<compile_context>
chip_gen: v7x
topology: tpu7x:2x2x1
jax: 0.10.0
libtpu: 0.0.40
codegen_flags: <defaults>
</compile_context>

<pallas_src>
import jax
import jax.numpy as jnp
from jax.experimental import pallas as pl
from jax.experimental.pallas import tpu as pltpu

BN_EPS = 1e-5
LEAKY = 0.2
# Low-precision storage for the pre-projected point features / second-conv
# weights (halves the dominant HBM traffic, bf16 MXU on v6e/v7x).  Set to
# jnp.float32 to recover exact f32 math.
LOWP = jnp.bfloat16

_P1 = pltpu.CompilerParams(dimension_semantics=("parallel",))
_P2 = pltpu.CompilerParams(dimension_semantics=("parallel", "parallel"))


def _leaky(x):
    return jnp.where(x >= 0, x, LEAKY * x)


# ----------------------------- Pallas kernels -----------------------------

def _pairwise_kernel(xr_ref, xf_ref, o_ref):
    # xr_ref: (1, tn, C) row tile; xf_ref: (1, N, C) full point set of batch b;
    # o_ref: (1, tn, N) NEGATIVE squared distance.
    xr = xr_ref[0]
    xf = xf_ref[0]
    inner = jax.lax.dot_general(xr, xf, (((1,), (1,)), ((), ())),
                                preferred_element_type=jnp.float32)
    r2 = jnp.sum(xr * xr, axis=-1, keepdims=True)        # (tn, 1)
    f2 = jnp.sum(xf * xf, axis=-1, keepdims=True)        # (N, 1)
    o_ref[0] = 2.0 * inner - r2 - f2.T


def _precompute_kernel(x_ref, w_ref, b_ref, o_ref):
    # Per-point pre-projection: (tile, C) @ (C, 128) + (1, 128) -> (tile, 128)
    # columns [:64]  = x @ (W1a * s1)                (gathered as neighbor term)
    # columns [64:]  = x @ ((W1b - W1a) * s1) + b1   (center term)
    h = jnp.dot(x_ref[...], w_ref[...], preferred_element_type=jnp.float32)
    o_ref[...] = (h + b_ref[...]).astype(o_ref.dtype)


def _edge_fused2_kernel(ynbr_ref, p_ref, w2_ref, s2_ref, b2_ref, o_ref):
    # MultiEdgeConvolution body: per-edge LeakyReLU(conv1) done as add of the
    # gathered neighbor term + center term, then conv2+BN+LeakyReLU, then
    # elementwise max over the k neighbors (VPU only, no relayout).
    K = ynbr_ref.shape[0]
    H = o_ref.shape[-1]
    yb = p_ref[...][:, H:].astype(jnp.float32)            # center term (tile, H)
    acc = None
    for j in range(K):                                     # small static unroll
        h = _leaky(ynbr_ref[j].astype(jnp.float32) + yb)
        g = jnp.dot(h.astype(w2_ref.dtype), w2_ref[...],
                    preferred_element_type=jnp.float32)
        g = _leaky(g * s2_ref[...] + b2_ref[...])
        acc = g if acc is None else jnp.maximum(acc, g)
    o_ref[...] = acc


def _edge_fused1_kernel(ynbr_ref, p_ref, o_ref):
    # EdgeConvolution body: the whole conv+BN is folded into the precompute,
    # so only add + LeakyReLU + max-over-k remains (pure VPU).
    K = ynbr_ref.shape[0]
    H = o_ref.shape[-1]
    yb = p_ref[...][:, H:].astype(jnp.float32)
    acc = None
    for j in range(K):
        h = _leaky(ynbr_ref[j].astype(jnp.float32) + yb)
        acc = h if acc is None else jnp.maximum(acc, h)
    o_ref[...] = acc


def _tail_kernel(x1_ref, x2_ref, x3_ref, x4_ref,
                 w1_ref, w2_ref, w3_ref, w4_ref, s_ref, b_ref, o_ref):
    # Tail Conv1d(256->128, k=1, no bias) + BN + LeakyReLU, fed directly from
    # the four 64-wide activations (no HBM concat); 128-lane dense output.
    h = jnp.dot(x1_ref[...], w1_ref[...], preferred_element_type=jnp.float32)
    h += jnp.dot(x2_ref[...], w2_ref[...], preferred_element_type=jnp.float32)
    h += jnp.dot(x3_ref[...], w3_ref[...], preferred_element_type=jnp.float32)
    h += jnp.dot(x4_ref[...], w4_ref[...], preferred_element_type=jnp.float32)
    o_ref[...] = _leaky(h * s_ref[...] + b_ref[...])


# ----------------------------- Pallas wrappers -----------------------------

def pairwise_neg_dist(x):
    B, N, C = x.shape
    if N >= 4096:
        tn = 256            # keep (tn, N) f32 output blocks within scoped VMEM
    elif N >= 512:
        tn = 512
    else:
        tn = N
    return pl.pallas_call(
        _pairwise_kernel,
        out_shape=jax.ShapeDtypeStruct((B, N, N), jnp.float32),
        grid=(B, pl.cdiv(N, tn)),
        in_specs=[
            pl.BlockSpec((1, tn, C), lambda b, i: (b, i, 0)),
            pl.BlockSpec((1, N, C), lambda b, i: (b, 0, 0)),
        ],
        out_specs=pl.BlockSpec((1, tn, N), lambda b, i: (b, i, 0)),
        compiler_params=_P2,
    )(x, x)


def precompute(x2d, w, b, tile):
    M, C = x2d.shape
    H2 = w.shape[1]                                         # 2*H = 128
    return pl.pallas_call(
        _precompute_kernel,
        out_shape=jax.ShapeDtypeStruct((M, H2), LOWP),
        grid=(pl.cdiv(M, tile),),
        in_specs=[
            pl.BlockSpec((tile, C), lambda i: (i, 0)),
            pl.BlockSpec((C, H2), lambda i: (0, 0)),
            pl.BlockSpec((1, H2), lambda i: (0, 0)),
        ],
        out_specs=pl.BlockSpec((tile, H2), lambda i: (i, 0)),
        compiler_params=_P1,
    )(x2d, w, b)


def edge_fused2(ynbr, p, w2, s2, b2, tile):
    K, M, H = ynbr.shape
    return pl.pallas_call(
        _edge_fused2_kernel,
        out_shape=jax.ShapeDtypeStruct((M, H), jnp.float32),
        grid=(pl.cdiv(M, tile),),
        in_specs=[
            pl.BlockSpec((K, tile, H), lambda i: (0, i, 0)),
            pl.BlockSpec((tile, 2 * H), lambda i: (i, 0)),
            pl.BlockSpec((H, H), lambda i: (0, 0)),
            pl.BlockSpec((1, H), lambda i: (0, 0)),
            pl.BlockSpec((1, H), lambda i: (0, 0)),
        ],
        out_specs=pl.BlockSpec((tile, H), lambda i: (i, 0)),
        compiler_params=_P1,
    )(ynbr, p, w2, s2, b2)


def edge_fused1(ynbr, p, tile):
    K, M, H = ynbr.shape
    return pl.pallas_call(
        _edge_fused1_kernel,
        out_shape=jax.ShapeDtypeStruct((M, H), jnp.float32),
        grid=(pl.cdiv(M, tile),),
        in_specs=[
            pl.BlockSpec((K, tile, H), lambda i: (0, i, 0)),
            pl.BlockSpec((tile, 2 * H), lambda i: (i, 0)),
        ],
        out_specs=pl.BlockSpec((tile, H), lambda i: (i, 0)),
        compiler_params=_P1,
    )(ynbr, p)


def tail_fused(xs, ws, s, b, tile):
    M, H = xs[0].shape
    Ho = ws[0].shape[1]
    return pl.pallas_call(
        _tail_kernel,
        out_shape=jax.ShapeDtypeStruct((M, Ho), jnp.float32),
        grid=(pl.cdiv(M, tile),),
        in_specs=(
            [pl.BlockSpec((tile, H), lambda i: (i, 0)) for _ in range(4)]
            + [pl.BlockSpec((H, Ho), lambda i: (0, 0)) for _ in range(4)]
            + [pl.BlockSpec((1, Ho), lambda i: (0, 0)),
               pl.BlockSpec((1, Ho), lambda i: (0, 0))]),
        out_specs=pl.BlockSpec((tile, Ho), lambda i: (i, 0)),
        compiler_params=_P1,
    )(*xs, *ws, s, b)


# ----------------------------- graph glue (JAX) -----------------------------

def knn_idx(x_bnc, k):
    # TODO(synk): top-k neighbor selection has no clean Pallas primitive; the
    # pairwise-distance matmul is a Pallas kernel, the selection stays in XLA.
    neg_dist = pairwise_neg_dist(x_bnc)
    return jax.lax.top_k(neg_dist, k)[1]                   # (B, N, k) int32


def gather_neighbors(p_bn, idx, h):
    # TODO(synk): the data-dependent row gather stays as an XLA gather (no
    # robust in-kernel vector gather); only the 64-wide neighbor half of the
    # pre-projected bf16 features is gathered, laid out (k, B*N, H) so the
    # fused kernel reads contiguous per-k slabs.
    B, N, _ = p_bn.shape
    k = idx.shape[-1]
    ynbr = jax.vmap(lambda pb, ib: pb[ib.T, :h], out_axes=1)(p_bn, idx)  # (k,B,N,H)
    return ynbr.reshape(k, B * N, h)


def multi_edge_conv(x_bnc, k, pre_w, pre_b, w2, s2, b2, tile):
    B, N, C = x_bnc.shape
    H = w2.shape[0]
    idx = knn_idx(x_bnc, k)
    p = precompute(x_bnc.reshape(B * N, C), pre_w, pre_b, tile)   # (M, 2H) bf16
    ynbr = gather_neighbors(p.reshape(B, N, 2 * H), idx, H)       # (k, M, H)
    out = edge_fused2(ynbr, p, w2, s2, b2, tile)                  # (M, H) f32
    return out.reshape(B, N, H)


def edge_conv(x_bnc, k, pre_w, pre_b, tile):
    B, N, C = x_bnc.shape
    H = pre_w.shape[1] // 2
    idx = knn_idx(x_bnc, k)
    p = precompute(x_bnc.reshape(B * N, C), pre_w, pre_b, tile)
    ynbr = gather_neighbors(p.reshape(B, N, 2 * H), idx, H)
    out = edge_fused1(ynbr, p, tile)
    return out.reshape(B, N, H)


# ----------------------------- parameters -----------------------------

def make_params(key):
    keys = jax.random.split(key, 14)

    def w(kk, shape, scale=0.05):
        return jax.random.normal(kk, shape, jnp.float32) * scale

    def bn(kk, c):
        k1, k2, k3, k4 = jax.random.split(kk, 4)
        return dict(gamma=1.0 + 0.1 * jax.random.normal(k1, (c,), jnp.float32),
                    beta=0.1 * jax.random.normal(k2, (c,), jnp.float32),
                    mean=0.1 * jax.random.normal(k3, (c,), jnp.float32),
                    var=1.0 + 0.1 * jax.random.uniform(k4, (c,), jnp.float32))

    return {
        # encoder.conv0: MultiEdgeConvolution(in=6, mlp=(64,64)) -> edge dim 12
        "c0_w1": w(keys[0], (12, 64)), "c0_bn1": bn(keys[1], 64),
        "c0_w2": w(keys[2], (64, 64)), "c0_bn2": bn(keys[3], 64),
        # encoder.conv1: MultiEdgeConvolution(in=64, mlp=(64,64)) -> edge dim 128
        "c1_w1": w(keys[4], (128, 64)), "c1_bn1": bn(keys[5], 64),
        "c1_w2": w(keys[6], (64, 64)), "c1_bn2": bn(keys[7], 64),
        # encoder.conv2/conv3: EdgeConvolution(in=64, out=64) -> edge dim 128
        "c2_w": w(keys[8], (128, 64)), "c2_bn": bn(keys[9], 64),
        "c3_w": w(keys[10], (128, 64)), "c3_bn": bn(keys[11], 64),
        # tail: Conv1d(256 -> 128, kernel=1, bias=False) + BN + LeakyReLU
        "tail_w": w(keys[12], (256, 128)), "tail_bn": bn(keys[13], 128),
    }


def _bn_fold(bn):
    s = bn["gamma"] / jnp.sqrt(bn["var"] + BN_EPS)          # inference-mode BN
    b = bn["beta"] - bn["mean"] * s
    return s, b


def _split_edge_weight(w1, bn1):
    # Exact algebraic split of the first edge conv:
    #   [x_j - x_i, x_i] @ w1 = x_j @ w1[:C] + x_i @ (w1[C:] - w1[:C])
    # BN scale folds into the columns; bias only into the center half.
    C = w1.shape[0] // 2
    H = w1.shape[1]
    s, b = _bn_fold(bn1)
    wa = w1[:C] * s[None, :]
    wd = (w1[C:] - w1[:C]) * s[None, :]
    pre_w = jnp.concatenate([wa, wd], axis=1)                       # (C, 2H)
    pre_b = jnp.concatenate([jnp.zeros((H,), jnp.float32), b])      # (2H,)
    return pre_w, pre_b.reshape(1, 2 * H)


def fold_params(p):
    f = {}
    f["c0_pre_w"], f["c0_pre_b"] = _split_edge_weight(p["c0_w1"], p["c0_bn1"])
    s, b = _bn_fold(p["c0_bn2"])
    f["c0_w2"], f["c0_s2"], f["c0_b2"] = (p["c0_w2"].astype(LOWP),
                                          s.reshape(1, -1), b.reshape(1, -1))
    f["c1_pre_w"], f["c1_pre_b"] = _split_edge_weight(p["c1_w1"], p["c1_bn1"])
    s, b = _bn_fold(p["c1_bn2"])
    f["c1_w2"], f["c1_s2"], f["c1_b2"] = (p["c1_w2"].astype(LOWP),
                                          s.reshape(1, -1), b.reshape(1, -1))
    f["c2_pre_w"], f["c2_pre_b"] = _split_edge_weight(p["c2_w"], p["c2_bn"])
    f["c3_pre_w"], f["c3_pre_b"] = _split_edge_weight(p["c3_w"], p["c3_bn"])
    st, bt = _bn_fold(p["tail_bn"])
    f["tail_w"] = tuple(p["tail_w"][i * 64:(i + 1) * 64] for i in range(4))
    f["tail_s"], f["tail_b"] = st.reshape(1, -1), bt.reshape(1, -1)
    return f


# ----------------------------- model forward -----------------------------

def model_forward(params, x_bcn, k=8, tile=512):
    # x_bcn: PyTorch-style (B, 6, N); returns (B, 128, N)
    x = jnp.transpose(x_bcn, (0, 2, 1)).astype(jnp.float32)        # (B, N, 6)
    B, N, _ = x.shape
    M = B * N
    tile = tile if M >= tile else M                                 # full-extent block when small
    f = params

    x1 = multi_edge_conv(x, k, f["c0_pre_w"], f["c0_pre_b"],
                         f["c0_w2"], f["c0_s2"], f["c0_b2"], tile)   # (B, N, 64)
    x2 = multi_edge_conv(x1, k, f["c1_pre_w"], f["c1_pre_b"],
                         f["c1_w2"], f["c1_s2"], f["c1_b2"], tile)   # (B, N, 64)
    x3 = edge_conv(x2, k, f["c2_pre_w"], f["c2_pre_b"], tile)        # (B, N, 64)
    x4 = edge_conv(x3, k, f["c3_pre_w"], f["c3_pre_b"], tile)        # (B, N, 64)

    xs = [a.reshape(M, 64) for a in (x1, x2, x3, x4)]
    out = tail_fused(xs, list(f["tail_w"]), f["tail_s"], f["tail_b"], tile)
    return jnp.transpose(out.reshape(B, N, 128), (0, 2, 1))          # (B, 128, N)


if __name__ == "__main__":
    B, C_IN, N, K = 2, 6, 64, 8   # small shapes; Model(k=K) applied to N points
    key = jax.random.PRNGKey(0)
    pkey, xkey = jax.random.split(key)

    params = fold_params(make_params(pkey))
    x = jax.random.normal(xkey, (B, C_IN, N), jnp.float32)

    fwd = jax.jit(lambda p, xx: model_forward(p, xx, k=K))
    out = fwd(params, x)
    jax.block_until_ready(out)

    assert out.shape == (B, 128, N), out.shape
    assert bool(jnp.all(jnp.isfinite(out)))
    print("KERNEL_OK")
</pallas_src>

<mosaic_0001>
module attributes {stable_mosaic.version = 11 : i64} {
  func.func @_pairwise_kernel(%arg0: i32, %arg1: i32, %arg2: memref<1x64x6xf32, #tpu.memory_space<vmem>>, %arg3: memref<1x64x6xf32, #tpu.memory_space<vmem>>, %arg4: memref<1x64x64xf32, #tpu.memory_space<vmem>>) attributes {dimension_semantics = [#tpu.dimension_semantics<parallel>, #tpu.dimension_semantics<parallel>], iteration_bounds = array<i64: 2, 1>, scalar_prefetch = 0 : i64, scratch_operands = 0 : i64, tpu.core_type = #tpu.core_type<tc>, window_params = [{transform_indices = @transform_0, window_bounds = array<i64: 1, 64, 6>}, {transform_indices = @transform_1, window_bounds = array<i64: 1, 64, 6>}, {transform_indices = @transform_2, window_bounds = array<i64: 1, 64, 64>}]} {
    %c0 = arith.constant 0 : index
    %c0_0 = arith.constant 0 : index
    %c0_1 = arith.constant 0 : index
    %0 = vector.load %arg2[%c0, %c0_0, %c0_1] : memref<1x64x6xf32, #tpu.memory_space<vmem>>, vector<1x64x6xf32>
    %1 = vector.shape_cast %0 : vector<1x64x6xf32> to vector<64x6xf32>
    %c0_2 = arith.constant 0 : index
    %c0_3 = arith.constant 0 : index
    %c0_4 = arith.constant 0 : index
    %2 = vector.load %arg3[%c0_2, %c0_3, %c0_4] : memref<1x64x6xf32, #tpu.memory_space<vmem>>, vector<1x64x6xf32>
    %3 = vector.shape_cast %2 : vector<1x64x6xf32> to vector<64x6xf32>
    %cst = arith.constant dense<0.000000e+00> : vector<64x64xf32>
    %4 = tpu.matmul %1, %3, %cst {dimension_numbers = #tpu.dot_dimension_numbers<[1], [1], [0], [0], [0, 0, 1, 0], [], []>} : vector<64x6xf32>, vector<64x6xf32>, vector<64x64xf32> -> vector<64x64xf32>
    %5 = arith.mulf %1, %1 : vector<64x6xf32>
    %cst_5 = arith.constant dense<0.000000e+00> : vector<64xf32>
    %6 = vector.multi_reduction <add>, %5, %cst_5 [1] : vector<64x6xf32> to vector<64xf32>
    %7 = vector.shape_cast %6 : vector<64xf32> to vector<64x1xf32>
    %8 = arith.mulf %3, %3 : vector<64x6xf32>
    %cst_6 = arith.constant dense<0.000000e+00> : vector<64xf32>
    %9 = vector.multi_reduction <add>, %8, %cst_6 [1] : vector<64x6xf32> to vector<64xf32>
    %10 = vector.shape_cast %9 : vector<64xf32> to vector<64x1xf32>
    %cst_7 = arith.constant 2.000000e+00 : f32
    %11 = vector.broadcast %cst_7 : f32 to vector<64x64xf32>
    %12 = arith.mulf %11, %4 : vector<64x64xf32>
    %13 = vector.broadcast %7 : vector<64x1xf32> to vector<64x64xf32>
    %14 = arith.subf %12, %13 : vector<64x64xf32>
    %15 = tpu.transpose %10, [1, 0] : vector<64x1xf32> -> vector<1x64xf32>
    %16 = vector.broadcast %15 : vector<1x64xf32> to vector<64x64xf32>
    %17 = arith.subf %14, %16 : vector<64x64xf32>
    %c0_8 = arith.constant 0 : index
    %c0_9 = arith.constant 0 : index
    %c0_10 = arith.constant 0 : index
    %18 = vector.load %arg4[%c0_8, %c0_9, %c0_10] : memref<1x64x64xf32, #tpu.memory_space<vmem>>, vector<1x64x64xf32>
    %19 = vector.shape_cast %18 : vector<1x64x64xf32> to vector<64x64xf32>
    %20 = vector.shape_cast %17 : vector<64x64xf32> to vector<1x64x64xf32>
    tpu.vector_store %arg4[%c0_8, %c0_9, %c0_10], %20 {strides = array<i32>} : memref<1x64x64xf32, #tpu.memory_space<vmem>>, vector<1x64x64xf32>,
    return
  }
  func.func @transform_0(%arg0: i32, %arg1: i32) -> (i32, i32, i32) {
    %c0_i32 = arith.constant 0 : i32
    %c0_i32_0 = arith.constant 0 : i32
    return %arg0, %arg1, %c0_i32 : i32, i32, i32
  }
  func.func @transform_1(%arg0: i32, %arg1: i32) -> (i32, i32, i32) {
    %c0_i32 = arith.constant 0 : i32
    %c0_i32_0 = arith.constant 0 : i32
    %c0_i32_1 = arith.constant 0 : i32
    return %arg0, %c0_i32, %c0_i32_0 : i32, i32, i32
  }
  func.func @transform_2(%arg0: i32, %arg1: i32) -> (i32, i32, i32) {
    %c0_i32 = arith.constant 0 : i32
    %c0_i32_0 = arith.constant 0 : i32
    return %arg0, %arg1, %c0_i32 : i32, i32, i32
  }
}

module attributes {stable_mosaic.version = 11 : i64} {
  func.func @_precompute_kernel(%arg0: i32, %arg1: memref<128x6xf32, #tpu.memory_space<vmem>>, %arg2: memref<6x128xf32, #tpu.memory_space<vmem>>, %arg3: memref<1x128xf32, #tpu.memory_space<vmem>>, %arg4: memref<128x128xbf16, #tpu.memory_space<vmem>>) attributes {dimension_semantics = [#tpu.dimension_semantics<parallel>], iteration_bounds = array<i64: 1>, scalar_prefetch = 0 : i64, scratch_operands = 0 : i64, tpu.core_type = #tpu.core_type<tc>, window_params = [{transform_indices = @transform_0, window_bounds = array<i64: 128, 6>}, {pipeline_mode = #tpu.pipeline_mode<synchronous>, transform_indices = @transform_1, window_bounds = array<i64: 6, 128>}, {pipeline_mode = #tpu.pipeline_mode<synchronous>, transform_indices = @transform_2, window_bounds = array<i64: 1, 128>}, {transform_indices = @transform_3, window_bounds = array<i64: 128, 128>}]} {
    %c0 = arith.constant 0 : index
    %c0_0 = arith.constant 0 : index
    %0 = vector.load %arg1[%c0, %c0_0] : memref<128x6xf32, #tpu.memory_space<vmem>>, vector<128x6xf32>
    %c0_1 = arith.constant 0 : index
    %c0_2 = arith.constant 0 : index
    %1 = vector.load %arg2[%c0_1, %c0_2] : memref<6x128xf32, #tpu.memory_space<vmem>>, vector<6x128xf32>
    %cst = arith.constant dense<0.000000e+00> : vector<128x128xf32>
    %2 = tpu.matmul %0, %1, %cst {dimension_numbers = #tpu.dot_dimension_numbers<[1], [0], [0], [1], [0, 0, 1, 1], [], []>} : vector<128x6xf32>, vector<6x128xf32>, vector<128x128xf32> -> vector<128x128xf32>
    %c0_3 = arith.constant 0 : index
    %c0_4 = arith.constant 0 : index
    %3 = vector.load %arg3[%c0_3, %c0_4] : memref<1x128xf32, #tpu.memory_space<vmem>>, vector<1x128xf32>
    %4 = vector.broadcast %3 : vector<1x128xf32> to vector<128x128xf32>
    %5 = arith.addf %2, %4 : vector<128x128xf32>
    %6 = arith.truncf %5 : vector<128x128xf32> to vector<128x128xbf16>
    %c0_5 = arith.constant 0 : index
    %c0_6 = arith.constant 0 : index
    %7 = vector.load %arg4[%c0_5, %c0_6] : memref<128x128xbf16, #tpu.memory_space<vmem>>, vector<128x128xbf16>
    tpu.vector_store %arg4[%c0_5, %c0_6], %6 {strides = array<i32>} : memref<128x128xbf16, #tpu.memory_space<vmem>>, vector<128x128xbf16>,
    return
  }
  func.func @transform_0(%arg0: i32) -> (i32, i32) {
    %c0_i32 = arith.constant 0 : i32
    %c0_i32_0 = arith.constant 0 : i32
    return %arg0, %c0_i32 : i32, i32
  }
  func.func @transform_1(%arg0: i32) -> (i32, i32) {
    %c0_i32 = arith.constant 0 : i32
    %c0_i32_0 = arith.constant 0 : i32
    %c0_i32_1 = arith.constant 0 : i32
    return %c0_i32, %c0_i32_0 : i32, i32
  }
  func.func @transform_2(%arg0: i32) -> (i32, i32) {
    %c0_i32 = arith.constant 0 : i32
    %c0_i32_0 = arith.constant 0 : i32
    %c0_i32_1 = arith.constant 0 : i32
    return %c0_i32, %c0_i32_0 : i32, i32
  }
  func.func @transform_3(%arg0: i32) -> (i32, i32) {
    %c0_i32 = arith.constant 0 : i32
    %c0_i32_0 = arith.constant 0 : i32
    return %arg0, %c0_i32 : i32, i32
  }
}

module attributes {stable_mosaic.version = 11 : i64} {
  func.func @_pairwise_kernel(%arg0: i32, %arg1: i32, %arg2: memref<1x64x64xf32, #tpu.memory_space<vmem>>, %arg3: memref<1x64x64xf32, #tpu.memory_space<vmem>>, %arg4: memref<1x64x64xf32, #tpu.memory_space<vmem>>) attributes {dimension_semantics = [#tpu.dimension_semantics<parallel>, #tpu.dimension_semantics<parallel>], iteration_bounds = array<i64: 2, 1>, scalar_prefetch = 0 : i64, scratch_operands = 0 : i64, tpu.core_type = #tpu.core_type<tc>, window_params = [{transform_indices = @transform_0, window_bounds = array<i64: 1, 64, 64>}, {transform_indices = @transform_1, window_bounds = array<i64: 1, 64, 64>}, {transform_indices = @transform_2, window_bounds = array<i64: 1, 64, 64>}]} {
    %c0 = arith.constant 0 : index
    %c0_0 = arith.constant 0 : index
    %c0_1 = arith.constant 0 : index
    %0 = vector.load %arg2[%c0, %c0_0, %c0_1] : memref<1x64x64xf32, #tpu.memory_space<vmem>>, vector<1x64x64xf32>
    %1 = vector.shape_cast %0 : vector<1x64x64xf32> to vector<64x64xf32>
    %c0_2 = arith.constant 0 : index
    %c0_3 = arith.constant 0 : index
    %c0_4 = arith.constant 0 : index
    %2 = vector.load %arg3[%c0_2, %c0_3, %c0_4] : memref<1x64x64xf32, #tpu.memory_space<vmem>>, vector<1x64x64xf32>
    %3 = vector.shape_cast %2 : vector<1x64x64xf32> to vector<64x64xf32>
    %cst = arith.constant dense<0.000000e+00> : vector<64x64xf32>
    %4 = tpu.matmul %1, %3, %cst {dimension_numbers = #tpu.dot_dimension_numbers<[1], [1], [0], [0], [0, 0, 1, 0], [], []>} : vector<64x64xf32>, vector<64x64xf32>, vector<64x64xf32> -> vector<64x64xf32>
    %5 = arith.mulf %1, %1 : vector<64x64xf32>
    %cst_5 = arith.constant dense<0.000000e+00> : vector<64xf32>
    %6 = vector.multi_reduction <add>, %5, %cst_5 [1] : vector<64x64xf32> to vector<64xf32>
    %7 = vector.shape_cast %6 : vector<64xf32> to vector<64x1xf32>
    %8 = arith.mulf %3, %3 : vector<64x64xf32>
    %cst_6 = arith.constant dense<0.000000e+00> : vector<64xf32>
    %9 = vector.multi_reduction <add>, %8, %cst_6 [1] : vector<64x64xf32> to vector<64xf32>
    %10 = vector.shape_cast %9 : vector<64xf32> to vector<64x1xf32>
    %cst_7 = arith.constant 2.000000e+00 : f32
    %11 = vector.broadcast %cst_7 : f32 to vector<64x64xf32>
    %12 = arith.mulf %11, %4 : vector<64x64xf32>
    %13 = vector.broadcast %7 : vector<64x1xf32> to vector<64x64xf32>
    %14 = arith.subf %12, %13 : vector<64x64xf32>
    %15 = tpu.transpose %10, [1, 0] : vector<64x1xf32> -> vector<1x64xf32>
    %16 = vector.broadcast %15 : vector<1x64xf32> to vector<64x64xf32>
    %17 = arith.subf %14, %16 : vector<64x64xf32>
    %c0_8 = arith.constant 0 : index
    %c0_9 = arith.constant 0 : index
    %c0_10 = arith.constant 0 : index
    %18 = vector.load %arg4[%c0_8, %c0_9, %c0_10] : memref<1x64x64xf32, #tpu.memory_space<vmem>>, vector<1x64x64xf32>
    %19 = vector.shape_cast %18 : vector<1x64x64xf32> to vector<64x64xf32>
    %20 = vector.shape_cast %17 : vector<64x64xf32> to vector<1x64x64xf32>
    tpu.vector_store %arg4[%c0_8, %c0_9, %c0_10], %20 {strides = array<i32>} : memref<1x64x64xf32, #tpu.memory_space<vmem>>, vector<1x64x64xf32>,
    return
  }
  func.func @transform_0(%arg0: i32, %arg1: i32) -> (i32, i32, i32) {
    %c0_i32 = arith.constant 0 : i32
    %c0_i32_0 = arith.constant 0 : i32
    return %arg0, %arg1, %c0_i32 : i32, i32, i32
  }
  func.func @transform_1(%arg0: i32, %arg1: i32) -> (i32, i32, i32) {
    %c0_i32 = arith.constant 0 : i32
    %c0_i32_0 = arith.constant 0 : i32
    %c0_i32_1 = arith.constant 0 : i32
    return %arg0, %c0_i32, %c0_i32_0 : i32, i32, i32
  }
  func.func @transform_2(%arg0: i32, %arg1: i32) -> (i32, i32, i32) {
    %c0_i32 = arith.constant 0 : i32
    %c0_i32_0 = arith.constant 0 : i32
    return %arg0, %arg1, %c0_i32 : i32, i32, i32
  }
}

module attributes {stable_mosaic.version = 11 : i64} {
  func.func @_edge_fused2_kernel(%arg0: i32, %arg1: memref<8x128x64xbf16, #tpu.memory_space<vmem>>, %arg2: memref<128x128xbf16, #tpu.memory_space<vmem>>, %arg3: memref<64x64xbf16, #tpu.memory_space<vmem>>, %arg4: memref<1x64xf32, #tpu.memory_space<vmem>>, %arg5: memref<1x64xf32, #tpu.memory_space<vmem>>, %arg6: memref<128x64xf32, #tpu.memory_space<vmem>>) attributes {dimension_semantics = [#tpu.dimension_semantics<parallel>], iteration_bounds = array<i64: 1>, scalar_prefetch = 0 : i64, scratch_operands = 0 : i64, tpu.core_type = #tpu.core_type<tc>, window_params = [{transform_indices = @transform_0, window_bounds = array<i64: 8, 128, 64>}, {transform_indices = @transform_1, window_bounds = array<i64: 128, 128>}, {pipeline_mode = #tpu.pipeline_mode<synchronous>, transform_indices = @transform_2, window_bounds = array<i64: 64, 64>}, {pipeline_mode = #tpu.pipeline_mode<synchronous>, transform_indices = @transform_3, window_bounds = array<i64: 1, 64>}, {pipeline_mode = #tpu.pipeline_mode<synchronous>, transform_indices = @transform_4, window_bounds = array<i64: 1, 64>}, {transform_indices = @transform_5, window_bounds = array<i64: 128, 64>}]} {
    %c0 = arith.constant 0 : index
    %c0_0 = arith.constant 0 : index
    %0 = vector.load %arg2[%c0, %c0_0] : memref<128x128xbf16, #tpu.memory_space<vmem>>, vector<128x128xbf16>
    %1 = vector.extract_strided_slice %0 {offsets = [0, 64], sizes = [128, 64], strides = [1, 1]} : vector<128x128xbf16> to vector<128x64xbf16>
    %2 = arith.extf %1 : vector<128x64xbf16> to vector<128x64xf32>
    %c0_1 = arith.constant 0 : index
    %c0_2 = arith.constant 0 : index
    %c0_3 = arith.constant 0 : index
    %3 = vector.load %arg1[%c0_1, %c0_2, %c0_3] : memref<8x128x64xbf16, #tpu.memory_space<vmem>>, vector<1x128x64xbf16>
    %4 = vector.shape_cast %3 : vector<1x128x64xbf16> to vector<128x64xbf16>
    %5 = arith.extf %4 : vector<128x64xbf16> to vector<128x64xf32>
    %6 = arith.addf %5, %2 : vector<128x64xf32>
    %cst = arith.constant 0.000000e+00 : f32
    %7 = vector.broadcast %cst : f32 to vector<128x64xf32>
    %8 = arith.cmpf oge, %6, %7 : vector<128x64xf32>
    %cst_4 = arith.constant 2.000000e-01 : f32
    %9 = vector.broadcast %cst_4 : f32 to vector<128x64xf32>
    %10 = arith.mulf %9, %6 : vector<128x64xf32>
    %11 = arith.select %8, %6, %10 : vector<128x64xi1>, vector<128x64xf32>
    %12 = arith.truncf %11 : vector<128x64xf32> to vector<128x64xbf16>
    %c0_5 = arith.constant 0 : index
    %c0_6 = arith.constant 0 : index
    %13 = vector.load %arg3[%c0_5, %c0_6] : memref<64x64xbf16, #tpu.memory_space<vmem>>, vector<64x64xbf16>
    %cst_7 = arith.constant dense<0.000000e+00> : vector<128x64xf32>
    %14 = tpu.matmul %12, %13, %cst_7 {dimension_numbers = #tpu.dot_dimension_numbers<[1], [0], [0], [1], [0, 0, 1, 1], [], []>} : vector<128x64xbf16>, vector<64x64xbf16>, vector<128x64xf32> -> vector<128x64xf32>
    %c0_8 = arith.constant 0 : index
    %c0_9 = arith.constant 0 : index
    %15 = vector.load %arg4[%c0_8, %c0_9] : memref<1x64xf32, #tpu.memory_space<vmem>>, vector<1x64xf32>
    %16 = vector.broadcast %15 : vector<1x64xf32> to vector<128x64xf32>
    %17 = arith.mulf %14, %16 : vector<128x64xf32>
    %c0_10 = arith.constant 0 : index
    %c0_11 = arith.constant 0 : index
    %18 = vector.load %arg5[%c0_10, %c0_11] : memref<1x64xf32, #tpu.memory_space<vmem>>, vector<1x64xf32>
    %19 = vector.broadcast %18 : vector<1x64xf32> to vector<128x64xf32>
    %20 = arith.addf %17, %19 : vector<128x64xf32>
    %cst_12 = arith.constant 0.000000e+00 : f32
    %21 = vector.broadcast %cst_12 : f32 to vector<128x64xf32>
    %22 = arith.cmpf oge, %20, %21 : vector<128x64xf32>
    %cst_13 = arith.constant 2.000000e-01 : f32
    %23 = vector.broadcast %cst_13 : f32 to vector<128x64xf32>
    %24 = arith.mulf %23, %20 : vector<128x64xf32>
    %25 = arith.select %22, %20, %24 : vector<128x64xi1>, vector<128x64xf32>
    %c1 = arith.constant 1 : index
    %c0_14 = arith.constant 0 : index
    %c0_15 = arith.constant 0 : index
    %26 = vector.load %arg1[%c1, %c0_14, %c0_15] : memref<8x128x64xbf16, #tpu.memory_space<vmem>>, vector<1x128x64xbf16>
    %27 = vector.shape_cast %26 : vector<1x128x64xbf16> to vector<128x64xbf16>
    %28 = arith.extf %27 : vector<128x64xbf16> to vector<128x64xf32>
    %29 = arith.addf %28, %2 : vector<128x64xf32>
    %cst_16 = arith.constant 0.000000e+00 : f32
    %30 = vector.broadcast %cst_16 : f32 to vector<128x64xf32>
    %31 = arith.cmpf oge, %29, %30 : vector<128x64xf32>
    %cst_17 = arith.constant 2.000000e-01 : f32
    %32 = vector.broadcast %cst_17 : f32 to vector<128x64xf32>
    %33 = arith.mulf %32, %29 : vector<128x64xf32>
    %34 = arith.select %31, %29, %33 : vector<128x64xi1>, vector<128x64xf32>
    %35 = arith.truncf %34 : vector<128x64xf32> to vector<128x64xbf16>
    %c0_18 = arith.constant 0 : index
    %c0_19 = arith.constant 0 : index
    %36 = vector.load %arg3[%c0_18, %c0_19] : memref<64x64xbf16, #tpu.memory_space<vmem>>, vector<64x64xbf16>
    %cst_20 = arith.constant dense<0.000000e+00> : vector<128x64xf32>
    %37 = tpu.matmul %35, %36, %cst_20 {dimension_numbers = #tpu.dot_dimension_numbers<[1], [0], [0], [1], [0, 0, 1, 1], [], []>} : vector<128x64xbf16>, vector<64x64xbf16>, vector<128x64xf32> -> vector<128x64xf32>
    %c0_21 = arith.constant 0 : index
    %c0_22 = arith.constant 0 : index
    %38 = vector.load %arg4[%c0_21, %c0_22] : memref<1x64xf32, #tpu.memory_space<vmem>>, vector<1x64xf32>
    %39 = vector.broadcast %38 : vector<1x64xf32> to vector<128x64xf32>
    %40 = arith.mulf %37, %39 : vector<128x64xf32>
    %c0_23 = arith.constant 0 : index
    %c0_24 = arith.constant 0 : index
    %41 = vector.load %arg5[%c0_23, %c0_24] : memref<1x64xf32, #tpu.memory_space<vmem>>, vector<1x64xf32>
    %42 = vector.broadcast %41 : vector<1x64xf32> to vector<128x64xf32>
    %43 = arith.addf %40, %42 : vector<128x64xf32>
    %cst_25 = arith.constant 0.000000e+00 : f32
    %44 = vector.broadcast %cst_25 : f32 to vector<128x64xf32>
    %45 = arith.cmpf oge, %43, %44 : vector<128x64xf32>
    %cst_26 = arith.constant 2.000000e-01 : f32
    %46 = vector.broadcast %cst_26 : f32 to vector<128x64xf32>
    %47 = arith.mulf %46, %43 : vector<128x64xf32>
    %48 = arith.select %45, %43, %47 : vector<128x64xi1>, vector<128x64xf32>
    %49 = arith.maximumf %25, %48 : vector<128x64xf32>
    %c2 = arith.constant 2 : index
    %c0_27 = arith.constant 0 : index
    %c0_28 = arith.constant 0 : index
    %50 = vector.load %arg1[%c2, %c0_27, %c0_28] : memref<8x128x64xbf16, #tpu.memory_space<vmem>>, vector<1x128x64xbf16>
    %51 = vector.shape_cast %50 : vector<1x128x64xbf16> to vector<128x64xbf16>
    %52 = arith.extf %51 : vector<128x64xbf16> to vector<128x64xf32>
    %53 = arith.addf %52, %2 : vector<128x64xf32>
    %cst_29 = arith.constant 0.000000e+00 : f32
    %54 = vector.broadcast %cst_29 : f32 to vector<128x64xf32>
    %55 = arith.cmpf oge, %53, %54 : vector<128x64xf32>
    %cst_30 = arith.constant 2.000000e-01 : f32
    %56 = vector.broadcast %cst_30 : f32 to vector<128x64xf32>
    %57 = arith.mulf %56, %53 : vector<128x64xf32>
    %58 = arith.select %55, %53, %57 : vector<128x64xi1>, vector<128x64xf32>
    %59 = arith.truncf %58 : vector<128x64xf32> to vector<128x64xbf16>
    %c0_31 = arith.constant 0 : index
    %c0_32 = arith.constant 0 : index
    %60 = vector.load %arg3[%c0_31, %c0_32] : memref<64x64xbf16, #tpu.memory_space<vmem>>, vector<64x64xbf16>
    %cst_33 = arith.constant dense<0.000000e+00> : vector<128x64xf32>
    %61 = tpu.matmul %59, %60, %cst_33 {dimension_numbers = #tpu.dot_dimension_numbers<[1], [0], [0], [1], [0, 0, 1, 1], [], []>} : vector<128x64xbf16>, vector<64x64xbf16>, vector<128x64xf32> -> vector<128x64xf32>
    %c0_34 = arith.constant 0 : index
    %c0_35 = arith.constant 0 : index
    %62 = vector.load %arg4[%c0_34, %c0_35] : memref<1x64xf32, #tpu.memory_space<vmem>>, vector<1x64xf32>
    %63 = vector.broadcast %62 : vector<1x64xf32> to vector<128x64xf32>
    %64 = arith.mulf %61, %63 : vector<128x64xf32>
    %c0_36 = arith.constant 0 : index
    %c0_37 = arith.constant 0 : index
    %65 = vector.load %arg5[%c0_36, %c0_37] : memref<1x64xf32, #tpu.memory_space<vmem>>, vector<1x64xf32>
    %66 = vector.broadcast %65 : vector<1x64xf32> to vector<128x64xf32>
    %67 = arith.addf %64, %66 : vector<128x64xf32>
    %cst_38 = arith.constant 0.000000e+00 : f32
    %68 = vector.broadcast %cst_38 : f32 to vector<128x64xf32>
    %69 = arith.cmpf oge, %67, %68 : vector<128x64xf32>
    %cst_39 = arith.constant 2.000000e-01 : f32
    %70 = vector.broadcast %cst_39 : f32 to vector<128x64xf32>
    %71 = arith.mulf %70, %67 : vector<128x64xf32>
    %72 = arith.select %69, %67, %71 : vector<128x64xi1>, vector<128x64xf32>
    %73 = arith.maximumf %49, %72 : vector<128x64xf32>
    %c3 = arith.constant 3 : index
    %c0_40 = arith.constant 0 : index
    %c0_41 = arith.constant 0 : index
    %74 = vector.load %arg1[%c3, %c0_40, %c0_41] : memref<8x128x64xbf16, #tpu.memory_space<vmem>>, vector<1x128x64xbf16>
    %75 = vector.shape_cast %74 : vector<1x128x64xbf16> to vector<128x64xbf16>
    %76 = arith.extf %75 : vector<128x64xbf16> to vector<128x64xf32>
    %77 = arith.addf %76, %2 : vector<128x64xf32>
    %cst_42 = arith.constant 0.000000e+00 : f32
    %78 = vector.broadcast %cst_42 : f32 to vector<128x64xf32>
    %79 = arith.cmpf oge, %77, %78 : vector<128x64xf32>
    %cst_43 = arith.constant 2.000000e-01 : f32
    %80 = vector.broadcast %cst_43 : f32 to vector<128x64xf32>
    %81 = arith.mulf %80, %77 : vector<128x64xf32>
    %82 = arith.select %79, %77, %81 : vector<128x64xi1>, vector<128x64xf32>
    %83 = arith.truncf %82 : vector<128x64xf32> to vector<128x64xbf16>
    %c0_44 = arith.constant 0 : index
    %c0_45 = arith.constant 0 : index
    %84 = vector.load %arg3[%c0_44, %c0_45] : memref<64x64xbf16, #tpu.memory_space<vmem>>, vector<64x64xbf16>
    %cst_46 = arith.constant dense<0.000000e+00> : vector<128x64xf32>
    %85 = tpu.matmul %83, %84, %cst_46 {dimension_numbers = #tpu.dot_dimension_numbers<[1], [0], [0], [1], [0, 0, 1, 1], [], []>} : vector<128x64xbf16>, vector<64x64xbf16>, vector<128x64xf32> -> vector<128x64xf32>
    %c0_47 = arith.constant 0 : index
    %c0_48 = arith.constant 0 : index
    %86 = vector.load %arg4[%c0_47, %c0_48] : memref<1x64xf32, #tpu.memory_space<vmem>>, vector<1x64xf32>
    %87 = vector.broadcast %86 : vector<1x64xf32> to vector<128x64xf32>
    %88 = arith.mulf %85, %87 : vector<128x64xf32>
    %c0_49 = arith.constant 0 : index
    %c0_50 = arith.constant 0 : index
    %89 = vector.load %arg5[%c0_49, %c0_50] : memref<1x64xf32, #tpu.memory_space<vmem>>, vector<1x64xf32>
    %90 = vector.broadcast %89 : vector<1x64xf32> to vector<128x64xf32>
    %91 = arith.addf %88, %90 : vector<128x64xf32>
    %cst_51 = arith.constant 0.000000e+00 : f32
    %92 = vector.broadcast %cst_51 : f32 to vector<128x64xf32>
    %93 = arith.cmpf oge, %91, %92 : vector<128x64xf32>
    %cst_52 = arith.constant 2.000000e-01 : f32
    %94 = vector.broadcast %cst_52 : f32 to vector<128x64xf32>
    %95 = arith.mulf %94, %91 : vector<128x64xf32>
    %96 = arith.select %93, %91, %95 : vector<128x64xi1>, vector<128x64xf32>
    %97 = arith.maximumf %73, %96 : vector<128x64xf32>
    %c4 = arith.constant 4 : index
    %c0_53 = arith.constant 0 : index
    %c0_54 = arith.constant 0 : index
    %98 = vector.load %arg1[%c4, %c0_53, %c0_54] : memref<8x128x64xbf16, #tpu.memory_space<vmem>>, vector<1x128x64xbf16>
    %99 = vector.shape_cast %98 : vector<1x128x64xbf16> to vector<128x64xbf16>
    %100 = arith.extf %99 : vector<128x64xbf16> to vector<128x64xf32>
    %101 = arith.addf %100, %2 : vector<128x64xf32>
    %cst_55 = arith.constant 0.000000e+00 : f32
    %102 = vector.broadcast %cst_55 : f32 to vector<128x64xf32>
    %103 = arith.cmpf oge, %101, %102 : vector<128x64xf32>
    %cst_56 = arith.constant 2.000000e-01 : f32
    %104 = vector.broadcast %cst_56 : f32 to vector<128x64xf32>
    %105 = arith.mulf %104, %101 : vector<128x64xf32>
    %106 = arith.select %103, %101, %105 : vector<128x64xi1>, vector<128x64xf32>
    %107 = arith.truncf %106 : vector<128x64xf32> to vector<128x64xbf16>
    %c0_57 = arith.constant 0 : index
    %c0_58 = arith.constant 0 : index
    %108 = vector.load %arg3[%c0_57, %c0_58] : memref<64x64xbf16, #tpu.memory_space<vmem>>, vector<64x64xbf16>
    %cst_59 = arith.constant dense<0.000000e+00> : vector<128x64xf32>
    %109 = tpu.matmul %107, %108, %cst_59 {dimension_numbers = #tpu.dot_dimension_numbers<[1], [0], [0], [1], [0, 0, 1, 1], [], []>} : vector<128x64xbf16>, vector<64x64xbf16>, vector<128x64xf32> -> vector<128x64xf32>
    %c0_60 = arith.constant 0 : index
    %c0_61 = arith.constant 0 : index
    %110 = vector.load %arg4[%c0_60, %c0_61] : memref<1x64xf32, #tpu.memory_space<vmem>>, vector<1x64xf32>
    %111 = vector.broadcast %110 : vector<1x64xf32> to vector<128x64xf32>
    %112 = arith.mulf %109, %111 : vector<128x64xf32>
    %c0_62 = arith.constant 0 : index
    %c0_63 = arith.constant 0 : index
    %113 = vector.load %arg5[%c0_62, %c0_63] : memref<1x64xf32, #tpu.memory_space<vmem>>, vector<1x64xf32>
    %114 = vector.broadcast %113 : vector<1x64xf32> to vector<128x64xf32>
    %115 = arith.addf %112, %114 : vector<128x64xf32>
    %cst_64 = arith.constant 0.000000e+00 : f32
    %116 = vector.broadcast %cst_64 : f32 to vector<128x64xf32>
    %117 = arith.cmpf oge, %115, %116 : vector<128x64xf32>
    %cst_65 = arith.constant 2.000000e-01 : f32
    %118 = vector.broadcast %cst_65 : f32 to vector<128x64xf32>
    %119 = arith.mulf %118, %115 : vector<128x64xf32>
    %120 = arith.select %117, %115, %119 : vector<128x64xi1>, vector<128x64xf32>
    %121 = arith.maximumf %97, %120 : vector<128x64xf32>
    %c5 = arith.constant 5 : index
    %c0_66 = arith.constant 0 : index
    %c0_67 = arith.constant 0 : index
    %122 = vector.load %arg1[%c5, %c0_66, %c0_67] : memref<8x128x64xbf16, #tpu.memory_space<vmem>>, vector<1x128x64xbf16>
    %123 = vector.shape_cast %122 : vector<1x128x64xbf16> to vector<128x64xbf16>
    %124 = arith.extf %123 : vector<128x64xbf16> to vector<128x64xf32>
    %125 = arith.addf %124, %2 : vector<128x64xf32>
    %cst_68 = arith.constant 0.000000e+00 : f32
    %126 = vector.broadcast %cst_68 : f32 to vector<128x64xf32>
    %127 = arith.cmpf oge, %125, %126 : vector<128x64xf32>
    %cst_69 = arith.constant 2.000000e-01 : f32
    %128 = vector.broadcast %cst_69 : f32 to vector<128x64xf32>
    %129 = arith.mulf %128, %125 : vector<128x64xf32>
    %130 = arith.select %127, %125, %129 : vector<128x64xi1>, vector<128x64xf32>
    %131 = arith.truncf %130 : vector<128x64xf32> to vector<128x64xbf16>
    %c0_70 = arith.constant 0 : index
    %c0_71 = arith.constant 0 : index
    %132 = vector.load %arg3[%c0_70, %c0_71] : memref<64x64xbf16, #tpu.memory_space<vmem>>, vector<64x64xbf16>
    %cst_72 = arith.constant dense<0.000000e+00> : vector<128x64xf32>
    %133 = tpu.matmul %131, %132, %cst_72 {dimension_numbers = #tpu.dot_dimension_numbers<[1], [0], [0], [1], [0, 0, 1, 1], [], []>} : vector<128x64xbf16>, vector<64x64xbf16>, vector<128x64xf32> -> vector<128x64xf32>
    %c0_73 = arith.constant 0 : index
    %c0_74 = arith.constant 0 : index
    %134 = vector.load %arg4[%c0_73, %c0_74] : memref<1x64xf32, #tpu.memory_space<vmem>>, vector<1x64xf32>
    %135 = vector.broadcast %134 : vector<1x64xf32> to vector<128x64xf32>
    %136 = arith.mulf %133, %135 : vector<128x64xf32>
    %c0_75 = arith.constant 0 : index
    %c0_76 = arith.constant 0 : index
    %137 = vector.load %arg5[%c0_75, %c0_76] : memref<1x64xf32, #tpu.memory_space<vmem>>, vector<1x64xf32>
    %138 = vector.broadcast %137 : vector<1x64xf32> to vector<128x64xf32>
    %139 = arith.addf %136, %138 : vector<128x64xf32>
    %cst_77 = arith.constant 0.000000e+00 : f32
    %140 = vector.broadcast %cst_77 : f32 to vector<128x64xf32>
    %141 = arith.cmpf oge, %139, %140 : vector<128x64xf32>
    %cst_78 = arith.constant 2.000000e-01 : f32
    %142 = vector.broadcast %cst_78 : f32 to vector<128x64xf32>
    %143 = arith.mulf %142, %139 : vector<128x64xf32>
    %144 = arith.select %141, %139, %143 : vector<128x64xi1>, vector<128x64xf32>
    %145 = arith.maximumf %121, %144 : vector<128x64xf32>
    %c6 = arith.constant 6 : index
    %c0_79 = arith.constant 0 : index
    %c0_80 = arith.constant 0 : index
    %146 = vector.load %arg1[%c6, %c0_79, %c0_80] : memref<8x128x64xbf16, #tpu.memory_space<vmem>>, vector<1x128x64xbf16>
    %147 = vector.shape_cast %146 : vector<1x128x64xbf16> to vector<128x64xbf16>
    %148 = arith.extf %147 : vector<128x64xbf16> to vector<128x64xf32>
    %149 = arith.addf %148, %2 : vector<128x64xf32>
    %cst_81 = arith.constant 0.000000e+00 : f32
    %150 = vector.broadcast %cst_81 : f32 to vector<128x64xf32>
    %151 = arith.cmpf oge, %149, %150 : vector<128x64xf32>
    %cst_82 = arith.constant 2.000000e-01 : f32
    %152 = vector.broadcast %cst_82 : f32 to vector<128x64xf32>
    %153 = arith.mulf %152, %149 : vector<128x64xf32>
    %154 = arith.select %151, %149, %153 : vector<128x64xi1>, vector<128x64xf32>
    %155 = arith.truncf %154 : vector<128x64xf32> to vector<128x64xbf16>
    %c0_83 = arith.constant 0 : index
    %c0_84 = arith.constant 0 : index
    %156 = vector.load %arg3[%c0_83, %c0_84] : memref<64x64xbf16, #tpu.memory_space<vmem>>, vector<64x64xbf16>
    %cst_85 = arith.constant dense<0.000000e+00> : vector<128x64xf32>
    %157 = tpu.matmul %155, %156, %cst_85 {dimension_numbers = #tpu.dot_dimension_numbers<[1], [0], [0], [1], [0, 0, 1, 1], [], []>} : vector<128x64xbf16>, vector<64x64xbf16>, vector<128x64xf32> -> vector<128x64xf32>
    %c0_86 = arith.constant 0 : index
    %c0_87 = arith.constant 0 : index
    %158 = vector.load %arg4[%c0_86, %c0_87] : memref<1x64xf32, #tpu.memory_space<vmem>>, vector<1x64xf32>
    %159 = vector.broadcast %158 : vector<1x64xf32> to vector<128x64xf32>
    %160 = arith.mulf %157, %159 : vector<128x64xf32>
    %c0_88 = arith.constant 0 : index
    %c0_89 = arith.constant 0 : index
    %161 = vector.load %arg5[%c0_88, %c0_89] : memref<1x64xf32, #tpu.memory_space<vmem>>, vector<1x64xf32>
    %162 = vector.broadcast %161 : vector<1x64xf32> to vector<128x64xf32>
    %163 = arith.addf %160, %162 : vector<128x64xf32>
    %cst_90 = arith.constant 0.000000e+00 : f32
    %164 = vector.broadcast %cst_90 : f32 to vector<128x64xf32>
    %165 = arith.cmpf oge, %163, %164 : vector<128x64xf32>
    %cst_91 = arith.constant 2.000000e-01 : f32
    %166 = vector.broadcast %cst_91 : f32 to vector<128x64xf32>
    %167 = arith.mulf %166, %163 : vector<128x64xf32>
    %168 = arith.select %165, %163, %167 : vector<128x64xi1>, vector<128x64xf32>
    %169 = arith.maximumf %145, %168 : vector<128x64xf32>
    %c7 = arith.constant 7 : index
    %c0_92 = arith.constant 0 : index
    %c0_93 = arith.constant 0 : index
    %170 = vector.load %arg1[%c7, %c0_92, %c0_93] : memref<8x128x64xbf16, #tpu.memory_space<vmem>>, vector<1x128x64xbf16>
    %171 = vector.shape_cast %170 : vector<1x128x64xbf16> to vector<128x64xbf16>
    %172 = arith.extf %171 : vector<128x64xbf16> to vector<128x64xf32>
    %173 = arith.addf %172, %2 : vector<128x64xf32>
    %cst_94 = arith.constant 0.000000e+00 : f32
    %174 = vector.broadcast %cst_94 : f32 to vector<128x64xf32>
    %175 = arith.cmpf oge, %173, %174 : vector<128x64xf32>
    %cst_95 = arith.constant 2.000000e-01 : f32
    %176 = vector.broadcast %cst_95 : f32 to vector<128x64xf32>
    %177 = arith.mulf %176, %173 : vector<128x64xf32>
    %178 = arith.select %175, %173, %177 : vector<128x64xi1>, vector<128x64xf32>
    %179 = arith.truncf %178 : vector<128x64xf32> to vector<128x64xbf16>
    %c0_96 = arith.constant 0 : index
    %c0_97 = arith.constant 0 : index
    %180 = vector.load %arg3[%c0_96, %c0_97] : memref<64x64xbf16, #tpu.memory_space<vmem>>, vector<64x64xbf16>
    %cst_98 = arith.constant dense<0.000000e+00> : vector<128x64xf32>
    %181 = tpu.matmul %179, %180, %cst_98 {dimension_numbers = #tpu.dot_dimension_numbers<[1], [0], [0], [1], [0, 0, 1, 1], [], []>} : vector<128x64xbf16>, vector<64x64xbf16>, vector<128x64xf32> -> vector<128x64xf32>
    %c0_99 = arith.constant 0 : index
    %c0_100 = arith.constant 0 : index
    %182 = vector.load %arg4[%c0_99, %c0_100] : memref<1x64xf32, #tpu.memory_space<vmem>>, vector<1x64xf32>
    %183 = vector.broadcast %182 : vector<1x64xf32> to vector<128x64xf32>
    %184 = arith.mulf %181, %183 : vector<128x64xf32>
    %c0_101 = arith.constant 0 : index
    %c0_102 = arith.constant 0 : index
    %185 = vector.load %arg5[%c0_101, %c0_102] : memref<1x64xf32, #tpu.memory_space<vmem>>, vector<1x64xf32>
    %186 = vector.broadcast %185 : vector<1x64xf32> to vector<128x64xf32>
    %187 = arith.addf %184, %186 : vector<128x64xf32>
    %cst_103 = arith.constant 0.000000e+00 : f32
    %188 = vector.broadcast %cst_103 : f32 to vector<128x64xf32>
    %189 = arith.cmpf oge, %187, %188 : vector<128x64xf32>
    %cst_104 = arith.constant 2.000000e-01 : f32
    %190 = vector.broadcast %cst_104 : f32 to vector<128x64xf32>
    %191 = arith.mulf %190, %187 : vector<128x64xf32>
    %192 = arith.select %189, %187, %191 : vector<128x64xi1>, vector<128x64xf32>
    %193 = arith.maximumf %169, %192 : vector<128x64xf32>
    %c0_105 = arith.constant 0 : index
    %c0_106 = arith.constant 0 : index
    %194 = vector.load %arg6[%c0_105, %c0_106] : memref<128x64xf32, #tpu.memory_space<vmem>>, vector<128x64xf32>
    tpu.vector_store %arg6[%c0_105, %c0_106], %193 {strides = array<i32>} : memref<128x64xf32, #tpu.memory_space<vmem>>, vector<128x64xf32>,
    return
  }
  func.func @transform_0(%arg0: i32) -> (i32, i32, i32) {
    %c0_i32 = arith.constant 0 : i32
    %c0_i32_0 = arith.constant 0 : i32
    %c0_i32_1 = arith.constant 0 : i32
    return %c0_i32, %arg0, %c0_i32_0 : i32, i32, i32
  }
  func.func @transform_1(%arg0: i32) -> (i32, i32) {
    %c0_i32 = arith.constant 0 : i32
    %c0_i32_0 = arith.constant 0 : i32
    return %arg0, %c0_i32 : i32, i32
  }
  func.func @transform_2(%arg0: i32) -> (i32, i32) {
    %c0_i32 = arith.constant 0 : i32
    %c0_i32_0 = arith.constant 0 : i32
    %c0_i32_1 = arith.constant 0 : i32
    return %c0_i32, %c0_i32_0 : i32, i32
  }
  func.func @transform_3(%arg0: i32) -> (i32, i32) {
    %c0_i32 = arith.constant 0 : i32
    %c0_i32_0 = arith.constant 0 : i32
    %c0_i32_1 = arith.constant 0 : i32
    return %c0_i32, %c0_i32_0 : i32, i32
  }
  func.func @transform_4(%arg0: i32) -> (i32, i32) {
    %c0_i32 = arith.constant 0 : i32
    %c0_i32_0 = arith.constant 0 : i32
    %c0_i32_1 = arith.constant 0 : i32
    return %c0_i32, %c0_i32_0 : i32, i32
  }
  func.func @transform_5(%arg0: i32) -> (i32, i32) {
    %c0_i32 = arith.constant 0 : i32
    %c0_i32_0 = arith.constant 0 : i32
    return %arg0, %c0_i32 : i32, i32
  }
}

module attributes {stable_mosaic.version = 11 : i64} {
  func.func @_precompute_kernel(%arg0: i32, %arg1: memref<128x64xf32, #tpu.memory_space<vmem>>, %arg2: memref<64x128xf32, #tpu.memory_space<vmem>>, %arg3: memref<1x128xf32, #tpu.memory_space<vmem>>, %arg4: memref<128x128xbf16, #tpu.memory_space<vmem>>) attributes {dimension_semantics = [#tpu.dimension_semantics<parallel>], iteration_bounds = array<i64: 1>, scalar_prefetch = 0 : i64, scratch_operands = 0 : i64, tpu.core_type = #tpu.core_type<tc>, window_params = [{transform_indices = @transform_0, window_bounds = array<i64: 128, 64>}, {pipeline_mode = #tpu.pipeline_mode<synchronous>, transform_indices = @transform_1, window_bounds = array<i64: 64, 128>}, {pipeline_mode = #tpu.pipeline_mode<synchronous>, transform_indices = @transform_2, window_bounds = array<i64: 1, 128>}, {transform_indices = @transform_3, window_bounds = array<i64: 128, 128>}]} {
    %c0 = arith.constant 0 : index
    %c0_0 = arith.constant 0 : index
    %0 = vector.load %arg1[%c0, %c0_0] : memref<128x64xf32, #tpu.memory_space<vmem>>, vector<128x64xf32>
    %c0_1 = arith.constant 0 : index
    %c0_2 = arith.constant 0 : index
    %1 = vector.load %arg2[%c0_1, %c0_2] : memref<64x128xf32, #tpu.memory_space<vmem>>, vector<64x128xf32>
    %cst = arith.constant dense<0.000000e+00> : vector<128x128xf32>
    %2 = tpu.matmul %0, %1, %cst {dimension_numbers = #tpu.dot_dimension_numbers<[1], [0], [0], [1], [0, 0, 1, 1], [], []>} : vector<128x64xf32>, vector<64x128xf32>, vector<128x128xf32> -> vector<128x128xf32>
    %c0_3 = arith.constant 0 : index
    %c0_4 = arith.constant 0 : index
    %3 = vector.load %arg3[%c0_3, %c0_4] : memref<1x128xf32, #tpu.memory_space<vmem>>, vector<1x128xf32>
    %4 = vector.broadcast %3 : vector<1x128xf32> to vector<128x128xf32>
    %5 = arith.addf %2, %4 : vector<128x128xf32>
    %6 = arith.truncf %5 : vector<128x128xf32> to vector<128x128xbf16>
    %c0_5 = arith.constant 0 : index
    %c0_6 = arith.constant 0 : index
    %7 = vector.load %arg4[%c0_5, %c0_6] : memref<128x128xbf16, #tpu.memory_space<vmem>>, vector<128x128xbf16>
    tpu.vector_store %arg4[%c0_5, %c0_6], %6 {strides = array<i32>} : memref<128x128xbf16, #tpu.memory_space<vmem>>, vector<128x128xbf16>,
    return
  }
  func.func @transform_0(%arg0: i32) -> (i32, i32) {
    %c0_i32 = arith.constant 0 : i32
    %c0_i32_0 = arith.constant 0 : i32
    return %arg0, %c0_i32 : i32, i32
  }
  func.func @transform_1(%arg0: i32) -> (i32, i32) {
    %c0_i32 = arith.constant 0 : i32
    %c0_i32_0 = arith.constant 0 : i32
    %c0_i32_1 = arith.constant 0 : i32
    return %c0_i32, %c0_i32_0 : i32, i32
  }
  func.func @transform_2(%arg0: i32) -> (i32, i32) {
    %c0_i32 = arith.constant 0 : i32
    %c0_i32_0 = arith.constant 0 : i32
    %c0_i32_1 = arith.constant 0 : i32
    return %c0_i32, %c0_i32_0 : i32, i32
  }
  func.func @transform_3(%arg0: i32) -> (i32, i32) {
    %c0_i32 = arith.constant 0 : i32
    %c0_i32_0 = arith.constant 0 : i32
    return %arg0, %c0_i32 : i32, i32
  }
}

module attributes {stable_mosaic.version = 11 : i64} {
  func.func @_tail_kernel(%arg0: i32, %arg1: memref<128x64xf32, #tpu.memory_space<vmem>>, %arg2: memref<128x64xf32, #tpu.memory_space<vmem>>, %arg3: memref<128x64xf32, #tpu.memory_space<vmem>>, %arg4: memref<128x64xf32, #tpu.memory_space<vmem>>, %arg5: memref<64x128xf32, #tpu.memory_space<vmem>>, %arg6: memref<64x128xf32, #tpu.memory_space<vmem>>, %arg7: memref<64x128xf32, #tpu.memory_space<vmem>>, %arg8: memref<64x128xf32, #tpu.memory_space<vmem>>, %arg9: memref<1x128xf32, #tpu.memory_space<vmem>>, %arg10: memref<1x128xf32, #tpu.memory_space<vmem>>, %arg11: memref<128x128xf32, #tpu.memory_space<vmem>>) attributes {dimension_semantics = [#tpu.dimension_semantics<parallel>], iteration_bounds = array<i64: 1>, scalar_prefetch = 0 : i64, scratch_operands = 0 : i64, tpu.core_type = #tpu.core_type<tc>, window_params = [{transform_indices = @transform_0, window_bounds = array<i64: 128, 64>}, {transform_indices = @transform_1, window_bounds = array<i64: 128, 64>}, {transform_indices = @transform_2, window_bounds = array<i64: 128, 64>}, {transform_indices = @transform_3, window_bounds = array<i64: 128, 64>}, {pipeline_mode = #tpu.pipeline_mode<synchronous>, transform_indices = @transform_4, window_bounds = array<i64: 64, 128>}, {pipeline_mode = #tpu.pipeline_mode<synchronous>, transform_indices = @transform_5, window_bounds = array<i64: 64, 128>}, {pipeline_mode = #tpu.pipeline_mode<synchronous>, transform_indices = @transform_6, window_bounds = array<i64: 64, 128>}, {pipeline_mode = #tpu.pipeline_mode<synchronous>, transform_indices = @transform_7, window_bounds = array<i64: 64, 128>}, {pipeline_mode = #tpu.pipeline_mode<synchronous>, transform_indices = @transform_8, window_bounds = array<i64: 1, 128>}, {pipeline_mode = #tpu.pipeline_mode<synchronous>, transform_indices = @transform_9, window_bounds = array<i64: 1, 128>}, {transform_indices = @transform_10, window_bounds = array<i64: 128, 128>}]} {
    %c0 = arith.constant 0 : index
    %c0_0 = arith.constant 0 : index
    %0 = vector.load %arg1[%c0, %c0_0] : memref<128x64xf32, #tpu.memory_space<vmem>>, vector<128x64xf32>
    %c0_1 = arith.constant 0 : index
    %c0_2 = arith.constant 0 : index
    %1 = vector.load %arg5[%c0_1, %c0_2] : memref<64x128xf32, #tpu.memory_space<vmem>>, vector<64x128xf32>
    %cst = arith.constant dense<0.000000e+00> : vector<128x128xf32>
    %2 = tpu.matmul %0, %1, %cst {dimension_numbers = #tpu.dot_dimension_numbers<[1], [0], [0], [1], [0, 0, 1, 1], [], []>} : vector<128x64xf32>, vector<64x128xf32>, vector<128x128xf32> -> vector<128x128xf32>
    %c0_3 = arith.constant 0 : index
    %c0_4 = arith.constant 0 : index
    %3 = vector.load %arg2[%c0_3, %c0_4] : memref<128x64xf32, #tpu.memory_space<vmem>>, vector<128x64xf32>
    %c0_5 = arith.constant 0 : index
    %c0_6 = arith.constant 0 : index
    %4 = vector.load %arg6[%c0_5, %c0_6] : memref<64x128xf32, #tpu.memory_space<vmem>>, vector<64x128xf32>
    %cst_7 = arith.constant dense<0.000000e+00> : vector<128x128xf32>
    %5 = tpu.matmul %3, %4, %cst_7 {dimension_numbers = #tpu.dot_dimension_numbers<[1], [0], [0], [1], [0, 0, 1, 1], [], []>} : vector<128x64xf32>, vector<64x128xf32>, vector<128x128xf32> -> vector<128x128xf32>
    %6 = arith.addf %2, %5 : vector<128x128xf32>
    %c0_8 = arith.constant 0 : index
    %c0_9 = arith.constant 0 : index
    %7 = vector.load %arg3[%c0_8, %c0_9] : memref<128x64xf32, #tpu.memory_space<vmem>>, vector<128x64xf32>
    %c0_10 = arith.constant 0 : index
    %c0_11 = arith.constant 0 : index
    %8 = vector.load %arg7[%c0_10, %c0_11] : memref<64x128xf32, #tpu.memory_space<vmem>>, vector<64x128xf32>
    %cst_12 = arith.constant dense<0.000000e+00> : vector<128x128xf32>
    %9 = tpu.matmul %7, %8, %cst_12 {dimension_numbers = #tpu.dot_dimension_numbers<[1], [0], [0], [1], [0, 0, 1, 1], [], []>} : vector<128x64xf32>, vector<64x128xf32>, vector<128x128xf32> -> vector<128x128xf32>
    %10 = arith.addf %6, %9 : vector<128x128xf32>
    %c0_13 = arith.constant 0 : index
    %c0_14 = arith.constant 0 : index
    %11 = vector.load %arg4[%c0_13, %c0_14] : memref<128x64xf32, #tpu.memory_space<vmem>>, vector<128x64xf32>
    %c0_15 = arith.constant 0 : index
    %c0_16 = arith.constant 0 : index
    %12 = vector.load %arg8[%c0_15, %c0_16] : memref<64x128xf32, #tpu.memory_space<vmem>>, vector<64x128xf32>
    %cst_17 = arith.constant dense<0.000000e+00> : vector<128x128xf32>
    %13 = tpu.matmul %11, %12, %cst_17 {dimension_numbers = #tpu.dot_dimension_numbers<[1], [0], [0], [1], [0, 0, 1, 1], [], []>} : vector<128x64xf32>, vector<64x128xf32>, vector<128x128xf32> -> vector<128x128xf32>
    %14 = arith.addf %10, %13 : vector<128x128xf32>
    %c0_18 = arith.constant 0 : index
    %c0_19 = arith.constant 0 : index
    %15 = vector.load %arg9[%c0_18, %c0_19] : memref<1x128xf32, #tpu.memory_space<vmem>>, vector<1x128xf32>
    %16 = vector.broadcast %15 : vector<1x128xf32> to vector<128x128xf32>
    %17 = arith.mulf %14, %16 : vector<128x128xf32>
    %c0_20 = arith.constant 0 : index
    %c0_21 = arith.constant 0 : index
    %18 = vector.load %arg10[%c0_20, %c0_21] : memref<1x128xf32, #tpu.memory_space<vmem>>, vector<1x128xf32>
    %19 = vector.broadcast %18 : vector<1x128xf32> to vector<128x128xf32>
    %20 = arith.addf %17, %19 : vector<128x128xf32>
    %cst_22 = arith.constant 0.000000e+00 : f32
    %21 = vector.broadcast %cst_22 : f32 to vector<128x128xf32>
    %22 = arith.cmpf oge, %20, %21 : vector<128x128xf32>
    %cst_23 = arith.constant 2.000000e-01 : f32
    %23 = vector.broadcast %cst_23 : f32 to vector<128x128xf32>
    %24 = arith.mulf %23, %20 : vector<128x128xf32>
    %25 = arith.select %22, %20, %24 : vector<128x128xi1>, vector<128x128xf32>
    %c0_24 = arith.constant 0 : index
    %c0_25 = arith.constant 0 : index
    %26 = vector.load %arg11[%c0_24, %c0_25] : memref<128x128xf32, #tpu.memory_space<vmem>>, vector<128x128xf32>
    tpu.vector_store %arg11[%c0_24, %c0_25], %25 {strides = array<i32>} : memref<128x128xf32, #tpu.memory_space<vmem>>, vector<128x128xf32>,
    return
  }
  func.func @transform_0(%arg0: i32) -> (i32, i32) {
    %c0_i32 = arith.constant 0 : i32
    %c0_i32_0 = arith.constant 0 : i32
    return %arg0, %c0_i32 : i32, i32
  }
  func.func @transform_1(%arg0: i32) -> (i32, i32) {
    %c0_i32 = arith.constant 0 : i32
    %c0_i32_0 = arith.constant 0 : i32
    return %arg0, %c0_i32 : i32, i32
  }
  func.func @transform_2(%arg0: i32) -> (i32, i32) {
    %c0_i32 = arith.constant 0 : i32
    %c0_i32_0 = arith.constant 0 : i32
    return %arg0, %c0_i32 : i32, i32
  }
  func.func @transform_3(%arg0: i32) -> (i32, i32) {
    %c0_i32 = arith.constant 0 : i32
    %c0_i32_0 = arith.constant 0 : i32
    return %arg0, %c0_i32 : i32, i32
  }
  func.func @transform_4(%arg0: i32) -> (i32, i32) {
    %c0_i32 = arith.constant 0 : i32
    %c0_i32_0 = arith.constant 0 : i32
    %c0_i32_1 = arith.constant 0 : i32
    return %c0_i32, %c0_i32_0 : i32, i32
  }
  func.func @transform_5(%arg0: i32) -> (i32, i32) {
    %c0_i32 = arith.constant 0 : i32
    %c0_i32_0 = arith.constant 0 : i32
    %c0_i32_1 = arith.constant 0 : i32
    return %c0_i32, %c0_i32_0 : i32, i32
  }
  func.func @transform_6(%arg0: i32) -> (i32, i32) {
    %c0_i32 = arith.constant 0 : i32
    %c0_i32_0 = arith.constant 0 : i32
    %c0_i32_1 = arith.constant 0 : i32
    return %c0_i32, %c0_i32_0 : i32, i32
  }
  func.func @transform_7(%arg0: i32) -> (i32, i32) {
    %c0_i32 = arith.constant 0 : i32
    %c0_i32_0 = arith.constant 0 : i32
    %c0_i32_1 = arith.constant 0 : i32
    return %c0_i32, %c0_i32_0 : i32, i32
  }
  func.func @transform_8(%arg0: i32) -> (i32, i32) {
    %c0_i32 = arith.constant 0 : i32
    %c0_i32_0 = arith.constant 0 : i32
    %c0_i32_1 = arith.constant 0 : i32
    return %c0_i32, %c0_i32_0 : i32, i32
  }
  func.func @transform_9(%arg0: i32) -> (i32, i32) {
    %c0_i32 = arith.constant 0 : i32
    %c0_i32_0 = arith.constant 0 : i32
    %c0_i32_1 = arith.constant 0 : i32
    return %c0_i32, %c0_i32_0 : i32, i32
  }
  func.func @transform_10(%arg0: i32) -> (i32, i32) {
    %c0_i32 = arith.constant 0 : i32
    %c0_i32_0 = arith.constant 0 : i32
    return %arg0, %c0_i32 : i32, i32
  }
}

module attributes {stable_mosaic.version = 11 : i64} {
  func.func @_edge_fused1_kernel(%arg0: i32, %arg1: memref<8x128x64xbf16, #tpu.memory_space<vmem>>, %arg2: memref<128x128xbf16, #tpu.memory_space<vmem>>, %arg3: memref<128x64xf32, #tpu.memory_space<vmem>>) attributes {dimension_semantics = [#tpu.dimension_semantics<parallel>], iteration_bounds = array<i64: 1>, scalar_prefetch = 0 : i64, scratch_operands = 0 : i64, tpu.core_type = #tpu.core_type<tc>, window_params = [{transform_indices = @transform_0, window_bounds = array<i64: 8, 128, 64>}, {transform_indices = @transform_1, window_bounds = array<i64: 128, 128>}, {transform_indices = @transform_2, window_bounds = array<i64: 128, 64>}]} {
    %c0 = arith.constant 0 : index
    %c0_0 = arith.constant 0 : index
    %0 = vector.load %arg2[%c0, %c0_0] : memref<128x128xbf16, #tpu.memory_space<vmem>>, vector<128x128xbf16>
    %1 = vector.extract_strided_slice %0 {offsets = [0, 64], sizes = [128, 64], strides = [1, 1]} : vector<128x128xbf16> to vector<128x64xbf16>
    %2 = arith.extf %1 : vector<128x64xbf16> to vector<128x64xf32>
    %c0_1 = arith.constant 0 : index
    %c0_2 = arith.constant 0 : index
    %c0_3 = arith.constant 0 : index
    %3 = vector.load %arg1[%c0_1, %c0_2, %c0_3] : memref<8x128x64xbf16, #tpu.memory_space<vmem>>, vector<1x128x64xbf16>
    %4 = vector.shape_cast %3 : vector<1x128x64xbf16> to vector<128x64xbf16>
    %5 = arith.extf %4 : vector<128x64xbf16> to vector<128x64xf32>
    %6 = arith.addf %5, %2 : vector<128x64xf32>
    %cst = arith.constant 0.000000e+00 : f32
    %7 = vector.broadcast %cst : f32 to vector<128x64xf32>
    %8 = arith.cmpf oge, %6, %7 : vector<128x64xf32>
    %cst_4 = arith.constant 2.000000e-01 : f32
    %9 = vector.broadcast %cst_4 : f32 to vector<128x64xf32>
    %10 = arith.mulf %9, %6 : vector<128x64xf32>
    %11 = arith.select %8, %6, %10 : vector<128x64xi1>, vector<128x64xf32>
    %c1 = arith.constant 1 : index
    %c0_5 = arith.constant 0 : index
    %c0_6 = arith.constant 0 : index
    %12 = vector.load %arg1[%c1, %c0_5, %c0_6] : memref<8x128x64xbf16, #tpu.memory_space<vmem>>, vector<1x128x64xbf16>
    %13 = vector.shape_cast %12 : vector<1x128x64xbf16> to vector<128x64xbf16>
    %14 = arith.extf %13 : vector<128x64xbf16> to vector<128x64xf32>
    %15 = arith.addf %14, %2 : vector<128x64xf32>
    %cst_7 = arith.constant 0.000000e+00 : f32
    %16 = vector.broadcast %cst_7 : f32 to vector<128x64xf32>
    %17 = arith.cmpf oge, %15, %16 : vector<128x64xf32>
    %cst_8 = arith.constant 2.000000e-01 : f32
    %18 = vector.broadcast %cst_8 : f32 to vector<128x64xf32>
    %19 = arith.mulf %18, %15 : vector<128x64xf32>
    %20 = arith.select %17, %15, %19 : vector<128x64xi1>, vector<128x64xf32>
    %21 = arith.maximumf %11, %20 : vector<128x64xf32>
    %c2 = arith.constant 2 : index
    %c0_9 = arith.constant 0 : index
    %c0_10 = arith.constant 0 : index
    %22 = vector.load %arg1[%c2, %c0_9, %c0_10] : memref<8x128x64xbf16, #tpu.memory_space<vmem>>, vector<1x128x64xbf16>
    %23 = vector.shape_cast %22 : vector<1x128x64xbf16> to vector<128x64xbf16>
    %24 = arith.extf %23 : vector<128x64xbf16> to vector<128x64xf32>
    %25 = arith.addf %24, %2 : vector<128x64xf32>
    %cst_11 = arith.constant 0.000000e+00 : f32
    %26 = vector.broadcast %cst_11 : f32 to vector<128x64xf32>
    %27 = arith.cmpf oge, %25, %26 : vector<128x64xf32>
    %cst_12 = arith.constant 2.000000e-01 : f32
    %28 = vector.broadcast %cst_12 : f32 to vector<128x64xf32>
    %29 = arith.mulf %28, %25 : vector<128x64xf32>
    %30 = arith.select %27, %25, %29 : vector<128x64xi1>, vector<128x64xf32>
    %31 = arith.maximumf %21, %30 : vector<128x64xf32>
    %c3 = arith.constant 3 : index
    %c0_13 = arith.constant 0 : index
    %c0_14 = arith.constant 0 : index
    %32 = vector.load %arg1[%c3, %c0_13, %c0_14] : memref<8x128x64xbf16, #tpu.memory_space<vmem>>, vector<1x128x64xbf16>
    %33 = vector.shape_cast %32 : vector<1x128x64xbf16> to vector<128x64xbf16>
    %34 = arith.extf %33 : vector<128x64xbf16> to vector<128x64xf32>
    %35 = arith.addf %34, %2 : vector<128x64xf32>
    %cst_15 = arith.constant 0.000000e+00 : f32
    %36 = vector.broadcast %cst_15 : f32 to vector<128x64xf32>
    %37 = arith.cmpf oge, %35, %36 : vector<128x64xf32>
    %cst_16 = arith.constant 2.000000e-01 : f32
    %38 = vector.broadcast %cst_16 : f32 to vector<128x64xf32>
    %39 = arith.mulf %38, %35 : vector<128x64xf32>
    %40 = arith.select %37, %35, %39 : vector<128x64xi1>, vector<128x64xf32>
    %41 = arith.maximumf %31, %40 : vector<128x64xf32>
    %c4 = arith.constant 4 : index
    %c0_17 = arith.constant 0 : index
    %c0_18 = arith.constant 0 : index
    %42 = vector.load %arg1[%c4, %c0_17, %c0_18] : memref<8x128x64xbf16, #tpu.memory_space<vmem>>, vector<1x128x64xbf16>
    %43 = vector.shape_cast %42 : vector<1x128x64xbf16> to vector<128x64xbf16>
    %44 = arith.extf %43 : vector<128x64xbf16> to vector<128x64xf32>
    %45 = arith.addf %44, %2 : vector<128x64xf32>
    %cst_19 = arith.constant 0.000000e+00 : f32
    %46 = vector.broadcast %cst_19 : f32 to vector<128x64xf32>
    %47 = arith.cmpf oge, %45, %46 : vector<128x64xf32>
    %cst_20 = arith.constant 2.000000e-01 : f32
    %48 = vector.broadcast %cst_20 : f32 to vector<128x64xf32>
    %49 = arith.mulf %48, %45 : vector<128x64xf32>
    %50 = arith.select %47, %45, %49 : vector<128x64xi1>, vector<128x64xf32>
    %51 = arith.maximumf %41, %50 : vector<128x64xf32>
    %c5 = arith.constant 5 : index
    %c0_21 = arith.constant 0 : index
    %c0_22 = arith.constant 0 : index
    %52 = vector.load %arg1[%c5, %c0_21, %c0_22] : memref<8x128x64xbf16, #tpu.memory_space<vmem>>, vector<1x128x64xbf16>
    %53 = vector.shape_cast %52 : vector<1x128x64xbf16> to vector<128x64xbf16>
    %54 = arith.extf %53 : vector<128x64xbf16> to vector<128x64xf32>
    %55 = arith.addf %54, %2 : vector<128x64xf32>
    %cst_23 = arith.constant 0.000000e+00 : f32
    %56 = vector.broadcast %cst_23 : f32 to vector<128x64xf32>
    %57 = arith.cmpf oge, %55, %56 : vector<128x64xf32>
    %cst_24 = arith.constant 2.000000e-01 : f32
    %58 = vector.broadcast %cst_24 : f32 to vector<128x64xf32>
    %59 = arith.mulf %58, %55 : vector<128x64xf32>
    %60 = arith.select %57, %55, %59 : vector<128x64xi1>, vector<128x64xf32>
    %61 = arith.maximumf %51, %60 : vector<128x64xf32>
    %c6 = arith.constant 6 : index
    %c0_25 = arith.constant 0 : index
    %c0_26 = arith.constant 0 : index
    %62 = vector.load %arg1[%c6, %c0_25, %c0_26] : memref<8x128x64xbf16, #tpu.memory_space<vmem>>, vector<1x128x64xbf16>
    %63 = vector.shape_cast %62 : vector<1x128x64xbf16> to vector<128x64xbf16>
    %64 = arith.extf %63 : vector<128x64xbf16> to vector<128x64xf32>
    %65 = arith.addf %64, %2 : vector<128x64xf32>
    %cst_27 = arith.constant 0.000000e+00 : f32
    %66 = vector.broadcast %cst_27 : f32 to vector<128x64xf32>
    %67 = arith.cmpf oge, %65, %66 : vector<128x64xf32>
    %cst_28 = arith.constant 2.000000e-01 : f32
    %68 = vector.broadcast %cst_28 : f32 to vector<128x64xf32>
    %69 = arith.mulf %68, %65 : vector<128x64xf32>
    %70 = arith.select %67, %65, %69 : vector<128x64xi1>, vector<128x64xf32>
    %71 = arith.maximumf %61, %70 : vector<128x64xf32>
    %c7 = arith.constant 7 : index
    %c0_29 = arith.constant 0 : index
    %c0_30 = arith.constant 0 : index
    %72 = vector.load %arg1[%c7, %c0_29, %c0_30] : memref<8x128x64xbf16, #tpu.memory_space<vmem>>, vector<1x128x64xbf16>
    %73 = vector.shape_cast %72 : vector<1x128x64xbf16> to vector<128x64xbf16>
    %74 = arith.extf %73 : vector<128x64xbf16> to vector<128x64xf32>
    %75 = arith.addf %74, %2 : vector<128x64xf32>
    %cst_31 = arith.constant 0.000000e+00 : f32
    %76 = vector.broadcast %cst_31 : f32 to vector<128x64xf32>
    %77 = arith.cmpf oge, %75, %76 : vector<128x64xf32>
    %cst_32 = arith.constant 2.000000e-01 : f32
    %78 = vector.broadcast %cst_32 : f32 to vector<128x64xf32>
    %79 = arith.mulf %78, %75 : vector<128x64xf32>
    %80 = arith.select %77, %75, %79 : vector<128x64xi1>, vector<128x64xf32>
    %81 = arith.maximumf %71, %80 : vector<128x64xf32>
    %c0_33 = arith.constant 0 : index
    %c0_34 = arith.constant 0 : index
    %82 = vector.load %arg3[%c0_33, %c0_34] : memref<128x64xf32, #tpu.memory_space<vmem>>, vector<128x64xf32>
    tpu.vector_store %arg3[%c0_33, %c0_34], %81 {strides = array<i32>} : memref<128x64xf32, #tpu.memory_space<vmem>>, vector<128x64xf32>,
    return
  }
  func.func @transform_0(%arg0: i32) -> (i32, i32, i32) {
    %c0_i32 = arith.constant 0 : i32
    %c0_i32_0 = arith.constant 0 : i32
    %c0_i32_1 = arith.constant 0 : i32
    return %c0_i32, %arg0, %c0_i32_0 : i32, i32, i32
  }
  func.func @transform_1(%arg0: i32) -> (i32, i32) {
    %c0_i32 = arith.constant 0 : i32
    %c0_i32_0 = arith.constant 0 : i32
    return %arg0, %c0_i32 : i32, i32
  }
  func.func @transform_2(%arg0: i32) -> (i32, i32) {
    %c0_i32 = arith.constant 0 : i32
    %c0_i32_0 = arith.constant 0 : i32
    return %arg0, %c0_i32 : i32, i32
  }
}

</mosaic_0001>

<bundles_post_ra>
// kernel: _lambda_.14
= control target key start
LH: loop header
LB: loop body
LE: loop exit
PB: predicated region body
PF: predicated region fallthrough
CT: control target
= control target key end

     0   :  { %vm87_vm0 = vcmask 1045504   ;;  %vm38_vm1 = vcmask 48128   ;;  %s576_s1 = inlined_call_operand.vmem [shape: f32[6,128], index: 1, kind: input, shape index: {}]   ;;  %s577_s0 = inlined_call_operand.vmem [shape: f32[128,6], index: 0, kind: input, shape index: {}]   ;;  %s578_s2 = inlined_call_operand.vmem [shape: f32[1,128], index: 2, kind: input, shape index: {}]   ;;  %s579_s3 = inlined_call_operand.vmem [shape: bf16[128,128], index: 3, kind: output, shape index: {}]  }
   0x1   :  { %v30_v0 = vld [vmem:[%s576_s1] sm:$0x3f]  ;;  %v15_v3 = vld [vmem:[%s577_s0 + $0x8] sm:$0xff]  ;;  %v16_v5 = vld [vmem:[%s577_s0 + $0x10] sm:$0xff] }
   0x2   :  { %v14_v1 = vld [vmem:[%s577_s0] sm:$0xff]  ;;  %434 = vmatprep.subr.msk.mxu0 %vm87_vm0, %v30_v0  ;;  %460 = vmatprep.subr.msk.mxu1 %vm87_vm0, %v30_v0  ;;  %v23_v4 = vld [vmem:[%s577_s0 + $0x48] sm:$0xff]  ;;  %v24_v6 = vld [vmem:[%s577_s0 + $0x50] sm:$0xff] }
   0x3   :  { %v22_v2 = vld [vmem:[%s577_s0 + $0x40] sm:$0xff]  ;;  %435 = vmatpush3.msk.msra.mxu0 %vm87_vm0, %v30_v0  ;;  %461 = vmatpush3.msk.msra.mxu1 %vm87_vm0, %v30_v0  ;;  %v17_v7 = vld [vmem:[%s577_s0 + $0x18] sm:$0xff]  ;;  %v19_v11 = vld [vmem:[%s577_s0 + $0x28] sm:$0xff] }
   0x4   :  { %436 = vmatprep.mubr.msk.f32.mxu0 %vm38_vm1, %v14_v1  ;;  %448 = vmatprep.mubr.msk.f32.mxu1 %vm38_vm1, %v22_v2  ;;  %v25_v8 = vld [vmem:[%s577_s0 + $0x58] sm:$0xff]  ;;  %v18_v9 = vld [vmem:[%s577_s0 + $0x20] sm:$0xff]  ;;  %v27_v12 = vld [vmem:[%s577_s0 + $0x68] sm:$0xff] }
   0x5   :  { %437 = vmatmul.mubr.msk.f32.vlgmr.msra.gmra.mrb[0].mxu0 %vm38_vm1, %v15_v3  ;;  %449 = vmatmul.mubr.msk.f32.vlgmr.msra.gmra.mrb[0].mxu1 %vm38_vm1, %v23_v4  ;;  %v26_v10 = vld [vmem:[%s577_s0 + $0x60] sm:$0xff]  ;;  %v20_v13 = vld [vmem:[%s577_s0 + $0x30] sm:$0xff]  ;;  %v21_v15 = vld [vmem:[%s577_s0 + $0x38] sm:$0xff] }
   0x6   :  { %439 = vmatprep.mubr.msk.f32.mxu0 %vm38_vm1, %v16_v5  ;;  %451 = vmatprep.mubr.msk.f32.mxu1 %vm38_vm1, %v24_v6  ;;  %v28_v14 = vld [vmem:[%s577_s0 + $0x70] sm:$0xff]  ;;  %v29_v16 = vld [vmem:[%s577_s0 + $0x78] sm:$0xff]  ;;  %v320_v17 = vld [vmem:[%s578_s2] ss:$0 sm:$0xff] }
   0x9   :  { %440 = vmatmul.mubr.msk.f32.gmra.mrb[2].mxu0 %vm38_vm1, %v17_v7  ;;  %452 = vmatmul.mubr.msk.f32.gmra.mrb[2].mxu1 %vm38_vm1, %v25_v8 }
   0xa   :  { %442 = vmatprep.mubr.msk.f32.mxu0 %vm38_vm1, %v18_v9  ;;  %454 = vmatprep.mubr.msk.f32.mxu1 %vm38_vm1, %v26_v10 }
   0xd   :  { %443 = vmatmul.mubr.msk.f32.gmra.mrb[4].mxu0 %vm38_vm1, %v19_v11  ;;  %455 = vmatmul.mubr.msk.f32.gmra.mrb[4].mxu1 %vm38_vm1, %v27_v12 }
   0xe   :  { %445 = vmatprep.mubr.msk.f32.mxu0 %vm38_vm1, %v20_v13  ;;  %457 = vmatprep.mubr.msk.f32.mxu1 %vm38_vm1, %v28_v14 }
  0x11   :  { %446 = vmatmul.mubr.msk.f32.gmra.mrb[6].mxu0 %vm38_vm1, %v21_v15  ;;  %458 = vmatmul.mubr.msk.f32.gmra.mrb[6].mxu1 %vm38_vm1, %v29_v16 }
  0xd8   :  { %v438_v18 = vpop.f32.mrb[0].mxu0  ;;  %v450_v19 = vpop.f32.mrb[0].mxu1 }
  0xd9   :  { %v163_v20 = vadd.f32 %v438_v18, %v320_v17  ;;  %v203_v21 = vadd.f32 %v450_v19, %v320_v17  ;;  %v157_v22 = vpop.f32.mrb[1].mxu0  ;;  %v197_v23 = vpop.f32.mrb[1].mxu1 }
  0xda   :  { %v158_v24 = vadd.f32 %v320_v17, %v157_v22  ;;  %v198_v25 = vadd.f32 %v320_v17, %v197_v23 }
  0xdc   :  { %v373_v26 = vpack.c.bf16 %v163_v20, %v158_v24  ;;  %v393_v27 = vpack.c.bf16 %v203_v21, %v198_v25  ;;  %v441_v28 = vpop.f32.mrb[2].mxu0  ;;  %v453_v29 = vpop.f32.mrb[2].mxu1 }
  0xdd   :  { %v173_v30 = vadd.f32 %v441_v28, %v320_v17  ;;  %v213_v31 = vadd.f32 %v453_v29, %v320_v17  ;;  %v167_v32 = vpop.f32.mrb[3].mxu0  ;;  %v207_v33 = vpop.f32.mrb[3].mxu1 }
  0xde   :  { %374 = vst [vmem:[%s579_s3] sm:$0xff] %v373_v26   ;;  %413 = vst [vmem:[%s579_s3 + $0x20] sm:$0xff] %v393_v27   ;;  %v168_v34 = vadd.f32 %v320_v17, %v167_v32  ;;  %v208_v35 = vadd.f32 %v320_v17, %v207_v33 }
  0xe0   :  { %v378_v36 = vpack.c.bf16 %v173_v30, %v168_v34  ;;  %v398_v37 = vpack.c.bf16 %v213_v31, %v208_v35  ;;  %v444_v38 = vpop.f32.mrb[4].mxu0  ;;  %v456_v39 = vpop.f32.mrb[4].mxu1 }
  0xe1   :  { %v183_v40 = vadd.f32 %v444_v38, %v320_v17  ;;  %v223_v41 = vadd.f32 %v456_v39, %v320_v17  ;;  %v177_v42 = vpop.f32.mrb[5].mxu0  ;;  %v217_v43 = vpop.f32.mrb[5].mxu1 }
  0xe2   :  { %410 = vst [vmem:[%s579_s3 + $0x8] sm:$0xff] %v378_v36   ;;  %414 = vst [vmem:[%s579_s3 + $0x28] sm:$0xff] %v398_v37   ;;  %v178_v44 = vadd.f32 %v320_v17, %v177_v42  ;;  %v218_v45 = vadd.f32 %v320_v17, %v217_v43 }
  0xe4   :  { %v383_v46 = vpack.c.bf16 %v183_v40, %v178_v44  ;;  %v403_v47 = vpack.c.bf16 %v223_v41, %v218_v45  ;;  %v447_v48 = vpop.f32.mrb[6].mxu0  ;;  %v459_v49 = vpop.f32.mrb[6].mxu1 }
  0xe5   :  { %v193_v50 = vadd.f32 %v447_v48, %v320_v17  ;;  %v233_v51 = vadd.f32 %v459_v49, %v320_v17  ;;  %v187_v52 = vpop.f32.mrb[7].mxu0  ;;  %v227_v53 = vpop.f32.mrb[7].mxu1 }
  0xe6   :  { %411 = vst [vmem:[%s579_s3 + $0x10] sm:$0xff] %v383_v46   ;;  %415 = vst [vmem:[%s579_s3 + $0x30] sm:$0xff] %v403_v47   ;;  %v188_v54 = vadd.f32 %v320_v17, %v187_v52  ;;  %v228_v55 = vadd.f32 %v320_v17, %v227_v53 }
  0xe8   :  { %v388_v56 = vpack.c.bf16 %v193_v50, %v188_v54  ;;  %v408_v57 = vpack.c.bf16 %v233_v51, %v228_v55 }
  0xea   :  { %412 = vst [vmem:[%s579_s3 + $0x18] sm:$0xff] %v388_v56   ;;  %416 = vst [vmem:[%s579_s3 + $0x38] sm:$0xff] %v408_v57  }

// kernel: _lambda_.13
= control target key start
LH: loop header
LB: loop body
LE: loop exit
PB: predicated region body
PF: predicated region fallthrough
CT: control target
= control target key end

     0   :  { %s777_s9 = smov 0   ;;  %s779_s10 = smov 0   ;;  %s908_s0 = inlined_call_operand.vmem [shape: f32[2,64,6], index: 0, kind: input, shape index: {}, may-alias: {0,1}]   ;;  %s909_s1 = inlined_call_operand.vmem [shape: f32[2,64,6], index: 1, kind: input, shape index: {}, may-alias: {0,1}]   ;;  %s910_s2 = inlined_call_operand.vmem [shape: f32[2,64,64], index: 2, kind: output, shape index: {}]  }
   0x1   :  { %s781_s11 = smov 0  }
   0x2 LB: > { %s24_s12 = sadd.s32 1, %s756_s10  ;;  %p609_p0 = scmp.ge.s32.totalorder %s760_s11, 1  ;;  %s760_s11 = sphi %s781_s11, %s12_s11   ;;  %s756_s10 = sphi %s779_s10, %s914_s10   ;;  %s752_s9 = sphi %s777_s9, %s913_s9  }
   0x3   : > { %p26_p1 = scmp.ge.s32.totalorder %s24_s12, 2  ;;  %p143_p2 = scmp.lt.s32.totalorder %s760_s11, 3 }
   0x5   : > { %s916_s12 = smov (%p26_p1, %s24_s12), 0  ;;  %p144_p3 = pnand %p609_p0, %p143_p2 }
   0x6   : > { %p179_p4 = scmp.lt.s32.totalorder (!%p144_p3), %s752_s9, 1  ;;  %vm219_vm0 = vcmask (!%p144_p3), 48128   ;;  %vm497_vm2 = vcmask (!%p144_p3), 523264  }
   0x7   : > { %147 = sbr.rel (%p144_p3) target bundleno = 300 (0x12c), region = 28  ;;  %vm805_vm1 = vmpackc.low (!%p144_p3), %vm219_vm0, %vm219_vm0 }
   0xe   : > { %s918_s9 = smov (!%p179_p4, %s752_s9), 1 }
   0xf   : > { %s795_s13 = sshll.u32 %s918_s9, 6 }
  0x10   : > { %s801_s16 = scalar_lea.vmem %s909_s1, %s795_s13  ;;  %s817_s19 = scalar_lea.vmem %s908_s0, %s795_s13 }
  0x11   : > { %v211_v1 = vld [vmem:[%s801_s16] sm:$0xff]  ;;  %v212_v2 = vld [vmem:[%s801_s16 + $0x8] sm:$0xff]  ;;  %v213_v3 = vld [vmem:[%s801_s16 + $0x10] sm:$0xff]  ;;  %s201_s22 = scalar_lea.vmem %s910_s2, %s795_s13 }
  0x12   : > { %v681_v4 = vpack.c.bf16 %v212_v2, %v211_v1  ;;  %v405_v5 = vmul.f32 %v211_v1, %v211_v1  ;;  %v406_v6 = vmul.f32 %v212_v2, %v212_v2  ;;  %v214_v7 = vld [vmem:[%s801_s16 + $0x18] sm:$0xff]  ;;  %v407_v8 = vmul.f32 %v213_v3, %v213_v3  ;;  %v215_v10 = vld [vmem:[%s801_s16 + $0x20] sm:$0xff]  ;;  %v216_v18 = vld [vmem:[%s801_s16 + $0x28] sm:$0xff] }
  0x13   : > { %v687_v9 = vpack.c.bf16 %v214_v7, %v213_v3  ;;  %v408_v13 = vmul.f32 %v214_v7, %v214_v7  ;;  %v203_v14 = vld [vmem:[%s817_s19] sm:$0xff]  ;;  %v409_v17 = vmul.f32 %v215_v10, %v215_v10  ;;  %v217_v19 = vld [vmem:[%s801_s16 + $0x30] sm:$0xff]  ;;  %v410_v21 = vmul.f32 %v216_v18, %v216_v18  ;;  %v218_v25 = vld [vmem:[%s801_s16 + $0x38] sm:$0xff] }
  0x14   : > { %683 = vmatprep.subr.msk.bf16.mxu0 %vm805_vm1, %v681_v4  ;;  %705 = vmatprep.subr.msk.bf16.mxu1 %vm805_vm1, %v681_v4  ;;  %v413_v11 = vsel %vm219_vm0, %v405_v5, 0.0  ;;  %v419_v12 = vsel %vm219_vm0, %v407_v8, 0.0  ;;  %v207_v15 = vld [vmem:[%s817_s19 + $0x20] sm:$0xff]  ;;  %v416_v16 = vsel %vm219_vm0, %v406_v6, 0.0  ;;  %v693_v22 = vpack.c.bf16 %v216_v18, %v215_v10  ;;  %v204_v30 = vld [vmem:[%s817_s19 + $0x8] sm:$0xff]  ;;  %v205_v33 = vld [vmem:[%s817_s19 + $0x10] sm:$0xff] }
  0x15   : > { %414 = vadd.xlane.f32.xlu0 %v413_v11  ;;  %686 = vmatpush3.bf16.xpose.msk.msra.mxu0 %vm805_vm1, %v681_v4  ;;  %v422_v20 = vsel %vm219_vm0, %v408_v13, 0.0  ;;  %v425_v23 = vsel %vm219_vm0, %v409_v17, 0.0  ;;  %v411_v24 = vmul.f32 %v217_v19, %v217_v19  ;;  %v428_v26 = vsel %vm219_vm0, %v410_v21, 0.0  ;;  %v206_v37 = vld [vmem:[%s817_s19 + $0x18] sm:$0xff]  ;;  %v208_v42 = vld [vmem:[%s817_s19 + $0x28] sm:$0xff]  ;;  %v209_v45 = vld [vmem:[%s817_s19 + $0x30] sm:$0xff] }
  0x16   : > { %709 = vmatpush3.bf16.xpose.msk.msra.mxu1 %vm805_vm1, %v681_v4  ;;  %689 = vmatprep.subr.msk.bf16.mxu0 %vm805_vm1, %v687_v9  ;;  %v412_v27 = vmul.f32 %v218_v25, %v218_v25  ;;  %v373_v29 = vmul.f32 %v203_v14, %v203_v14  ;;  %v374_v32 = vmul.f32 %v204_v30, %v204_v30  ;;  %v210_v48 = vld [vmem:[%s817_s19 + $0x38] sm:$0xff] }
  0x17   : > { %706 = vmatprep.subr.msk.bf16.mxu1 %vm805_vm1, %v687_v9  ;;  %420 = vadd.xlane.f32.xlu1 %v419_v12  ;;  %v431_v28 = vsel %vm219_vm0, %v411_v24, 0.0  ;;  %v699_v34 = vpack.c.bf16 %v218_v25, %v217_v19  ;;  %v375_v36 = vmul.f32 %v205_v33, %v205_v33  ;;  %v376_v39 = vmul.f32 %v206_v37, %v206_v37 }
  0x18   : > { %669 = vmatprep.mubr.msk.f32.mxu0 %vm219_vm0, %v203_v14  ;;  %675 = vmatprep.mubr.msk.f32.mxu1 %vm219_vm0, %v207_v15  ;;  %v434_v31 = vsel %vm219_vm0, %v412_v27, 0.0  ;;  %v381_v35 = vsel %vm219_vm0, %v373_v29, 0.0  ;;  %v384_v38 = vsel %vm219_vm0, %v374_v32, 0.0  ;;  %v377_v40 = vmul.f32 %v207_v15, %v207_v15 }
  0x19   : > { %417 = vadd.xlane.f32.xlu0 %v416_v16  ;;  %v387_v41 = vsel %vm219_vm0, %v375_v36, 0.0  ;;  %v390_v43 = vsel %vm219_vm0, %v376_v39, 0.0  ;;  %v378_v44 = vmul.f32 %v208_v42, %v208_v42  ;;  %v379_v47 = vmul.f32 %v209_v45, %v209_v45 }
  0x1a   : > { %v393_v46 = vsel %vm219_vm0, %v377_v40, 0.0  ;;  %v380_v50 = vmul.f32 %v210_v48, %v210_v48 }
  0x1b   : > { %423 = vadd.xlane.f32.xlu1 %v422_v20  ;;  %v396_v49 = vsel %vm219_vm0, %v378_v44, 0.0  ;;  %v399_v51 = vsel %vm219_vm0, %v379_v47, 0.0 }
  0x1c   : > { %v402_v52 = vsel %vm219_vm0, %v380_v50, 0.0 }
  0x1d   : > { %692 = vmatpush3.bf16.xpose.msk.msra.mxu0 %vm805_vm1, %v687_v9  ;;  %426 = vadd.xlane.f32.xlu0 %v425_v23 }
  0x1e   : > { %710 = vmatpush3.bf16.xpose.msk.msra.mxu1 %vm805_vm1, %v687_v9  ;;  %695 = vmatprep.subr.msk.bf16.mxu0 %vm805_vm1, %v693_v22  ;;  %v485_v9 = vlaneseq }
  0x1f   : > { %707 = vmatprep.subr.msk.bf16.mxu1 %vm805_vm1, %v693_v22  ;;  %429 = vadd.xlane.f32.xlu1 %v428_v26 }
  0x20   : > { %v486_v12 = vshrl.u32 %v485_v9, 7 }
  0x21   : > { %432 = vadd.xlane.f32.xlu0 %v431_v28 }
  0x22   : > { %v487_v20 = vsub.s32 0, %v486_v12 }
  0x23   : > { %435 = vadd.xlane.f32.xlu1 %v434_v31 }
  0x25   : > { %698 = vmatpush3.bf16.xpose.msk.msra.mxu0 %vm805_vm1, %v693_v22  ;;  %382 = vadd.xlane.f32.xlu0 %v381_v35 }
  0x26   : > { %711 = vmatpush3.bf16.xpose.msk.msra.mxu1 %vm805_vm1, %v693_v22  ;;  %701 = vmatprep.subr.msk.bf16.mxu0 %vm805_vm1, %v699_v34 }
  0x27   : > { %708 = vmatprep.subr.msk.bf16.mxu1 %vm805_vm1, %v699_v34  ;;  %385 = vadd.xlane.f32.xlu1 %v384_v38 }
  0x29   : > { %388 = vadd.xlane.f32.xlu0 %v387_v41 }
  0x2b   : > { %391 = vadd.xlane.f32.xlu1 %v390_v43 }
  0x2d   : > { %704 = vmatpush3.bf16.xpose.msk.msra.mxu0 %vm805_vm1, %v699_v34  ;;  %394 = vadd.xlane.f32.xlu0 %v393_v46 }
  0x2e   : > { %712 = vmatpush3.bf16.xpose.msk.msra.mxu1 %vm805_vm1, %v699_v34 }
  0x2f   : > { %397 = vadd.xlane.f32.xlu1 %v396_v49 }
  0x31   : > { %400 = vadd.xlane.f32.xlu0 %v399_v51 }
  0x33   : > { %403 = vadd.xlane.f32.xlu1 %v402_v52 }
  0x34   : > { %670 = vmatmul.mubr.msk.f32.vlgmr.msra.gmra.mrb[0].mxu0 %vm219_vm0, %v204_v30 }
  0x35   : > { %676 = vmatmul.mubr.msk.f32.vlgmr.msra.gmra.mrb[0].mxu1 %vm219_vm0, %v208_v42  ;;  %672 = vmatprep.mubr.msk.f32.mxu0 %vm219_vm0, %v205_v33 }
  0x36   : > { %678 = vmatprep.mubr.msk.f32.mxu1 %vm219_vm0, %v209_v45 }
  0x38   : > { %673 = vmatmul.mubr.msk.f32.gmra.mrb[2].mxu0 %vm219_vm0, %v206_v37 }
  0x39   : > { %679 = vmatmul.mubr.msk.f32.gmra.mrb[2].mxu1 %vm219_vm0, %v210_v48 }
  0xa2   : > { %v415_v53 = vpop.xlane.xlu0 %414 }
  0xa3   : > { %453 = vxpose.xlu0.b32.start [1/8] (short) (narrow) %v415_v53, 8 }
  0xa4   : > { %v421_v55 = vpop.xlane.xlu1 %420 }
  0xa6   : > { %v418_v54 = vpop.xlane.xlu0 %417 }
  0xa7   : > { %454 = vxpose.xlu0.b32.cont [2/8] (short) (narrow) %v418_v54, 8 }
  0xa8   : > { %v424_v56 = vpop.xlane.xlu1 %423 }
  0xaa   : > { %v427_v57 = vpop.xlane.xlu0 %426 }
  0xab   : > { %455 = vxpose.xlu0.b32.cont [3/8] (short) (narrow) %v421_v55, 8 }
  0xac   : > { %v430_v58 = vpop.xlane.xlu1 %429 }
  0xae   : > { %v433_v59 = vpop.xlane.xlu0 %432 }
  0xaf   : > { %456 = vxpose.xlu0.b32.cont [4/8] (short) (narrow) %v424_v56, 8 }
  0xb0   : > { %v436_v60 = vpop.xlane.xlu1 %435 }
  0xb2   : > { %v383_v4 = vpop.xlane.xlu0 %382 }
  0xb3   : > { %457 = vxpose.xlu0.b32.cont [5/8] (short) (narrow) %v427_v57, 8 }
  0xb4   : > { %v386_v6 = vpop.xlane.xlu1 %385 }
  0xb6   : > { %v389_v7 = vpop.xlane.xlu0 %388 }
  0xb7   : > { %458 = vxpose.xlu0.b32.cont [6/8] (short) (narrow) %v430_v58, 8 }
  0xb8   : > { %v392_v8 = vpop.xlane.xlu1 %391 }
  0xba   : > { %v395_v10 = vpop.xlane.xlu0 %394 }
  0xbb   : > { %459 = vxpose.xlu0.b32.cont [7/8] (short) (narrow) %v433_v59, 8 }
  0xbc   : > { %v398_v11 = vpop.xlane.xlu1 %397 }
  0xbe   : > { %v401_v13 = vpop.xlane.xlu0 %400 }
  0xbf   : > { %460 = vxpose.xlu0.b32.end [8/8] (short) (narrow) %v436_v60, 8 }
  0xc0   : > { %v404_v19 = vpop.xlane.xlu1 %403 }
 0x107   : > { %v671_v61 = vpop.f32.mrb[0].mxu0 }
 0x108   : > { %v677_v62 = vpop.f32.mrb[0].mxu1  ;;  %v334_v63 = vpop.f32.mrb[1].mxu0  ;;  %v438_v14 = vmul.f32 2.0, %v671_v61 }
 0x109   : > { %v354_v0 = vpop.f32.mrb[1].mxu1  ;;  %v437_v16 = vmul.f32 2.0, %v334_v63  ;;  %v442_v21 = vmul.f32 2.0, %v677_v62 }
 0x10a   : > { %v441_v22 = vmul.f32 2.0, %v354_v0  ;;  %v446_v24 = vsub.f32 %v438_v14, %v386_v6 }
 0x10b   : > { %v674_v1 = vpop.f32.mrb[2].mxu0  ;;  %v445_v27 = vsub.f32 %v437_v16, %v383_v4  ;;  %v450_v33 = vsub.f32 %v442_v21, %v398_v11 }
 0x10c   : > { %v680_v2 = vpop.f32.mrb[2].mxu1  ;;  %v344_v3 = vpop.f32.mrb[3].mxu0  ;;  %v440_v17 = vmul.f32 2.0, %v674_v1  ;;  %v449_v31 = vsub.f32 %v441_v22, %v395_v10 }
 0x10d   : > { %v364_v5 = vpop.f32.mrb[3].mxu1  ;;  %v444_v15 = vmul.f32 2.0, %v680_v2  ;;  %v439_v18 = vmul.f32 2.0, %v344_v3 }
 0x10e   : > { %v443_v23 = vmul.f32 2.0, %v364_v5  ;;  %v448_v29 = vsub.f32 %v440_v17, %v392_v8 }
 0x10f   : > { %v452_v25 = vsub.f32 %v444_v15, %v404_v19  ;;  %v447_v28 = vsub.f32 %v439_v18, %v389_v7 }
 0x110   : > { %v451_v32 = vsub.f32 %v443_v23, %v401_v13 }
 0x123   : > { %v469_v26 = vpop.trf.xlu0 }
 0x124   : > { %v488_v30 = vrot.slane %v469_v26, %v487_v20 }
 0x126   : > { %v489_v34 = vsub.f32 %v445_v27, %v488_v30  ;;  %v490_v35 = vsub.f32 %v446_v24, %v488_v30  ;;  %v491_v36 = vsub.f32 %v447_v28, %v488_v30  ;;  %v492_v37 = vsub.f32 %v448_v29, %v488_v30 }
 0x127   : > { %v493_v38 = vsub.f32 %v449_v31, %v488_v30  ;;  %v494_v39 = vsub.f32 %v450_v33, %v488_v30  ;;  %v495_v40 = vsub.f32 %v451_v32, %v488_v30  ;;  %v496_v41 = vsub.f32 %v452_v25, %v488_v30 }
 0x128   : > { %498 = vst.msk [vmem:[%s201_s22] sm:$0xff] %vm497_vm2, %v489_v34  ;;  %499 = vst.msk [vmem:[%s201_s22 + $0x8] sm:$0xff] %vm497_vm2, %v490_v35 }
 0x129   : > { %500 = vst.msk [vmem:[%s201_s22 + $0x10] sm:$0xff] %vm497_vm2, %v491_v36  ;;  %501 = vst.msk [vmem:[%s201_s22 + $0x18] sm:$0xff] %vm497_vm2, %v492_v37 }
 0x12a   : > { %502 = vst.msk [vmem:[%s201_s22 + $0x20] sm:$0xff] %vm497_vm2, %v493_v38  ;;  %503 = vst.msk [vmem:[%s201_s22 + $0x28] sm:$0xff] %vm497_vm2, %v494_v39 }
 0x12b   : > { %504 = vst.msk [vmem:[%s201_s22 + $0x30] sm:$0xff] %vm497_vm2, %v495_v40  ;;  %505 = vst.msk [vmem:[%s201_s22 + $0x38] sm:$0xff] %vm497_vm2, %v496_v41 }
 0x12c PF: > { %s12_s11 = sadd.s32 1, %s760_s11   ;;  %s913_s9 = smov %s756_s10 }
 0x12d   : > { %p9_p5 = scmp.ge.s32.totalorder %s12_s11, 4   ;;  %s914_s10 = smov %s916_s12 }
 0x12f   :  { %11 = sbr.rel (!%p9_p5) target bundleno = 2 (0x2), region = 61 }

// kernel: _lambda_.16
= control target key start
LH: loop header
LB: loop body
LE: loop exit
PB: predicated region body
PF: predicated region fallthrough
CT: control target
= control target key end

     0   :  { %s776_s9 = smov 0   ;;  %s778_s10 = smov 0   ;;  %s907_s0 = inlined_call_operand.vmem [shape: f32[2,64,64], index: 0, kind: input, shape index: {}, may-alias: {0,1}]   ;;  %s908_s1 = inlined_call_operand.vmem [shape: f32[2,64,64], index: 1, kind: input, shape index: {}, may-alias: {0,1}]   ;;  %s909_s2 = inlined_call_operand.vmem [shape: f32[2,64,64], index: 2, kind: output, shape index: {}]  }
   0x1   :  { %s780_s11 = smov 0  }
   0x2 LB: > { %s24_s12 = sadd.s32 1, %s755_s10  ;;  %p608_p0 = scmp.ge.s32.totalorder %s759_s11, 1  ;;  %s759_s11 = sphi %s780_s11, %s12_s11   ;;  %s755_s10 = sphi %s778_s10, %s913_s10   ;;  %s751_s9 = sphi %s776_s9, %s912_s9  }
   0x3   : > { %p26_p1 = scmp.ge.s32.totalorder %s24_s12, 2  ;;  %p143_p2 = scmp.lt.s32.totalorder %s759_s11, 3 }
   0x5   : > { %s915_s12 = smov (%p26_p1, %s24_s12), 0  ;;  %p144_p3 = pnand %p608_p0, %p143_p2 }
   0x6   : > { %p179_p4 = scmp.lt.s32.totalorder (!%p144_p3), %s751_s9, 1  ;;  %vm219_vm0 = vcmask (!%p144_p3), 523264  }
   0x7   : > { %147 = sbr.rel (%p144_p3) target bundleno = 300 (0x12c), region = 28  ;;  %vm804_vm1 = vmpackc.low (!%p144_p3), %vm219_vm0, %vm219_vm0 }
   0xe   : > { %s917_s9 = smov (!%p179_p4, %s751_s9), 1 }
   0xf   : > { %s794_s13 = sshll.u32 %s917_s9, 6 }
  0x10   : > { %s800_s16 = scalar_lea.vmem %s908_s1, %s794_s13  ;;  %s816_s19 = scalar_lea.vmem %s907_s0, %s794_s13 }
  0x11   : > { %v211_v1 = vld [vmem:[%s800_s16] sm:$0xff]  ;;  %v212_v2 = vld [vmem:[%s800_s16 + $0x8] sm:$0xff]  ;;  %v213_v3 = vld [vmem:[%s800_s16 + $0x10] sm:$0xff]  ;;  %s201_s22 = scalar_lea.vmem %s909_s2, %s794_s13 }
  0x12   : > { %v680_v4 = vpack.c.bf16 %v212_v2, %v211_v1  ;;  %v405_v5 = vmul.f32 %v211_v1, %v211_v1  ;;  %v406_v6 = vmul.f32 %v212_v2, %v212_v2  ;;  %v214_v7 = vld [vmem:[%s800_s16 + $0x18] sm:$0xff]  ;;  %v407_v8 = vmul.f32 %v213_v3, %v213_v3  ;;  %v215_v10 = vld [vmem:[%s800_s16 + $0x20] sm:$0xff]  ;;  %v216_v18 = vld [vmem:[%s800_s16 + $0x28] sm:$0xff] }
  0x13   : > { %v686_v9 = vpack.c.bf16 %v214_v7, %v213_v3  ;;  %v408_v13 = vmul.f32 %v214_v7, %v214_v7  ;;  %v203_v14 = vld [vmem:[%s816_s19] sm:$0xff]  ;;  %v409_v17 = vmul.f32 %v215_v10, %v215_v10  ;;  %v217_v19 = vld [vmem:[%s800_s16 + $0x30] sm:$0xff]  ;;  %v410_v21 = vmul.f32 %v216_v18, %v216_v18  ;;  %v218_v25 = vld [vmem:[%s800_s16 + $0x38] sm:$0xff] }
  0x14   : > { %682 = vmatprep.subr.msk.bf16.mxu0 %vm804_vm1, %v680_v4  ;;  %704 = vmatprep.subr.msk.bf16.mxu1 %vm804_vm1, %v680_v4  ;;  %v413_v11 = vsel %vm219_vm0, %v405_v5, 0.0  ;;  %v419_v12 = vsel %vm219_vm0, %v407_v8, 0.0  ;;  %v207_v15 = vld [vmem:[%s816_s19 + $0x20] sm:$0xff]  ;;  %v416_v16 = vsel %vm219_vm0, %v406_v6, 0.0  ;;  %v692_v22 = vpack.c.bf16 %v216_v18, %v215_v10  ;;  %v204_v30 = vld [vmem:[%s816_s19 + $0x8] sm:$0xff]  ;;  %v205_v33 = vld [vmem:[%s816_s19 + $0x10] sm:$0xff] }
  0x15   : > { %414 = vadd.xlane.f32.xlu0 %v413_v11  ;;  %685 = vmatpush3.bf16.xpose.msk.msra.mxu0 %vm804_vm1, %v680_v4  ;;  %v422_v20 = vsel %vm219_vm0, %v408_v13, 0.0  ;;  %v425_v23 = vsel %vm219_vm0, %v409_v17, 0.0  ;;  %v411_v24 = vmul.f32 %v217_v19, %v217_v19  ;;  %v428_v26 = vsel %vm219_vm0, %v410_v21, 0.0  ;;  %v206_v37 = vld [vmem:[%s816_s19 + $0x18] sm:$0xff]  ;;  %v208_v42 = vld [vmem:[%s816_s19 + $0x28] sm:$0xff]  ;;  %v209_v45 = vld [vmem:[%s816_s19 + $0x30] sm:$0xff] }
  0x16   : > { %708 = vmatpush3.bf16.xpose.msk.msra.mxu1 %vm804_vm1, %v680_v4  ;;  %688 = vmatprep.subr.msk.bf16.mxu0 %vm804_vm1, %v686_v9  ;;  %v412_v27 = vmul.f32 %v218_v25, %v218_v25  ;;  %v373_v29 = vmul.f32 %v203_v14, %v203_v14  ;;  %v374_v32 = vmul.f32 %v204_v30, %v204_v30  ;;  %v210_v48 = vld [vmem:[%s816_s19 + $0x38] sm:$0xff] }
  0x17   : > { %705 = vmatprep.subr.msk.bf16.mxu1 %vm804_vm1, %v686_v9  ;;  %420 = vadd.xlane.f32.xlu1 %v419_v12  ;;  %v431_v28 = vsel %vm219_vm0, %v411_v24, 0.0  ;;  %v698_v34 = vpack.c.bf16 %v218_v25, %v217_v19  ;;  %v375_v36 = vmul.f32 %v205_v33, %v205_v33  ;;  %v376_v39 = vmul.f32 %v206_v37, %v206_v37 }
  0x18   : > { %668 = vmatprep.mubr.msk.f32.mxu0 %vm219_vm0, %v203_v14  ;;  %674 = vmatprep.mubr.msk.f32.mxu1 %vm219_vm0, %v207_v15  ;;  %v434_v31 = vsel %vm219_vm0, %v412_v27, 0.0  ;;  %v381_v35 = vsel %vm219_vm0, %v373_v29, 0.0  ;;  %v384_v38 = vsel %vm219_vm0, %v374_v32, 0.0  ;;  %v377_v40 = vmul.f32 %v207_v15, %v207_v15 }
  0x19   : > { %417 = vadd.xlane.f32.xlu0 %v416_v16  ;;  %v387_v41 = vsel %vm219_vm0, %v375_v36, 0.0  ;;  %v390_v43 = vsel %vm219_vm0, %v376_v39, 0.0  ;;  %v378_v44 = vmul.f32 %v208_v42, %v208_v42  ;;  %v379_v47 = vmul.f32 %v209_v45, %v209_v45 }
  0x1a   : > { %v393_v46 = vsel %vm219_vm0, %v377_v40, 0.0  ;;  %v380_v50 = vmul.f32 %v210_v48, %v210_v48 }
  0x1b   : > { %423 = vadd.xlane.f32.xlu1 %v422_v20  ;;  %v396_v49 = vsel %vm219_vm0, %v378_v44, 0.0  ;;  %v399_v51 = vsel %vm219_vm0, %v379_v47, 0.0 }
  0x1c   : > { %v402_v52 = vsel %vm219_vm0, %v380_v50, 0.0 }
  0x1d   : > { %691 = vmatpush3.bf16.xpose.msk.msra.mxu0 %vm804_vm1, %v686_v9  ;;  %426 = vadd.xlane.f32.xlu0 %v425_v23 }
  0x1e   : > { %709 = vmatpush3.bf16.xpose.msk.msra.mxu1 %vm804_vm1, %v686_v9  ;;  %694 = vmatprep.subr.msk.bf16.mxu0 %vm804_vm1, %v692_v22  ;;  %v485_v9 = vlaneseq }
  0x1f   : > { %706 = vmatprep.subr.msk.bf16.mxu1 %vm804_vm1, %v692_v22  ;;  %429 = vadd.xlane.f32.xlu1 %v428_v26 }
  0x20   : > { %v486_v12 = vshrl.u32 %v485_v9, 7 }
  0x21   : > { %432 = vadd.xlane.f32.xlu0 %v431_v28 }
  0x22   : > { %v487_v20 = vsub.s32 0, %v486_v12 }
  0x23   : > { %435 = vadd.xlane.f32.xlu1 %v434_v31 }
  0x25   : > { %697 = vmatpush3.bf16.xpose.msk.msra.mxu0 %vm804_vm1, %v692_v22  ;;  %382 = vadd.xlane.f32.xlu0 %v381_v35 }
  0x26   : > { %710 = vmatpush3.bf16.xpose.msk.msra.mxu1 %vm804_vm1, %v692_v22  ;;  %700 = vmatprep.subr.msk.bf16.mxu0 %vm804_vm1, %v698_v34 }
  0x27   : > { %707 = vmatprep.subr.msk.bf16.mxu1 %vm804_vm1, %v698_v34  ;;  %385 = vadd.xlane.f32.xlu1 %v384_v38 }
  0x29   : > { %388 = vadd.xlane.f32.xlu0 %v387_v41 }
  0x2b   : > { %391 = vadd.xlane.f32.xlu1 %v390_v43 }
  0x2d   : > { %703 = vmatpush3.bf16.xpose.msk.msra.mxu0 %vm804_vm1, %v698_v34  ;;  %394 = vadd.xlane.f32.xlu0 %v393_v46 }
  0x2e   : > { %711 = vmatpush3.bf16.xpose.msk.msra.mxu1 %vm804_vm1, %v698_v34 }
  0x2f   : > { %397 = vadd.xlane.f32.xlu1 %v396_v49 }
  0x31   : > { %400 = vadd.xlane.f32.xlu0 %v399_v51 }
  0x33   : > { %403 = vadd.xlane.f32.xlu1 %v402_v52 }
  0x34   : > { %669 = vmatmul.mubr.msk.f32.vlgmr.msra.gmra.mrb[0].mxu0 %vm219_vm0, %v204_v30 }
  0x35   : > { %675 = vmatmul.mubr.msk.f32.vlgmr.msra.gmra.mrb[0].mxu1 %vm219_vm0, %v208_v42  ;;  %671 = vmatprep.mubr.msk.f32.mxu0 %vm219_vm0, %v205_v33 }
  0x36   : > { %677 = vmatprep.mubr.msk.f32.mxu1 %vm219_vm0, %v209_v45 }
  0x38   : > { %672 = vmatmul.mubr.msk.f32.gmra.mrb[2].mxu0 %vm219_vm0, %v206_v37 }
  0x39   : > { %678 = vmatmul.mubr.msk.f32.gmra.mrb[2].mxu1 %vm219_vm0, %v210_v48 }
  0xa2   : > { %v415_v53 = vpop.xlane.xlu0 %414 }
  0xa3   : > { %453 = vxpose.xlu0.b32.start [1/8] (short) (narrow) %v415_v53, 8 }
  0xa4   : > { %v421_v55 = vpop.xlane.xlu1 %420 }
  0xa6   : > { %v418_v54 = vpop.xlane.xlu0 %417 }
  0xa7   : > { %454 = vxpose.xlu0.b32.cont [2/8] (short) (narrow) %v418_v54, 8 }
  0xa8   : > { %v424_v56 = vpop.xlane.xlu1 %423 }
  0xaa   : > { %v427_v57 = vpop.xlane.xlu0 %426 }
  0xab   : > { %455 = vxpose.xlu0.b32.cont [3/8] (short) (narrow) %v421_v55, 8 }
  0xac   : > { %v430_v58 = vpop.xlane.xlu1 %429 }
  0xae   : > { %v433_v59 = vpop.xlane.xlu0 %432 }
  0xaf   : > { %456 = vxpose.xlu0.b32.cont [4/8] (short) (narrow) %v424_v56, 8 }
  0xb0   : > { %v436_v60 = vpop.xlane.xlu1 %435 }
  0xb2   : > { %v383_v4 = vpop.xlane.xlu0 %382 }
  0xb3   : > { %457 = vxpose.xlu0.b32.cont [5/8] (short) (narrow) %v427_v57, 8 }
  0xb4   : > { %v386_v6 = vpop.xlane.xlu1 %385 }
  0xb6   : > { %v389_v7 = vpop.xlane.xlu0 %388 }
  0xb7   : > { %458 = vxpose.xlu0.b32.cont [6/8] (short) (narrow) %v430_v58, 8 }
  0xb8   : > { %v392_v8 = vpop.xlane.xlu1 %391 }
  0xba   : > { %v395_v10 = vpop.xlane.xlu0 %394 }
  0xbb   : > { %459 = vxpose.xlu0.b32.cont [7/8] (short) (narrow) %v433_v59, 8 }
  0xbc   : > { %v398_v11 = vpop.xlane.xlu1 %397 }
  0xbe   : > { %v401_v13 = vpop.xlane.xlu0 %400 }
  0xbf   : > { %460 = vxpose.xlu0.b32.end [8/8] (short) (narrow) %v436_v60, 8 }
  0xc0   : > { %v404_v19 = vpop.xlane.xlu1 %403 }
 0x107   : > { %v670_v61 = vpop.f32.mrb[0].mxu0 }
 0x108   : > { %v676_v62 = vpop.f32.mrb[0].mxu1  ;;  %v334_v63 = vpop.f32.mrb[1].mxu0  ;;  %v438_v14 = vmul.f32 2.0, %v670_v61 }
 0x109   : > { %v354_v0 = vpop.f32.mrb[1].mxu1  ;;  %v437_v16 = vmul.f32 2.0, %v334_v63  ;;  %v442_v21 = vmul.f32 2.0, %v676_v62 }
 0x10a   : > { %v441_v22 = vmul.f32 2.0, %v354_v0  ;;  %v446_v24 = vsub.f32 %v438_v14, %v386_v6 }
 0x10b   : > { %v673_v1 = vpop.f32.mrb[2].mxu0  ;;  %v445_v27 = vsub.f32 %v437_v16, %v383_v4  ;;  %v450_v33 = vsub.f32 %v442_v21, %v398_v11 }
 0x10c   : > { %v679_v2 = vpop.f32.mrb[2].mxu1  ;;  %v344_v3 = vpop.f32.mrb[3].mxu0  ;;  %v440_v17 = vmul.f32 2.0, %v673_v1  ;;  %v449_v31 = vsub.f32 %v441_v22, %v395_v10 }
 0x10d   : > { %v364_v5 = vpop.f32.mrb[3].mxu1  ;;  %v444_v15 = vmul.f32 2.0, %v679_v2  ;;  %v439_v18 = vmul.f32 2.0, %v344_v3 }
 0x10e   : > { %v443_v23 = vmul.f32 2.0, %v364_v5  ;;  %v448_v29 = vsub.f32 %v440_v17, %v392_v8 }
 0x10f   : > { %v452_v25 = vsub.f32 %v444_v15, %v404_v19  ;;  %v447_v28 = vsub.f32 %v439_v18, %v389_v7 }
 0x110   : > { %v451_v32 = vsub.f32 %v443_v23, %v401_v13 }
 0x123   : > { %v469_v26 = vpop.trf.xlu0 }
 0x124   : > { %v488_v30 = vrot.slane %v469_v26, %v487_v20 }
 0x126   : > { %v489_v34 = vsub.f32 %v445_v27, %v488_v30  ;;  %v490_v35 = vsub.f32 %v446_v24, %v488_v30  ;;  %v491_v36 = vsub.f32 %v447_v28, %v488_v30  ;;  %v492_v37 = vsub.f32 %v448_v29, %v488_v30 }
 0x127   : > { %v493_v38 = vsub.f32 %v449_v31, %v488_v30  ;;  %v494_v39 = vsub.f32 %v450_v33, %v488_v30  ;;  %v495_v40 = vsub.f32 %v451_v32, %v488_v30  ;;  %v496_v41 = vsub.f32 %v452_v25, %v488_v30 }
 0x128   : > { %497 = vst.msk [vmem:[%s201_s22] sm:$0xff] %vm219_vm0, %v489_v34  ;;  %498 = vst.msk [vmem:[%s201_s22 + $0x8] sm:$0xff] %vm219_vm0, %v490_v35 }
 0x129   : > { %499 = vst.msk [vmem:[%s201_s22 + $0x10] sm:$0xff] %vm219_vm0, %v491_v36  ;;  %500 = vst.msk [vmem:[%s201_s22 + $0x18] sm:$0xff] %vm219_vm0, %v492_v37 }
 0x12a   : > { %501 = vst.msk [vmem:[%s201_s22 + $0x20] sm:$0xff] %vm219_vm0, %v493_v38  ;;  %502 = vst.msk [vmem:[%s201_s22 + $0x28] sm:$0xff] %vm219_vm0, %v494_v39 }
 0x12b   : > { %503 = vst.msk [vmem:[%s201_s22 + $0x30] sm:$0xff] %vm219_vm0, %v495_v40  ;;  %504 = vst.msk [vmem:[%s201_s22 + $0x38] sm:$0xff] %vm219_vm0, %v496_v41 }
 0x12c PF: > { %s12_s11 = sadd.s32 1, %s759_s11   ;;  %s912_s9 = smov %s755_s10 }
 0x12d   : > { %p9_p5 = scmp.ge.s32.totalorder %s12_s11, 4   ;;  %s913_s10 = smov %s915_s12 }
 0x12f   :  { %11 = sbr.rel (!%p9_p5) target bundleno = 2 (0x2), region = 61 }

// kernel: _lambda_.17
= control target key start
LH: loop header
LB: loop body
LE: loop exit
PB: predicated region body
PF: predicated region fallthrough
CT: control target
= control target key end

     0   :  { %vm45_vm0 = vcmask 523264   ;;  %s642_s1 = inlined_call_operand.vmem [shape: f32[64,128], index: 1, kind: input, shape index: {}]   ;;  %s643_s0 = inlined_call_operand.vmem [shape: f32[128,64], index: 0, kind: input, shape index: {}]   ;;  %s644_s2 = inlined_call_operand.vmem [shape: f32[1,128], index: 2, kind: input, shape index: {}]   ;;  %s645_s3 = inlined_call_operand.vmem [shape: bf16[128,128], index: 3, kind: output, shape index: {}]  }
   0x1   :  { %v30_v0 = vld [vmem:[%s642_s1] sm:$0xff]  ;;  %v31_v1 = vld [vmem:[%s642_s1 + $0x8] sm:$0xff]  ;;  %v32_v2 = vld [vmem:[%s642_s1 + $0x10] sm:$0xff] }
   0x2   :  { %v483_v3 = vpack.c.bf16 %v31_v1, %v30_v0  ;;  %v33_v4 = vld [vmem:[%s642_s1 + $0x18] sm:$0xff]  ;;  %v34_v6 = vld [vmem:[%s642_s1 + $0x20] sm:$0xff]  ;;  %v35_v7 = vld [vmem:[%s642_s1 + $0x28] sm:$0xff] }
   0x3   :  { %v487_v5 = vpack.c.bf16 %v33_v4, %v32_v2  ;;  %v14_v8 = vld [vmem:[%s643_s0] sm:$0xff]  ;;  %v491_v10 = vpack.c.bf16 %v35_v7, %v34_v6  ;;  %v36_v11 = vld [vmem:[%s642_s1 + $0x30] sm:$0xff]  ;;  %v37_v12 = vld [vmem:[%s642_s1 + $0x38] sm:$0xff] }
   0x4   :  { %484 = vmatprep.subr.bf16.mxu0 %v483_v3  ;;  %499 = vmatprep.subr.bf16.mxu1 %v483_v3  ;;  %v22_v9 = vld [vmem:[%s643_s0 + $0x40] sm:$0xff]  ;;  %v495_v13 = vpack.c.bf16 %v37_v12, %v36_v11  ;;  %v15_v14 = vld [vmem:[%s643_s0 + $0x8] sm:$0xff]  ;;  %v16_v16 = vld [vmem:[%s643_s0 + $0x10] sm:$0xff] }
   0x5   :  { %486 = vmatpush3.bf16.msra.mxu0 %v483_v3  ;;  %503 = vmatpush3.bf16.msra.mxu1 %v483_v3  ;;  %v23_v15 = vld [vmem:[%s643_s0 + $0x48] sm:$0xff]  ;;  %v24_v17 = vld [vmem:[%s643_s0 + $0x50] sm:$0xff]  ;;  %v17_v18 = vld [vmem:[%s643_s0 + $0x18] sm:$0xff] }
   0x6   :  { %488 = vmatprep.subr.bf16.mxu0 %v487_v5  ;;  %500 = vmatprep.subr.bf16.mxu1 %v487_v5  ;;  %v25_v19 = vld [vmem:[%s643_s0 + $0x58] sm:$0xff]  ;;  %v18_v20 = vld [vmem:[%s643_s0 + $0x20] sm:$0xff]  ;;  %v19_v22 = vld [vmem:[%s643_s0 + $0x28] sm:$0xff] }
   0x7   :  { %459 = vmatprep.mubr.msk.f32.mxu0 %vm45_vm0, %v14_v8  ;;  %471 = vmatprep.mubr.msk.f32.mxu1 %vm45_vm0, %v22_v9  ;;  %v26_v21 = vld [vmem:[%s643_s0 + $0x60] sm:$0xff]  ;;  %v27_v23 = vld [vmem:[%s643_s0 + $0x68] sm:$0xff]  ;;  %v20_v24 = vld [vmem:[%s643_s0 + $0x30] sm:$0xff] }
   0x8   :  { %v28_v25 = vld [vmem:[%s643_s0 + $0x70] sm:$0xff]  ;;  %v21_v26 = vld [vmem:[%s643_s0 + $0x38] sm:$0xff]  ;;  %v323_v28 = vld [vmem:[%s644_s2] ss:$0 sm:$0xff] }
   0x9   :  { %490 = vmatpush3.bf16.msra.mxu0 %v487_v5  ;;  %504 = vmatpush3.bf16.msra.mxu1 %v487_v5  ;;  %v29_v27 = vld [vmem:[%s643_s0 + $0x78] sm:$0xff] }
   0xa   :  { %492 = vmatprep.subr.bf16.mxu0 %v491_v10  ;;  %501 = vmatprep.subr.bf16.mxu1 %v491_v10 }
   0xd   :  { %494 = vmatpush3.bf16.msra.mxu0 %v491_v10  ;;  %505 = vmatpush3.bf16.msra.mxu1 %v491_v10 }
   0xe   :  { %496 = vmatprep.subr.bf16.mxu0 %v495_v13  ;;  %502 = vmatprep.subr.bf16.mxu1 %v495_v13 }
  0x11   :  { %498 = vmatpush3.bf16.msra.mxu0 %v495_v13  ;;  %506 = vmatpush3.bf16.msra.mxu1 %v495_v13 }
  0x14   :  { %460 = vmatmul.mubr.msk.f32.vlgmr.msra.gmra.mrb[0].mxu0 %vm45_vm0, %v15_v14  ;;  %472 = vmatmul.mubr.msk.f32.vlgmr.msra.gmra.mrb[0].mxu1 %vm45_vm0, %v23_v15 }
  0x15   :  { %462 = vmatprep.mubr.msk.f32.mxu0 %vm45_vm0, %v16_v16  ;;  %474 = vmatprep.mubr.msk.f32.mxu1 %vm45_vm0, %v24_v17 }
  0x18   :  { %463 = vmatmul.mubr.msk.f32.gmra.mrb[2].mxu0 %vm45_vm0, %v17_v18  ;;  %475 = vmatmul.mubr.msk.f32.gmra.mrb[2].mxu1 %vm45_vm0, %v25_v19 }
  0x19   :  { %465 = vmatprep.mubr.msk.f32.mxu0 %vm45_vm0, %v18_v20  ;;  %477 = vmatprep.mubr.msk.f32.mxu1 %vm45_vm0, %v26_v21 }
  0x1c   :  { %466 = vmatmul.mubr.msk.f32.gmra.mrb[4].mxu0 %vm45_vm0, %v19_v22  ;;  %478 = vmatmul.mubr.msk.f32.gmra.mrb[4].mxu1 %vm45_vm0, %v27_v23 }
  0x1d   :  { %468 = vmatprep.mubr.msk.f32.mxu0 %vm45_vm0, %v20_v24  ;;  %480 = vmatprep.mubr.msk.f32.mxu1 %vm45_vm0, %v28_v25 }
  0x20   :  { %469 = vmatmul.mubr.msk.f32.gmra.mrb[6].mxu0 %vm45_vm0, %v21_v26  ;;  %481 = vmatmul.mubr.msk.f32.gmra.mrb[6].mxu1 %vm45_vm0, %v29_v27 }
  0xe7   :  { %v461_v29 = vpop.f32.mrb[0].mxu0  ;;  %v473_v30 = vpop.f32.mrb[0].mxu1 }
  0xe8   :  { %v166_v31 = vadd.f32 %v461_v29, %v323_v28  ;;  %v206_v32 = vadd.f32 %v473_v30, %v323_v28  ;;  %v160_v33 = vpop.f32.mrb[1].mxu0  ;;  %v200_v34 = vpop.f32.mrb[1].mxu1 }
  0xe9   :  { %v161_v35 = vadd.f32 %v323_v28, %v160_v33  ;;  %v201_v36 = vadd.f32 %v323_v28, %v200_v34 }
  0xeb   :  { %v375_v37 = vpack.c.bf16 %v166_v31, %v161_v35  ;;  %v395_v38 = vpack.c.bf16 %v206_v32, %v201_v36  ;;  %v464_v39 = vpop.f32.mrb[2].mxu0  ;;  %v476_v40 = vpop.f32.mrb[2].mxu1 }
  0xec   :  { %v176_v41 = vadd.f32 %v464_v39, %v323_v28  ;;  %v216_v42 = vadd.f32 %v476_v40, %v323_v28  ;;  %v170_v43 = vpop.f32.mrb[3].mxu0  ;;  %v210_v44 = vpop.f32.mrb[3].mxu1 }
  0xed   :  { %376 = vst [vmem:[%s645_s3] sm:$0xff] %v375_v37   ;;  %415 = vst [vmem:[%s645_s3 + $0x20] sm:$0xff] %v395_v38   ;;  %v171_v45 = vadd.f32 %v323_v28, %v170_v43  ;;  %v211_v46 = vadd.f32 %v323_v28, %v210_v44 }
  0xef   :  { %v380_v47 = vpack.c.bf16 %v176_v41, %v171_v45  ;;  %v400_v48 = vpack.c.bf16 %v216_v42, %v211_v46  ;;  %v467_v49 = vpop.f32.mrb[4].mxu0  ;;  %v479_v50 = vpop.f32.mrb[4].mxu1 }
  0xf0   :  { %v186_v51 = vadd.f32 %v467_v49, %v323_v28  ;;  %v226_v52 = vadd.f32 %v479_v50, %v323_v28  ;;  %v180_v53 = vpop.f32.mrb[5].mxu0  ;;  %v220_v54 = vpop.f32.mrb[5].mxu1 }
  0xf1   :  { %412 = vst [vmem:[%s645_s3 + $0x8] sm:$0xff] %v380_v47   ;;  %416 = vst [vmem:[%s645_s3 + $0x28] sm:$0xff] %v400_v48   ;;  %v181_v55 = vadd.f32 %v323_v28, %v180_v53  ;;  %v221_v56 = vadd.f32 %v323_v28, %v220_v54 }
  0xf3   :  { %v385_v57 = vpack.c.bf16 %v186_v51, %v181_v55  ;;  %v405_v58 = vpack.c.bf16 %v226_v52, %v221_v56  ;;  %v470_v59 = vpop.f32.mrb[6].mxu0  ;;  %v482_v60 = vpop.f32.mrb[6].mxu1 }
  0xf4   :  { %v196_v61 = vadd.f32 %v470_v59, %v323_v28  ;;  %v236_v62 = vadd.f32 %v482_v60, %v323_v28  ;;  %v190_v63 = vpop.f32.mrb[7].mxu0  ;;  %v230_v0 = vpop.f32.mrb[7].mxu1 }
  0xf5   :  { %413 = vst [vmem:[%s645_s3 + $0x10] sm:$0xff] %v385_v57   ;;  %417 = vst [vmem:[%s645_s3 + $0x30] sm:$0xff] %v405_v58   ;;  %v191_v1 = vadd.f32 %v323_v28, %v190_v63  ;;  %v231_v2 = vadd.f32 %v323_v28, %v230_v0 }
  0xf7   :  { %v390_v3 = vpack.c.bf16 %v196_v61, %v191_v1  ;;  %v410_v4 = vpack.c.bf16 %v236_v62, %v231_v2 }
  0xf9   :  { %414 = vst [vmem:[%s645_s3 + $0x18] sm:$0xff] %v390_v3   ;;  %418 = vst [vmem:[%s645_s3 + $0x38] sm:$0xff] %v410_v4  }

// kernel: _lambda_.25
= control target key start
LH: loop header
LB: loop body
LE: loop exit
PB: predicated region body
PF: predicated region fallthrough
CT: control target
= control target key end

     0   :  { %vm84_vm0 = vcmask 523264   ;;  %s1988_s0 = inlined_call_operand.vmem [shape: f32[128,64], index: 0, kind: input, shape index: {}]   ;;  %s1989_s1 = inlined_call_operand.vmem [shape: f32[128,64], index: 1, kind: input, shape index: {}]   ;;  %s1990_s2 = inlined_call_operand.vmem [shape: f32[128,64], index: 2, kind: input, shape index: {}]   ;;  %s1991_s3 = inlined_call_operand.vmem [shape: f32[128,64], index: 3, kind: input, shape index: {}]   ;;  %s1992_s4 = inlined_call_operand.vmem [shape: f32[64,128], index: 4, kind: input, shape index: {}]   ;;  %s1993_s5 = inlined_call_operand.vmem [shape: f32[64,128], index: 5, kind: input, shape index: {}]   ;;  %s1994_s6 = inlined_call_operand.vmem [shape: f32[64,128], index: 6, kind: input, shape index: {}]   ;;  %s1995_s7 = inlined_call_operand.vmem [shape: f32[64,128], index: 7, kind: input, shape index: {}]   ;;  %s1996_s8 = inlined_call_operand.vmem [shape: f32[1,128], index: 8, kind: input, shape index: {}]   ;;  %s1997_s9 = inlined_call_operand.vmem [shape: f32[1,128], index: 9, kind: input, shape index: {}]   ;;  %s1998_s10 = inlined_call_operand.hbm [shape: f32[128,128], index: 10, kind: output, shape index: {}]  }
   0x1   :  { %v76_v0 = vld [vmem:[%s1993_s5] sm:$0xff]  ;;  %v77_v1 = vld [vmem:[%s1993_s5 + $0x8] sm:$0xff]  ;;  %v78_v5 = vld [vmem:[%s1993_s5 + $0x10] sm:$0xff] }
   0x2   :  { %v487_v2 = vld [vmem:[%s1994_s6] sm:$0xff]  ;;  %v1385_v3 = vpack.c.bf16 %v77_v1, %v76_v0  ;;  %v488_v4 = vld [vmem:[%s1994_s6 + $0x8] sm:$0xff]  ;;  %v79_v6 = vld [vmem:[%s1993_s5 + $0x18] sm:$0xff] }
   0x3   :  { %v1417_v7 = vpack.c.bf16 %v488_v4, %v487_v2  ;;  %v1389_v8 = vpack.c.bf16 %v79_v6, %v78_v5  ;;  %v489_v9 = vld [vmem:[%s1994_s6 + $0x10] sm:$0xff]  ;;  %v490_v10 = vld [vmem:[%s1994_s6 + $0x18] sm:$0xff]  ;;  %v80_v11 = vld [vmem:[%s1993_s5 + $0x20] sm:$0xff] }
   0x4   :  { %1386 = vmatprep.subr.bf16.mxu1 %v1385_v3  ;;  %v1421_v12 = vpack.c.bf16 %v490_v10, %v489_v9  ;;  %v81_v13 = vld [vmem:[%s1993_s5 + $0x28] sm:$0xff]  ;;  %v491_v14 = vld [vmem:[%s1994_s6 + $0x20] sm:$0xff]  ;;  %v82_v20 = vld [vmem:[%s1993_s5 + $0x30] sm:$0xff] }
   0x5   :  { %v492_v15 = vld [vmem:[%s1994_s6 + $0x28] sm:$0xff]  ;;  %1418 = vmatprep.subr.bf16.mxu0 %v1417_v7  ;;  %1388 = vmatpush3.bf16.msra.mxu1 %v1385_v3  ;;  %v1393_v16 = vpack.c.bf16 %v81_v13, %v80_v11  ;;  %v60_v17 = vld [vmem:[%s1989_s1] sm:$0xff]  ;;  %v83_v21 = vld [vmem:[%s1993_s5 + $0x38] sm:$0xff] }
   0x6   :  { %1420 = vmatpush3.bf16.msra.mxu0 %v1417_v7  ;;  %1390 = vmatprep.subr.bf16.mxu1 %v1389_v8  ;;  %v471_v18 = vld [vmem:[%s1990_s2] sm:$0xff]  ;;  %v1425_v19 = vpack.c.bf16 %v492_v15, %v491_v14  ;;  %v493_v22 = vld [vmem:[%s1994_s6 + $0x30] sm:$0xff]  ;;  %v494_v23 = vld [vmem:[%s1994_s6 + $0x38] sm:$0xff]  ;;  %v1397_v24 = vpack.c.bf16 %v83_v21, %v82_v20 }
   0x7   :  { %1422 = vmatprep.subr.bf16.mxu0 %v1421_v12  ;;  %1241 = vmatprep.mubr.msk.f32.mxu1 %vm84_vm0, %v60_v17  ;;  %v1429_v25 = vpack.c.bf16 %v494_v23, %v493_v22  ;;  %v52_v26 = vld [vmem:[%s1992_s4] sm:$0xff]  ;;  %v53_v27 = vld [vmem:[%s1992_s4 + $0x8] sm:$0xff]  ;;  %v54_v32 = vld [vmem:[%s1992_s4 + $0x10] sm:$0xff] }
   0x8   :  { %1321 = vmatprep.mubr.msk.f32.mxu0 %vm84_vm0, %v471_v18  ;;  %v720_v28 = vld [vmem:[%s1995_s7] sm:$0xff]  ;;  %v721_v29 = vld [vmem:[%s1995_s7 + $0x8] sm:$0xff]  ;;  %v1401_v30 = vpack.c.bf16 %v53_v27, %v52_v26  ;;  %v55_v33 = vld [vmem:[%s1992_s4 + $0x18] sm:$0xff] }
   0x9   :  { %1392 = vmatpush3.bf16.msra.mxu1 %v1389_v8  ;;  %v1433_v31 = vpack.c.bf16 %v721_v29, %v720_v28  ;;  %v61_v34 = vld [vmem:[%s1989_s1 + $0x8] sm:$0xff]  ;;  %v722_v35 = vld [vmem:[%s1995_s7 + $0x10] sm:$0xff]  ;;  %v723_v36 = vld [vmem:[%s1995_s7 + $0x18] sm:$0xff]  ;;  %v1405_v39 = vpack.c.bf16 %v55_v33, %v54_v32 }
   0xa   :  { %1424 = vmatpush3.bf16.msra.mxu0 %v1421_v12  ;;  %1394 = vmatprep.subr.bf16.mxu1 %v1393_v16  ;;  %v472_v37 = vld [vmem:[%s1990_s2 + $0x8] sm:$0xff]  ;;  %v62_v38 = vld [vmem:[%s1989_s1 + $0x10] sm:$0xff]  ;;  %v1437_v41 = vpack.c.bf16 %v723_v36, %v722_v35  ;;  %v56_v42 = vld [vmem:[%s1992_s4 + $0x20] sm:$0xff] }
   0xb   :  { %1426 = vmatprep.subr.bf16.mxu0 %v1425_v19  ;;  %v473_v40 = vld [vmem:[%s1990_s2 + $0x10] sm:$0xff]  ;;  %v57_v43 = vld [vmem:[%s1992_s4 + $0x28] sm:$0xff]  ;;  %v63_v44 = vld [vmem:[%s1989_s1 + $0x18] sm:$0xff] }
   0xc   :  { %v724_v45 = vld [vmem:[%s1995_s7 + $0x20] sm:$0xff]  ;;  %v725_v46 = vld [vmem:[%s1995_s7 + $0x28] sm:$0xff]  ;;  %v474_v47 = vld [vmem:[%s1990_s2 + $0x18] sm:$0xff]  ;;  %v1409_v50 = vpack.c.bf16 %v57_v43, %v56_v42 }
   0xd   :  { %1396 = vmatpush3.bf16.msra.mxu1 %v1393_v16  ;;  %v64_v48 = vld [vmem:[%s1989_s1 + $0x20] sm:$0xff]  ;;  %v1441_v51 = vpack.c.bf16 %v725_v46, %v724_v45  ;;  %v58_v52 = vld [vmem:[%s1992_s4 + $0x30] sm:$0xff]  ;;  %v59_v53 = vld [vmem:[%s1992_s4 + $0x38] sm:$0xff] }
   0xe   :  { %1428 = vmatpush3.bf16.msra.mxu0 %v1425_v19  ;;  %1398 = vmatprep.subr.bf16.mxu1 %v1397_v24  ;;  %v475_v49 = vld [vmem:[%s1990_s2 + $0x20] sm:$0xff]  ;;  %v65_v54 = vld [vmem:[%s1989_s1 + $0x28] sm:$0xff]  ;;  %v726_v55 = vld [vmem:[%s1995_s7 + $0x30] sm:$0xff]  ;;  %v1413_v60 = vpack.c.bf16 %v59_v53, %v58_v52 }
   0xf   :  { %1430 = vmatprep.subr.bf16.mxu0 %v1429_v25  ;;  %v727_v56 = vld [vmem:[%s1995_s7 + $0x38] sm:$0xff]  ;;  %v476_v57 = vld [vmem:[%s1990_s2 + $0x28] sm:$0xff]  ;;  %v66_v58 = vld [vmem:[%s1989_s1 + $0x30] sm:$0xff] }
  0x10   :  { %v477_v59 = vld [vmem:[%s1990_s2 + $0x30] sm:$0xff]  ;;  %v1445_v61 = vpack.c.bf16 %v727_v56, %v726_v55  ;;  %v67_v62 = vld [vmem:[%s1989_s1 + $0x38] sm:$0xff]  ;;  %v68_v0 = vld [vmem:[%s1989_s1 + $0x40] sm:$0xff] }
  0x11   :  { %1400 = vmatpush3.bf16.msra.mxu1 %v1397_v24  ;;  %v478_v63 = vld [vmem:[%s1990_s2 + $0x38] sm:$0xff]  ;;  %v479_v1 = vld [vmem:[%s1990_s2 + $0x40] sm:$0xff]  ;;  %v69_v2 = vld [vmem:[%s1989_s1 + $0x48] sm:$0xff] }
  0x12   :  { %1432 = vmatpush3.bf16.msra.mxu0 %v1429_v25  ;;  %1402 = vmatprep.subr.bf16.mxu1 %v1401_v30 }
  0x13   :  { %1434 = vmatprep.subr.bf16.mxu0 %v1433_v31 }
  0x14   :  { %1242 = vmatmul.mubr.msk.f32.vlgmr.msra.gmra.mrb[0].mxu1 %vm84_vm0, %v61_v34 }
  0x15   :  { %1322 = vmatmul.mubr.msk.f32.vlgmr.msra.gmra.mrb[0].mxu0 %vm84_vm0, %v472_v37  ;;  %1404 = vmatpush3.bf16.msra.mxu1 %v1401_v30 }
  0x16   :  { %1436 = vmatpush3.bf16.msra.mxu0 %v1433_v31  ;;  %1244 = vmatprep.mubr.msk.f32.mxu1 %vm84_vm0, %v62_v38 }
  0x17   :  { %1324 = vmatprep.mubr.msk.f32.mxu0 %vm84_vm0, %v473_v40  ;;  %1406 = vmatprep.subr.bf16.mxu1 %v1405_v39 }
  0x18   :  { %1245 = vmatmul.mubr.msk.f32.gmra.mrb[2].mxu1 %vm84_vm0, %v63_v44  ;;  %1438 = vmatprep.subr.bf16.mxu0 %v1437_v41 }
  0x19   :  { %1325 = vmatmul.mubr.msk.f32.gmra.mrb[2].mxu0 %vm84_vm0, %v474_v47  ;;  %1247 = vmatprep.mubr.msk.f32.mxu1 %vm84_vm0, %v64_v48 }
  0x1a   :  { %1327 = vmatprep.mubr.msk.f32.mxu0 %vm84_vm0, %v475_v49  ;;  %1408 = vmatpush3.bf16.msra.mxu1 %v1405_v39 }
  0x1b   :  { %1440 = vmatpush3.bf16.msra.mxu0 %v1437_v41  ;;  %1410 = vmatprep.subr.bf16.mxu1 %v1409_v50 }
  0x1c   :  { %1248 = vmatmul.mubr.msk.f32.gmra.mrb[4].mxu1 %vm84_vm0, %v65_v54  ;;  %1442 = vmatprep.subr.bf16.mxu0 %v1441_v51 }
  0x1d   :  { %1328 = vmatmul.mubr.msk.f32.gmra.mrb[4].mxu0 %vm84_vm0, %v476_v57  ;;  %1250 = vmatprep.mubr.msk.f32.mxu1 %vm84_vm0, %v66_v58 }
  0x1e   :  { %1330 = vmatprep.mubr.msk.f32.mxu0 %vm84_vm0, %v477_v59  ;;  %1412 = vmatpush3.bf16.msra.mxu1 %v1409_v50 }
  0x1f   :  { %1444 = vmatpush3.bf16.msra.mxu0 %v1441_v51  ;;  %1414 = vmatprep.subr.bf16.mxu1 %v1413_v60 }
  0x20   :  { %1251 = vmatmul.mubr.msk.f32.gmra.mrb[6].mxu1 %vm84_vm0, %v67_v62  ;;  %1446 = vmatprep.subr.bf16.mxu0 %v1445_v61 }
  0x21   :  { %1331 = vmatmul.mubr.msk.f32.gmra.mrb[6].mxu0 %vm84_vm0, %v478_v63  ;;  %1253 = vmatprep.mubr.msk.f32.mxu1 %vm84_vm0, %v68_v0 }
  0x22   :  { %15 = vsyncpa [#allocation3], 0  ;;  %1333 = vmatprep.mubr.msk.f32.mxu0 %vm84_vm0, %v479_v1  ;;  %v480_v3 = vld [vmem:[%s1990_s2 + $0x48] sm:$0xff]  ;;  %v70_v4 = vld [vmem:[%s1989_s1 + $0x50] sm:$0xff]  ;;  %1416 = vmatpush3.bf16.msra.mxu1 %v1413_v60 }
  0x23   :  { %v481_v5 = vld [vmem:[%s1990_s2 + $0x50] sm:$0xff]  ;;  %1448 = vmatpush3.bf16.msra.mxu0 %v1445_v61  ;;  %v71_v6 = vld [vmem:[%s1989_s1 + $0x58] sm:$0xff]  ;;  %v72_v8 = vld [vmem:[%s1989_s1 + $0x60] sm:$0xff] }
  0x24   :  { %1254 = vmatmul.mubr.msk.f32.gmra.mrb[8].mxu1 %vm84_vm0, %v69_v2  ;;  %v482_v7 = vld [vmem:[%s1990_s2 + $0x58] sm:$0xff]  ;;  %v483_v9 = vld [vmem:[%s1990_s2 + $0x60] sm:$0xff]  ;;  %v73_v10 = vld [vmem:[%s1989_s1 + $0x68] sm:$0xff] }
  0x25   :  { %1334 = vmatmul.mubr.msk.f32.gmra.mrb[8].mxu0 %vm84_vm0, %v480_v3  ;;  %1256 = vmatprep.mubr.msk.f32.mxu1 %vm84_vm0, %v70_v4  ;;  %v484_v11 = vld [vmem:[%s1990_s2 + $0x68] sm:$0xff]  ;;  %v74_v12 = vld [vmem:[%s1989_s1 + $0x70] sm:$0xff]  ;;  %v75_v14 = vld [vmem:[%s1989_s1 + $0x78] sm:$0xff] }
  0x26   :  { %1336 = vmatprep.mubr.msk.f32.mxu0 %vm84_vm0, %v481_v5  ;;  %v485_v13 = vld [vmem:[%s1990_s2 + $0x70] sm:$0xff]  ;;  %v486_v15 = vld [vmem:[%s1990_s2 + $0x78] sm:$0xff]  ;;  %v36_v16 = vld [vmem:[%s1988_s0] sm:$0xff] }
  0x27   :  { %v704_v17 = vld [vmem:[%s1991_s3] sm:$0xff]  ;;  %v37_v18 = vld [vmem:[%s1988_s0 + $0x8] sm:$0xff]  ;;  %v38_v20 = vld [vmem:[%s1988_s0 + $0x10] sm:$0xff] }
  0x28   :  { %1257 = vmatmul.mubr.msk.f32.gmra.mrb[10].mxu1 %vm84_vm0, %v71_v6  ;;  %v705_v19 = vld [vmem:[%s1991_s3 + $0x8] sm:$0xff]  ;;  %v706_v21 = vld [vmem:[%s1991_s3 + $0x10] sm:$0xff]  ;;  %v39_v22 = vld [vmem:[%s1988_s0 + $0x18] sm:$0xff] }
  0x29   :  { %1337 = vmatmul.mubr.msk.f32.gmra.mrb[10].mxu0 %vm84_vm0, %v482_v7  ;;  %1259 = vmatprep.mubr.msk.f32.mxu1 %vm84_vm0, %v72_v8  ;;  %v707_v23 = vld [vmem:[%s1991_s3 + $0x18] sm:$0xff]  ;;  %v40_v24 = vld [vmem:[%s1988_s0 + $0x20] sm:$0xff]  ;;  %v41_v26 = vld [vmem:[%s1988_s0 + $0x28] sm:$0xff] }
  0x2a   :  { %1339 = vmatprep.mubr.msk.f32.mxu0 %vm84_vm0, %v483_v9  ;;  %v708_v25 = vld [vmem:[%s1991_s3 + $0x20] sm:$0xff]  ;;  %v709_v27 = vld [vmem:[%s1991_s3 + $0x28] sm:$0xff]  ;;  %v42_v28 = vld [vmem:[%s1988_s0 + $0x30] sm:$0xff] }
  0x2b   :  { %v710_v29 = vld [vmem:[%s1991_s3 + $0x30] sm:$0xff]  ;;  %v43_v30 = vld [vmem:[%s1988_s0 + $0x38] sm:$0xff]  ;;  %v44_v32 = vld [vmem:[%s1988_s0 + $0x40] sm:$0xff] }
  0x2c   :  { %1260 = vmatmul.mubr.msk.f32.gmra.mrb[12].mxu1 %vm84_vm0, %v73_v10  ;;  %v711_v31 = vld [vmem:[%s1991_s3 + $0x38] sm:$0xff]  ;;  %v712_v33 = vld [vmem:[%s1991_s3 + $0x40] sm:$0xff]  ;;  %v45_v34 = vld [vmem:[%s1988_s0 + $0x48] sm:$0xff] }
  0x2d   :  { %1340 = vmatmul.mubr.msk.f32.gmra.mrb[12].mxu0 %vm84_vm0, %v484_v11  ;;  %1262 = vmatprep.mubr.msk.f32.mxu1 %vm84_vm0, %v74_v12  ;;  %v713_v35 = vld [vmem:[%s1991_s3 + $0x48] sm:$0xff]  ;;  %v46_v36 = vld [vmem:[%s1988_s0 + $0x50] sm:$0xff]  ;;  %v47_v38 = vld [vmem:[%s1988_s0 + $0x58] sm:$0xff] }
  0x2e   :  { %1342 = vmatprep.mubr.msk.f32.mxu0 %vm84_vm0, %v485_v13  ;;  %v714_v37 = vld [vmem:[%s1991_s3 + $0x50] sm:$0xff]  ;;  %v715_v39 = vld [vmem:[%s1991_s3 + $0x58] sm:$0xff]  ;;  %v48_v40 = vld [vmem:[%s1988_s0 + $0x60] sm:$0xff] }
  0x2f   :  { %v716_v41 = vld [vmem:[%s1991_s3 + $0x60] sm:$0xff]  ;;  %v49_v42 = vld [vmem:[%s1988_s0 + $0x68] sm:$0xff]  ;;  %v50_v44 = vld [vmem:[%s1988_s0 + $0x70] sm:$0xff] }
  0x30   :  { %1263 = vmatmul.mubr.msk.f32.gmra.mrb[14].mxu1 %vm84_vm0, %v75_v14  ;;  %v717_v43 = vld [vmem:[%s1991_s3 + $0x68] sm:$0xff]  ;;  %v718_v45 = vld [vmem:[%s1991_s3 + $0x70] sm:$0xff]  ;;  %v51_v46 = vld [vmem:[%s1988_s0 + $0x78] sm:$0xff] }
  0x31   :  { %1343 = vmatmul.mubr.msk.f32.gmra.mrb[14].mxu0 %vm84_vm0, %v486_v15  ;;  %1281 = vmatprep.mubr.msk.f32.mxu1 %vm84_vm0, %v36_v16  ;;  %v719_v47 = vld [vmem:[%s1991_s3 + $0x78] sm:$0xff]  ;;  %v1937_v50 = vld [vmem:[%s1996_s8] ss:$0 sm:$0xff]  ;;  %s1524_s3 = smov [#allocation2]  }
  0x32   :  { %1361 = vmatprep.mubr.msk.f32.mxu0 %vm84_vm0, %v704_v17  ;;  %v1942_v54 = vld [vmem:[%s1997_s9] ss:$0 sm:$0xff]  ;;  %s1052_s8 = sshll.u32 %s1524_s3, 4  ;;  %s1053_s8 = int_to_ptr.vmem [resolvable:$true] %s1052_s8 }
  0x33   :  { %s1500_s9 = scalar_lea.vmem %s1053_s8, 2048  ;;  %p1505_p1 = scmp.lt.s32.totalorder %s1053_s8, %s1053_s8 }
  0x34   :  { %1282 = vmatmul.mubr.msk.f32.vlgmr.msra.gmra.mrb[0].mxu1 %vm84_vm0, %v37_v18  ;;  %p1501_p0 = scmp.ne.s32.totalorder %s1053_s8, %s1500_s9  ;;  %p1506_p2 = scmp.lt.s32.totalorder %s1500_s9, %s1500_s9 }
  0x35   :  { %1362 = vmatmul.mubr.msk.f32.vlgmr.msra.gmra.mrb[0].mxu0 %vm84_vm0, %v705_v19  ;;  %1284 = vmatprep.mubr.msk.f32.mxu1 %vm84_vm0, %v38_v20 }
  0x36   :  { %1364 = vmatprep.mubr.msk.f32.mxu0 %vm84_vm0, %v706_v21  ;;  %p1507_p3 = por %p1506_p2, %p1505_p1 }
  0x38   :  { %1285 = vmatmul.mubr.msk.f32.gmra.mrb[2].mxu1 %vm84_vm0, %v39_v22  ;;  %p1508_p4 = pnand %p1507_p3, %p1501_p0 }
  0x39   :  { %1365 = vmatmul.mubr.msk.f32.gmra.mrb[2].mxu0 %vm84_vm0, %v707_v23  ;;  %1287 = vmatprep.mubr.msk.f32.mxu1 %vm84_vm0, %v40_v24 }
  0x3a   :  { %1367 = vmatprep.mubr.msk.f32.mxu0 %vm84_vm0, %v708_v25 }
  0x3c   :  { %1288 = vmatmul.mubr.msk.f32.gmra.mrb[4].mxu1 %vm84_vm0, %v41_v26 }
  0x3d   :  { %1368 = vmatmul.mubr.msk.f32.gmra.mrb[4].mxu0 %vm84_vm0, %v709_v27  ;;  %1290 = vmatprep.mubr.msk.f32.mxu1 %vm84_vm0, %v42_v28 }
  0x3e   :  { %1370 = vmatprep.mubr.msk.f32.mxu0 %vm84_vm0, %v710_v29 }
  0x40   :  { %1291 = vmatmul.mubr.msk.f32.gmra.mrb[6].mxu1 %vm84_vm0, %v43_v30 }
  0x41   :  { %1371 = vmatmul.mubr.msk.f32.gmra.mrb[6].mxu0 %vm84_vm0, %v711_v31  ;;  %1293 = vmatprep.mubr.msk.f32.mxu1 %vm84_vm0, %v44_v32 }
  0x42   :  { %1373 = vmatprep.mubr.msk.f32.mxu0 %vm84_vm0, %v712_v33 }
  0x44   :  { %1294 = vmatmul.mubr.msk.f32.gmra.mrb[8].mxu1 %vm84_vm0, %v45_v34 }
  0x45   :  { %1374 = vmatmul.mubr.msk.f32.gmra.mrb[8].mxu0 %vm84_vm0, %v713_v35  ;;  %1296 = vmatprep.mubr.msk.f32.mxu1 %vm84_vm0, %v46_v36 }
  0x46   :  { %1376 = vmatprep.mubr.msk.f32.mxu0 %vm84_vm0, %v714_v37 }
  0x48   :  { %1297 = vmatmul.mubr.msk.f32.gmra.mrb[10].mxu1 %vm84_vm0, %v47_v38 }
  0x49   :  { %1377 = vmatmul.mubr.msk.f32.gmra.mrb[10].mxu0 %vm84_vm0, %v715_v39  ;;  %1299 = vmatprep.mubr.msk.f32.mxu1 %vm84_vm0, %v48_v40 }
  0x4a   :  { %1379 = vmatprep.mubr.msk.f32.mxu0 %vm84_vm0, %v716_v41 }
  0x4c   :  { %1300 = vmatmul.mubr.msk.f32.gmra.mrb[12].mxu1 %vm84_vm0, %v49_v42 }
  0x4d   :  { %1380 = vmatmul.mubr.msk.f32.gmra.mrb[12].mxu0 %vm84_vm0, %v717_v43  ;;  %1302 = vmatprep.mubr.msk.f32.mxu1 %vm84_vm0, %v50_v44 }
  0x4e   :  { %1382 = vmatprep.mubr.msk.f32.mxu0 %vm84_vm0, %v718_v45 }
  0x50   :  { %1303 = vmatmul.mubr.msk.f32.gmra.mrb[14].mxu1 %vm84_vm0, %v51_v46 }
  0x51   :  { %1383 = vmatmul.mubr.msk.f32.gmra.mrb[14].mxu0 %vm84_vm0, %v719_v47 }
 0x107   :  { %v1283_v48 = vpop.f32.mrb[0].mxu1 }
 0x108   :  { %v1363_v49 = vpop.f32.mrb[0].mxu0  ;;  %v392_v51 = vpop.f32.mrb[1].mxu1 }
 0x109   :  { %v1449_v52 = vadd.f32 %v1363_v49, %v1283_v48  ;;  %v842_v53 = vpop.f32.mrb[1].mxu0 }
 0x10a   :  { %v1450_v55 = vadd.f32 %v842_v53, %v392_v51 }
 0x10b   :  { %v945_v56 = vmul.f32 %v1449_v52, %v1937_v50  ;;  %v1286_v57 = vpop.f32.mrb[2].mxu1 }
 0x10c   :  { %v944_v58 = vmul.f32 %v1450_v55, %v1937_v50  ;;  %v1366_v59 = vpop.f32.mrb[2].mxu0  ;;  %v402_v60 = vpop.f32.mrb[3].mxu1 }
 0x10d   :  { %v968_v61 = vadd.f32 %v1942_v54, %v945_v56  ;;  %v1451_v62 = vadd.f32 %v1366_v59, %v1286_v57  ;;  %v852_v63 = vpop.f32.mrb[3].mxu0 }
 0x10e   :  { %v967_v0 = vadd.f32 %v1942_v54, %v944_v58  ;;  %v1452_v1 = vadd.f32 %v852_v63, %v402_v60 }
 0x10f   :  { %vm984_vm1 = vcmp.ge.f32.partialorder %v968_v61, 0.0  ;;  %v1000_v2 = vmul.f32 0.2, %v968_v61  ;;  %v947_v3 = vmul.f32 %v1451_v62, %v1937_v50  ;;  %v1289_v4 = vpop.f32.mrb[4].mxu1 }
 0x110   :  { %vm983_vm2 = vcmp.ge.f32.partialorder %v967_v0, 0.0  ;;  %v999_v5 = vmul.f32 0.2, %v967_v0  ;;  %v946_v6 = vmul.f32 %v1452_v1, %v1937_v50  ;;  %v1369_v7 = vpop.f32.mrb[4].mxu0  ;;  %v412_v8 = vpop.f32.mrb[5].mxu1 }
 0x111   :  { %v1016_v9 = vsel %vm984_vm1, %v968_v61, %v1000_v2  ;;  %v970_v10 = vadd.f32 %v1942_v54, %v947_v3  ;;  %v1453_v11 = vadd.f32 %v1369_v7, %v1289_v4  ;;  %v862_v12 = vpop.f32.mrb[5].mxu0 }
 0x112   :  { %1032 = vst [vmem:[#allocation2 + $0x8] sm:$0xff] %v1016_v9  ;;  %v1015_v13 = vsel %vm983_vm2, %v967_v0, %v999_v5  ;;  %v969_v14 = vadd.f32 %v1942_v54, %v946_v6  ;;  %v1454_v15 = vadd.f32 %v862_v12, %v412_v8 }
 0x113   :  { %1031 = vst [vmem:[#allocation2] sm:$0xff] %v1015_v13  ;;  %vm986_vm3 = vcmp.ge.f32.partialorder %v970_v10, 0.0  ;;  %v1002_v16 = vmul.f32 0.2, %v970_v10  ;;  %v949_v17 = vmul.f32 %v1453_v11, %v1937_v50  ;;  %v1292_v18 = vpop.f32.mrb[6].mxu1 }
 0x114   :  { %vm985_vm4 = vcmp.ge.f32.partialorder %v969_v14, 0.0  ;;  %v1001_v19 = vmul.f32 0.2, %v969_v14  ;;  %v948_v20 = vmul.f32 %v1454_v15, %v1937_v50  ;;  %v1372_v21 = vpop.f32.mrb[6].mxu0  ;;  %v422_v22 = vpop.f32.mrb[7].mxu1 }
 0x115   :  { %v1018_v23 = vsel %vm986_vm3, %v970_v10, %v1002_v16  ;;  %v972_v24 = vadd.f32 %v1942_v54, %v949_v17  ;;  %v1455_v25 = vadd.f32 %v1372_v21, %v1292_v18  ;;  %v872_v26 = vpop.f32.mrb[7].mxu0 }
 0x116   :  { %1034 = vst [vmem:[#allocation2 + $0x18] sm:$0xff] %v1018_v23  ;;  %v1017_v27 = vsel %vm985_vm4, %v969_v14, %v1001_v19  ;;  %v971_v28 = vadd.f32 %v1942_v54, %v948_v20  ;;  %v1456_v29 = vadd.f32 %v872_v26, %v422_v22 }
 0x117   :  { %1033 = vst [vmem:[#allocation2 + $0x10] sm:$0xff] %v1017_v27  ;;  %vm988_vm5 = vcmp.ge.f32.partialorder %v972_v24, 0.0  ;;  %v1004_v30 = vmul.f32 0.2, %v972_v24  ;;  %v951_v31 = vmul.f32 %v1455_v25, %v1937_v50  ;;  %v1295_v32 = vpop.f32.mrb[8].mxu1 }
 0x118   :  { %vm987_vm6 = vcmp.ge.f32.partialorder %v971_v28, 0.0  ;;  %v1003_v33 = vmul.f32 0.2, %v971_v28  ;;  %v950_v34 = vmul.f32 %v1456_v29, %v1937_v50  ;;  %v1375_v35 = vpop.f32.mrb[8].mxu0  ;;  %v432_v36 = vpop.f32.mrb[9].mxu1 }
 0x119   :  { %v1020_v37 = vsel %vm988_vm5, %v972_v24, %v1004_v30  ;;  %v974_v38 = vadd.f32 %v1942_v54, %v951_v31  ;;  %v1457_v39 = vadd.f32 %v1375_v35, %v1295_v32  ;;  %v882_v40 = vpop.f32.mrb[9].mxu0 }
 0x11a   :  { %1036 = vst [vmem:[#allocation2 + $0x28] sm:$0xff] %v1020_v37  ;;  %v1019_v41 = vsel %vm987_vm6, %v971_v28, %v1003_v33  ;;  %v973_v42 = vadd.f32 %v1942_v54, %v950_v34  ;;  %v1458_v43 = vadd.f32 %v882_v40, %v432_v36 }
 0x11b   :  { %1035 = vst [vmem:[#allocation2 + $0x20] sm:$0xff] %v1019_v41  ;;  %vm990_vm7 = vcmp.ge.f32.partialorder %v974_v38, 0.0  ;;  %v1006_v44 = vmul.f32 0.2, %v974_v38  ;;  %v953_v45 = vmul.f32 %v1457_v39, %v1937_v50  ;;  %v1298_v46 = vpop.f32.mrb[10].mxu1 }
 0x11c   :  { %vm989_vm8 = vcmp.ge.f32.partialorder %v973_v42, 0.0  ;;  %v1005_v47 = vmul.f32 0.2, %v973_v42  ;;  %v952_v48 = vmul.f32 %v1458_v43, %v1937_v50  ;;  %v1378_v49 = vpop.f32.mrb[10].mxu0  ;;  %v442_v51 = vpop.f32.mrb[11].mxu1 }
 0x11d   :  { %v1022_v52 = vsel %vm990_vm7, %v974_v38, %v1006_v44  ;;  %v976_v53 = vadd.f32 %v1942_v54, %v953_v45  ;;  %v1459_v55 = vadd.f32 %v1378_v49, %v1298_v46  ;;  %v892_v56 = vpop.f32.mrb[11].mxu0 }
 0x11e   :  { %1038 = vst [vmem:[#allocation2 + $0x38] sm:$0xff] %v1022_v52  ;;  %v1021_v57 = vsel %vm989_vm8, %v973_v42, %v1005_v47  ;;  %v975_v58 = vadd.f32 %v1942_v54, %v952_v48  ;;  %v1460_v59 = vadd.f32 %v892_v56, %v442_v51 }
 0x11f   :  { %1037 = vst [vmem:[#allocation2 + $0x30] sm:$0xff] %v1021_v57  ;;  %vm992_vm9 = vcmp.ge.f32.partialorder %v976_v53, 0.0  ;;  %v1008_v60 = vmul.f32 0.2, %v976_v53  ;;  %v955_v61 = vmul.f32 %v1459_v55, %v1937_v50  ;;  %v1301_v62 = vpop.f32.mrb[12].mxu1 }
 0x120   :  { %vm991_vm10 = vcmp.ge.f32.partialorder %v975_v58, 0.0  ;;  %v1007_v63 = vmul.f32 0.2, %v975_v58  ;;  %v954_v0 = vmul.f32 %v1460_v59, %v1937_v50  ;;  %v1381_v1 = vpop.f32.mrb[12].mxu0  ;;  %v452_v2 = vpop.f32.mrb[13].mxu1 }
 0x121   :  { %v1024_v3 = vsel %vm992_vm9, %v976_v53, %v1008_v60  ;;  %v978_v4 = vadd.f32 %v1942_v54, %v955_v61  ;;  %v1461_v5 = vadd.f32 %v1381_v1, %v1301_v62  ;;  %v902_v6 = vpop.f32.mrb[13].mxu0 }
 0x122   :  { %1040 = vst [vmem:[#allocation2 + $0x48] sm:$0xff] %v1024_v3  ;;  %v1023_v7 = vsel %vm991_vm10, %v975_v58, %v1007_v63  ;;  %v977_v8 = vadd.f32 %v1942_v54, %v954_v0  ;;  %v1462_v9 = vadd.f32 %v902_v6, %v452_v2 }
 0x123   :  { %1039 = vst [vmem:[#allocation2 + $0x40] sm:$0xff] %v1023_v7  ;;  %vm994_vm11 = vcmp.ge.f32.partialorder %v978_v4, 0.0  ;;  %v1010_v10 = vmul.f32 0.2, %v978_v4  ;;  %v957_v11 = vmul.f32 %v1461_v5, %v1937_v50  ;;  %v1304_v12 = vpop.f32.mrb[14].mxu1 }
 0x124   :  { %vm993_vm12 = vcmp.ge.f32.partialorder %v977_v8, 0.0  ;;  %v1009_v13 = vmul.f32 0.2, %v977_v8  ;;  %v956_v14 = vmul.f32 %v1462_v9, %v1937_v50  ;;  %v1384_v15 = vpop.f32.mrb[14].mxu0  ;;  %v462_v16 = vpop.f32.mrb[15].mxu1 }
 0x125   :  { %v1026_v17 = vsel %vm994_vm11, %v978_v4, %v1010_v10  ;;  %v980_v18 = vadd.f32 %v1942_v54, %v957_v11  ;;  %v1463_v19 = vadd.f32 %v1384_v15, %v1304_v12  ;;  %v912_v20 = vpop.f32.mrb[15].mxu0 }
 0x126   :  { %1042 = vst [vmem:[#allocation2 + $0x58] sm:$0xff] %v1026_v17  ;;  %v1025_v21 = vsel %vm993_vm12, %v977_v8, %v1009_v13  ;;  %v979_v22 = vadd.f32 %v1942_v54, %v956_v14  ;;  %v1464_v23 = vadd.f32 %v912_v20, %v462_v16 }
 0x127   :  { %1041 = vst [vmem:[#allocation2 + $0x50] sm:$0xff] %v1025_v21  ;;  %vm996_vm13 = vcmp.ge.f32.partialorder %v980_v18, 0.0  ;;  %v1012_v24 = vmul.f32 0.2, %v980_v18  ;;  %v959_v25 = vmul.f32 %v1463_v19, %v1937_v50 }
 0x128   :  { %vm995_vm14 = vcmp.ge.f32.partialorder %v979_v22, 0.0  ;;  %v1011_v26 = vmul.f32 0.2, %v979_v22  ;;  %v958_v27 = vmul.f32 %v1464_v23, %v1937_v50 }
 0x129   :  { %v1028_v28 = vsel %vm996_vm13, %v980_v18, %v1012_v24  ;;  %v982_v29 = vadd.f32 %v1942_v54, %v959_v25 }
 0x12a   :  { %1044 = vst [vmem:[#allocation2 + $0x68] sm:$0xff] %v1028_v28  ;;  %v1027_v30 = vsel %vm995_vm14, %v979_v22, %v1011_v26  ;;  %v981_v31 = vadd.f32 %v1942_v54, %v958_v27 }
 0x12b   :  { %1043 = vst [vmem:[#allocation2 + $0x60] sm:$0xff] %v1027_v30  ;;  %vm998_vm15 = vcmp.ge.f32.partialorder %v982_v29, 0.0  ;;  %v1014_v32 = vmul.f32 0.2, %v982_v29 }
 0x12c   :  { %vm997_vm0 = vcmp.ge.f32.partialorder %v981_v31, 0.0  ;;  %v1013_v33 = vmul.f32 0.2, %v981_v31 }
 0x12d   :  { %v1030_v34 = vsel %vm998_vm15, %v982_v29, %v1014_v32 }
 0x12e   :  { %1046 = vst [vmem:[#allocation2 + $0x78] sm:$0xff] %v1030_v34  ;;  %v1029_v35 = vsel %vm997_vm0, %v981_v31, %v1013_v33 }
 0x12f   :  { %1045 = vst [vmem:[#allocation2 + $0x70] sm:$0xff] %v1029_v35 }
 0x130   :  { %1511 = shalt.err (!%p1508_p4)
}
 0x131   :  { %s1512_s20 = scalar_lea.hbm %s1998_s10, 2048 }
 0x132   :  { %p1513_p5 = scmp.ne.s32.totalorder %s1998_s10, %s1512_s20  ;;  %p1516_p6 = scmp.lt.u32.totalorder %s1512_s20, %s1998_s10 }
 0x134   :  { %p1518_p7 = pnand %p1516_p6, %p1513_p5 }
 0x136   :  { %1521 = shalt.err (!%p1518_p7)
}
 0x137   :  { %s1525_s25 = smov 128   ;;  %s1526_s26 = smov 8  }
 0x138   :  { %1058 = dma.vmem_to_hbm [thread:$0]  %s1053_s8, 2048, %s1998_s10, [#allocation3], %s1525_s25, %s1525_s25, %s1526_s26  }
 0x139   :  { %1522 = dma.done.wait [#allocation3], 2048  }
 0x13a   :  { %1523 = vsyncadd [#allocation3], 4294965248 }
 0x13b   :  { %1062 = vsyncpa [#allocation3], 1 }

// kernel: _lambda_.15
= control target key start
LH: loop header
LB: loop body
LE: loop exit
PB: predicated region body
PF: predicated region fallthrough
CT: control target
= control target key end

     0   :  { %s3622_s9 = smov 64   ;;  %vm253_vm0 = vcmask 523264   ;;  %s5669_s1 = inlined_call_operand.vmem [shape: bf16[128,128], index: 1, kind: input, shape index: {}]   ;;  %s5670_s2 = inlined_call_operand.vmem [shape: bf16[64,64], index: 2, kind: input, shape index: {}]   ;;  %s5671_s0 = inlined_call_operand.vmem [shape: bf16[8,128,64], index: 0, kind: input, shape index: {}]   ;;  %s5672_s3 = inlined_call_operand.vmem [shape: f32[1,64], index: 3, kind: input, shape index: {}]   ;;  %s5673_s4 = inlined_call_operand.vmem [shape: f32[1,64], index: 4, kind: input, shape index: {}]   ;;  %s5674_s5 = inlined_call_operand.vmem [shape: f32[128,64], index: 5, kind: output, shape index: {}]  }
   0x1   :  { %v2926_v0 = vld [vmem:[%s5669_s1] sm:$0xff]   ;;  %v3213_v1 = vld [vmem:[%s5669_s1 + $0x8] sm:$0xff]   ;;  %v3214_v2 = vld [vmem:[%s5669_s1 + $0x10] sm:$0xff]  }
   0x2   :  { %v2927_v3 = vunpack.c.l.bf16 %v2926_v0  ;;  %v2928_v4 = vunpack.c.h.bf16 %v2926_v0  ;;  %v2931_v5 = vunpack.c.l.bf16 %v3213_v1  ;;  %v2932_v6 = vunpack.c.h.bf16 %v3213_v1  ;;  %v3215_v7 = vld [vmem:[%s5669_s1 + $0x18] sm:$0xff]   ;;  %v3216_v12 = vld [vmem:[%s5669_s1 + $0x20] sm:$0xff]   ;;  %v3217_v13 = vld [vmem:[%s5669_s1 + $0x28] sm:$0xff]  }
   0x3   :  { %v2935_v8 = vunpack.c.l.bf16 %v3214_v2  ;;  %v2936_v9 = vunpack.c.h.bf16 %v3214_v2  ;;  %v2939_v10 = vunpack.c.l.bf16 %v3215_v7  ;;  %v2940_v11 = vunpack.c.h.bf16 %v3215_v7  ;;  %v3674_v15 = vld [vmem:[%s5670_s2] sm:$0xff]   ;;  %v3679_v17 = vld [vmem:[%s5670_s2 + $0x8] sm:$0xff]   ;;  %v3218_v24 = vld [vmem:[%s5669_s1 + $0x30] sm:$0xff]  }
   0x4   :  { %v3572_v14 = vpack.i.bf16 %v2928_v4, %v2927_v3  ;;  %v3577_v18 = vpack.i.bf16 %v2932_v6, %v2931_v5  ;;  %v2943_v19 = vunpack.c.l.bf16 %v3216_v12  ;;  %v2944_v20 = vunpack.c.h.bf16 %v3216_v12  ;;  %3379 = vmatprep.subr.bf16.mxu0 %v3674_v15  ;;  %v3219_v25 = vld [vmem:[%s5669_s1 + $0x38] sm:$0xff]   ;;  %3403 = vmatprep.subr.bf16.mxu1 %v3674_v15  ;;  %v3696_v26 = vld [vmem:[%s5670_s2 + $0x10] sm:$0xff]   ;;  %v3726_v36 = vld [vmem:[%s5671_s0] sm:$0xff]  }
   0x5   :  { %v3582_v16 = vpack.i.bf16 %v2936_v9, %v2935_v8  ;;  %v3587_v21 = vpack.i.bf16 %v2940_v11, %v2939_v10  ;;  %v2947_v22 = vunpack.c.l.bf16 %v3217_v13  ;;  %v2948_v23 = vunpack.c.h.bf16 %v3217_v13  ;;  %3380 = vmatpush3.bf16.msra.mxu0 %v3674_v15  ;;  %3404 = vmatpush3.bf16.msra.mxu1 %v3674_v15  ;;  %v3707_v33 = vld [vmem:[%s5670_s2 + $0x18] sm:$0xff]   ;;  %v3731_v37 = vld [vmem:[%s5671_s0 + $0x40] sm:$0xff]   ;;  %v3736_v38 = vld [vmem:[%s5671_s0 + $0x8] sm:$0xff]  }
   0x6   :  { %3573 = vrot.lane.b32.xlu0 %v3572_v14, %s3622_s9  ;;  %3381 = vmatprep.subr.bf16.mxu0 %v3679_v17  ;;  %v3592_v27 = vpack.i.bf16 %v2944_v20, %v2943_v19  ;;  %v2951_v28 = vunpack.c.l.bf16 %v3218_v24  ;;  %v2952_v29 = vunpack.c.h.bf16 %v3218_v24  ;;  %v2955_v31 = vunpack.c.l.bf16 %v3219_v25  ;;  %v3741_v39 = vld [vmem:[%s5671_s0 + $0x48] sm:$0xff]   ;;  %v3746_v40 = vld [vmem:[%s5671_s0 + $0x10] sm:$0xff]   ;;  %v3760_v46 = vld [vmem:[%s5671_s0 + $0x18] sm:$0xff]  }
   0x7   :  { %3583 = vrot.lane.b32.xlu1 %v3582_v16, %s3622_s9  ;;  %3405 = vmatprep.subr.bf16.mxu1 %v3679_v17  ;;  %v3597_v30 = vpack.i.bf16 %v2948_v23, %v2947_v22  ;;  %v2956_v32 = vunpack.c.h.bf16 %v3219_v25  ;;  %v3751_v41 = vld [vmem:[%s5671_s0 + $0x50] sm:$0xff]   ;;  %v3765_v47 = vld [vmem:[%s5671_s0 + $0x58] sm:$0xff]   ;;  %v3774_v52 = vld [vmem:[%s5671_s0 + $0x20] sm:$0xff]   ;;  %v5772_v57 = vunpack.c.l.bf16 %v3746_v40 }
   0x8   :  { %v3602_v34 = vpack.i.bf16 %v2952_v29, %v2951_v28  ;;  %v3779_v53 = vld [vmem:[%s5671_s0 + $0x80] sm:$0xff]   ;;  %v3793_v59 = vld [vmem:[%s5671_s0 + $0x28] sm:$0xff]   ;;  %v3807_v1 = vld [vmem:[%s5671_s0 + $0x30] sm:$0xff]  }
   0x9   :  { %3382 = vmatpush3.bf16.msra.mxu0 %v3679_v17  ;;  %3406 = vmatpush3.bf16.msra.mxu1 %v3679_v17  ;;  %v3607_v35 = vpack.i.bf16 %v2956_v32, %v2955_v31  ;;  %v3788_v58 = vld [vmem:[%s5671_s0 + $0x60] sm:$0xff]   ;;  %v3802_v0 = vld [vmem:[%s5671_s0 + $0x68] sm:$0xff]   ;;  %v3814_v4 = vld [vmem:[%s5671_s0 + $0x70] sm:$0xff]  }
   0xa   :  { %3578 = vrot.lane.b32.xlu0 %v3577_v18, %s3622_s9  ;;  %3383 = vmatprep.subr.bf16.mxu0 %v3696_v26  ;;  %v3819_v5 = vld [vmem:[%s5671_s0 + $0x38] sm:$0xff]   ;;  %v3835_v13 = vld [vmem:[%s5671_s0 + $0xc0] sm:$0xff]   ;;  %v3844_v20 = vld [vmem:[%s5671_s0 + $0x88] sm:$0xff]  }
   0xb   :  { %3588 = vrot.lane.b32.xlu1 %v3587_v21, %s3622_s9  ;;  %3407 = vmatprep.subr.bf16.mxu1 %v3696_v26  ;;  %v3830_v12 = vld [vmem:[%s5671_s0 + $0x78] sm:$0xff]   ;;  %v3849_v21 = vld [vmem:[%s5671_s0 + $0xc8] sm:$0xff]   ;;  %v3863_v28 = vld [vmem:[%s5671_s0 + $0x100] sm:$0xff]  }
   0xc   :  { %5744 = vst [vmem:[#allocation2_spill] sm:$0xff] %v3863_v28  ;;  %v3886_v32 = vld [vmem:[%s5671_s0 + $0xd8] sm:$0xff]   ;;  %v3891_v29 = vld [vmem:[%s5671_s0 + $0xa0] sm:$0xff]   ;;  %v3903_v31 = vld [vmem:[%s5671_s0 + $0xa8] sm:$0xff]  }
   0xd   :  { %3384 = vmatpush3.bf16.msra.mxu0 %v3696_v26  ;;  %3408 = vmatpush3.bf16.msra.mxu1 %v3696_v26  ;;  %v3914_v19 = vld [vmem:[%s5671_s0 + $0xe8] sm:$0xff]   ;;  %v3919_v18 = vld [vmem:[%s5671_s0 + $0xb0] sm:$0xff]   ;;  %v3933_v23 = vld [vmem:[%s5671_s0 + $0xb8] sm:$0xff]  }
   0xe   :  { %3593 = vrot.lane.b32.xlu0 %v3592_v27, %s3622_s9  ;;  %3385 = vmatprep.subr.bf16.mxu0 %v3707_v33  ;;  %v3858_v27 = vld [vmem:[%s5671_s0 + $0x90] sm:$0xff]   ;;  %v3942_v7 = vld [vmem:[%s5671_s0 + $0xf8] sm:$0xff]   ;;  %v3947_v14 = vld [vmem:[%s5671_s0 + $0x140] sm:$0xff]  }
   0xf   :  { %3598 = vrot.lane.b32.xlu1 %v3597_v30, %s3622_s9  ;;  %3409 = vmatprep.subr.bf16.mxu1 %v3707_v33  ;;  %v3898_v30 = vld [vmem:[%s5671_s0 + $0xe0] sm:$0xff]   ;;  %v3928_v22 = vld [vmem:[%s5671_s0 + $0xf0] sm:$0xff]   ;;  %5745 = vst [vmem:[#allocation3_spill] sm:$0xff] %v3947_v14  ;;  %v3956_v25 = vld [vmem:[%s5671_s0 + $0x108] sm:$0xff]  }
  0x10   :  { %5746 = vst [vmem:[#allocation4_spill] sm:$0xff] %v3956_v25  ;;  %v3961_v10 = vld [vmem:[%s5671_s0 + $0x148] sm:$0xff]   ;;  %v3970_v6 = vld [vmem:[%s5671_s0 + $0x110] sm:$0xff]   ;;  %v3975_v8 = vld [vmem:[%s5671_s0 + $0x180] sm:$0xff]   ;;  %v5778_v25 = vunpack.c.l.bf16 %v3741_v39 }
  0x11   :  { %3386 = vmatpush3.bf16.msra.mxu0 %v3707_v33  ;;  %3410 = vmatpush3.bf16.msra.mxu1 %v3707_v33  ;;  %5747 = vst [vmem:[#allocation5_spill] sm:$0xff] %v3961_v10  ;;  %5748 = vst [vmem:[#allocation6_spill] sm:$0xff] %v3970_v6  ;;  %v3984_v24 = vld [vmem:[%s5671_s0 + $0x150] sm:$0xff]   ;;  %v3989_v2 = vld [vmem:[%s5671_s0 + $0x118] sm:$0xff]  }
  0x12   :  { %3603 = vrot.lane.b32.xlu0 %v3602_v34, %s3622_s9  ;;  %3427 = vmatprep.subr.bf16.mxu0 %v3674_v15  ;;  %v3872_v34 = vld [vmem:[%s5671_s0 + $0xd0] sm:$0xff]   ;;  %5749 = vst [vmem:[#allocation7_spill] sm:$0xff] %v3975_v8  ;;  %5750 = vst [vmem:[#allocation8_spill] sm:$0xff] %v3984_v24  ;;  %v3998_v16 = vld [vmem:[%s5671_s0 + $0x158] sm:$0xff]  }
  0x13   :  { %3608 = vrot.lane.b32.xlu1 %v3607_v35, %s3622_s9  ;;  %3451 = vmatprep.subr.bf16.mxu1 %v3674_v15  ;;  %v3877_v35 = vld [vmem:[%s5671_s0 + $0x98] sm:$0xff]   ;;  %5751 = vst [vmem:[#allocation9_spill] sm:$0xff] %v3989_v2  ;;  %5752 = vst [vmem:[#allocation10_spill] sm:$0xff] %v3998_v16  ;;  %v4003_v62 = vld [vmem:[%s5671_s0 + $0x120] sm:$0xff]   ;;  %v5777_v2 = vunpack.c.h.bf16 %v3736_v38 }
  0x14   :  { %5753 = vst [vmem:[#allocation11_spill] sm:$0xff] %v4003_v62  ;;  %v4010_v9 = vld [vmem:[%s5671_s0 + $0x160] sm:$0xff]   ;;  %v4015_v11 = vld [vmem:[%s5671_s0 + $0x128] sm:$0xff]   ;;  %v4031_v48 = vld [vmem:[%s5671_s0 + $0x130] sm:$0xff]  }
  0x15   :  { %5754 = vst [vmem:[#allocation12_spill] sm:$0xff] %v4010_v9  ;;  %5755 = vst [vmem:[#allocation13_spill] sm:$0xff] %v4015_v11  ;;  %v4026_v49 = vld [vmem:[%s5671_s0 + $0x168] sm:$0xff]   ;;  %v4040_v50 = vld [vmem:[%s5671_s0 + $0x170] sm:$0xff]  }
  0x16   :  { %5756 = vst [vmem:[#allocation14_spill] sm:$0xff] %v4026_v49  ;;  %5757 = vst [vmem:[#allocation15_spill] sm:$0xff] %v4031_v48  ;;  %v4045_v51 = vld [vmem:[%s5671_s0 + $0x138] sm:$0xff]   ;;  %v4059_v56 = vld [vmem:[%s5671_s0 + $0x1c0] sm:$0xff]   ;;  %v5775_v49 = vunpack.c.h.bf16 %v3751_v41 }
  0x17   :  { %5758 = vst [vmem:[#allocation16_spill] sm:$0xff] %v4040_v50  ;;  %5759 = vst [vmem:[#allocation17_spill] sm:$0xff] %v4045_v51  ;;  %v4054_v63 = vld [vmem:[%s5671_s0 + $0x178] sm:$0xff]   ;;  %v4068_v61 = vld [vmem:[%s5671_s0 + $0x188] sm:$0xff]  }
  0x18   :  { %5760 = vst [vmem:[#allocation18_spill] sm:$0xff] %v4054_v63  ;;  %5761 = vst [vmem:[#allocation19_spill] sm:$0xff] %v4059_v56  ;;  %v4073_v54 = vld [vmem:[%s5671_s0 + $0x1c8] sm:$0xff]   ;;  %v4082_v3 = vld [vmem:[%s5671_s0 + $0x190] sm:$0xff]   ;;  %v5768_v56 = vunpack.c.l.bf16 %v3726_v36 }
  0x19   :  { %5762 = vst [vmem:[#allocation20_spill] sm:$0xff] %v4068_v61  ;;  %5763 = vst [vmem:[#allocation21_spill] sm:$0xff] %v4073_v54  ;;  %v4087_v44 = vld [vmem:[%s5671_s0 + $0x1d0] sm:$0xff]   ;;  %v4096_v60 = vld [vmem:[%s5671_s0 + $0x198] sm:$0xff]   ;;  %v5770_v54 = vunpack.c.l.bf16 %v3731_v37 }
  0x1a   :  { %5764 = vst [vmem:[#allocation22_spill] sm:$0xff] %v4082_v3  ;;  %5765 = vst [vmem:[#allocation23_spill] sm:$0xff] %v4087_v44  ;;  %v4105_v45 = vld [vmem:[%s5671_s0 + $0x1d8] sm:$0xff]  }
  0x1b   :  { %5766 = vst [vmem:[#allocation24_spill] sm:$0xff] %v4096_v60  ;;  %5767 = vst [vmem:[#allocation25_spill] sm:$0xff] %v4105_v45  ;;  %v5771_v60 = vunpack.c.h.bf16 %v3731_v37  ;;  %v5773_v45 = vunpack.c.h.bf16 %v3746_v40 }
  0x78   :  { %v3574_v55 = vpop.permute.xlu0 %3573 }
  0x79   :  { %v4111_v8 = vunpack.i.h.bf16 %v3574_v55  ;;  %v4113_v51 = vunpack.i.l.bf16 %v3574_v55  ;;  %v3584_v50 = vpop.permute.xlu1 %3583  ;;  %v5769_v55 = vunpack.c.h.bf16 %v3726_v36  ;;  %v5774_v36 = vunpack.c.l.bf16 %v3751_v41 }
  0x7a   :  { %v4117_v63 = vunpack.i.h.bf16 %v3584_v50  ;;  %v4119_v48 = vunpack.i.l.bf16 %v3584_v50 }
  0x7b   :  { %v149_v42 = vadd.f32 %v4113_v51, %v5768_v56  ;;  %v150_v44 = vadd.f32 %v4111_v8, %v5769_v55  ;;  %v502_v61 = vadd.f32 %v4113_v51, %v5770_v54  ;;  %v503_v50 = vadd.f32 %v4111_v8, %v5771_v60 }
  0x7c   :  { %v3579_v3 = vpop.permute.xlu0 %3578  ;;  %v153_v43 = vadd.f32 %v4119_v48, %v5772_v57  ;;  %v154_v56 = vadd.f32 %v4117_v63, %v5773_v45  ;;  %v506_v55 = vadd.f32 %v4119_v48, %v5774_v36  ;;  %v507_v54 = vadd.f32 %v4117_v63, %v5775_v49 }
  0x7d   :  { %v4147_v37 = vunpack.i.h.bf16 %v3579_v3  ;;  %v4149_v60 = vunpack.i.l.bf16 %v3579_v3  ;;  %v3589_v11 = vpop.permute.xlu1 %3588  ;;  %vm165_vm1 = vcmp.ge.f32.partialorder %v149_v42, 0.0  ;;  %vm166_vm2 = vcmp.ge.f32.partialorder %v150_v44, 0.0 }
  0x7e   :  { %v4151_v57 = vunpack.i.h.bf16 %v3589_v11  ;;  %v4153_v40 = vunpack.i.l.bf16 %v3589_v11  ;;  %v181_v45 = vmul.f32 0.2, %v149_v42  ;;  %v182_v9 = vmul.f32 0.2, %v150_v44 }
  0x7f   :  { %vm518_vm3 = vcmp.ge.f32.partialorder %v502_v61, 0.0  ;;  %vm519_vm4 = vcmp.ge.f32.partialorder %v503_v50, 0.0  ;;  %v534_v36 = vmul.f32 0.2, %v502_v61  ;;  %v535_v62 = vmul.f32 0.2, %v503_v50 }
  0x80   :  { %v197_v41 = vsel %vm165_vm1, %v149_v42, %v181_v45  ;;  %v198_v16 = vsel %vm166_vm2, %v150_v44, %v182_v9  ;;  %v5776_v49 = vunpack.c.l.bf16 %v3736_v38  ;;  %v152_v24 = vadd.f32 %v4147_v37, %v5777_v2 }
  0x81   :  { %v213_v6 = vpack.c.bf16 %v198_v16, %v197_v41  ;;  %v550_v10 = vsel %vm518_vm3, %v502_v61, %v534_v36  ;;  %v551_v11 = vsel %vm519_vm4, %v503_v50, %v535_v62  ;;  %v504_v14 = vadd.f32 %v4149_v60, %v5778_v25  ;;  %v3594_v16 = vpop.permute.xlu0 %3593 }
  0x82   :  { %v151_v3 = vadd.f32 %v4149_v60, %v5776_v49  ;;  %v566_v28 = vpack.c.bf16 %v551_v11, %v550_v10  ;;  %vm168_vm6 = vcmp.ge.f32.partialorder %v152_v24, 0.0  ;;  %v184_v44 = vmul.f32 0.2, %v152_v24 }
  0x83   :  { %3387 = vmatprep.mubr.msk.bf16.mxu0 %vm253_vm0, %v213_v6  ;;  %v5779_v9 = vunpack.c.h.bf16 %v3741_v39  ;;  %vm520_vm7 = vcmp.ge.f32.partialorder %v504_v14, 0.0  ;;  %v536_v2 = vmul.f32 0.2, %v504_v14  ;;  %vm169_vm8 = vcmp.ge.f32.partialorder %v153_v43, 0.0  ;;  %v3599_v39 = vpop.permute.xlu1 %3598 }
  0x84   :  { %vm167_vm5 = vcmp.ge.f32.partialorder %v151_v3, 0.0  ;;  %v183_v42 = vmul.f32 0.2, %v151_v3  ;;  %3411 = vmatprep.mubr.msk.bf16.mxu1 %vm253_vm0, %v566_v28  ;;  %vm170_vm9 = vcmp.ge.f32.partialorder %v154_v56, 0.0  ;;  %v185_v62 = vmul.f32 0.2, %v153_v43 }
  0x85   :  { %v505_v38 = vadd.f32 %v4147_v37, %v5779_v9  ;;  %v200_v10 = vsel %vm168_vm6, %v152_v24, %v184_v44  ;;  %v552_v50 = vsel %vm520_vm7, %v504_v14, %v536_v2  ;;  %v186_v6 = vmul.f32 0.2, %v154_v56  ;;  %v3604_v44 = vpop.permute.xlu0 %3603 }
  0x86   :  { %v199_v61 = vsel %vm167_vm5, %v151_v3, %v183_v42  ;;  %v201_v36 = vsel %vm169_vm8, %v153_v43, %v185_v62  ;;  %vm522_vm11 = vcmp.ge.f32.partialorder %v506_v55, 0.0  ;;  %vm523_vm12 = vcmp.ge.f32.partialorder %v507_v54, 0.0 }
  0x87   :  { %vm521_vm10 = vcmp.ge.f32.partialorder %v505_v38, 0.0  ;;  %v537_v25 = vmul.f32 0.2, %v505_v38  ;;  %v214_v45 = vpack.c.bf16 %v200_v10, %v199_v61  ;;  %v538_v49 = vmul.f32 0.2, %v506_v55 }
  0x88   :  { %v539_v11 = vmul.f32 0.2, %v507_v54  ;;  %v202_v3 = vsel %vm170_vm9, %v154_v56, %v186_v6  ;;  %v4171_v42 = vunpack.i.h.bf16 %v3594_v16  ;;  %v4173_v24 = vunpack.i.l.bf16 %v3594_v16 }
  0x89   :  { %v553_v41 = vsel %vm521_vm10, %v505_v38, %v537_v25  ;;  %3388 = vmatmul.mubr.msk.bf16.vlgmr.msra.gmra.mrb[0].mxu0 %vm253_vm0, %v214_v45  ;;  %v215_v14 = vpack.c.bf16 %v202_v3, %v201_v36  ;;  %v554_v43 = vsel %vm522_vm11, %v506_v55, %v538_v49  ;;  %v4176_v2 = vunpack.i.h.bf16 %v3599_v39  ;;  %v3609_v36 = vpop.permute.xlu1 %3608 }
  0x8a   :  { %v567_v28 = vpack.c.bf16 %v553_v41, %v552_v50  ;;  %3428 = vmatpush3.bf16.msra.mxu0 %v3674_v15  ;;  %v555_v9 = vsel %vm523_vm12, %v507_v54, %v539_v11  ;;  %v4179_v61 = vunpack.i.l.bf16 %v3599_v39  ;;  %v5780_v56 = vunpack.c.l.bf16 %v3760_v46 }
  0x8b   :  { %v568_v38 = vpack.c.bf16 %v555_v9, %v554_v43  ;;  %3429 = vmatprep.subr.bf16.mxu0 %v3679_v17  ;;  %v5781_v16 = vunpack.c.h.bf16 %v3760_v46  ;;  %3391 = vmatprep.mubr.msk.bf16.mxu0 %vm253_vm0, %v215_v14  ;;  %v5782_v55 = vunpack.c.l.bf16 %v3765_v47  ;;  %v5783_v25 = vunpack.c.h.bf16 %v3765_v47 }
  0x8c   :  { %3412 = vmatmul.mubr.msk.bf16.vlgmr.msra.gmra.mrb[0].mxu1 %vm253_vm0, %v567_v28  ;;  %v155_v62 = vadd.f32 %v4153_v40, %v5780_v56  ;;  %v4196_v45 = vunpack.i.h.bf16 %v3604_v44  ;;  %v4198_v6 = vunpack.i.l.bf16 %v3604_v44  ;;  %v4203_v28 = vunpack.i.h.bf16 %v3609_v36 }
  0x8d   :  { %v156_v10 = vadd.f32 %v4151_v57, %v5781_v16  ;;  %3452 = vmatpush3.bf16.msra.mxu1 %v3674_v15  ;;  %v508_v54 = vadd.f32 %v4153_v40, %v5782_v55  ;;  %v509_v50 = vadd.f32 %v4151_v57, %v5783_v25  ;;  %3415 = vmatprep.mubr.msk.bf16.mxu1 %vm253_vm0, %v568_v38  ;;  %v4205_v3 = vunpack.i.l.bf16 %v3609_v36 }
  0x8e   :  { %vm171_vm13 = vcmp.ge.f32.partialorder %v155_v62, 0.0  ;;  %v187_v46 = vmul.f32 0.2, %v155_v62  ;;  %3453 = vmatprep.subr.bf16.mxu1 %v3679_v17  ;;  %3430 = vmatpush3.bf16.msra.mxu0 %v3679_v17  ;;  %v5784_v9 = vunpack.c.l.bf16 %v3774_v52  ;;  %v5785_v16 = vunpack.c.h.bf16 %v3774_v52 }
  0x8f   :  { %vm172_vm14 = vcmp.ge.f32.partialorder %v156_v10, 0.0  ;;  %v188_v39 = vmul.f32 0.2, %v156_v10  ;;  %vm524_vm15 = vcmp.ge.f32.partialorder %v508_v54, 0.0  ;;  %vm525_vm1 = vcmp.ge.f32.partialorder %v509_v50, 0.0  ;;  %3431 = vmatprep.subr.bf16.mxu0 %v3696_v26 }
  0x90   :  { %v540_v41 = vmul.f32 0.2, %v508_v54  ;;  %v541_v49 = vmul.f32 0.2, %v509_v50  ;;  %v203_v47 = vsel %vm171_vm13, %v155_v62, %v187_v46  ;;  %v157_v38 = vadd.f32 %v4173_v24, %v5784_v9 }
  0x91   :  { %v204_v11 = vsel %vm172_vm14, %v156_v10, %v188_v39  ;;  %3454 = vmatpush3.bf16.msra.mxu1 %v3679_v17  ;;  %v158_v62 = vadd.f32 %v4171_v42, %v5785_v16  ;;  %v5786_v10 = vunpack.c.l.bf16 %v3788_v58  ;;  %v5787_v25 = vunpack.c.h.bf16 %v3788_v58 }
  0x92   :  { %v216_v44 = vpack.c.bf16 %v204_v11, %v203_v47  ;;  %v556_v14 = vsel %vm524_vm15, %v508_v54, %v540_v41  ;;  %v557_v43 = vsel %vm525_vm1, %v509_v50, %v541_v49  ;;  %3455 = vmatprep.subr.bf16.mxu1 %v3696_v26  ;;  %vm173_vm2 = vcmp.ge.f32.partialorder %v157_v38, 0.0  ;;  %3432 = vmatpush3.bf16.msra.mxu0 %v3696_v26 }
  0x93   :  { %v569_v56 = vpack.c.bf16 %v557_v43, %v556_v14  ;;  %v510_v55 = vadd.f32 %v4173_v24, %v5786_v10  ;;  %v511_v54 = vadd.f32 %v4171_v42, %v5787_v25  ;;  %v189_v50 = vmul.f32 0.2, %v157_v38  ;;  %3433 = vmatprep.subr.bf16.mxu0 %v3707_v33 }
  0x94   :  { %3392 = vmatmul.mubr.msk.bf16.gmra.mrb[4].mxu0 %vm253_vm0, %v216_v44  ;;  %v5788_v36 = vunpack.c.l.bf16 %v3793_v59  ;;  %v5789_v46 = vunpack.c.h.bf16 %v3793_v59  ;;  %vm174_vm3 = vcmp.ge.f32.partialorder %v158_v62, 0.0  ;;  %v190_v58 = vmul.f32 0.2, %v158_v62 }
  0x95   :  { %3416 = vmatmul.mubr.msk.bf16.gmra.mrb[4].mxu1 %vm253_vm0, %v569_v56  ;;  %vm526_vm4 = vcmp.ge.f32.partialorder %v510_v55, 0.0  ;;  %vm527_vm5 = vcmp.ge.f32.partialorder %v511_v54, 0.0  ;;  %v205_v41 = vsel %vm173_vm2, %v157_v38, %v189_v50  ;;  %v542_v49 = vmul.f32 0.2, %v510_v55 }
  0x96   :  { %v159_v52 = vadd.f32 %v4179_v61, %v5788_v36  ;;  %v160_v39 = vadd.f32 %v4176_v2, %v5789_v46  ;;  %v543_v47 = vmul.f32 0.2, %v511_v54  ;;  %3456 = vmatpush3.bf16.msra.mxu1 %v3696_v26  ;;  %v206_v11 = vsel %vm174_vm3, %v158_v62, %v190_v58  ;;  %3434 = vmatpush3.bf16.msra.mxu0 %v3707_v33 }
  0x97   :  { %3457 = vmatprep.subr.bf16.mxu1 %v3707_v33  ;;  %v217_v14 = vpack.c.bf16 %v206_v11, %v205_v41  ;;  %v558_v43 = vsel %vm526_vm4, %v510_v55, %v542_v49  ;;  %v5790_v56 = vunpack.c.l.bf16 %v3802_v0  ;;  %v5791_v50 = vunpack.c.h.bf16 %v3802_v0  ;;  %3475 = vmatprep.subr.bf16.mxu0 %v3674_v15 }
  0x98   :  { %vm175_vm6 = vcmp.ge.f32.partialorder %v159_v52, 0.0  ;;  %vm176_vm7 = vcmp.ge.f32.partialorder %v160_v39, 0.0  ;;  %v191_v59 = vmul.f32 0.2, %v159_v52  ;;  %v192_v44 = vmul.f32 0.2, %v160_v39 }
  0x99   :  { %v559_v9 = vsel %vm527_vm5, %v511_v54, %v543_v47  ;;  %v512_v38 = vadd.f32 %v4179_v61, %v5790_v56  ;;  %v513_v36 = vadd.f32 %v4176_v2, %v5791_v50  ;;  %3395 = vmatprep.mubr.msk.bf16.mxu0 %vm253_vm0, %v217_v14  ;;  %v5792_v55 = vunpack.c.l.bf16 %v3807_v1 }
  0x9a   :  { %v570_v16 = vpack.c.bf16 %v559_v9, %v558_v43  ;;  %v207_v10 = vsel %vm175_vm6, %v159_v52, %v191_v59  ;;  %v208_v25 = vsel %vm176_vm7, %v160_v39, %v192_v44  ;;  %3458 = vmatpush3.bf16.msra.mxu1 %v3707_v33  ;;  %v5793_v0 = vunpack.c.h.bf16 %v3807_v1 }
  0x9b   :  { %v218_v62 = vpack.c.bf16 %v208_v25, %v207_v10  ;;  %vm528_vm8 = vcmp.ge.f32.partialorder %v512_v38, 0.0  ;;  %v544_v46 = vmul.f32 0.2, %v512_v38  ;;  %v161_v54 = vadd.f32 %v4198_v6, %v5792_v55  ;;  %3499 = vmatprep.subr.bf16.mxu1 %v3674_v15 }
  0x9c   :  { %3419 = vmatprep.mubr.msk.bf16.mxu1 %vm253_vm0, %v570_v16  ;;  %vm529_vm9 = vcmp.ge.f32.partialorder %v513_v36, 0.0  ;;  %v545_v52 = vmul.f32 0.2, %v513_v36  ;;  %v162_v39 = vadd.f32 %v4196_v45, %v5793_v0  ;;  %v5794_v58 = vunpack.c.l.bf16 %v3814_v4 }
  0x9d   :  { %3396 = vmatmul.mubr.msk.bf16.gmra.mrb[8].mxu0 %vm253_vm0, %v218_v62  ;;  %v560_v49 = vsel %vm528_vm8, %v512_v38, %v544_v46  ;;  %vm177_vm10 = vcmp.ge.f32.partialorder %v161_v54, 0.0  ;;  %v193_v47 = vmul.f32 0.2, %v161_v54  ;;  %v5795_v11 = vunpack.c.h.bf16 %v3814_v4 }
  0x9e   :  { %v514_v41 = vadd.f32 %v4198_v6, %v5794_v58  ;;  %v561_v1 = vsel %vm529_vm9, %v513_v36, %v545_v52  ;;  %vm178_vm11 = vcmp.ge.f32.partialorder %v162_v39, 0.0  ;;  %v194_v44 = vmul.f32 0.2, %v162_v39 }
  0x9f   :  { %v515_v59 = vadd.f32 %v4196_v45, %v5795_v11  ;;  %v571_v14 = vpack.c.bf16 %v561_v1, %v560_v49  ;;  %v209_v43 = vsel %vm177_vm10, %v161_v54, %v193_v47  ;;  %v5796_v38 = vunpack.c.l.bf16 %v3819_v5 }
  0xa0   :  { %vm530_vm12 = vcmp.ge.f32.partialorder %v514_v41, 0.0  ;;  %v546_v9 = vmul.f32 0.2, %v514_v41  ;;  %v210_v56 = vsel %vm178_vm11, %v162_v39, %v194_v44  ;;  %v5797_v4 = vunpack.c.h.bf16 %v3819_v5 }
  0xa1   :  { %vm531_vm13 = vcmp.ge.f32.partialorder %v515_v59, 0.0  ;;  %v547_v16 = vmul.f32 0.2, %v515_v59  ;;  %v163_v10 = vadd.f32 %v4205_v3, %v5796_v38  ;;  %3420 = vmatmul.mubr.msk.bf16.gmra.mrb[8].mxu1 %vm253_vm0, %v571_v14  ;;  %v219_v50 = vpack.c.bf16 %v210_v56, %v209_v43 }
  0xa2   :  { %v164_v25 = vadd.f32 %v4203_v28, %v5797_v4  ;;  %v562_v36 = vsel %vm530_vm12, %v514_v41, %v546_v9  ;;  %v5798_v62 = vunpack.c.l.bf16 %v3830_v12  ;;  %v5799_v55 = vunpack.c.h.bf16 %v3830_v12 }
  0xa3   :  { %v563_v52 = vsel %vm531_vm13, %v515_v59, %v547_v16  ;;  %vm179_vm14 = vcmp.ge.f32.partialorder %v163_v10, 0.0  ;;  %v195_v0 = vmul.f32 0.2, %v163_v10  ;;  %3399 = vmatprep.mubr.msk.bf16.mxu0 %vm253_vm0, %v219_v50  ;;  %v5800_v47 = vunpack.c.l.bf16 %v3779_v53 }
  0xa4   :  { %v516_v46 = vadd.f32 %v4205_v3, %v5798_v62  ;;  %v517_v54 = vadd.f32 %v4203_v28, %v5799_v55  ;;  %vm180_vm15 = vcmp.ge.f32.partialorder %v164_v25, 0.0  ;;  %v572_v5 = vpack.c.bf16 %v563_v52, %v562_v36 }
  0xa5   :  { %v196_v39 = vmul.f32 0.2, %v164_v25  ;;  %v211_v58 = vsel %vm179_vm14, %v163_v10, %v195_v0  ;;  %v824_v11 = vadd.f32 %v4113_v51, %v5800_v47  ;;  %v5801_v59 = vunpack.c.h.bf16 %v3779_v53 }
  0xa6   :  { %vm532_vm1 = vcmp.ge.f32.partialorder %v516_v46, 0.0  ;;  %vm533_vm2 = vcmp.ge.f32.partialorder %v517_v54, 0.0  ;;  %v548_v41 = vmul.f32 0.2, %v516_v46  ;;  %v549_v49 = vmul.f32 0.2, %v517_v54  ;;  %3423 = vmatprep.mubr.msk.bf16.mxu1 %vm253_vm0, %v572_v5 }
  0xa7   :  { %v212_v12 = vsel %vm180_vm15, %v164_v25, %v196_v39  ;;  %v825_v1 = vadd.f32 %v4111_v8, %v5801_v59  ;;  %v5802_v44 = vunpack.c.l.bf16 %v3835_v13  ;;  %v5803_v43 = vunpack.c.h.bf16 %v3835_v13 }
  0xa8   :  { %v220_v56 = vpack.c.bf16 %v212_v12, %v211_v58  ;;  %v564_v16 = vsel %vm532_vm1, %v516_v46, %v548_v41  ;;  %v565_v38 = vsel %vm533_vm2, %v517_v54, %v549_v49  ;;  %vm840_vm3 = vcmp.ge.f32.partialorder %v824_v11, 0.0 }
  0xa9   :  { %v1146_v14 = vadd.f32 %v4113_v51, %v5802_v44  ;;  %v1147_v9 = vadd.f32 %v4111_v8, %v5803_v43  ;;  %v573_v10 = vpack.c.bf16 %v565_v38, %v564_v16  ;;  %vm841_vm4 = vcmp.ge.f32.partialorder %v825_v1, 0.0 }
  0xaa   :  { %v856_v4 = vmul.f32 0.2, %v824_v11  ;;  %v857_v25 = vmul.f32 0.2, %v825_v1  ;;  %3400 = vmatmul.mubr.msk.bf16.gmra.mrb[12].mxu0 %vm253_vm0, %v220_v56  ;;  %v5804_v62 = vunpack.c.l.bf16 %v3844_v20  ;;  %v5805_v55 = vunpack.c.h.bf16 %v3844_v20 }
  0xab   :  { %vm1162_vm5 = vcmp.ge.f32.partialorder %v1146_v14, 0.0  ;;  %vm1163_vm6 = vcmp.ge.f32.partialorder %v1147_v9, 0.0  ;;  %v1178_v53 = vmul.f32 0.2, %v1146_v14  ;;  %v1179_v50 = vmul.f32 0.2, %v1147_v9  ;;  %3424 = vmatmul.mubr.msk.bf16.gmra.mrb[12].mxu1 %vm253_vm0, %v573_v10 }
  0xac   :  { %v872_v36 = vsel %vm840_vm3, %v824_v11, %v856_v4  ;;  %v873_v13 = vsel %vm841_vm4, %v825_v1, %v857_v25  ;;  %v826_v46 = vadd.f32 %v4149_v60, %v5804_v62  ;;  %v827_v54 = vadd.f32 %v4147_v37, %v5805_v55 }
  0xad   :  { %v888_v52 = vpack.c.bf16 %v873_v13, %v872_v36  ;;  %v1194_v0 = vsel %vm1162_vm5, %v1146_v14, %v1178_v53  ;;  %v1195_v5 = vsel %vm1163_vm6, %v1147_v9, %v1179_v50  ;;  %v5806_v39 = vunpack.c.l.bf16 %v3849_v21 }
  0xae   :  { %v1210_v41 = vpack.c.bf16 %v1195_v5, %v1194_v0  ;;  %vm842_vm7 = vcmp.ge.f32.partialorder %v826_v46, 0.0  ;;  %vm843_vm8 = vcmp.ge.f32.partialorder %v827_v54, 0.0  ;;  %v858_v49 = vmul.f32 0.2, %v826_v46 }
  0xaf   :  { %v1148_v58 = vadd.f32 %v4149_v60, %v5806_v39  ;;  %3435 = vmatprep.mubr.msk.bf16.mxu0 %vm253_vm0, %v888_v52  ;;  %v859_v47 = vmul.f32 0.2, %v827_v54  ;;  %v5807_v11 = vunpack.c.h.bf16 %v3849_v21  ;;  %v5808_v1 = vunpack.c.l.bf16 %v3858_v27 }
  0xb0   :  { %3459 = vmatprep.mubr.msk.bf16.mxu1 %vm253_vm0, %v1210_v41  ;;  %v874_v59 = vsel %vm842_vm7, %v826_v46, %v858_v49  ;;  %v5809_v14 = vunpack.c.h.bf16 %v3858_v27  ;;  %v5810_v9 = vunpack.c.l.bf16 %v3872_v34  ;;  %v5811_v50 = vunpack.c.h.bf16 %v3872_v34 }
  0xb1   :  { %v1149_v20 = vadd.f32 %v4147_v37, %v5807_v11  ;;  %vm1164_vm9 = vcmp.ge.f32.partialorder %v1148_v58, 0.0  ;;  %v1180_v12 = vmul.f32 0.2, %v1148_v58  ;;  %v828_v44 = vadd.f32 %v4119_v48, %v5808_v1 }
  0xb2   :  { %v829_v43 = vadd.f32 %v4117_v63, %v5809_v14  ;;  %v1150_v56 = vadd.f32 %v4119_v48, %v5810_v9  ;;  %v875_v21 = vsel %vm843_vm8, %v827_v54, %v859_v47  ;;  %v1151_v27 = vadd.f32 %v4117_v63, %v5811_v50 }
  0xb3   :  { %vm1165_vm10 = vcmp.ge.f32.partialorder %v1149_v20, 0.0  ;;  %v1181_v16 = vmul.f32 0.2, %v1149_v20  ;;  %v1196_v38 = vsel %vm1164_vm9, %v1148_v58, %v1180_v12  ;;  %v889_v10 = vpack.c.bf16 %v875_v21, %v874_v59 }
  0xb4   :  { %vm844_vm11 = vcmp.ge.f32.partialorder %v828_v44, 0.0  ;;  %vm845_vm12 = vcmp.ge.f32.partialorder %v829_v43, 0.0  ;;  %v860_v4 = vmul.f32 0.2, %v828_v44  ;;  %v861_v53 = vmul.f32 0.2, %v829_v43 }
  0xb5   :  { %v1197_v25 = vsel %vm1165_vm10, %v1149_v20, %v1181_v16  ;;  %vm1166_vm13 = vcmp.ge.f32.partialorder %v1150_v56, 0.0  ;;  %3436 = vmatmul.mubr.msk.bf16.vlgmr.msra.gmra.mrb[16].mxu0 %vm253_vm0, %v889_v10  ;;  %v1182_v62 = vmul.f32 0.2, %v1150_v56  ;;  %v5812_v46 = vunpack.c.l.bf16 %v3877_v35 }
  0xb6   :  { %v1211_v36 = vpack.c.bf16 %v1197_v25, %v1196_v38  ;;  %v876_v13 = vsel %vm844_vm11, %v828_v44, %v860_v4  ;;  %3476 = vmatpush3.bf16.msra.mxu0 %v3674_v15  ;;  %v877_v54 = vsel %vm845_vm12, %v829_v43, %v861_v53  ;;  %vm1167_vm14 = vcmp.ge.f32.partialorder %v1151_v27, 0.0 }
  0xb7   :  { %v830_v55 = vadd.f32 %v4153_v40, %v5812_v46  ;;  %v1183_v52 = vmul.f32 0.2, %v1151_v27  ;;  %v5813_v0 = vunpack.c.h.bf16 %v3877_v35  ;;  %v890_v5 = vpack.c.bf16 %v877_v54, %v876_v13  ;;  %3477 = vmatprep.subr.bf16.mxu0 %v3679_v17 }
  0xb8   :  { %3460 = vmatmul.mubr.msk.bf16.vlgmr.msra.gmra.mrb[16].mxu1 %vm253_vm0, %v1211_v36  ;;  %v1198_v39 = vsel %vm1166_vm13, %v1150_v56, %v1182_v62  ;;  %v5814_v47 = vunpack.c.l.bf16 %v3886_v32  ;;  %v5815_v12 = vunpack.c.h.bf16 %v3886_v32  ;;  %v5816_v1 = vunpack.c.l.bf16 %v3891_v29 }
  0xb9   :  { %v831_v34 = vadd.f32 %v4151_v57, %v5813_v0  ;;  %vm846_vm15 = vcmp.ge.f32.partialorder %v830_v55, 0.0  ;;  %v862_v58 = vmul.f32 0.2, %v830_v55  ;;  %v1199_v41 = vsel %vm1167_vm14, %v1151_v27, %v1183_v52  ;;  %3500 = vmatpush3.bf16.msra.mxu1 %v3674_v15  ;;  %3439 = vmatprep.mubr.msk.bf16.mxu0 %vm253_vm0, %v890_v5 }
  0xba   :  { %v1152_v11 = vadd.f32 %v4153_v40, %v5814_v47  ;;  %v1212_v35 = vpack.c.bf16 %v1199_v41, %v1198_v39  ;;  %v1153_v59 = vadd.f32 %v4151_v57, %v5815_v12  ;;  %v832_v44 = vadd.f32 %v4173_v24, %v5816_v1  ;;  %3478 = vmatpush3.bf16.msra.mxu0 %v3679_v17  ;;  %v4390_v1 = vld [vmem:[%s5670_s2] sm:$0xff]  }
  0xbb   :  { %vm847_vm1 = vcmp.ge.f32.partialorder %v831_v34, 0.0  ;;  %v863_v49 = vmul.f32 0.2, %v831_v34  ;;  %v878_v20 = vsel %vm846_vm15, %v830_v55, %v862_v58  ;;  %v5817_v43 = vunpack.c.h.bf16 %v3891_v29  ;;  %3501 = vmatprep.subr.bf16.mxu1 %v3679_v17  ;;  %3479 = vmatprep.subr.bf16.mxu0 %v3696_v26  ;;  %v4370_v58 = vld [vmem:[%s5670_s2 + $0x10] sm:$0xff]  }
  0xbc   :  { %vm1168_vm2 = vcmp.ge.f32.partialorder %v1152_v11, 0.0  ;;  %v1184_v15 = vmul.f32 0.2, %v1152_v11  ;;  %3463 = vmatprep.mubr.msk.bf16.mxu1 %vm253_vm0, %v1212_v35  ;;  %vm1169_vm3 = vcmp.ge.f32.partialorder %v1153_v59, 0.0  ;;  %v1185_v56 = vmul.f32 0.2, %v1153_v59 }
  0xbd   :  { %v879_v14 = vsel %vm847_vm1, %v831_v34, %v863_v49  ;;  %v833_v9 = vadd.f32 %v4171_v42, %v5817_v43  ;;  %vm848_vm4 = vcmp.ge.f32.partialorder %v832_v44, 0.0  ;;  %v864_v16 = vmul.f32 0.2, %v832_v44  ;;  %3502 = vmatpush3.bf16.msra.mxu1 %v3679_v17 }
  0xbe   :  { %v891_v32 = vpack.c.bf16 %v879_v14, %v878_v20  ;;  %v1200_v21 = vsel %vm1168_vm2, %v1152_v11, %v1184_v15  ;;  %v1201_v29 = vsel %vm1169_vm3, %v1153_v59, %v1185_v56  ;;  %v5818_v10 = vunpack.c.l.bf16 %v3898_v30  ;;  %3480 = vmatpush3.bf16.msra.mxu0 %v3696_v26  ;;  %3503 = vmatprep.subr.bf16.mxu1 %v3696_v26  ;;  %v4384_v59 = vld [vmem:[%s5670_s2 + $0x18] sm:$0xff]  }
  0xbf   :  { %vm849_vm5 = vcmp.ge.f32.partialorder %v833_v9, 0.0  ;;  %v865_v38 = vmul.f32 0.2, %v833_v9  ;;  %v5819_v25 = vunpack.c.h.bf16 %v3898_v30  ;;  %v5820_v50 = vunpack.c.l.bf16 %v3903_v31  ;;  %3481 = vmatprep.subr.bf16.mxu0 %v3707_v33 }
  0xc0   :  { %3440 = vmatmul.mubr.msk.bf16.gmra.mrb[20].mxu0 %vm253_vm0, %v891_v32  ;;  %v1154_v4 = vadd.f32 %v4173_v24, %v5818_v10  ;;  %v1213_v36 = vpack.c.bf16 %v1201_v29, %v1200_v21  ;;  %v880_v13 = vsel %vm848_vm4, %v832_v44, %v864_v16  ;;  %v5821_v17 = vunpack.c.h.bf16 %v3903_v31 }
  0xc1   :  { %v1155_v53 = vadd.f32 %v4171_v42, %v5819_v25  ;;  %v834_v27 = vadd.f32 %v4179_v61, %v5820_v50  ;;  %v881_v62 = vsel %vm849_vm5, %v833_v9, %v865_v38  ;;  %v5822_v34 = vunpack.c.l.bf16 %v3914_v19  ;;  %3504 = vmatpush3.bf16.msra.mxu1 %v4370_v58 }
  0xc2   :  { %v835_v46 = vadd.f32 %v4176_v2, %v5821_v17  ;;  %v892_v55 = vpack.c.bf16 %v881_v62, %v880_v13  ;;  %vm1170_vm6 = vcmp.ge.f32.partialorder %v1154_v4, 0.0  ;;  %v1186_v54 = vmul.f32 0.2, %v1154_v4  ;;  %3464 = vmatmul.mubr.msk.bf16.gmra.mrb[20].mxu1 %vm253_vm0, %v1213_v36  ;;  %3482 = vmatpush3.bf16.msra.mxu0 %v3707_v33 }
  0xc3   :  { %vm1171_vm7 = vcmp.ge.f32.partialorder %v1155_v53, 0.0  ;;  %v1187_v30 = vmul.f32 0.2, %v1155_v53  ;;  %vm850_vm8 = vcmp.ge.f32.partialorder %v834_v27, 0.0  ;;  %v866_v52 = vmul.f32 0.2, %v834_v27  ;;  %3505 = vmatprep.subr.bf16.mxu1 %v4384_v59  ;;  %3523 = vmatprep.subr.bf16.mxu0 %v4390_v1 }
  0xc4   :  { %vm851_vm9 = vcmp.ge.f32.partialorder %v835_v46, 0.0  ;;  %3443 = vmatprep.mubr.msk.bf16.mxu0 %vm253_vm0, %v892_v55  ;;  %v1202_v31 = vsel %vm1170_vm6, %v1154_v4, %v1186_v54  ;;  %v867_v0 = vmul.f32 0.2, %v835_v46  ;;  %v1156_v5 = vadd.f32 %v4179_v61, %v5822_v34 }
  0xc5   :  { %v5823_v39 = vunpack.c.h.bf16 %v3914_v19  ;;  %v1203_v41 = vsel %vm1171_vm7, %v1155_v53, %v1187_v30  ;;  %v882_v49 = vsel %vm850_vm8, %v834_v27, %v866_v52  ;;  %v5824_v47 = vunpack.c.l.bf16 %v3919_v18  ;;  %3506 = vmatpush3.bf16.msra.mxu1 %v4384_v59  ;;  %v5832_v52 = vld [vmem:[#allocation2_spill] sm:$0xff] }
  0xc6   :  { %v5825_v35 = vunpack.c.h.bf16 %v3919_v18  ;;  %v1214_v20 = vpack.c.bf16 %v1203_v41, %v1202_v31  ;;  %v883_v12 = vsel %vm851_vm9, %v835_v46, %v867_v0  ;;  %vm1172_vm10 = vcmp.ge.f32.partialorder %v1156_v5, 0.0  ;;  %3547 = vmatprep.subr.bf16.mxu1 %v4390_v1 }
  0xc7   :  { %v1157_v26 = vadd.f32 %v4176_v2, %v5823_v39  ;;  %v836_v11 = vadd.f32 %v4198_v6, %v5824_v47  ;;  %v893_v18 = vpack.c.bf16 %v883_v12, %v882_v49  ;;  %v1188_v33 = vmul.f32 0.2, %v1156_v5 }
  0xc8   :  { %v837_v19 = vadd.f32 %v4196_v45, %v5825_v35  ;;  %3467 = vmatprep.mubr.msk.bf16.mxu1 %vm253_vm0, %v1214_v20  ;;  %v5826_v43 = vunpack.c.l.bf16 %v3928_v22  ;;  %v5827_v21 = vunpack.c.h.bf16 %v3928_v22  ;;  %v5828_v38 = vunpack.c.l.bf16 %v3933_v23  ;;  %v5835_v20 = vld [vmem:[#allocation3_spill] sm:$0xff] }
  0xc9   :  { %vm1173_vm11 = vcmp.ge.f32.partialorder %v1157_v26, 0.0  ;;  %v1189_v44 = vmul.f32 0.2, %v1157_v26  ;;  %vm852_vm12 = vcmp.ge.f32.partialorder %v836_v11, 0.0  ;;  %v868_v14 = vmul.f32 0.2, %v836_v11  ;;  %3444 = vmatmul.mubr.msk.bf16.gmra.mrb[24].mxu0 %vm253_vm0, %v893_v18 }
  0xca   :  { %vm853_vm13 = vcmp.ge.f32.partialorder %v837_v19, 0.0  ;;  %v869_v15 = vmul.f32 0.2, %v837_v19  ;;  %v1158_v9 = vadd.f32 %v4198_v6, %v5826_v43  ;;  %v1204_v32 = vsel %vm1172_vm10, %v1156_v5, %v1188_v33 }
  0xcb   :  { %v1205_v56 = vsel %vm1173_vm11, %v1157_v26, %v1189_v44  ;;  %v1159_v16 = vadd.f32 %v4196_v45, %v5827_v21  ;;  %v838_v29 = vadd.f32 %v4205_v3, %v5828_v38  ;;  %v884_v4 = vsel %vm852_vm12, %v836_v11, %v868_v14 }
  0xcc   :  { %v1215_v10 = vpack.c.bf16 %v1205_v56, %v1204_v32  ;;  %v885_v25 = vsel %vm853_vm13, %v837_v19, %v869_v15  ;;  %vm1174_vm14 = vcmp.ge.f32.partialorder %v1158_v9, 0.0  ;;  %v1190_v50 = vmul.f32 0.2, %v1158_v9  ;;  %v5838_v32 = vld [vmem:[#allocation4_spill] sm:$0xff] }
  0xcd   :  { %v894_v53 = vpack.c.bf16 %v885_v25, %v884_v4  ;;  %vm1175_vm15 = vcmp.ge.f32.partialorder %v1159_v16, 0.0  ;;  %v1191_v27 = vmul.f32 0.2, %v1159_v16  ;;  %v5829_v22 = vunpack.c.h.bf16 %v3933_v23 }
  0xce   :  { %3468 = vmatmul.mubr.msk.bf16.gmra.mrb[24].mxu1 %vm253_vm0, %v1215_v10  ;;  %vm854_vm1 = vcmp.ge.f32.partialorder %v838_v29, 0.0  ;;  %v870_v13 = vmul.f32 0.2, %v838_v29  ;;  %v5830_v62 = vunpack.c.l.bf16 %v3942_v7  ;;  %v1206_v46 = vsel %vm1174_vm14, %v1158_v9, %v1190_v50  ;;  %v5841_v10 = vld [vmem:[#allocation5_spill] sm:$0xff] }
  0xcf   :  { %v839_v36 = vadd.f32 %v4203_v28, %v5829_v22  ;;  %3447 = vmatprep.mubr.msk.bf16.mxu0 %vm253_vm0, %v894_v53  ;;  %v1207_v55 = vsel %vm1175_vm15, %v1159_v16, %v1191_v27  ;;  %v5831_v54 = vunpack.c.h.bf16 %v3942_v7  ;;  %v5833_v31 = vunpack.c.l.bf16 %v5832_v52 }
  0xd0   :  { %v1160_v17 = vadd.f32 %v4205_v3, %v5830_v62  ;;  %v1216_v0 = vpack.c.bf16 %v1207_v55, %v1206_v46  ;;  %v886_v5 = vsel %vm854_vm1, %v838_v29, %v870_v13  ;;  %v5834_v49 = vunpack.c.h.bf16 %v5832_v52 }
  0xd1   :  { %v1161_v30 = vadd.f32 %v4203_v28, %v5831_v54  ;;  %v1468_v23 = vadd.f32 %v4113_v51, %v5833_v31  ;;  %vm855_vm2 = vcmp.ge.f32.partialorder %v839_v36, 0.0  ;;  %v871_v34 = vmul.f32 0.2, %v839_v36 }
  0xd2   :  { %vm1176_vm3 = vcmp.ge.f32.partialorder %v1160_v17, 0.0  ;;  %v1192_v39 = vmul.f32 0.2, %v1160_v17  ;;  %3471 = vmatprep.mubr.msk.bf16.mxu1 %vm253_vm0, %v1216_v0  ;;  %v1469_v7 = vadd.f32 %v4111_v8, %v5834_v49  ;;  %v5836_v12 = vunpack.c.l.bf16 %v5835_v20  ;;  %v5844_v0 = vld [vmem:[#allocation6_spill] sm:$0xff]  ;;  %v5847_v49 = vld [vmem:[#allocation8_spill] sm:$0xff] }
  0xd3   :  { %vm1177_vm4 = vcmp.ge.f32.partialorder %v1161_v30, 0.0  ;;  %v1193_v26 = vmul.f32 0.2, %v1161_v30  ;;  %v887_v41 = vsel %vm855_vm2, %v839_v36, %v871_v34  ;;  %vm1484_vm5 = vcmp.ge.f32.partialorder %v1468_v23, 0.0 }
  0xd4   :  { %v1500_v47 = vmul.f32 0.2, %v1468_v23  ;;  %v895_v11 = vpack.c.bf16 %v887_v41, %v886_v5  ;;  %v1208_v35 = vsel %vm1176_vm3, %v1160_v17, %v1192_v39  ;;  %v1790_v18 = vadd.f32 %v4113_v51, %v5836_v12 }
  0xd5   :  { %v1209_v19 = vsel %vm1177_vm4, %v1161_v30, %v1193_v26  ;;  %vm1485_vm6 = vcmp.ge.f32.partialorder %v1469_v7, 0.0  ;;  %v1501_v44 = vmul.f32 0.2, %v1469_v7  ;;  %v5837_v15 = vunpack.c.h.bf16 %v5835_v20 }
  0xd6   :  { %v1217_v33 = vpack.c.bf16 %v1209_v19, %v1208_v35  ;;  %v1516_v14 = vsel %vm1484_vm5, %v1468_v23, %v1500_v47  ;;  %3448 = vmatmul.mubr.msk.bf16.gmra.mrb[28].mxu0 %vm253_vm0, %v895_v11  ;;  %vm1806_vm7 = vcmp.ge.f32.partialorder %v1790_v18, 0.0  ;;  %v1822_v9 = vmul.f32 0.2, %v1790_v18  ;;  %v5850_v19 = vld [vmem:[#allocation9_spill] sm:$0xff] }
  0xd7   :  { %v1791_v43 = vadd.f32 %v4111_v8, %v5837_v15  ;;  %v5839_v56 = vunpack.c.l.bf16 %v5838_v32  ;;  %v1517_v16 = vsel %vm1485_vm6, %v1469_v7, %v1501_v44  ;;  %v5840_v38 = vunpack.c.h.bf16 %v5838_v32 }
  0xd8   :  { %3472 = vmatmul.mubr.msk.bf16.gmra.mrb[28].mxu1 %vm253_vm0, %v1217_v33  ;;  %v5842_v4 = vunpack.c.l.bf16 %v5841_v10  ;;  %v5843_v53 = vunpack.c.h.bf16 %v5841_v10  ;;  %v1532_v27 = vpack.c.bf16 %v1517_v16, %v1516_v14  ;;  %v1838_v36 = vsel %vm1806_vm7, %v1790_v18, %v1822_v9  ;;  %v3619_v9 = vld [vmem:[%s5670_s2 + $0x8] sm:$0xff]  }
  0xd9   :  { %v1470_v21 = vadd.f32 %v4149_v60, %v5839_v56  ;;  %v1471_v29 = vadd.f32 %v4147_v37, %v5840_v38  ;;  %vm1807_vm8 = vcmp.ge.f32.partialorder %v1791_v43, 0.0  ;;  %v1823_v22 = vmul.f32 0.2, %v1791_v43 }
  0xda   :  { %v1792_v25 = vadd.f32 %v4149_v60, %v5842_v4  ;;  %v1793_v50 = vadd.f32 %v4147_v37, %v5843_v53  ;;  %3483 = vmatprep.mubr.msk.bf16.mxu0 %vm253_vm0, %v1532_v27  ;;  %v5845_v34 = vunpack.c.l.bf16 %v5844_v0  ;;  %v5846_v39 = vunpack.c.h.bf16 %v5844_v0 }
  0xdb   :  { %vm1486_vm9 = vcmp.ge.f32.partialorder %v1470_v21, 0.0  ;;  %vm1487_vm10 = vcmp.ge.f32.partialorder %v1471_v29, 0.0  ;;  %v1502_v13 = vmul.f32 0.2, %v1470_v21  ;;  %v1503_v62 = vmul.f32 0.2, %v1471_v29 }
  0xdc   :  { %v1839_v17 = vsel %vm1807_vm8, %v1791_v43, %v1823_v22  ;;  %vm1808_vm11 = vcmp.ge.f32.partialorder %v1792_v25, 0.0  ;;  %vm1809_vm12 = vcmp.ge.f32.partialorder %v1793_v50, 0.0  ;;  %v1824_v46 = vmul.f32 0.2, %v1792_v25 }
  0xdd   :  { %v1854_v55 = vpack.c.bf16 %v1839_v17, %v1838_v36  ;;  %v1518_v54 = vsel %vm1486_vm9, %v1470_v21, %v1502_v13  ;;  %v1519_v30 = vsel %vm1487_vm10, %v1471_v29, %v1503_v62  ;;  %v1825_v52 = vmul.f32 0.2, %v1793_v50  ;;  %v5853_v29 = vld [vmem:[#allocation10_spill] sm:$0xff]  ;;  %v5856_v17 = vld [vmem:[#allocation11_spill] sm:$0xff] }
  0xde   :  { %v1533_v31 = vpack.c.bf16 %v1519_v30, %v1518_v54  ;;  %v1840_v23 = vsel %vm1808_vm11, %v1792_v25, %v1824_v46  ;;  %v1472_v5 = vadd.f32 %v4119_v48, %v5845_v34  ;;  %v1473_v26 = vadd.f32 %v4117_v63, %v5846_v39 }
  0xdf   :  { %3507 = vmatprep.mubr.msk.bf16.mxu1 %vm253_vm0, %v1854_v55  ;;  %v1841_v41 = vsel %vm1809_vm12, %v1793_v50, %v1825_v52  ;;  %v5848_v7 = vunpack.c.l.bf16 %v5847_v49  ;;  %v5849_v11 = vunpack.c.h.bf16 %v5847_v49  ;;  %v5851_v20 = vunpack.c.l.bf16 %v5850_v19 }
  0xe0   :  { %3484 = vmatmul.mubr.msk.bf16.vlgmr.msra.gmra.mrb[32].mxu0 %vm253_vm0, %v1533_v31  ;;  %v1855_v18 = vpack.c.bf16 %v1841_v41, %v1840_v23  ;;  %vm1488_vm13 = vcmp.ge.f32.partialorder %v1472_v5, 0.0  ;;  %vm1489_vm14 = vcmp.ge.f32.partialorder %v1473_v26, 0.0  ;;  %v1504_v33 = vmul.f32 0.2, %v1472_v5  ;;  %v5859_v23 = vld [vmem:[#allocation12_spill] sm:$0xff] }
  0xe1   :  { %v1794_v47 = vadd.f32 %v4119_v48, %v5848_v7  ;;  %v1795_v35 = vadd.f32 %v4117_v63, %v5849_v11  ;;  %v1474_v12 = vadd.f32 %v4153_v40, %v5851_v20  ;;  %3524 = vmatpush3.bf16.msra.mxu0 %v4390_v1  ;;  %v1505_v44 = vmul.f32 0.2, %v1473_v26 }
  0xe2   :  { %3508 = vmatmul.mubr.msk.bf16.vlgmr.msra.gmra.mrb[32].mxu1 %vm253_vm0, %v1855_v18  ;;  %v1520_v15 = vsel %vm1488_vm13, %v1472_v5, %v1504_v33  ;;  %3525 = vmatprep.subr.bf16.mxu0 %v3619_v9  ;;  %v5852_v32 = vunpack.c.h.bf16 %v5850_v19  ;;  %v5854_v10 = vunpack.c.l.bf16 %v5853_v29  ;;  %v5855_v36 = vunpack.c.h.bf16 %v5853_v29  ;;  %v5862_v19 = vld [vmem:[#allocation13_spill] sm:$0xff] }
  0xe3   :  { %vm1810_vm15 = vcmp.ge.f32.partialorder %v1794_v47, 0.0  ;;  %vm1811_vm1 = vcmp.ge.f32.partialorder %v1795_v35, 0.0  ;;  %v1826_v14 = vmul.f32 0.2, %v1794_v47  ;;  %v1827_v43 = vmul.f32 0.2, %v1795_v35  ;;  %3548 = vmatpush3.bf16.msra.mxu1 %v4390_v1 }
  0xe4   :  { %v1475_v56 = vadd.f32 %v4151_v57, %v5852_v32  ;;  %vm1490_vm2 = vcmp.ge.f32.partialorder %v1474_v12, 0.0  ;;  %v1521_v21 = vsel %vm1489_vm14, %v1473_v26, %v1505_v44  ;;  %v1506_v38 = vmul.f32 0.2, %v1474_v12  ;;  %3549 = vmatprep.subr.bf16.mxu1 %v3619_v9 }
  0xe5   :  { %v1842_v16 = vsel %vm1810_vm15, %v1794_v47, %v1826_v14  ;;  %v1796_v4 = vadd.f32 %v4153_v40, %v5854_v10  ;;  %v1534_v25 = vpack.c.bf16 %v1521_v21, %v1520_v15  ;;  %v1843_v53 = vsel %vm1811_vm1, %v1795_v35, %v1827_v43  ;;  %3526 = vmatpush3.bf16.msra.mxu0 %v3619_v9  ;;  %v5865_v21 = vld [vmem:[#allocation14_spill] sm:$0xff] }
  0xe6   :  { %vm1491_vm3 = vcmp.ge.f32.partialorder %v1475_v56, 0.0  ;;  %v1507_v50 = vmul.f32 0.2, %v1475_v56  ;;  %v1856_v27 = vpack.c.bf16 %v1843_v53, %v1842_v16  ;;  %v1522_v22 = vsel %vm1490_vm2, %v1474_v12, %v1506_v38  ;;  %3527 = vmatprep.subr.bf16.mxu0 %v4370_v58 }
  0xe7   :  { %v1797_v13 = vadd.f32 %v4151_v57, %v5855_v36  ;;  %vm1812_vm4 = vcmp.ge.f32.partialorder %v1796_v4, 0.0  ;;  %3487 = vmatprep.mubr.msk.bf16.mxu0 %vm253_vm0, %v1534_v25  ;;  %v1828_v62 = vmul.f32 0.2, %v1796_v4  ;;  %v5857_v46 = vunpack.c.l.bf16 %v5856_v17  ;;  %3550 = vmatpush3.bf16.msra.mxu1 %v3619_v9  ;;  %v5868_v25 = vld [vmem:[#allocation15_spill] sm:$0xff] }
  0xe8   :  { %v1523_v1 = vsel %vm1491_vm3, %v1475_v56, %v1507_v50  ;;  %v5858_v54 = vunpack.c.h.bf16 %v5856_v17  ;;  %3511 = vmatprep.mubr.msk.bf16.mxu1 %vm253_vm0, %v1856_v27  ;;  %v5860_v0 = vunpack.c.l.bf16 %v5859_v23  ;;  %3551 = vmatprep.subr.bf16.mxu1 %v4370_v58  ;;  %v5861_v49 = vunpack.c.h.bf16 %v5859_v23 }
  0xe9   :  { %v1476_v55 = vadd.f32 %v4173_v24, %v5857_v46  ;;  %v1535_v52 = vpack.c.bf16 %v1523_v1, %v1522_v22  ;;  %vm1813_vm5 = vcmp.ge.f32.partialorder %v1797_v13, 0.0  ;;  %v1829_v31 = vmul.f32 0.2, %v1797_v13  ;;  %3528 = vmatpush3.bf16.msra.mxu0 %v4370_v58 }
  0xea   :  { %v1477_v30 = vadd.f32 %v4171_v42, %v5858_v54  ;;  %v1798_v34 = vadd.f32 %v4173_v24, %v5860_v0  ;;  %v1844_v5 = vsel %vm1812_vm4, %v1796_v4, %v1828_v62  ;;  %v1799_v7 = vadd.f32 %v4171_v42, %v5861_v49  ;;  %3529 = vmatprep.subr.bf16.mxu0 %v4384_v59  ;;  %v5874_v0 = vld [vmem:[#allocation17_spill] sm:$0xff] }
  0xeb   :  { %vm1492_vm6 = vcmp.ge.f32.partialorder %v1476_v55, 0.0  ;;  %v1508_v39 = vmul.f32 0.2, %v1476_v55  ;;  %3488 = vmatmul.mubr.msk.bf16.gmra.mrb[36].mxu0 %vm253_vm0, %v1535_v52  ;;  %v1845_v26 = vsel %vm1813_vm5, %v1797_v13, %v1829_v31  ;;  %v5863_v20 = vunpack.c.l.bf16 %v5862_v19  ;;  %3552 = vmatpush3.bf16.msra.mxu1 %v4370_v58 }
  0xec   :  { %vm1493_vm7 = vcmp.ge.f32.partialorder %v1477_v30, 0.0  ;;  %v1509_v41 = vmul.f32 0.2, %v1477_v30  ;;  %vm1814_vm8 = vcmp.ge.f32.partialorder %v1798_v34, 0.0  ;;  %v1857_v47 = vpack.c.bf16 %v1845_v26, %v1844_v5  ;;  %3553 = vmatprep.subr.bf16.mxu1 %v4384_v59 }
  0xed   :  { %v1524_v11 = vsel %vm1492_vm6, %v1476_v55, %v1508_v39  ;;  %v1830_v35 = vmul.f32 0.2, %v1798_v34  ;;  %v1478_v12 = vadd.f32 %v4179_v61, %v5863_v20  ;;  %vm1815_vm9 = vcmp.ge.f32.partialorder %v1799_v7, 0.0  ;;  %3530 = vmatpush3.bf16.msra.mxu0 %v4384_v59 }
  0xee   :  { %v1525_v18 = vsel %vm1493_vm7, %v1477_v30, %v1509_v41  ;;  %v1831_v33 = vmul.f32 0.2, %v1799_v7  ;;  %v5864_v44 = vunpack.c.h.bf16 %v5862_v19  ;;  %3512 = vmatmul.mubr.msk.bf16.gmra.mrb[36].mxu1 %vm253_vm0, %v1857_v47  ;;  %v5866_v16 = vunpack.c.l.bf16 %v5865_v21  ;;  %v5871_v30 = vld [vmem:[#allocation16_spill] sm:$0xff] }
  0xef   :  { %v1536_v15 = vpack.c.bf16 %v1525_v18, %v1524_v11  ;;  %v1846_v43 = vsel %vm1814_vm8, %v1798_v34, %v1830_v35  ;;  %vm1494_vm10 = vcmp.ge.f32.partialorder %v1478_v12, 0.0  ;;  %v1510_v9 = vmul.f32 0.2, %v1478_v12  ;;  %3554 = vmatpush3.bf16.msra.mxu1 %v4384_v59  ;;  %v5877_v18 = vld [vmem:[#allocation18_spill] sm:$0xff] }
  0xf0   :  { %v1479_v14 = vadd.f32 %v4176_v2, %v5864_v44  ;;  %v1847_v32 = vsel %vm1815_vm9, %v1799_v7, %v1831_v33  ;;  %v1800_v38 = vadd.f32 %v4179_v61, %v5866_v16  ;;  %v5867_v10 = vunpack.c.h.bf16 %v5865_v21 }
  0xf1   :  { %3491 = vmatprep.mubr.msk.bf16.mxu0 %vm253_vm0, %v1536_v15  ;;  %v1858_v58 = vpack.c.bf16 %v1847_v32, %v1846_v43  ;;  %v1526_v29 = vsel %vm1494_vm10, %v1478_v12, %v1510_v9  ;;  %v5869_v53 = vunpack.c.l.bf16 %v5868_v25  ;;  %v5870_v36 = vunpack.c.h.bf16 %v5868_v25  ;;  %v5880_v32 = vld [vmem:[#allocation7_spill] sm:$0xff] }
  0xf2   :  { %vm1495_vm11 = vcmp.ge.f32.partialorder %v1479_v14, 0.0  ;;  %v1511_v56 = vmul.f32 0.2, %v1479_v14  ;;  %v1801_v4 = vadd.f32 %v4176_v2, %v5867_v10  ;;  %vm1816_vm12 = vcmp.ge.f32.partialorder %v1800_v38, 0.0 }
  0xf3   :  { %v1480_v50 = vadd.f32 %v4198_v6, %v5869_v53  ;;  %v1832_v22 = vmul.f32 0.2, %v1800_v38  ;;  %v1481_v13 = vadd.f32 %v4196_v45, %v5870_v36  ;;  %3515 = vmatprep.mubr.msk.bf16.mxu1 %vm253_vm0, %v1858_v58  ;;  %v5872_v52 = vunpack.c.l.bf16 %v5871_v30 }
  0xf4   :  { %v1527_v27 = vsel %vm1495_vm11, %v1479_v14, %v1511_v56  ;;  %vm1817_vm13 = vcmp.ge.f32.partialorder %v1801_v4, 0.0  ;;  %v1833_v62 = vmul.f32 0.2, %v1801_v4  ;;  %v5873_v23 = vunpack.c.h.bf16 %v5871_v30 }
  0xf5   :  { %v1537_v1 = vpack.c.bf16 %v1527_v27, %v1526_v29  ;;  %vm1496_vm14 = vcmp.ge.f32.partialorder %v1480_v50, 0.0  ;;  %v1848_v17 = vsel %vm1816_vm12, %v1800_v38, %v1832_v22  ;;  %vm1497_vm15 = vcmp.ge.f32.partialorder %v1481_v13, 0.0  ;;  %v5883_v27 = vld [vmem:[#allocation19_spill] sm:$0xff] }
  0xf6   :  { %v1512_v46 = vmul.f32 0.2, %v1480_v50  ;;  %v1513_v55 = vmul.f32 0.2, %v1481_v13  ;;  %v1849_v54 = vsel %vm1817_vm13, %v1801_v4, %v1833_v62  ;;  %v1802_v31 = vadd.f32 %v4198_v6, %v5872_v52 }
  0xf7   :  { %3492 = vmatmul.mubr.msk.bf16.gmra.mrb[40].mxu0 %vm253_vm0, %v1537_v1  ;;  %v1803_v59 = vadd.f32 %v4196_v45, %v5873_v23  ;;  %v5875_v34 = vunpack.c.l.bf16 %v5874_v0  ;;  %v1859_v39 = vpack.c.bf16 %v1849_v54, %v1848_v17  ;;  %v5876_v49 = vunpack.c.h.bf16 %v5874_v0 }
  0xf8   :  { %v1528_v26 = vsel %vm1496_vm14, %v1480_v50, %v1512_v46  ;;  %v1529_v41 = vsel %vm1497_vm15, %v1481_v13, %v1513_v55  ;;  %vm1818_vm1 = vcmp.ge.f32.partialorder %v1802_v31, 0.0  ;;  %v1834_v11 = vmul.f32 0.2, %v1802_v31  ;;  %v5886_v46 = vld [vmem:[#allocation20_spill] sm:$0xff] }
  0xf9   :  { %v1482_v5 = vadd.f32 %v4205_v3, %v5875_v34  ;;  %v1483_v7 = vadd.f32 %v4203_v28, %v5876_v49  ;;  %v1538_v47 = vpack.c.bf16 %v1529_v41, %v1528_v26  ;;  %vm1819_vm2 = vcmp.ge.f32.partialorder %v1803_v59, 0.0  ;;  %3516 = vmatmul.mubr.msk.bf16.gmra.mrb[40].mxu1 %vm253_vm0, %v1859_v39 }
  0xfa   :  { %v1835_v35 = vmul.f32 0.2, %v1803_v59  ;;  %v1850_v20 = vsel %vm1818_vm1, %v1802_v31, %v1834_v11  ;;  %v5878_v33 = vunpack.c.l.bf16 %v5877_v18  ;;  %v5879_v14 = vunpack.c.h.bf16 %v5877_v18  ;;  %v5892_v11 = vld [vmem:[#allocation22_spill] sm:$0xff] }
  0xfb   :  { %vm1498_vm3 = vcmp.ge.f32.partialorder %v1482_v5, 0.0  ;;  %vm1499_vm4 = vcmp.ge.f32.partialorder %v1483_v7, 0.0  ;;  %v1514_v19 = vmul.f32 0.2, %v1482_v5  ;;  %3495 = vmatprep.mubr.msk.bf16.mxu0 %vm253_vm0, %v1538_v47  ;;  %v1515_v12 = vmul.f32 0.2, %v1483_v7 }
  0xfc   :  { %v1804_v44 = vadd.f32 %v4205_v3, %v5878_v33  ;;  %v1805_v15 = vadd.f32 %v4203_v28, %v5879_v14  ;;  %v1851_v43 = vsel %vm1819_vm2, %v1803_v59, %v1835_v35  ;;  %v5881_v56 = vunpack.c.l.bf16 %v5880_v32 }
  0xfd   :  { %v1530_v9 = vsel %vm1498_vm3, %v1482_v5, %v1514_v19  ;;  %v5882_v16 = vunpack.c.h.bf16 %v5880_v32  ;;  %v1860_v58 = vpack.c.bf16 %v1851_v43, %v1850_v20  ;;  %v1531_v29 = vsel %vm1499_vm4, %v1483_v7, %v1515_v12  ;;  %v5889_v5 = vld [vmem:[#allocation21_spill] sm:$0xff] }
  0xfe   :  { %v2112_v21 = vadd.f32 %v4113_v51, %v5881_v56  ;;  %vm1820_vm5 = vcmp.ge.f32.partialorder %v1804_v44, 0.0  ;;  %vm1821_vm6 = vcmp.ge.f32.partialorder %v1805_v15, 0.0  ;;  %v1539_v10 = vpack.c.bf16 %v1531_v29, %v1530_v9  ;;  %v5895_v56 = vld [vmem:[#allocation23_spill] sm:$0xff] }
  0xff   :  { %v2113_v38 = vadd.f32 %v4111_v8, %v5882_v16  ;;  %v1836_v4 = vmul.f32 0.2, %v1804_v44  ;;  %v1837_v25 = vmul.f32 0.2, %v1805_v15  ;;  %3519 = vmatprep.mubr.msk.bf16.mxu1 %vm253_vm0, %v1860_v58  ;;  %v5884_v22 = vunpack.c.l.bf16 %v5883_v27 }
 0x100   :  { %vm2128_vm7 = vcmp.ge.f32.partialorder %v2112_v21, 0.0  ;;  %v2144_v53 = vmul.f32 0.2, %v2112_v21  ;;  %3496 = vmatmul.mubr.msk.bf16.gmra.mrb[44].mxu0 %vm253_vm0, %v1539_v10  ;;  %v5885_v62 = vunpack.c.h.bf16 %v5883_v27  ;;  %v5887_v55 = vunpack.c.l.bf16 %v5886_v46 }
 0x101   :  { %vm2129_vm8 = vcmp.ge.f32.partialorder %v2113_v38, 0.0  ;;  %v2145_v50 = vmul.f32 0.2, %v2113_v38  ;;  %v2434_v36 = vadd.f32 %v4113_v51, %v5884_v22  ;;  %v1852_v13 = vsel %vm1820_vm5, %v1804_v44, %v1836_v4 }
 0x102   :  { %v1853_v1 = vsel %vm1821_vm6, %v1805_v15, %v1837_v25  ;;  %v2435_v17 = vadd.f32 %v4111_v8, %v5885_v62  ;;  %v2114_v54 = vadd.f32 %v4149_v60, %v5887_v55  ;;  %v2160_v52 = vsel %vm2128_vm7, %v2112_v21, %v2144_v53  ;;  %v5898_v53 = vld [vmem:[#allocation24_spill] sm:$0xff] }
 0x103   :  { %v1861_v30 = vpack.c.bf16 %v1853_v1, %v1852_v13  ;;  %v2161_v31 = vsel %vm2129_vm8, %v2113_v38, %v2145_v50  ;;  %vm2450_vm9 = vcmp.ge.f32.partialorder %v2434_v36, 0.0  ;;  %v2466_v59 = vmul.f32 0.2, %v2434_v36  ;;  %v5901_v13 = vld [vmem:[#allocation25_spill] sm:$0xff] }
 0x104   :  { %v2176_v23 = vpack.c.bf16 %v2161_v31, %v2160_v52  ;;  %vm2451_vm10 = vcmp.ge.f32.partialorder %v2435_v17, 0.0  ;;  %v2467_v51 = vmul.f32 0.2, %v2435_v17  ;;  %v5888_v0 = vunpack.c.h.bf16 %v5886_v46 }
 0x105   :  { %3520 = vmatmul.mubr.msk.bf16.gmra.mrb[44].mxu1 %vm253_vm0, %v1861_v30  ;;  %vm2130_vm11 = vcmp.ge.f32.partialorder %v2114_v54, 0.0  ;;  %v2146_v8 = vmul.f32 0.2, %v2114_v54  ;;  %v5890_v39 = vunpack.c.l.bf16 %v5889_v5  ;;  %v2482_v41 = vsel %vm2450_vm9, %v2434_v36, %v2466_v59  ;;  %v3271_v30 = vld [vmem:[%s5671_s0 + $0x1a0] sm:$0xff]   ;;  %v3272_v59 = vld [vmem:[%s5671_s0 + $0x1a8] sm:$0xff]  }
 0x106   :  { %v2115_v34 = vadd.f32 %v4147_v37, %v5888_v0  ;;  %3531 = vmatprep.mubr.msk.bf16.mxu0 %vm253_vm0, %v2176_v23  ;;  %v2483_v49 = vsel %vm2451_vm10, %v2435_v17, %v2467_v51  ;;  %v5891_v7 = vunpack.c.h.bf16 %v5889_v5  ;;  %v5893_v35 = vunpack.c.l.bf16 %v5892_v11 }
 0x107   :  { %v2436_v26 = vadd.f32 %v4149_v60, %v5890_v39  ;;  %v2498_v20 = vpack.c.bf16 %v2483_v49, %v2482_v41  ;;  %v2162_v18 = vsel %vm2130_vm11, %v2114_v54, %v2146_v8  ;;  %v5894_v14 = vunpack.c.h.bf16 %v5892_v11  ;;  %v3280_v49 = vld [vmem:[%s5671_s0 + $0x1e8] sm:$0xff]  }
 0x108   :  { %v2437_v47 = vadd.f32 %v4147_v37, %v5891_v7  ;;  %v2116_v19 = vadd.f32 %v4119_v48, %v5893_v35  ;;  %vm2131_vm12 = vcmp.ge.f32.partialorder %v2115_v34, 0.0  ;;  %v2147_v12 = vmul.f32 0.2, %v2115_v34 }
 0x109   :  { %vm2452_vm13 = vcmp.ge.f32.partialorder %v2436_v26, 0.0  ;;  %v2468_v33 = vmul.f32 0.2, %v2436_v26  ;;  %3555 = vmatprep.mubr.msk.bf16.mxu1 %vm253_vm0, %v2498_v20  ;;  %v2117_v15 = vadd.f32 %v4117_v63, %v5894_v14  ;;  %v5896_v21 = vunpack.c.l.bf16 %v5895_v56 }
 0x10a   :  { %vm2453_vm14 = vcmp.ge.f32.partialorder %v2437_v47, 0.0  ;;  %v2469_v60 = vmul.f32 0.2, %v2437_v47  ;;  %v2163_v44 = vsel %vm2131_vm12, %v2115_v34, %v2147_v12  ;;  %vm2132_vm15 = vcmp.ge.f32.partialorder %v2116_v19, 0.0 }
 0x10b   :  { %v2148_v37 = vmul.f32 0.2, %v2116_v19  ;;  %v2177_v43 = vpack.c.bf16 %v2163_v44, %v2162_v18  ;;  %v2484_v9 = vsel %vm2452_vm13, %v2436_v26, %v2468_v33  ;;  %v2438_v16 = vadd.f32 %v4119_v48, %v5896_v21 }
 0x10c   :  { %v2485_v32 = vsel %vm2453_vm14, %v2437_v47, %v2469_v60  ;;  %vm2133_vm1 = vcmp.ge.f32.partialorder %v2117_v15, 0.0  ;;  %v2149_v58 = vmul.f32 0.2, %v2117_v15  ;;  %v5897_v10 = vunpack.c.h.bf16 %v5895_v56 }
 0x10d   :  { %v2499_v38 = vpack.c.bf16 %v2485_v32, %v2484_v9  ;;  %v2164_v29 = vsel %vm2132_vm15, %v2116_v19, %v2148_v37  ;;  %3532 = vmatmul.mubr.msk.bf16.vlgmr.msra.gmra.mrb[48].mxu0 %vm253_vm0, %v2177_v43  ;;  %vm2454_vm2 = vcmp.ge.f32.partialorder %v2438_v16, 0.0  ;;  %v2470_v25 = vmul.f32 0.2, %v2438_v16 }
 0x10e   :  { %v2439_v4 = vadd.f32 %v4117_v63, %v5897_v10  ;;  %v5899_v50 = vunpack.c.l.bf16 %v5898_v53  ;;  %v2165_v22 = vsel %vm2133_vm1, %v2117_v15, %v2149_v58  ;;  %v5900_v48 = vunpack.c.h.bf16 %v5898_v53 }
 0x10f   :  { %3556 = vmatmul.mubr.msk.bf16.vlgmr.msra.gmra.mrb[48].mxu1 %vm253_vm0, %v2499_v38  ;;  %v5902_v1 = vunpack.c.l.bf16 %v5901_v13  ;;  %v5903_v17 = vunpack.c.h.bf16 %v5901_v13  ;;  %v2178_v46 = vpack.c.bf16 %v2165_v22, %v2164_v29  ;;  %v2486_v54 = vsel %vm2454_vm2, %v2438_v16, %v2470_v25  ;;  %v3281_v29 = vld [vmem:[%s5671_s0 + $0x1f0] sm:$0xff]  }
 0x110   :  { %v2118_v27 = vadd.f32 %v4153_v40, %v5899_v50  ;;  %v2119_v36 = vadd.f32 %v4151_v57, %v5900_v48  ;;  %vm2455_vm3 = vcmp.ge.f32.partialorder %v2439_v4, 0.0  ;;  %v2471_v55 = vmul.f32 0.2, %v2439_v4 }
 0x111   :  { %v2440_v62 = vadd.f32 %v4153_v40, %v5902_v1  ;;  %v2441_v63 = vadd.f32 %v4151_v57, %v5903_v17  ;;  %3535 = vmatprep.mubr.msk.bf16.mxu0 %vm253_vm0, %v2178_v46  ;;  %v3279_v57 = vld [vmem:[%s5671_s0 + $0x1e0] sm:$0xff]   ;;  %v3167_v26 = vunpack.c.l.bf16 %v3271_v30  ;;  %v3168_v41 = vunpack.c.h.bf16 %v3271_v30 }
 0x112   :  { %vm2134_vm4 = vcmp.ge.f32.partialorder %v2118_v27, 0.0  ;;  %vm2135_vm5 = vcmp.ge.f32.partialorder %v2119_v36, 0.0  ;;  %v2150_v52 = vmul.f32 0.2, %v2118_v27  ;;  %v2151_v31 = vmul.f32 0.2, %v2119_v36 }
 0x113   :  { %v2487_v23 = vsel %vm2455_vm3, %v2439_v4, %v2471_v55  ;;  %vm2456_vm6 = vcmp.ge.f32.partialorder %v2440_v62, 0.0  ;;  %vm2457_vm7 = vcmp.ge.f32.partialorder %v2441_v63, 0.0  ;;  %v2472_v40 = vmul.f32 0.2, %v2440_v62 }
 0x114   :  { %v2500_v51 = vpack.c.bf16 %v2487_v23, %v2486_v54  ;;  %v2166_v0 = vsel %vm2134_vm4, %v2118_v27, %v2150_v52  ;;  %v2167_v34 = vsel %vm2135_vm5, %v2119_v36, %v2151_v31  ;;  %v2473_v8 = vmul.f32 0.2, %v2441_v63  ;;  %v3274_v52 = vld [vmem:[%s5671_s0 + $0x1b8] sm:$0xff]  }
 0x115   :  { %v2179_v5 = vpack.c.bf16 %v2167_v34, %v2166_v0  ;;  %v2488_v39 = vsel %vm2456_vm6, %v2440_v62, %v2472_v40  ;;  %v3199_v47 = vunpack.c.l.bf16 %v3279_v57  ;;  %v3200_v11 = vunpack.c.h.bf16 %v3279_v57  ;;  %v3282_v40 = vld [vmem:[%s5671_s0 + $0x1f8] sm:$0xff]  }
 0x116   :  { %3559 = vmatprep.mubr.msk.bf16.mxu1 %vm253_vm0, %v2500_v51  ;;  %v2489_v7 = vsel %vm2457_vm7, %v2441_v63, %v2473_v8  ;;  %v3171_v35 = vunpack.c.l.bf16 %v3272_v59  ;;  %v2120_v20 = vadd.f32 %v4173_v24, %v3167_v26  ;;  %v2121_v12 = vadd.f32 %v4171_v42, %v3168_v41 }
 0x117   :  { %3536 = vmatmul.mubr.msk.bf16.gmra.mrb[52].mxu0 %vm253_vm0, %v2179_v5  ;;  %v2501_v19 = vpack.c.bf16 %v2489_v7, %v2488_v39  ;;  %v3172_v18 = vunpack.c.h.bf16 %v3272_v59  ;;  %v2442_v33 = vadd.f32 %v4173_v24, %v3199_v47  ;;  %v2443_v60 = vadd.f32 %v4171_v42, %v3200_v11  ;;  %v3273_v42 = vld [vmem:[%s5671_s0 + $0x1b0] sm:$0xff]  }
 0x118   :  { %v2122_v44 = vadd.f32 %v4179_v61, %v3171_v35  ;;  %v3203_v14 = vunpack.c.l.bf16 %v3280_v49  ;;  %vm2136_vm8 = vcmp.ge.f32.partialorder %v2120_v20, 0.0  ;;  %vm2137_vm9 = vcmp.ge.f32.partialorder %v2121_v12, 0.0 }
 0x119   :  { %3560 = vmatmul.mubr.msk.bf16.gmra.mrb[52].mxu1 %vm253_vm0, %v2501_v19  ;;  %v2152_v15 = vmul.f32 0.2, %v2120_v20  ;;  %v2153_v37 = vmul.f32 0.2, %v2121_v12  ;;  %vm2458_vm10 = vcmp.ge.f32.partialorder %v2442_v33, 0.0  ;;  %vm2459_vm11 = vcmp.ge.f32.partialorder %v2443_v60, 0.0 }
 0x11a   :  { %v2474_v43 = vmul.f32 0.2, %v2442_v33  ;;  %v2475_v9 = vmul.f32 0.2, %v2443_v60  ;;  %v2123_v21 = vadd.f32 %v4176_v2, %v3172_v18  ;;  %vm2138_vm12 = vcmp.ge.f32.partialorder %v2122_v44, 0.0 }
 0x11b   :  { %v2168_v32 = vsel %vm2136_vm8, %v2120_v20, %v2152_v15  ;;  %v2169_v56 = vsel %vm2137_vm9, %v2121_v12, %v2153_v37  ;;  %v2154_v58 = vmul.f32 0.2, %v2122_v44  ;;  %v3204_v25 = vunpack.c.h.bf16 %v3280_v49 }
 0x11c   :  { %v2180_v24 = vpack.c.bf16 %v2169_v56, %v2168_v32  ;;  %v2490_v16 = vsel %vm2458_vm10, %v2442_v33, %v2474_v43  ;;  %v2491_v38 = vsel %vm2459_vm11, %v2443_v60, %v2475_v9  ;;  %vm2139_vm13 = vcmp.ge.f32.partialorder %v2123_v21, 0.0  ;;  %v4659_v43 = vld [vmem:[%s5673_s4] ss:$0 sm:$0xff] }
 0x11d   :  { %v2502_v10 = vpack.c.bf16 %v2491_v38, %v2490_v16  ;;  %v2155_v4 = vmul.f32 0.2, %v2123_v21  ;;  %v2170_v53 = vsel %vm2138_vm12, %v2122_v44, %v2154_v58  ;;  %v2444_v50 = vadd.f32 %v4179_v61, %v3203_v14 }
 0x11e   :  { %3539 = vmatprep.mubr.msk.bf16.mxu0 %vm253_vm0, %v2180_v24  ;;  %v3175_v27 = vunpack.c.l.bf16 %v3273_v42  ;;  %v3176_v22 = vunpack.c.h.bf16 %v3273_v42  ;;  %v2445_v36 = vadd.f32 %v4176_v2, %v3204_v25  ;;  %v3207_v13 = vunpack.c.l.bf16 %v3281_v29 }
 0x11f   :  { %3563 = vmatprep.mubr.msk.bf16.mxu1 %vm253_vm0, %v2502_v10  ;;  %v2171_v48 = vsel %vm2139_vm13, %v2123_v21, %v2155_v4  ;;  %v3208_v1 = vunpack.c.h.bf16 %v3281_v29  ;;  %vm2460_vm14 = vcmp.ge.f32.partialorder %v2444_v50, 0.0  ;;  %v2476_v17 = vmul.f32 0.2, %v2444_v50 }
 0x120   :  { %v2181_v62 = vpack.c.bf16 %v2171_v48, %v2170_v53  ;;  %v2124_v63 = vadd.f32 %v4198_v6, %v3175_v27  ;;  %vm2461_vm15 = vcmp.ge.f32.partialorder %v2445_v36, 0.0  ;;  %v2477_v46 = vmul.f32 0.2, %v2445_v36 }
 0x121   :  { %v2125_v55 = vadd.f32 %v4196_v45, %v3176_v22  ;;  %v2446_v61 = vadd.f32 %v4198_v6, %v3207_v13  ;;  %v2492_v54 = vsel %vm2460_vm14, %v2444_v50, %v2476_v17  ;;  %v2447_v2 = vadd.f32 %v4196_v45, %v3208_v1 }
 0x122   :  { %3540 = vmatmul.mubr.msk.bf16.gmra.mrb[56].mxu0 %vm253_vm0, %v2181_v62  ;;  %vm2140_vm1 = vcmp.ge.f32.partialorder %v2124_v63, 0.0  ;;  %v2156_v30 = vmul.f32 0.2, %v2124_v63  ;;  %v2493_v31 = vsel %vm2461_vm15, %v2445_v36, %v2477_v46  ;;  %v3179_v34 = vunpack.c.l.bf16 %v3274_v52 }
 0x123   :  { %vm2141_vm2 = vcmp.ge.f32.partialorder %v2125_v55, 0.0  ;;  %v2157_v23 = vmul.f32 0.2, %v2125_v55  ;;  %vm2462_vm3 = vcmp.ge.f32.partialorder %v2446_v61, 0.0  ;;  %v2503_v6 = vpack.c.bf16 %v2493_v31, %v2492_v54 }
 0x124   :  { %v2172_v57 = vsel %vm2140_vm1, %v2124_v63, %v2156_v30  ;;  %vm2463_vm4 = vcmp.ge.f32.partialorder %v2447_v2, 0.0  ;;  %v2478_v59 = vmul.f32 0.2, %v2446_v61  ;;  %v2479_v0 = vmul.f32 0.2, %v2447_v2 }
 0x125   :  { %v2173_v51 = vsel %vm2141_vm2, %v2125_v55, %v2157_v23  ;;  %v3180_v45 = vunpack.c.h.bf16 %v3274_v52  ;;  %3564 = vmatmul.mubr.msk.bf16.gmra.mrb[56].mxu1 %vm253_vm0, %v2503_v6  ;;  %v3211_v39 = vunpack.c.l.bf16 %v3282_v40  ;;  %v3212_v26 = vunpack.c.h.bf16 %v3282_v40 }
 0x126   :  { %v2182_v8 = vpack.c.bf16 %v2173_v51, %v2172_v57  ;;  %v2494_v5 = vsel %vm2462_vm3, %v2446_v61, %v2478_v59  ;;  %v2495_v41 = vsel %vm2463_vm4, %v2447_v2, %v2479_v0  ;;  %v2126_v49 = vadd.f32 %v4205_v3, %v3179_v34 }
 0x127   :  { %v2127_v7 = vadd.f32 %v4203_v28, %v3180_v45  ;;  %v2504_v47 = vpack.c.bf16 %v2495_v41, %v2494_v5  ;;  %v2448_v11 = vadd.f32 %v4205_v3, %v3211_v39  ;;  %v2449_v35 = vadd.f32 %v4203_v28, %v3212_v26  ;;  %v4654_v28 = vld [vmem:[%s5672_s3] ss:$0 sm:$0xff] }
 0x128   :  { %3543 = vmatprep.mubr.msk.bf16.mxu0 %vm253_vm0, %v2182_v8  ;;  %vm2142_vm5 = vcmp.ge.f32.partialorder %v2126_v49, 0.0  ;;  %v2158_v19 = vmul.f32 0.2, %v2126_v49 }
 0x129   :  { %vm2143_vm6 = vcmp.ge.f32.partialorder %v2127_v7, 0.0  ;;  %v2159_v20 = vmul.f32 0.2, %v2127_v7  ;;  %3567 = vmatprep.mubr.msk.bf16.mxu1 %vm253_vm0, %v2504_v47  ;;  %vm2464_vm7 = vcmp.ge.f32.partialorder %v2448_v11, 0.0  ;;  %vm2465_vm8 = vcmp.ge.f32.partialorder %v2449_v35, 0.0 }
 0x12a   :  { %v2480_v12 = vmul.f32 0.2, %v2448_v11  ;;  %v2481_v18 = vmul.f32 0.2, %v2449_v35  ;;  %v2174_v33 = vsel %vm2142_vm5, %v2126_v49, %v2158_v19 }
 0x12b   :  { %v2175_v60 = vsel %vm2143_vm6, %v2127_v7, %v2159_v20 }
 0x12c   :  { %v2183_v44 = vpack.c.bf16 %v2175_v60, %v2174_v33  ;;  %v2496_v14 = vsel %vm2464_vm7, %v2448_v11, %v2480_v12  ;;  %v2497_v15 = vsel %vm2465_vm8, %v2449_v35, %v2481_v18 }
 0x12d   :  { %v2505_v37 = vpack.c.bf16 %v2497_v15, %v2496_v14 }
 0x12e   :  { %3544 = vmatmul.mubr.msk.bf16.gmra.mrb[60].mxu0 %vm253_vm0, %v2183_v44 }
 0x12f   :  { %3568 = vmatmul.mubr.msk.bf16.gmra.mrb[60].mxu1 %vm253_vm0, %v2505_v37 }
 0x15c   :  { %v3389_v3 = vpop.f32.mrb[0].mxu0 }
 0x15d   :  { %v384_v9 = vmul.f32 %v3389_v3, %v4654_v28  ;;  %v312_v32 = vpop.f32.mrb[1].mxu0 }
 0x15e   :  { %v382_v21 = vmul.f32 %v4654_v28, %v312_v32  ;;  %v3390_v42 = vpop.f32.mrb[2].mxu0 }
 0x15f   :  { %v3413_v56 = vpop.f32.mrb[0].mxu1  ;;  %v407_v24 = vadd.f32 %v4659_v43, %v384_v9  ;;  %v385_v58 = vmul.f32 %v3390_v42, %v4654_v28  ;;  %v315_v29 = vpop.f32.mrb[3].mxu0 }
 0x160   :  { %v697_v16 = vmul.f32 %v3413_v56, %v4654_v28  ;;  %v632_v38 = vpop.f32.mrb[1].mxu1  ;;  %v405_v10 = vadd.f32 %v4659_v43, %v382_v21  ;;  %v383_v53 = vmul.f32 %v4654_v28, %v315_v29 }
 0x161   :  { %v695_v4 = vmul.f32 %v4654_v28, %v632_v38  ;;  %v3414_v25 = vpop.f32.mrb[2].mxu1  ;;  %vm423_vm9 = vcmp.ge.f32.partialorder %v407_v24, 0.0  ;;  %v439_v50 = vmul.f32 0.2, %v407_v24  ;;  %v408_v22 = vadd.f32 %v4659_v43, %v385_v58 }
 0x162   :  { %v713_v27 = vadd.f32 %v4659_v43, %v697_v16  ;;  %v635_v48 = vpop.f32.mrb[3].mxu1  ;;  %vm421_vm10 = vcmp.ge.f32.partialorder %v405_v10, 0.0  ;;  %v437_v36 = vmul.f32 0.2, %v405_v10  ;;  %v698_v1 = vmul.f32 %v3414_v25, %v4654_v28 }
 0x163   :  { %v711_v13 = vadd.f32 %v4659_v43, %v695_v4  ;;  %v4673_v62 = vsel %vm423_vm9, %v407_v24, %v439_v50  ;;  %vm424_vm12 = vcmp.ge.f32.partialorder %v408_v22, 0.0  ;;  %v440_v55 = vmul.f32 0.2, %v408_v22 }
 0x164   :  { %vm729_vm11 = vcmp.ge.f32.partialorder %v713_v27, 0.0  ;;  %v745_v17 = vmul.f32 0.2, %v713_v27  ;;  %v4675_v63 = vsel %vm421_vm10, %v405_v10, %v437_v36  ;;  %v714_v54 = vadd.f32 %v4659_v43, %v698_v1 }
 0x165   :  { %vm727_vm13 = vcmp.ge.f32.partialorder %v711_v13, 0.0  ;;  %v743_v46 = vmul.f32 0.2, %v711_v13  ;;  %v406_v30 = vadd.f32 %v4659_v43, %v383_v53  ;;  %v696_v2 = vmul.f32 %v4654_v28, %v635_v48 }
 0x166   :  { %v4677_v61 = vsel %vm729_vm11, %v713_v27, %v745_v17  ;;  %v4686_v40 = vsel %vm424_vm12, %v408_v22, %v440_v55  ;;  %vm730_vm14 = vcmp.ge.f32.partialorder %v714_v54, 0.0  ;;  %v746_v0 = vmul.f32 0.2, %v714_v54 }
 0x167   :  { %v3393_v52 = vpop.f32.mrb[4].mxu0  ;;  %v777_v31 = vmax.f32 %v4673_v62, %v4677_v61  ;;  %v4684_v23 = vsel %vm727_vm13, %v711_v13, %v743_v46  ;;  %vm422_vm15 = vcmp.ge.f32.partialorder %v406_v30, 0.0  ;;  %v438_v8 = vmul.f32 0.2, %v406_v30 }
 0x168   :  { %v388_v6 = vmul.f32 %v3393_v52, %v4654_v28  ;;  %v3417_v57 = vpop.f32.mrb[4].mxu1  ;;  %v328_v59 = vpop.f32.mrb[5].mxu0  ;;  %v775_v51 = vmax.f32 %v4675_v63, %v4684_v23  ;;  %v712_v5 = vadd.f32 %v4659_v43, %v696_v2  ;;  %v4694_v7 = vsel %vm730_vm14, %v714_v54, %v746_v0 }
 0x169   :  { %v648_v34 = vpop.f32.mrb[5].mxu1  ;;  %v3394_v45 = vpop.f32.mrb[6].mxu0  ;;  %v701_v26 = vmul.f32 %v3417_v57, %v4654_v28  ;;  %v386_v47 = vmul.f32 %v4654_v28, %v328_v59  ;;  %v778_v20 = vmax.f32 %v4686_v40, %v4694_v7  ;;  %v4701_v12 = vsel %vm422_vm15, %v406_v30, %v438_v8 }
 0x16a   :  { %v411_v39 = vadd.f32 %v4659_v43, %v388_v6  ;;  %v3418_v41 = vpop.f32.mrb[6].mxu1  ;;  %v331_v49 = vpop.f32.mrb[7].mxu0  ;;  %v699_v11 = vmul.f32 %v4654_v28, %v648_v34  ;;  %v389_v35 = vmul.f32 %v3394_v45, %v4654_v28  ;;  %vm728_vm1 = vcmp.ge.f32.partialorder %v712_v5, 0.0 }
 0x16b   :  { %v651_v19 = vpop.f32.mrb[7].mxu1  ;;  %v744_v18 = vmul.f32 0.2, %v712_v5  ;;  %v717_v60 = vadd.f32 %v4659_v43, %v701_v26  ;;  %v409_v44 = vadd.f32 %v4659_v43, %v386_v47  ;;  %v702_v3 = vmul.f32 %v3418_v41, %v4654_v28 }
 0x16c   :  { %vm427_vm2 = vcmp.ge.f32.partialorder %v411_v39, 0.0  ;;  %v443_v33 = vmul.f32 0.2, %v411_v39  ;;  %v715_v15 = vadd.f32 %v4659_v43, %v699_v11  ;;  %v412_v37 = vadd.f32 %v4659_v43, %v389_v35 }
 0x16d   :  { %v4705_v14 = vsel %vm728_vm1, %v712_v5, %v744_v18  ;;  %vm733_vm3 = vcmp.ge.f32.partialorder %v717_v60, 0.0  ;;  %v749_v56 = vmul.f32 0.2, %v717_v60  ;;  %vm425_vm4 = vcmp.ge.f32.partialorder %v409_v44, 0.0 }
 0x16e   :  { %v776_v9 = vmax.f32 %v4701_v12, %v4705_v14  ;;  %v4712_v32 = vsel %vm427_vm2, %v411_v39, %v443_v33  ;;  %v441_v42 = vmul.f32 0.2, %v409_v44  ;;  %vm731_vm5 = vcmp.ge.f32.partialorder %v715_v15, 0.0 }
 0x16f   :  { %v747_v24 = vmul.f32 0.2, %v715_v15  ;;  %v4714_v16 = vsel %vm733_vm3, %v717_v60, %v749_v56  ;;  %vm428_vm6 = vcmp.ge.f32.partialorder %v412_v37, 0.0  ;;  %v444_v38 = vmul.f32 0.2, %v412_v37 }
 0x170   :  { %v3397_v21 = vpop.f32.mrb[8].mxu0  ;;  %v718_v58 = vadd.f32 %v4659_v43, %v702_v3  ;;  %v4719_v4 = vsel %vm425_vm4, %v409_v44, %v441_v42  ;;  %v387_v53 = vmul.f32 %v4654_v28, %v331_v49  ;;  %v700_v17 = vmul.f32 %v4654_v28, %v651_v19 }
 0x171   :  { %v344_v29 = vpop.f32.mrb[9].mxu0  ;;  %v4721_v25 = vsel %vm731_vm5, %v715_v15, %v747_v24  ;;  %v4726_v22 = vsel %vm428_vm6, %v412_v37, %v444_v38  ;;  %v392_v46 = vmul.f32 %v3397_v21, %v4654_v28 }
 0x172   :  { %v3398_v50 = vpop.f32.mrb[10].mxu0  ;;  %vm734_vm7 = vcmp.ge.f32.partialorder %v718_v58, 0.0  ;;  %v750_v48 = vmul.f32 0.2, %v718_v58  ;;  %v410_v1 = vadd.f32 %v4659_v43, %v387_v53  ;;  %v390_v2 = vmul.f32 %v4654_v28, %v344_v29 }
 0x173   :  { %v347_v13 = vpop.f32.mrb[11].mxu0  ;;  %v393_v6 = vmul.f32 %v3398_v50, %v4654_v28  ;;  %v716_v34 = vadd.f32 %v4659_v43, %v700_v17  ;;  %v415_v8 = vadd.f32 %v4659_v43, %v392_v46 }
 0x174   :  { %v3421_v36 = vpop.f32.mrb[8].mxu1  ;;  %v4732_v30 = vsel %vm734_vm7, %v718_v58, %v750_v48  ;;  %vm426_vm8 = vcmp.ge.f32.partialorder %v410_v1, 0.0  ;;  %v442_v0 = vmul.f32 0.2, %v410_v1  ;;  %v413_v39 = vadd.f32 %v4659_v43, %v390_v2 }
 0x175   :  { %v705_v55 = vmul.f32 %v3421_v36, %v4654_v28  ;;  %v664_v54 = vpop.f32.mrb[9].mxu1  ;;  %vm732_vm9 = vcmp.ge.f32.partialorder %v716_v34, 0.0  ;;  %v748_v49 = vmul.f32 0.2, %v716_v34  ;;  %v416_v47 = vadd.f32 %v4659_v43, %v393_v6 }
 0x176   :  { %v703_v52 = vmul.f32 %v4654_v28, %v664_v54  ;;  %v3422_v57 = vpop.f32.mrb[10].mxu1  ;;  %v4744_v41 = vsel %vm426_vm8, %v410_v1, %v442_v0  ;;  %vm431_vm10 = vcmp.ge.f32.partialorder %v415_v8, 0.0  ;;  %v447_v11 = vmul.f32 0.2, %v415_v8 }
 0x177   :  { %v667_v45 = vpop.f32.mrb[11].mxu1  ;;  %v721_v5 = vadd.f32 %v4659_v43, %v705_v55  ;;  %v4747_v19 = vsel %vm732_vm9, %v716_v34, %v748_v49  ;;  %vm429_vm12 = vcmp.ge.f32.partialorder %v413_v39, 0.0  ;;  %v445_v18 = vmul.f32 0.2, %v413_v39 }
 0x178   :  { %v719_v26 = vadd.f32 %v4659_v43, %v703_v52  ;;  %v4751_v44 = vsel %vm431_vm10, %v415_v8, %v447_v11  ;;  %vm432_vm14 = vcmp.ge.f32.partialorder %v416_v47, 0.0  ;;  %v448_v24 = vmul.f32 0.2, %v416_v47 }
 0x179   :  { %vm737_vm11 = vcmp.ge.f32.partialorder %v721_v5, 0.0  ;;  %v753_v35 = vmul.f32 0.2, %v721_v5  ;;  %v4757_v42 = vsel %vm429_vm12, %v413_v39, %v445_v18  ;;  %v706_v53 = vmul.f32 %v3422_v57, %v4654_v28 }
 0x17a   :  { %vm735_vm13 = vcmp.ge.f32.partialorder %v719_v26, 0.0  ;;  %v751_v37 = vmul.f32 0.2, %v719_v26  ;;  %v391_v50 = vmul.f32 %v4654_v28, %v347_v13  ;;  %v704_v48 = vmul.f32 %v4654_v28, %v667_v45 }
 0x17b   :  { %v4753_v15 = vsel %vm737_vm11, %v721_v5, %v753_v35  ;;  %v4766_v46 = vsel %vm432_vm14, %v416_v47, %v448_v24  ;;  %v722_v52 = vadd.f32 %v4659_v43, %v706_v53 }
 0x17c   :  { %v4759_v29 = vsel %vm735_vm13, %v719_v26, %v751_v37  ;;  %v414_v6 = vadd.f32 %v4659_v43, %v391_v50  ;;  %v720_v13 = vadd.f32 %v4659_v43, %v704_v48 }
 0x17d   :  { %v3401_v33 = vpop.f32.mrb[12].mxu0  ;;  %vm738_vm15 = vcmp.ge.f32.partialorder %v722_v52, 0.0  ;;  %v754_v5 = vmul.f32 0.2, %v722_v52 }
 0x17e   :  { %v3425_v3 = vpop.f32.mrb[12].mxu1  ;;  %v360_v56 = vpop.f32.mrb[13].mxu0  ;;  %v396_v55 = vmul.f32 %v3401_v33, %v4654_v28  ;;  %vm430_vm1 = vcmp.ge.f32.partialorder %v414_v6, 0.0  ;;  %v446_v39 = vmul.f32 0.2, %v414_v6  ;;  %vm736_vm2 = vcmp.ge.f32.partialorder %v720_v13, 0.0 }
 0x17f   :  { %v680_v38 = vpop.f32.mrb[13].mxu1  ;;  %v3402_v58 = vpop.f32.mrb[14].mxu0  ;;  %v709_v54 = vmul.f32 %v3425_v3, %v4654_v28  ;;  %v394_v57 = vmul.f32 %v4654_v28, %v360_v56  ;;  %v752_v26 = vmul.f32 0.2, %v720_v13  ;;  %v4778_v47 = vsel %vm738_vm15, %v722_v52, %v754_v5 }
 0x180   :  { %v3426_v36 = vpop.f32.mrb[14].mxu1  ;;  %v363_v1 = vpop.f32.mrb[15].mxu0  ;;  %v419_v0 = vadd.f32 %v4659_v43, %v396_v55  ;;  %v707_v45 = vmul.f32 %v4654_v28, %v680_v38  ;;  %v397_v8 = vmul.f32 %v3402_v58, %v4654_v28  ;;  %v4780_v11 = vsel %vm430_vm1, %v414_v6, %v446_v39 }
 0x181   :  { %v683_v2 = vpop.f32.mrb[15].mxu1  ;;  %v725_v34 = vadd.f32 %v4659_v43, %v709_v54  ;;  %v4784_v37 = vsel %vm736_vm2, %v720_v13, %v752_v26  ;;  %v417_v56 = vadd.f32 %v4659_v43, %v394_v57  ;;  %v710_v6 = vmul.f32 %v3426_v36, %v4654_v28 }
 0x182   :  { %vm435_vm3 = vcmp.ge.f32.partialorder %v419_v0, 0.0  ;;  %v451_v49 = vmul.f32 0.2, %v419_v0  ;;  %v723_v53 = vadd.f32 %v4659_v43, %v707_v45  ;;  %v420_v50 = vadd.f32 %v4659_v43, %v397_v8 }
 0x183   :  { %vm741_vm4 = vcmp.ge.f32.partialorder %v725_v34, 0.0  ;;  %v757_v35 = vmul.f32 0.2, %v725_v34  ;;  %vm433_vm5 = vcmp.ge.f32.partialorder %v417_v56, 0.0  ;;  %v449_v52 = vmul.f32 0.2, %v417_v56 }
 0x184   :  { %v4786_v3 = vsel %vm435_vm3, %v419_v0, %v451_v49  ;;  %vm739_vm6 = vcmp.ge.f32.partialorder %v723_v53, 0.0  ;;  %v755_v0 = vmul.f32 0.2, %v723_v53  ;;  %vm436_vm7 = vcmp.ge.f32.partialorder %v420_v50, 0.0 }
 0x185   :  { %v4791_v58 = vsel %vm741_vm4, %v725_v34, %v757_v35  ;;  %v452_v34 = vmul.f32 0.2, %v420_v50  ;;  %v4798_v5 = vsel %vm433_vm5, %v417_v56, %v449_v52  ;;  %v726_v45 = vadd.f32 %v4659_v43, %v710_v6 }
 0x186   :  { %v395_v8 = vmul.f32 %v4654_v28, %v363_v1  ;;  %v708_v39 = vmul.f32 %v4654_v28, %v683_v2  ;;  %v4803_v49 = vsel %vm739_vm6, %v723_v53, %v755_v0 }
 0x187   :  { %v4805_v35 = vsel %vm436_vm7, %v420_v50, %v452_v34  ;;  %vm742_vm8 = vcmp.ge.f32.partialorder %v726_v45, 0.0  ;;  %v758_v52 = vmul.f32 0.2, %v726_v45 }
 0x188   :  { %v3437_v18 = vpop.f32.mrb[16].mxu0  ;;  %v418_v6 = vadd.f32 %v4659_v43, %v395_v8  ;;  %v724_v1 = vadd.f32 %v4659_v43, %v708_v39 }
 0x189   :  { %v954_v24 = vpop.f32.mrb[17].mxu0  ;;  %v1019_v36 = vmul.f32 %v3437_v18, %v4654_v28  ;;  %v4816_v18 = vsel %vm742_vm8, %v726_v45, %v758_v52 }
 0x18a   :  { %v3438_v55 = vpop.f32.mrb[18].mxu0  ;;  %v1017_v50 = vmul.f32 %v4654_v28, %v954_v24  ;;  %vm434_vm9 = vcmp.ge.f32.partialorder %v418_v6, 0.0  ;;  %vm740_vm10 = vcmp.ge.f32.partialorder %v724_v1, 0.0  ;;  %v756_v39 = vmul.f32 0.2, %v724_v1 }
 0x18b   :  { %v3461_v48 = vpop.f32.mrb[16].mxu1  ;;  %v957_v57 = vpop.f32.mrb[19].mxu0  ;;  %v1035_v2 = vadd.f32 %v4659_v43, %v1019_v36  ;;  %v1020_v21 = vmul.f32 %v3438_v55, %v4654_v28 }
 0x18c   :  { %v1276_v13 = vpop.f32.mrb[17].mxu1  ;;  %v1341_v54 = vmul.f32 %v3461_v48, %v4654_v28  ;;  %v450_v48 = vmul.f32 0.2, %v418_v6  ;;  %v4827_v33 = vsel %vm740_vm10, %v724_v1, %v756_v39 }
 0x18d   :  { %v3462_v26 = vpop.f32.mrb[18].mxu1  ;;  %v1339_v34 = vmul.f32 %v4654_v28, %v1276_v13  ;;  %vm1051_vm11 = vcmp.ge.f32.partialorder %v1035_v2, 0.0  ;;  %v1067_v24 = vmul.f32 0.2, %v1035_v2  ;;  %v1033_v13 = vadd.f32 %v4659_v43, %v1017_v50 }
 0x18e   :  { %v1279_v38 = vpop.f32.mrb[19].mxu1  ;;  %v1357_v53 = vadd.f32 %v4659_v43, %v1341_v54  ;;  %v4825_v54 = vsel %vm434_vm9, %v418_v6, %v450_v48  ;;  %v1342_v27 = vmul.f32 %v3462_v26, %v4654_v28  ;;  %v1036_v39 = vadd.f32 %v4659_v43, %v1020_v21 }
 0x18f   :  { %v1355_v17 = vadd.f32 %v4659_v43, %v1339_v34  ;;  %v1083_v6 = vsel %vm1051_vm11, %v1035_v2, %v1067_v24  ;;  %vm1049_vm13 = vcmp.ge.f32.partialorder %v1033_v13, 0.0  ;;  %v1065_v50 = vmul.f32 0.2, %v1033_v13 }
 0x190   :  { %vm1373_vm12 = vcmp.ge.f32.partialorder %v1357_v53, 0.0  ;;  %v1389_v45 = vmul.f32 0.2, %v1357_v53  ;;  %v4842_v1 = vmax.f32 %v777_v31, %v1083_v6  ;;  %v1358_v2 = vadd.f32 %v4659_v43, %v1342_v27 }
 0x191   :  { %vm1371_vm14 = vcmp.ge.f32.partialorder %v1355_v17, 0.0  ;;  %v1387_v34 = vmul.f32 0.2, %v1355_v17  ;;  %v1081_v24 = vsel %vm1049_vm13, %v1033_v13, %v1065_v50  ;;  %v1340_v62 = vmul.f32 %v4654_v28, %v1279_v38 }
 0x192   :  { %v4836_v48 = vsel %vm1373_vm12, %v1357_v53, %v1389_v45  ;;  %v1018_v53 = vmul.f32 %v4654_v28, %v957_v57  ;;  %v4856_v31 = vmax.f32 %v775_v51, %v1081_v24  ;;  %vm1052_vm15 = vcmp.ge.f32.partialorder %v1036_v39, 0.0 }
 0x193   :  { %v3441_v0 = vpop.f32.mrb[20].mxu0  ;;  %v4858_v45 = vsel %vm1371_vm14, %v1355_v17, %v1387_v34  ;;  %v1068_v21 = vmul.f32 0.2, %v1036_v39  ;;  %vm1374_vm1 = vcmp.ge.f32.partialorder %v1358_v2, 0.0  ;;  %v1390_v57 = vmul.f32 0.2, %v1358_v2 }
 0x194   :  { %v4819_v56 = vpop.f32.mrb[21].mxu0  ;;  %v1023_v61 = vmul.f32 %v3441_v0, %v4654_v28  ;;  %v1034_v6 = vadd.f32 %v4659_v43, %v1018_v53  ;;  %v1356_v13 = vadd.f32 %v4659_v43, %v1340_v62 }
 0x195   :  { %v4823_v36 = vpop.f32.mrb[22].mxu0  ;;  %v3465_v52 = vpop.f32.mrb[20].mxu1  ;;  %v1084_v63 = vsel %vm1052_vm15, %v1036_v39, %v1068_v21  ;;  %v4877_v34 = vsel %vm1374_vm1, %v1358_v2, %v1390_v57  ;;  %v1021_v40 = vmul.f32 %v4654_v28, %v4819_v56 }
 0x196   :  { %v1292_v8 = vpop.f32.mrb[21].mxu1  ;;  %v4832_v60 = vpop.f32.mrb[23].mxu0  ;;  %v1039_v23 = vadd.f32 %v4659_v43, %v1023_v61  ;;  %v1345_v51 = vmul.f32 %v3465_v52, %v4654_v28  ;;  %v4875_v50 = vmax.f32 %v778_v20, %v1084_v63  ;;  %vm1050_vm2 = vcmp.ge.f32.partialorder %v1034_v6, 0.0 }
 0x197   :  { %v3466_v10 = vpop.f32.mrb[22].mxu1  ;;  %v1066_v53 = vmul.f32 0.2, %v1034_v6  ;;  %vm1372_vm3 = vcmp.ge.f32.partialorder %v1356_v13, 0.0  ;;  %v1388_v39 = vmul.f32 0.2, %v1356_v13  ;;  %v1343_v63 = vmul.f32 %v4654_v28, %v1292_v8 }
 0x198   :  { %v4844_v55 = vpop.f32.mrb[23].mxu1  ;;  %vm1055_vm4 = vcmp.ge.f32.partialorder %v1039_v23, 0.0  ;;  %v1071_v61 = vmul.f32 0.2, %v1039_v23  ;;  %v1361_v0 = vadd.f32 %v4659_v43, %v1345_v51  ;;  %v1346_v8 = vmul.f32 %v3466_v10, %v4654_v28 }
 0x199   :  { %v1082_v21 = vsel %vm1050_vm2, %v1034_v6, %v1066_v53  ;;  %v4891_v2 = vsel %vm1372_vm3, %v1356_v13, %v1388_v39  ;;  %v5904_v6 = vmax.f32 %v4712_v32, %v4714_v16  ;;  %v1037_v53 = vadd.f32 %v4659_v43, %v1021_v40 }
 0x19a   :  { %v4889_v20 = vmax.f32 %v776_v9, %v1082_v21  ;;  %v1087_v57 = vsel %vm1055_vm4, %v1039_v23, %v1071_v61  ;;  %vm1377_vm5 = vcmp.ge.f32.partialorder %v1361_v0, 0.0  ;;  %v1393_v56 = vmul.f32 0.2, %v1361_v0 }
 0x19b   :  { %v4899_v51 = vmax.f32 %v5904_v6, %v1087_v57  ;;  %v1359_v14 = vadd.f32 %v4659_v43, %v1343_v63  ;;  %v1024_v9 = vmul.f32 %v4823_v36, %v4654_v28  ;;  %vm1053_vm6 = vcmp.ge.f32.partialorder %v1037_v53, 0.0 }
 0x19c   :  { %v4860_v27 = vpop.f32.mrb[24].mxu0  ;;  %v4910_v13 = vsel %vm1377_vm5, %v1361_v0, %v1393_v56  ;;  %v1069_v32 = vmul.f32 0.2, %v1037_v53  ;;  %v1022_v16 = vmul.f32 %v4654_v28, %v4832_v60  ;;  %v1362_v36 = vadd.f32 %v4659_v43, %v1346_v8 }
 0x19d   :  { %v4864_v38 = vpop.f32.mrb[25].mxu0  ;;  %vm1375_vm7 = vcmp.ge.f32.partialorder %v1359_v14, 0.0  ;;  %v1391_v39 = vmul.f32 0.2, %v1359_v14  ;;  %v1040_v61 = vadd.f32 %v4659_v43, %v1024_v9  ;;  %v1344_v0 = vmul.f32 %v4654_v28, %v4844_v55 }
 0x19e   :  { %v4870_v17 = vpop.f32.mrb[26].mxu0  ;;  %v1085_v40 = vsel %vm1053_vm6, %v1037_v53, %v1069_v32  ;;  %v1038_v10 = vadd.f32 %v4659_v43, %v1022_v16  ;;  %v5905_v63 = vmax.f32 %v4719_v4, %v4721_v25  ;;  %vm1378_vm9 = vcmp.ge.f32.partialorder %v1362_v36, 0.0 }
 0x19f   :  { %v4879_v62 = vpop.f32.mrb[27].mxu0  ;;  %v4932_v56 = vsel %vm1375_vm7, %v1359_v14, %v1391_v39  ;;  %vm1056_vm8 = vcmp.ge.f32.partialorder %v1040_v61, 0.0  ;;  %v1072_v53 = vmul.f32 0.2, %v1040_v61  ;;  %v1394_v32 = vmul.f32 0.2, %v1362_v36 }
 0x1a0   :  { %v4930_v6 = vmax.f32 %v5905_v63, %v1085_v40  ;;  %5906 = vst [vmem:[#allocation2_spill] sm:$0xff] %v4932_v56  ;;  %vm1054_vm10 = vcmp.ge.f32.partialorder %v1038_v10, 0.0  ;;  %v1070_v55 = vmul.f32 0.2, %v1038_v10  ;;  %v1360_v4 = vadd.f32 %v4659_v43, %v1344_v0 }
 0x1a1   :  { %v3469_v24 = vpop.f32.mrb[24].mxu1  ;;  %v1088_v23 = vsel %vm1056_vm8, %v1040_v61, %v1072_v53  ;;  %v1027_v25 = vmul.f32 %v4860_v27, %v4654_v28  ;;  %v5907_v40 = vmax.f32 %v4726_v22, %v4732_v30  ;;  %v4952_v12 = vsel %vm1378_vm9, %v1362_v36, %v1394_v32 }
 0x1a2   :  { %v1308_v7 = vpop.f32.mrb[25].mxu1  ;;  %v1086_v59 = vsel %vm1054_vm10, %v1038_v10, %v1070_v55  ;;  %v1349_v16 = vmul.f32 %v3469_v24, %v4654_v28  ;;  %v5908_v0 = vmax.f32 %v4744_v41, %v4747_v19  ;;  %vm1376_vm11 = vcmp.ge.f32.partialorder %v1360_v4, 0.0 }
 0x1a3   :  { %v4894_v26 = vpop.f32.mrb[26].mxu1  ;;  %v4950_v63 = vmax.f32 %v5907_v40, %v1088_v23  ;;  %v1392_v53 = vmul.f32 0.2, %v1360_v4  ;;  %v1043_v56 = vadd.f32 %v4659_v43, %v1027_v25  ;;  %v1025_v23 = vmul.f32 %v4654_v28, %v4864_v38 }
 0x1a4   :  { %v4902_v52 = vpop.f32.mrb[27].mxu1  ;;  %v4960_v27 = vmax.f32 %v5908_v0, %v1086_v59  ;;  %v1365_v30 = vadd.f32 %v4659_v43, %v1349_v16  ;;  %v1347_v24 = vmul.f32 %v4654_v28, %v1308_v7  ;;  %v1028_v59 = vmul.f32 %v4870_v17, %v4654_v28 }
 0x1a5   :  { %v4969_v36 = vsel %vm1376_vm11, %v1360_v4, %v1392_v53  ;;  %vm1059_vm12 = vcmp.ge.f32.partialorder %v1043_v56, 0.0  ;;  %v1075_v41 = vmul.f32 0.2, %v1043_v56  ;;  %v1041_v55 = vadd.f32 %v4659_v43, %v1025_v23 }
 0x1a6   :  { %5909 = vst [vmem:[#allocation3_spill] sm:$0xff] %v4960_v27  ;;  %5910 = vst [vmem:[#allocation4_spill] sm:$0xff] %v4969_v36  ;;  %vm1381_vm13 = vcmp.ge.f32.partialorder %v1365_v30, 0.0  ;;  %v1397_v32 = vmul.f32 0.2, %v1365_v30  ;;  %v1363_v7 = vadd.f32 %v4659_v43, %v1347_v24  ;;  %v1044_v4 = vadd.f32 %v4659_v43, %v1028_v59 }
 0x1a7   :  { %v1091_v38 = vsel %vm1059_vm12, %v1043_v56, %v1075_v41  ;;  %v1350_v25 = vmul.f32 %v4894_v26, %v4654_v28  ;;  %v5911_v0 = vmax.f32 %v4751_v44, %v4753_v15  ;;  %vm1057_vm14 = vcmp.ge.f32.partialorder %v1041_v55, 0.0 }
 0x1a8   :  { %v4993_v23 = vsel %vm1381_vm13, %v1365_v30, %v1397_v32  ;;  %v1073_v56 = vmul.f32 0.2, %v1041_v55  ;;  %vm1379_vm15 = vcmp.ge.f32.partialorder %v1363_v7, 0.0  ;;  %v1395_v59 = vmul.f32 0.2, %v1363_v7 }
 0x1a9   :  { %v4917_v21 = vpop.f32.mrb[28].mxu0  ;;  %v4991_v53 = vmax.f32 %v5911_v0, %v1091_v38  ;;  %vm1060_vm1 = vcmp.ge.f32.partialorder %v1044_v4, 0.0  ;;  %v1076_v26 = vmul.f32 0.2, %v1044_v4  ;;  %v1366_v44 = vadd.f32 %v4659_v43, %v1350_v25 }
 0x1aa   :  { %v4925_v60 = vpop.f32.mrb[29].mxu0  ;;  %v1089_v22 = vsel %vm1057_vm14, %v1041_v55, %v1073_v56  ;;  %v1026_v15 = vmul.f32 %v4654_v28, %v4879_v62  ;;  %v5912_v32 = vmax.f32 %v4757_v42, %v4759_v29  ;;  %v5011_v0 = vsel %vm1379_vm15, %v1363_v7, %v1395_v59 }
 0x1ab   :  { %v4923_v57 = vpop.f32.mrb[28].mxu1  ;;  %v4936_v8 = vpop.f32.mrb[30].mxu0  ;;  %v1092_v36 = vsel %vm1060_vm1, %v1044_v4, %v1076_v26  ;;  %v1348_v27 = vmul.f32 %v4654_v28, %v4902_v52  ;;  %v5913_v55 = vmax.f32 %v4766_v46, %v4778_v47  ;;  %vm1382_vm2 = vcmp.ge.f32.partialorder %v1366_v44, 0.0 }
 0x1ac   :  { %v4934_v9 = vpop.f32.mrb[29].mxu1  ;;  %v4945_v39 = vpop.f32.mrb[31].mxu0  ;;  %v5009_v38 = vmax.f32 %v5912_v32, %v1089_v22  ;;  %v1398_v62 = vmul.f32 0.2, %v1366_v44  ;;  %v1042_v56 = vadd.f32 %v4659_v43, %v1026_v15  ;;  %v1031_v22 = vmul.f32 %v4917_v21, %v4654_v28 }
 0x1ad   :  { %v4943_v14 = vpop.f32.mrb[30].mxu1  ;;  %v5020_v25 = vmax.f32 %v5913_v55, %v1092_v36  ;;  %v1364_v29 = vadd.f32 %v4659_v43, %v1348_v27  ;;  %v1353_v52 = vmul.f32 %v4923_v57, %v4654_v28  ;;  %v1029_v47 = vmul.f32 %v4654_v28, %v4925_v60 }
 0x1ae   :  { %v4955_v61 = vpop.f32.mrb[31].mxu1  ;;  %v5030_v7 = vsel %vm1382_vm2, %v1366_v44, %v1398_v62  ;;  %vm1058_vm3 = vcmp.ge.f32.partialorder %v1042_v56, 0.0  ;;  %v1074_v46 = vmul.f32 0.2, %v1042_v56  ;;  %v1047_v59 = vadd.f32 %v4659_v43, %v1031_v22 }
 0x1af   :  { %5914 = vst [vmem:[#allocation5_spill] sm:$0xff] %v5030_v7  ;;  %vm1380_vm4 = vcmp.ge.f32.partialorder %v1364_v29, 0.0  ;;  %v1396_v27 = vmul.f32 0.2, %v1364_v29  ;;  %v1369_v57 = vadd.f32 %v4659_v43, %v1353_v52  ;;  %v1045_v44 = vadd.f32 %v4659_v43, %v1029_v47 }
 0x1b0   :  { %v1090_v26 = vsel %vm1058_vm3, %v1042_v56, %v1074_v46  ;;  %v1351_v15 = vmul.f32 %v4654_v28, %v4934_v9  ;;  %v5915_v32 = vmax.f32 %v4780_v11, %v4784_v37  ;;  %vm1063_vm5 = vcmp.ge.f32.partialorder %v1047_v59, 0.0 }
 0x1b1   :  { %v5052_v62 = vsel %vm1380_vm4, %v1364_v29, %v1396_v27  ;;  %v1079_v22 = vmul.f32 0.2, %v1047_v59  ;;  %vm1385_vm6 = vcmp.ge.f32.partialorder %v1369_v57, 0.0  ;;  %v1401_v52 = vmul.f32 0.2, %v1369_v57 }
 0x1b2   :  { %v5050_v55 = vmax.f32 %v5915_v32, %v1090_v26  ;;  %vm1061_vm7 = vcmp.ge.f32.partialorder %v1045_v44, 0.0  ;;  %v1077_v46 = vmul.f32 0.2, %v1045_v44  ;;  %v1367_v11 = vadd.f32 %v4659_v43, %v1351_v15 }
 0x1b3   :  { %v4973_v19 = vpop.f32.mrb[32].mxu0  ;;  %v1095_v47 = vsel %vm1063_vm5, %v1047_v59, %v1079_v22  ;;  %v1032_v37 = vmul.f32 %v4936_v8, %v4654_v28  ;;  %v5916_v27 = vmax.f32 %v4786_v3, %v4791_v58  ;;  %v5070_v32 = vsel %vm1385_vm6, %v1369_v57, %v1401_v52 }
 0x1b4   :  { %v4978_v16 = vpop.f32.mrb[33].mxu0  ;;  %v1093_v42 = vsel %vm1061_vm7, %v1045_v44, %v1077_v46  ;;  %v1354_v7 = vmul.f32 %v4943_v14, %v4654_v28  ;;  %v5917_v59 = vmax.f32 %v4798_v5, %v4803_v49  ;;  %vm1383_vm8 = vcmp.ge.f32.partialorder %v1367_v11, 0.0 }
 0x1b5   :  { %v4984_v17 = vpop.f32.mrb[32].mxu1  ;;  %v4986_v40 = vpop.f32.mrb[34].mxu0  ;;  %v5068_v26 = vmax.f32 %v5916_v27, %v1095_v47  ;;  %v1399_v8 = vmul.f32 0.2, %v1367_v11  ;;  %v1048_v22 = vadd.f32 %v4659_v43, %v1032_v37  ;;  %v1030_v14 = vmul.f32 %v4654_v28, %v4945_v39 }
 0x1b6   :  { %v4995_v41 = vpop.f32.mrb[33].mxu1  ;;  %v4997_v24 = vpop.f32.mrb[35].mxu0  ;;  %v5079_v15 = vmax.f32 %v5917_v59, %v1093_v42  ;;  %v1370_v57 = vadd.f32 %v4659_v43, %v1354_v7  ;;  %v1352_v44 = vmul.f32 %v4654_v28, %v4955_v61  ;;  %v1663_v42 = vmul.f32 %v4973_v19, %v4654_v28 }
 0x1b7   :  { %v5004_v30 = vpop.f32.mrb[34].mxu1  ;;  %v5091_v5 = vsel %vm1383_vm8, %v1367_v11, %v1399_v8  ;;  %vm1064_vm9 = vcmp.ge.f32.partialorder %v1048_v22, 0.0  ;;  %v1080_v49 = vmul.f32 0.2, %v1048_v22  ;;  %v1046_v47 = vadd.f32 %v4659_v43, %v1030_v14 }
 0x1b8   :  { %v5015_v10 = vpop.f32.mrb[35].mxu1  ;;  %5918 = vst [vmem:[#allocation6_spill] sm:$0xff] %v5079_v15  ;;  %5919 = vst [vmem:[#allocation8_spill] sm:$0xff] %v5091_v5  ;;  %vm1386_vm10 = vcmp.ge.f32.partialorder %v1370_v57, 0.0  ;;  %v1402_v7 = vmul.f32 0.2, %v1370_v57  ;;  %v1368_v61 = vadd.f32 %v4659_v43, %v1352_v44  ;;  %v1679_v11 = vadd.f32 %v4659_v43, %v1663_v42 }
 0x1b9   :  { %v1096_v37 = vsel %vm1064_vm9, %v1048_v22, %v1080_v49  ;;  %v1985_v27 = vmul.f32 %v4984_v17, %v4654_v28  ;;  %v5920_v59 = vmax.f32 %v4805_v35, %v4816_v18  ;;  %vm1062_vm11 = vcmp.ge.f32.partialorder %v1046_v47, 0.0 }
 0x1ba   :  { %v5113_v46 = vsel %vm1386_vm10, %v1370_v57, %v1402_v7  ;;  %v1078_v14 = vmul.f32 0.2, %v1046_v47  ;;  %vm1384_vm12 = vcmp.ge.f32.partialorder %v1368_v61, 0.0  ;;  %v1400_v44 = vmul.f32 0.2, %v1368_v61 }
 0x1bb   :  { %v5111_v8 = vmax.f32 %v5920_v59, %v1096_v37  ;;  %vm1695_vm13 = vcmp.ge.f32.partialorder %v1679_v11, 0.0  ;;  %v1711_v49 = vmul.f32 0.2, %v1679_v11  ;;  %v2001_v35 = vadd.f32 %v4659_v43, %v1985_v27 }
 0x1bc   :  { %v1094_v42 = vsel %vm1062_vm11, %v1046_v47, %v1078_v14  ;;  %v1661_v18 = vmul.f32 %v4654_v28, %v4978_v16  ;;  %v5921_v7 = vmax.f32 %v4825_v54, %v4827_v33  ;;  %v5131_v59 = vsel %vm1384_vm12, %v1368_v61, %v1400_v44 }
 0x1bd   :  { %v1727_v5 = vsel %vm1695_vm13, %v1679_v11, %v1711_v49  ;;  %v1983_v15 = vmul.f32 %v4654_v28, %v4995_v41  ;;  %v5922_v47 = vmax.f32 %v4842_v1, %v4836_v48  ;;  %vm2017_vm14 = vcmp.ge.f32.partialorder %v2001_v35, 0.0 }
 0x1be   :  { %v5034_v36 = vpop.f32.mrb[36].mxu0  ;;  %v5129_v37 = vmax.f32 %v5921_v7, %v1094_v42  ;;  %v2033_v16 = vmul.f32 0.2, %v2001_v35  ;;  %v1677_v14 = vadd.f32 %v4659_v43, %v1661_v18  ;;  %v1664_v41 = vmul.f32 %v4986_v40, %v4654_v28 }
 0x1bf   :  { %v5039_v21 = vpop.f32.mrb[37].mxu0  ;;  %v5140_v27 = vmax.f32 %v5922_v47, %v1727_v5  ;;  %v1999_v61 = vadd.f32 %v4659_v43, %v1983_v15  ;;  %v1986_v11 = vmul.f32 %v5004_v30, %v4654_v28  ;;  %v1662_v5 = vmul.f32 %v4654_v28, %v4997_v24 }
 0x1c0   :  { %v5045_v60 = vpop.f32.mrb[38].mxu0  ;;  %v5152_v48 = vsel %vm2017_vm14, %v2001_v35, %v2033_v16  ;;  %vm1693_vm15 = vcmp.ge.f32.partialorder %v1677_v14, 0.0  ;;  %v1709_v1 = vmul.f32 0.2, %v1677_v14  ;;  %v1680_v42 = vadd.f32 %v4659_v43, %v1664_v41 }
 0x1c1   :  { %v5054_v4 = vpop.f32.mrb[36].mxu1  ;;  %v5056_v56 = vpop.f32.mrb[39].mxu0  ;;  %5923 = vst [vmem:[#allocation9_spill] sm:$0xff] %v5140_v27  ;;  %5924 = vst [vmem:[#allocation10_spill] sm:$0xff] %v5152_v48  ;;  %vm2015_vm1 = vcmp.ge.f32.partialorder %v1999_v61, 0.0  ;;  %v2002_v30 = vadd.f32 %v4659_v43, %v1986_v11  ;;  %v1678_v35 = vadd.f32 %v4659_v43, %v1662_v5  ;;  %v1984_v7 = vmul.f32 %v4654_v28, %v5015_v10 }
 0x1c2   :  { %v5063_v29 = vpop.f32.mrb[37].mxu1  ;;  %v2031_v15 = vmul.f32 0.2, %v1999_v61  ;;  %v1725_v18 = vsel %vm1693_vm15, %v1677_v14, %v1709_v1  ;;  %v5925_v47 = vmax.f32 %v4856_v31, %v4858_v45  ;;  %vm1696_vm2 = vcmp.ge.f32.partialorder %v1680_v42, 0.0 }
 0x1c3   :  { %v5074_v9 = vpop.f32.mrb[38].mxu1  ;;  %v1712_v41 = vmul.f32 0.2, %v1680_v42  ;;  %vm2018_vm3 = vcmp.ge.f32.partialorder %v2002_v30, 0.0  ;;  %v2034_v11 = vmul.f32 0.2, %v2002_v30  ;;  %v2000_v31 = vadd.f32 %v4659_v43, %v1984_v7 }
 0x1c4   :  { %v5082_v3 = vpop.f32.mrb[39].mxu1  ;;  %v5172_v16 = vmax.f32 %v5925_v47, %v1725_v18  ;;  %v5174_v49 = vsel %vm2015_vm1, %v1999_v61, %v2031_v15  ;;  %vm1694_vm4 = vcmp.ge.f32.partialorder %v1678_v35, 0.0  ;;  %v1710_v1 = vmul.f32 0.2, %v1678_v35 }
 0x1c5   :  { %v1728_v5 = vsel %vm1696_vm2, %v1680_v42, %v1712_v41  ;;  %v1667_v45 = vmul.f32 %v5034_v36, %v4654_v28  ;;  %v5926_v15 = vmax.f32 %v4875_v50, %v4877_v34  ;;  %v5192_v47 = vsel %vm2018_vm3, %v2002_v30, %v2034_v11 }
 0x1c6   :  { %5927 = vst [vmem:[#allocation11_spill] sm:$0xff] %v5192_v47  ;;  %v1726_v48 = vsel %vm1694_vm4, %v1678_v35, %v1710_v1  ;;  %v1989_v27 = vmul.f32 %v5054_v4, %v4654_v28  ;;  %v5928_v42 = vmax.f32 %v4889_v20, %v4891_v2  ;;  %vm2016_vm5 = vcmp.ge.f32.partialorder %v2000_v31, 0.0  ;;  %v5211_v28 = vld [vmem:[%s5673_s4] ss:$0 sm:$0xff] }
 0x1c7   :  { %v5190_v18 = vmax.f32 %v5926_v15, %v1728_v5  ;;  %v2032_v36 = vmul.f32 0.2, %v2000_v31  ;;  %v1683_v41 = vadd.f32 %v4659_v43, %v1667_v45  ;;  %v5217_v20 = vld [vmem:[%s5672_s3] ss:$0 sm:$0xff] }
 0x1c8   :  { %v5201_v7 = vmax.f32 %v5928_v42, %v1726_v48  ;;  %v2005_v4 = vadd.f32 %v5211_v28, %v1989_v27  ;;  %v1665_v43 = vmul.f32 %v5217_v20, %v5039_v21  ;;  %v1987_v2 = vmul.f32 %v5217_v20, %v5063_v29 }
 0x1c9   :  { %v5223_v48 = vsel %vm2016_vm5, %v2000_v31, %v2032_v36  ;;  %vm1699_vm6 = vcmp.ge.f32.partialorder %v1683_v41, 0.0  ;;  %v1715_v30 = vmul.f32 0.2, %v1683_v41  ;;  %v1668_v35 = vmul.f32 %v5217_v20, %v5045_v60 }
 0x1ca   :  { %v5095_v52 = vpop.f32.mrb[40].mxu0  ;;  %5929 = vst [vmem:[#allocation12_spill] sm:$0xff] %v5201_v7  ;;  %5930 = vst [vmem:[#allocation13_spill] sm:$0xff] %v5223_v48  ;;  %vm2021_vm7 = vcmp.ge.f32.partialorder %v2005_v4, 0.0  ;;  %v2037_v11 = vmul.f32 0.2, %v2005_v4  ;;  %v1681_v1 = vadd.f32 %v5211_v28, %v1665_v43  ;;  %v2003_v45 = vadd.f32 %v5211_v28, %v1987_v2 }
 0x1cb   :  { %v5100_v39 = vpop.f32.mrb[41].mxu0  ;;  %v1731_v21 = vsel %vm1699_vm6, %v1683_v41, %v1715_v30  ;;  %v1684_v29 = vadd.f32 %v5211_v28, %v1668_v35  ;;  %v1990_v31 = vmul.f32 %v5217_v20, %v5074_v9  ;;  %v5931_v42 = vmax.f32 %v4899_v51, %v4910_v13 }
 0x1cc   :  { %v5106_v19 = vpop.f32.mrb[42].mxu0  ;;  %v5115_v58 = vpop.f32.mrb[40].mxu1  ;;  %v5245_v43 = vsel %vm2021_vm7, %v2005_v4, %v2037_v11  ;;  %vm1697_vm8 = vcmp.ge.f32.partialorder %v1681_v1, 0.0  ;;  %v1713_v41 = vmul.f32 0.2, %v1681_v1  ;;  %vm2019_vm9 = vcmp.ge.f32.partialorder %v2003_v45, 0.0 }
 0x1cd   :  { %v5117_v22 = vpop.f32.mrb[43].mxu0  ;;  %v5124_v57 = vpop.f32.mrb[41].mxu1  ;;  %v5243_v36 = vmax.f32 %v5931_v42, %v1731_v21  ;;  %5932 = vst [vmem:[#allocation14_spill] sm:$0xff] %v5245_v43  ;;  %v2035_v35 = vmul.f32 0.2, %v2003_v45  ;;  %vm1700_vm10 = vcmp.ge.f32.partialorder %v1684_v29, 0.0  ;;  %v2006_v51 = vadd.f32 %v5211_v28, %v1990_v31 }
 0x1ce   :  { %v5135_v17 = vpop.f32.mrb[42].mxu1  ;;  %v1716_v9 = vmul.f32 0.2, %v1684_v29  ;;  %v1729_v34 = vsel %vm1697_vm8, %v1681_v1, %v1713_v41  ;;  %v1666_v13 = vmul.f32 %v5217_v20, %v5056_v56  ;;  %v5933_v21 = vld [vmem:[#allocation2_spill] sm:$0xff]  ;;  %v1988_v1 = vmul.f32 %v5217_v20, %v5082_v3 }
 0x1cf   :  { %v5143_v33 = vpop.f32.mrb[43].mxu1  ;;  %v5934_v42 = vmax.f32 %v4930_v6, %v5933_v21  ;;  %v5265_v7 = vsel %vm2019_vm9, %v2003_v45, %v2035_v35  ;;  %v5936_v56 = vmax.f32 %v4950_v63, %v4952_v12  ;;  %vm2022_vm11 = vcmp.ge.f32.partialorder %v2006_v51, 0.0 }
 0x1d0   :  { %5935 = vst [vmem:[#allocation15_spill] sm:$0xff] %v5265_v7  ;;  %v1732_v47 = vsel %vm1700_vm10, %v1684_v29, %v1716_v9  ;;  %v2038_v27 = vmul.f32 0.2, %v2006_v51  ;;  %v1682_v43 = vadd.f32 %v5211_v28, %v1666_v13  ;;  %v1671_v45 = vmul.f32 %v5217_v20, %v5095_v52 }
 0x1d1   :  { %v5263_v48 = vmax.f32 %v5934_v42, %v1729_v34  ;;  %v5274_v31 = vmax.f32 %v5936_v56, %v1732_v47  ;;  %v2004_v34 = vadd.f32 %v5211_v28, %v1988_v1  ;;  %v1993_v3 = vmul.f32 %v5217_v20, %v5115_v58  ;;  %v5939_v1 = vld [vmem:[#allocation3_spill] sm:$0xff]  ;;  %v5940_v56 = vld [vmem:[#allocation4_spill] sm:$0xff] }
 0x1d2   :  { %v5284_v29 = vsel %vm2022_vm11, %v2006_v51, %v2038_v27  ;;  %vm1698_vm12 = vcmp.ge.f32.partialorder %v1682_v43, 0.0  ;;  %v1714_v12 = vmul.f32 0.2, %v1682_v43  ;;  %v1669_v63 = vmul.f32 %v5217_v20, %v5100_v39 }
 0x1d3   :  { %v5156_v44 = vpop.f32.mrb[44].mxu0  ;;  %5937 = vst [vmem:[#allocation16_spill] sm:$0xff] %v5274_v31  ;;  %5938 = vst [vmem:[#allocation17_spill] sm:$0xff] %v5284_v29  ;;  %vm2020_vm13 = vcmp.ge.f32.partialorder %v2004_v34, 0.0  ;;  %v2036_v9 = vmul.f32 0.2, %v2004_v34  ;;  %v1687_v13 = vadd.f32 %v5211_v28, %v1671_v45  ;;  %v2009_v58 = vadd.f32 %v5211_v28, %v1993_v3 }
 0x1d4   :  { %v5161_v40 = vpop.f32.mrb[45].mxu0  ;;  %v1730_v21 = vsel %vm1698_vm12, %v1682_v43, %v1714_v12  ;;  %v1685_v27 = vadd.f32 %v5211_v28, %v1669_v63  ;;  %v1991_v51 = vmul.f32 %v5217_v20, %v5124_v57  ;;  %v5941_v35 = vmax.f32 %v5939_v1, %v5940_v56 }
 0x1d5   :  { %v5167_v24 = vpop.f32.mrb[46].mxu0  ;;  %v5308_v45 = vsel %vm2020_vm13, %v2004_v34, %v2036_v9  ;;  %vm1703_vm14 = vcmp.ge.f32.partialorder %v1687_v13, 0.0  ;;  %v1719_v43 = vmul.f32 0.2, %v1687_v13  ;;  %vm2025_vm15 = vcmp.ge.f32.partialorder %v2009_v58, 0.0 }
 0x1d6   :  { %v5178_v14 = vpop.f32.mrb[47].mxu0  ;;  %v5306_v6 = vmax.f32 %v5941_v35, %v1730_v21  ;;  %v2041_v63 = vmul.f32 0.2, %v2009_v58  ;;  %vm1701_vm1 = vcmp.ge.f32.partialorder %v1685_v27, 0.0  ;;  %v1717_v57 = vmul.f32 0.2, %v1685_v27 }
 0x1d7   :  { %v1735_v31 = vsel %vm1703_vm14, %v1687_v13, %v1719_v43  ;;  %v2007_v1 = vadd.f32 %v5211_v28, %v1991_v51  ;;  %v1672_v34 = vmul.f32 %v5217_v20, %v5106_v19  ;;  %v5943_v9 = vmax.f32 %v4991_v53, %v4993_v23 }
 0x1d8   :  { %v5176_v54 = vpop.f32.mrb[44].mxu1  ;;  %v5326_v56 = vsel %vm2025_vm15, %v2009_v58, %v2041_v63  ;;  %v1994_v7 = vmul.f32 %v5217_v20, %v5135_v17  ;;  %v5944_v13 = vmax.f32 %v5009_v38, %v5011_v0  ;;  %v1992_v17 = vmul.f32 %v5217_v20, %v5143_v33 }
 0x1d9   :  { %v5185_v61 = vpop.f32.mrb[45].mxu1  ;;  %v5324_v21 = vmax.f32 %v5943_v9, %v1735_v31  ;;  %vm2023_vm2 = vcmp.ge.f32.partialorder %v2007_v1, 0.0  ;;  %v2039_v19 = vmul.f32 0.2, %v2007_v1  ;;  %v1688_v43 = vadd.f32 %v5211_v28, %v1672_v34  ;;  %v5945_v34 = vld [vmem:[#allocation5_spill] sm:$0xff] }
 0x1da   :  { %v5196_v10 = vpop.f32.mrb[46].mxu1  ;;  %v2010_v23 = vadd.f32 %v5211_v28, %v1994_v7  ;;  %v1670_v31 = vmul.f32 %v5217_v20, %v5117_v22  ;;  %v1675_v0 = vmul.f32 %v5217_v20, %v5156_v44  ;;  %v2008_v22 = vadd.f32 %v5211_v28, %v1992_v17 }
 0x1db   :  { %v5204_v50 = vpop.f32.mrb[47].mxu1  ;;  %v5345_v58 = vsel %vm2023_vm2, %v2007_v1, %v2039_v19  ;;  %vm1704_vm3 = vcmp.ge.f32.partialorder %v1688_v43, 0.0  ;;  %v1720_v38 = vmul.f32 0.2, %v1688_v43  ;;  %v1997_v33 = vmul.f32 %v5217_v20, %v5176_v54 }
 0x1dc   :  { %vm2026_vm4 = vcmp.ge.f32.partialorder %v2010_v23, 0.0  ;;  %v1686_v7 = vadd.f32 %v5211_v28, %v1670_v31  ;;  %v5946_v44 = vmax.f32 %v5020_v25, %v5945_v34  ;;  %vm2024_vm6 = vcmp.ge.f32.partialorder %v2008_v22, 0.0 }
 0x1dd   :  { %v1736_v63 = vsel %vm1704_vm3, %v1688_v43, %v1720_v38  ;;  %v2040_v43 = vmul.f32 0.2, %v2008_v22  ;;  %v1673_v25 = vmul.f32 %v5217_v20, %v5161_v40  ;;  %v5949_v40 = vmax.f32 %v5068_v26, %v5070_v32 }
 0x1de   :  { %v5361_v9 = vmax.f32 %v5946_v44, %v1736_v63  ;;  %vm1702_vm5 = vcmp.ge.f32.partialorder %v1686_v7, 0.0  ;;  %v1718_v19 = vmul.f32 0.2, %v1686_v7 }
 0x1df   :  { %v5379_v34 = vsel %vm2024_vm6, %v2008_v22, %v2040_v43  ;;  %v1998_v43 = vmul.f32 %v5217_v20, %v5196_v10  ;;  %v5952_v22 = vld [vmem:[#allocation8_spill] sm:$0xff] }
 0x1e0   :  { %v5230_v5 = vpop.f32.mrb[48].mxu0  ;;  %v1734_v38 = vsel %vm1702_vm5, %v1686_v7, %v1718_v19  ;;  %5948 = vst [vmem:[#allocation7_spill] sm:$0xff] %v5379_v34 }
 0x1e1   :  { %v5238_v60 = vpop.f32.mrb[49].mxu0  ;;  %v2014_v10 = vadd.f32 %v5211_v28, %v1998_v43 }
 0x1e2   :  { %v5236_v15 = vpop.f32.mrb[48].mxu1  ;;  %v5249_v2 = vpop.f32.mrb[50].mxu0 }
 0x1e3   :  { %v5247_v30 = vpop.f32.mrb[49].mxu1  ;;  %v5258_v11 = vpop.f32.mrb[51].mxu0  ;;  %vm2030_vm12 = vcmp.ge.f32.partialorder %v2014_v10, 0.0 }
 0x1e4   :  { %v5256_v4 = vpop.f32.mrb[50].mxu1 }
 0x1e5   :  { %v5269_v41 = vpop.f32.mrb[51].mxu1 }
 0x1ea   :  { %v5288_v47 = vpop.f32.mrb[52].mxu0 }
 0x1eb   :  { %v5293_v52 = vpop.f32.mrb[53].mxu0 }
 0x1ec   :  { %v5299_v39 = vpop.f32.mrb[52].mxu1  ;;  %v5301_v42 = vpop.f32.mrb[54].mxu0 }
 0x1ed   :  { %v5310_v12 = vpop.f32.mrb[53].mxu1  ;;  %v5312_v3 = vpop.f32.mrb[55].mxu0 }
 0x1ee   :  { %5942 = vst [vmem:[#allocation18_spill] sm:$0xff] %v5312_v3  ;;  %v5319_v35 = vpop.f32.mrb[54].mxu1  ;;  %v1733_v3 = vsel %vm1701_vm1, %v1685_v27, %v1717_v57  ;;  %v1691_v57 = vadd.f32 %v5211_v28, %v1675_v0  ;;  %v2013_v0 = vadd.f32 %v5211_v28, %v1997_v33  ;;  %v1995_v27 = vmul.f32 %v5217_v20, %v5185_v61 }
 0x1ef   :  { %v5330_v29 = vpop.f32.mrb[55].mxu1  ;;  %v5335_v51 = vmax.f32 %v5944_v13, %v1733_v3  ;;  %v2042_v3 = vmul.f32 0.2, %v2010_v23 }
 0x1f0   :  { %vm1707_vm7 = vcmp.ge.f32.partialorder %v1691_v57, 0.0  ;;  %v1723_v17 = vmul.f32 0.2, %v1691_v57  ;;  %vm2029_vm8 = vcmp.ge.f32.partialorder %v2013_v0, 0.0  ;;  %v2045_v19 = vmul.f32 0.2, %v2013_v0 }
 0x1f1   :  { %v5363_v13 = vsel %vm2026_vm4, %v2010_v23, %v2042_v3  ;;  %v5947_v23 = vmax.f32 %v5050_v55, %v5052_v62  ;;  %v1689_v55 = vadd.f32 %v5211_v28, %v1673_v25  ;;  %v2011_v61 = vadd.f32 %v5211_v28, %v1995_v27 }
 0x1f2   :  { %v1739_v44 = vsel %vm1707_vm7, %v1691_v57, %v1723_v17  ;;  %v1676_v57 = vmul.f32 %v5217_v20, %v5167_v24  ;;  %v5404_v32 = vsel %vm2029_vm8, %v2013_v0, %v2045_v19  ;;  %v5951_v19 = vld [vmem:[#allocation6_spill] sm:$0xff] }
 0x1f3   :  { %v5377_v3 = vmax.f32 %v5947_v23, %v1734_v38  ;;  %v5390_v33 = vmax.f32 %v5949_v40, %v1739_v44  ;;  %5950 = vst [vmem:[#allocation19_spill] sm:$0xff] %v5404_v32  ;;  %vm1705_vm9 = vcmp.ge.f32.partialorder %v1689_v55, 0.0  ;;  %v1721_v17 = vmul.f32 0.2, %v1689_v55 }
 0x1f4   :  { %v1674_v38 = vmul.f32 %v5217_v20, %v5178_v14  ;;  %vm2027_vm10 = vcmp.ge.f32.partialorder %v2011_v61, 0.0  ;;  %v2043_v23 = vmul.f32 0.2, %v2011_v61  ;;  %v1692_v24 = vadd.f32 %v5211_v28, %v1676_v57  ;;  %v5961_v57 = vld [vmem:[#allocation9_spill] sm:$0xff] }
 0x1f5   :  { %v5356_v1 = vpop.f32.mrb[56].mxu0  ;;  %v1737_v44 = vsel %vm1705_vm9, %v1689_v55, %v1721_v17  ;;  %v1996_v40 = vmul.f32 %v5217_v20, %v5204_v50  ;;  %v5953_v14 = vmax.f32 %v5951_v19, %v5952_v22  ;;  %v2046_v32 = vmul.f32 0.2, %v2014_v10 }
 0x1f6   :  { %v5365_v31 = vpop.f32.mrb[57].mxu0  ;;  %v1690_v0 = vadd.f32 %v5211_v28, %v1674_v38  ;;  %v5422_v34 = vsel %vm2027_vm10, %v2011_v61, %v2043_v23  ;;  %vm1708_vm11 = vcmp.ge.f32.partialorder %v1692_v24, 0.0  ;;  %v1724_v27 = vmul.f32 0.2, %v1692_v24 }
 0x1f7   :  { %v5372_v63 = vpop.f32.mrb[58].mxu0  ;;  %v5420_v53 = vmax.f32 %v5953_v14, %v1737_v44  ;;  %5954 = vst [vmem:[#allocation20_spill] sm:$0xff] %v5422_v34  ;;  %v2012_v17 = vadd.f32 %v5211_v28, %v1996_v40  ;;  %v2307_v50 = vmul.f32 %v5217_v20, %v5230_v5  ;;  %v5955_v61 = vmax.f32 %v5111_v8, %v5113_v46 }
 0x1f8   :  { %v5383_v54 = vpop.f32.mrb[56].mxu1  ;;  %v5385_v7 = vpop.f32.mrb[59].mxu0  ;;  %vm1706_vm13 = vcmp.ge.f32.partialorder %v1690_v0, 0.0  ;;  %v1722_v55 = vmul.f32 0.2, %v1690_v0  ;;  %v1740_v43 = vsel %vm1708_vm11, %v1692_v24, %v1724_v27  ;;  %v5436_v23 = vsel %vm2030_vm12, %v2014_v10, %v2046_v32 }
 0x1f9   :  { %v5393_v62 = vpop.f32.mrb[57].mxu1  ;;  %v5434_v38 = vmax.f32 %v5955_v61, %v1740_v43  ;;  %5957 = vst [vmem:[#allocation22_spill] sm:$0xff] %v5436_v23  ;;  %v2629_v19 = vmul.f32 %v5217_v20, %v5236_v15  ;;  %v5958_v5 = vmax.f32 %v5129_v37, %v5131_v59  ;;  %vm2028_vm14 = vcmp.ge.f32.partialorder %v2012_v17, 0.0  ;;  %v5962_v23 = vld [vmem:[#allocation10_spill] sm:$0xff] }
 0x1fa   :  { %v5402_v26 = vpop.f32.mrb[58].mxu1  ;;  %v1738_v44 = vsel %vm1706_vm13, %v1690_v0, %v1722_v55  ;;  %v2044_v40 = vmul.f32 0.2, %v2012_v17  ;;  %v2323_v46 = vadd.f32 %v5211_v28, %v2307_v50  ;;  %v2305_v0 = vmul.f32 %v5217_v20, %v5238_v60 }
 0x1fb   :  { %v5408_v25 = vpop.f32.mrb[59].mxu1  ;;  %5956 = vst [vmem:[#allocation21_spill] sm:$0xff] %v5434_v38  ;;  %v5447_v24 = vmax.f32 %v5958_v5, %v1738_v44  ;;  %v2645_v10 = vadd.f32 %v5211_v28, %v2629_v19  ;;  %v2627_v37 = vmul.f32 %v5217_v20, %v5247_v30  ;;  %v2308_v61 = vmul.f32 %v5217_v20, %v5249_v2 }
 0x1fc   :  { %v5465_v43 = vsel %vm2028_vm14, %v2012_v17, %v2044_v40  ;;  %vm2339_vm15 = vcmp.ge.f32.partialorder %v2323_v46, 0.0  ;;  %v2355_v50 = vmul.f32 0.2, %v2323_v46  ;;  %v2321_v30 = vadd.f32 %v5211_v28, %v2305_v0 }
 0x1fd   :  { %5959 = vst [vmem:[#allocation23_spill] sm:$0xff] %v5465_v43  ;;  %vm2661_vm1 = vcmp.ge.f32.partialorder %v2645_v10, 0.0  ;;  %v2677_v60 = vmul.f32 0.2, %v2645_v10  ;;  %v2643_v15 = vadd.f32 %v5211_v28, %v2627_v37  ;;  %v2324_v17 = vadd.f32 %v5211_v28, %v2308_v61 }
 0x1fe   :  { %v2371_v5 = vsel %vm2339_vm15, %v2323_v46, %v2355_v50  ;;  %v2630_v40 = vmul.f32 %v5217_v20, %v5256_v4  ;;  %v5963_v2 = vmax.f32 %v5961_v57, %v5962_v23  ;;  %vm2337_vm2 = vcmp.ge.f32.partialorder %v2321_v30, 0.0 }
 0x1ff   :  { %v2353_v34 = vmul.f32 0.2, %v2321_v30  ;;  %vm2659_vm3 = vcmp.ge.f32.partialorder %v2643_v15, 0.0  ;;  %v2675_v19 = vmul.f32 0.2, %v2643_v15  ;;  %vm2340_vm4 = vcmp.ge.f32.partialorder %v2324_v17, 0.0 }
 0x200   :  { %v2387_v38 = vmax.f32 %v5963_v2, %v2371_v5  ;;  %v2356_v43 = vmul.f32 0.2, %v2324_v17  ;;  %v2646_v37 = vadd.f32 %v5211_v28, %v2630_v40  ;;  %v2306_v50 = vmul.f32 %v5217_v20, %v5258_v11 }
 0x201   :  { %v5429_v22 = vpop.f32.mrb[60].mxu0  ;;  %v2369_v46 = vsel %vm2337_vm2, %v2321_v30, %v2353_v34  ;;  %v5964_v4 = vmax.f32 %v5172_v16, %v5174_v49  ;;  %v2691_v57 = vsel %vm2659_vm3, %v2643_v15, %v2675_v19  ;;  %v5965_v34 = vld [vmem:[#allocation11_spill] sm:$0xff]  ;;  %v2311_v15 = vmul.f32 %v5217_v20, %v5288_v47 }
 0x202   :  { %v5440_v14 = vpop.f32.mrb[60].mxu1  ;;  %v5442_v27 = vpop.f32.mrb[61].mxu0  ;;  %v2372_v23 = vsel %vm2340_vm4, %v2324_v17, %v2356_v43  ;;  %vm2662_vm5 = vcmp.ge.f32.partialorder %v2646_v37, 0.0  ;;  %v2678_v11 = vmul.f32 0.2, %v2646_v37  ;;  %v2631_v2 = vmul.f32 %v5217_v20, %v5310_v12 }
 0x203   :  { %v5450_v8 = vpop.f32.mrb[61].mxu1  ;;  %v5452_v32 = vpop.f32.mrb[62].mxu0  ;;  %v2385_v61 = vmax.f32 %v5964_v4, %v2369_v46  ;;  %v2327_v17 = vadd.f32 %v5211_v28, %v2311_v15  ;;  %v5972_v15 = vld [vmem:[#allocation15_spill] sm:$0xff] }
 0x204   :  { %v5461_v59 = vpop.f32.mrb[62].mxu1  ;;  %v5463_v55 = vpop.f32.mrb[63].mxu0  ;;  %v2694_v43 = vsel %vm2662_vm5, %v2646_v37, %v2678_v11  ;;  %v2647_v12 = vadd.f32 %v5211_v28, %v2631_v2 }
 0x205   :  { %v5469_v44 = vpop.f32.mrb[63].mxu1  ;;  %v2707_v49 = vmax.f32 %v2385_v61, %v2691_v57  ;;  %vm2343_vm8 = vcmp.ge.f32.partialorder %v2327_v17, 0.0  ;;  %v2359_v4 = vmul.f32 0.2, %v2327_v17 }
 0x206   :  { %5960 = vst [vmem:[#allocation24_spill] sm:$0xff] %v5469_v44  ;;  %v2693_v44 = vsel %vm2661_vm1, %v2645_v10, %v2677_v60  ;;  %v2628_v10 = vmul.f32 %v5217_v20, %v5269_v41  ;;  %v2322_v60 = vadd.f32 %v5211_v28, %v2306_v50  ;;  %v2633_v41 = vmul.f32 %v5217_v20, %v5299_v39 }
 0x207   :  { %v2709_v0 = vmax.f32 %v2387_v38, %v2693_v44  ;;  %v5966_v38 = vmax.f32 %v5190_v18, %v5965_v34  ;;  %v2309_v18 = vmul.f32 %v5217_v20, %v5293_v52  ;;  %2723 = vst.msk [vmem:[%s5674_s5] sm:$0xff] %vm253_vm0, %v2707_v49  ;;  %v5967_v52 = vld [vmem:[#allocation12_spill] sm:$0xff]  ;;  %v2312_v34 = vmul.f32 %v5217_v20, %v5301_v42 }
 0x208   :  { %v2644_v16 = vadd.f32 %v5211_v28, %v2628_v10  ;;  %vm2338_vm6 = vcmp.ge.f32.partialorder %v2322_v60, 0.0  ;;  %v2354_v19 = vmul.f32 0.2, %v2322_v60  ;;  %v2649_v40 = vadd.f32 %v5211_v28, %v2633_v41 }
 0x209   :  { %2725 = vst.msk [vmem:[%s5674_s5 + $0x10] sm:$0xff] %vm253_vm0, %v2709_v0  ;;  %v2388_v44 = vmax.f32 %v5966_v38, %v2372_v23  ;;  %v2325_v39 = vadd.f32 %v5211_v28, %v2309_v18  ;;  %v5968_v0 = vld [vmem:[#allocation13_spill] sm:$0xff]  ;;  %v2375_v10 = vsel %vm2343_vm8, %v2327_v17, %v2359_v4  ;;  %v5970_v38 = vld [vmem:[#allocation14_spill] sm:$0xff]  ;;  %v5973_v41 = vmax.f32 %v5263_v48, %v5972_v15 }
 0x20a   :  { %vm2660_vm7 = vcmp.ge.f32.partialorder %v2644_v16, 0.0  ;;  %v2676_v5 = vmul.f32 0.2, %v2644_v16  ;;  %v2370_v47 = vsel %vm2338_vm6, %v2322_v60, %v2354_v19  ;;  %v5969_v46 = vmax.f32 %v5967_v52, %v5968_v0 }
 0x20b   :  { %v2710_v30 = vmax.f32 %v2388_v44, %v2694_v43  ;;  %vm2665_vm9 = vcmp.ge.f32.partialorder %v2649_v40, 0.0  ;;  %v2681_v61 = vmul.f32 0.2, %v2649_v40  ;;  %vm2341_vm10 = vcmp.ge.f32.partialorder %v2325_v39, 0.0 }
 0x20c   :  { %v2386_v37 = vmax.f32 %v5969_v46, %v2370_v47  ;;  %v2692_v50 = vsel %vm2660_vm7, %v2644_v16, %v2676_v5  ;;  %v2357_v57 = vmul.f32 0.2, %v2325_v39  ;;  %v5971_v44 = vmax.f32 %v5243_v36, %v5970_v38 }
 0x20d   :  { %2726 = vst.msk [vmem:[%s5674_s5 + $0x18] sm:$0xff] %vm253_vm0, %v2710_v30  ;;  %v2697_v60 = vsel %vm2665_vm9, %v2649_v40, %v2681_v61  ;;  %v2634_v16 = vmul.f32 %v5217_v20, %v5319_v35  ;;  %vm2663_vm11 = vcmp.ge.f32.partialorder %v2647_v12, 0.0  ;;  %v2679_v42 = vmul.f32 0.2, %v2647_v12  ;;  %v5974_v30 = vld [vmem:[#allocation18_spill] sm:$0xff] }
 0x20e   :  { %v2708_v23 = vmax.f32 %v2386_v37, %v2692_v50  ;;  %v2391_v11 = vmax.f32 %v5971_v44, %v2375_v10  ;;  %v2373_v49 = vsel %vm2341_vm10, %v2325_v39, %v2357_v57  ;;  %v2328_v19 = vadd.f32 %v5211_v28, %v2312_v34  ;;  %v5976_v37 = vld [vmem:[#allocation17_spill] sm:$0xff] }
 0x20f   :  { %v2389_v43 = vmax.f32 %v5973_v41, %v2373_v49  ;;  %v2650_v18 = vadd.f32 %v5211_v28, %v2634_v16  ;;  %v2310_v5 = vmul.f32 %v5217_v20, %v5974_v30  ;;  %v2632_v35 = vmul.f32 %v5217_v20, %v5330_v29 }
 0x210   :  { %2724 = vst.msk [vmem:[%s5674_s5 + $0x8] sm:$0xff] %vm253_vm0, %v2708_v23  ;;  %v2713_v36 = vmax.f32 %v2391_v11, %v2697_v60  ;;  %v2695_v17 = vsel %vm2663_vm11, %v2647_v12, %v2679_v42  ;;  %vm2344_vm12 = vcmp.ge.f32.partialorder %v2328_v19, 0.0  ;;  %v2360_v47 = vmul.f32 0.2, %v2328_v19 }
 0x211   :  { %v2315_v48 = vmul.f32 %v5217_v20, %v5356_v1  ;;  %v2711_v40 = vmax.f32 %v2389_v43, %v2695_v17  ;;  %vm2666_vm13 = vcmp.ge.f32.partialorder %v2650_v18, 0.0  ;;  %v2682_v39 = vmul.f32 0.2, %v2650_v18  ;;  %v5975_v1 = vld [vmem:[#allocation16_spill] sm:$0xff] }
 0x212   :  { %2729 = vst.msk [vmem:[%s5674_s5 + $0x30] sm:$0xff] %vm253_vm0, %v2713_v36  ;;  %v2326_v2 = vadd.f32 %v5211_v28, %v2310_v5  ;;  %v2376_v52 = vsel %vm2344_vm12, %v2328_v19, %v2360_v47  ;;  %v2648_v0 = vadd.f32 %v5211_v28, %v2632_v35  ;;  %v2637_v46 = vmul.f32 %v5217_v20, %v5383_v54 }
 0x213   :  { %v2331_v29 = vadd.f32 %v5211_v28, %v2315_v48  ;;  %2727 = vst.msk [vmem:[%s5674_s5 + $0x20] sm:$0xff] %vm253_vm0, %v2711_v40  ;;  %v5977_v50 = vmax.f32 %v5975_v1, %v5976_v37  ;;  %v2698_v61 = vsel %vm2666_vm13, %v2650_v18, %v2682_v39  ;;  %v2313_v38 = vmul.f32 %v5217_v20, %v5365_v31  ;;  %v5982_v37 = vld [vmem:[#allocation7_spill] sm:$0xff] }
 0x214   :  { %vm2342_vm14 = vcmp.ge.f32.partialorder %v2326_v2, 0.0  ;;  %v2358_v57 = vmul.f32 0.2, %v2326_v2  ;;  %vm2664_vm15 = vcmp.ge.f32.partialorder %v2648_v0, 0.0  ;;  %v2680_v23 = vmul.f32 0.2, %v2648_v0 }
 0x215   :  { %v2392_v4 = vmax.f32 %v5977_v50, %v2376_v52  ;;  %vm2347_vm1 = vcmp.ge.f32.partialorder %v2331_v29, 0.0  ;;  %v2363_v10 = vmul.f32 0.2, %v2331_v29  ;;  %v2653_v54 = vadd.f32 %v5211_v28, %v2637_v46 }
 0x216   :  { %v2374_v34 = vsel %vm2342_vm14, %v2326_v2, %v2358_v57  ;;  %v5978_v44 = vmax.f32 %v5306_v6, %v5308_v45  ;;  %v2696_v60 = vsel %vm2664_vm15, %v2648_v0, %v2680_v23  ;;  %v2635_v16 = vmul.f32 %v5217_v20, %v5393_v62 }
 0x217   :  { %v2714_v12 = vmax.f32 %v2392_v4, %v2698_v61  ;;  %v2379_v49 = vsel %vm2347_vm1, %v2331_v29, %v2363_v10  ;;  %v5979_v15 = vmax.f32 %v5324_v21, %v5326_v56  ;;  %vm2669_vm2 = vcmp.ge.f32.partialorder %v2653_v54, 0.0 }
 0x218   :  { %v2390_v11 = vmax.f32 %v5978_v44, %v2374_v34  ;;  %v2685_v31 = vmul.f32 0.2, %v2653_v54  ;;  %v2329_v43 = vadd.f32 %v5211_v28, %v2313_v38  ;;  %v2651_v45 = vadd.f32 %v5211_v28, %v2635_v16 }
 0x219   :  { %2730 = vst.msk [vmem:[%s5674_s5 + $0x38] sm:$0xff] %vm253_vm0, %v2714_v12  ;;  %v2395_v41 = vmax.f32 %v5979_v15, %v2379_v49  ;;  %v2316_v42 = vmul.f32 %v5217_v20, %v5372_v63  ;;  %v2638_v62 = vmul.f32 %v5217_v20, %v5402_v26  ;;  %v2314_v21 = vmul.f32 %v5217_v20, %v5385_v7 }
 0x21a   :  { %v2712_v6 = vmax.f32 %v2390_v11, %v2696_v60  ;;  %v2701_v19 = vsel %vm2669_vm2, %v2653_v54, %v2685_v31  ;;  %vm2345_vm3 = vcmp.ge.f32.partialorder %v2329_v43, 0.0  ;;  %v2361_v36 = vmul.f32 0.2, %v2329_v43 }
 0x21b   :  { %v2717_v56 = vmax.f32 %v2395_v41, %v2701_v19  ;;  %vm2667_vm4 = vcmp.ge.f32.partialorder %v2651_v45, 0.0  ;;  %v2683_v18 = vmul.f32 0.2, %v2651_v45  ;;  %v2332_v30 = vadd.f32 %v5211_v28, %v2316_v42 }
 0x21c   :  { %2728 = vst.msk [vmem:[%s5674_s5 + $0x28] sm:$0xff] %vm253_vm0, %v2712_v6  ;;  %v2377_v63 = vsel %vm2345_vm3, %v2329_v43, %v2361_v36  ;;  %v2654_v5 = vadd.f32 %v5211_v28, %v2638_v62  ;;  %v2330_v26 = vadd.f32 %v5211_v28, %v2314_v21  ;;  %v2636_v35 = vmul.f32 %v5217_v20, %v5408_v25  ;;  %v5988_v36 = vld [vmem:[#allocation24_spill] sm:$0xff] }
 0x21d   :  { %2733 = vst.msk [vmem:[%s5674_s5 + $0x50] sm:$0xff] %vm253_vm0, %v2717_v56  ;;  %v5980_v7 = vmax.f32 %v5335_v51, %v5345_v58  ;;  %v2699_v47 = vsel %vm2667_vm4, %v2651_v45, %v2683_v18  ;;  %vm2348_vm5 = vcmp.ge.f32.partialorder %v2332_v30, 0.0  ;;  %v2364_v48 = vmul.f32 0.2, %v2332_v30  ;;  %v5986_v45 = vld [vmem:[#allocation20_spill] sm:$0xff]  ;;  %v5989_v56 = vld [vmem:[#allocation21_spill] sm:$0xff] }
 0x21e   :  { %vm2670_vm6 = vcmp.ge.f32.partialorder %v2654_v5, 0.0  ;;  %v2686_v40 = vmul.f32 0.2, %v2654_v5  ;;  %vm2346_vm7 = vcmp.ge.f32.partialorder %v2330_v26, 0.0  ;;  %v2362_v39 = vmul.f32 0.2, %v2330_v26 }
 0x21f   :  { %v2393_v17 = vmax.f32 %v5980_v7, %v2377_v63  ;;  %v2380_v52 = vsel %vm2348_vm5, %v2332_v30, %v2364_v48  ;;  %v2652_v25 = vadd.f32 %v5211_v28, %v2636_v35  ;;  %v2319_v0 = vmul.f32 %v5217_v20, %v5429_v22  ;;  %v5990_v18 = vld [vmem:[#allocation22_spill] sm:$0xff]  ;;  %v5992_v48 = vld [vmem:[#allocation23_spill] sm:$0xff] }
 0x220   :  { %v5981_v29 = vmax.f32 %v5361_v9, %v5363_v13  ;;  %v2702_v51 = vsel %vm2670_vm6, %v2654_v5, %v2686_v40  ;;  %v2378_v58 = vsel %vm2346_vm7, %v2330_v26, %v2362_v39  ;;  %v2641_v1 = vmul.f32 %v5217_v20, %v5440_v14 }
 0x221   :  { %v2715_v2 = vmax.f32 %v2393_v17, %v2699_v47  ;;  %v5983_v50 = vmax.f32 %v5377_v3, %v5982_v37  ;;  %vm2668_vm8 = vcmp.ge.f32.partialorder %v2652_v25, 0.0  ;;  %v2684_v22 = vmul.f32 0.2, %v2652_v25 }
 0x222   :  { %v2396_v46 = vmax.f32 %v5981_v29, %v2380_v52  ;;  %v2335_v61 = vadd.f32 %v5211_v28, %v2319_v0  ;;  %v2657_v13 = vadd.f32 %v5211_v28, %v2641_v1  ;;  %v2317_v57 = vmul.f32 %v5217_v20, %v5442_v27 }
 0x223   :  { %2731 = vst.msk [vmem:[%s5674_s5 + $0x40] sm:$0xff] %vm253_vm0, %v2715_v2  ;;  %v2394_v4 = vmax.f32 %v5983_v50, %v2378_v58  ;;  %v2639_v14 = vmul.f32 %v5217_v20, %v5450_v8  ;;  %v2700_v23 = vsel %vm2668_vm8, %v2652_v25, %v2684_v22  ;;  %v2320_v3 = vmul.f32 %v5217_v20, %v5452_v32  ;;  %v5984_v32 = vld [vmem:[#allocation19_spill] sm:$0xff] }
 0x224   :  { %v2718_v9 = vmax.f32 %v2396_v46, %v2702_v51  ;;  %vm2351_vm9 = vcmp.ge.f32.partialorder %v2335_v61, 0.0  ;;  %v2367_v10 = vmul.f32 0.2, %v2335_v61  ;;  %vm2673_vm10 = vcmp.ge.f32.partialorder %v2657_v13, 0.0 }
 0x225   :  { %v2716_v12 = vmax.f32 %v2394_v4, %v2700_v23  ;;  %v2689_v34 = vmul.f32 0.2, %v2657_v13  ;;  %v2333_v54 = vadd.f32 %v5211_v28, %v2317_v57  ;;  %v2655_v38 = vadd.f32 %v5211_v28, %v2639_v14 }
 0x226   :  { %2734 = vst.msk [vmem:[%s5674_s5 + $0x58] sm:$0xff] %vm253_vm0, %v2718_v9  ;;  %v2383_v27 = vsel %vm2351_vm9, %v2335_v61, %v2367_v10  ;;  %v2336_v8 = vadd.f32 %v5211_v28, %v2320_v3  ;;  %v2642_v44 = vmul.f32 %v5217_v20, %v5461_v59  ;;  %v5985_v11 = vmax.f32 %v5390_v33, %v5984_v32 }
 0x227   :  { %2732 = vst.msk [vmem:[%s5674_s5 + $0x48] sm:$0xff] %vm253_vm0, %v2716_v12  ;;  %v2705_v49 = vsel %vm2673_vm10, %v2657_v13, %v2689_v34  ;;  %vm2349_vm11 = vcmp.ge.f32.partialorder %v2333_v54, 0.0  ;;  %v2365_v16 = vmul.f32 0.2, %v2333_v54  ;;  %vm2671_vm12 = vcmp.ge.f32.partialorder %v2655_v38, 0.0 }
 0x228   :  { %v2399_v60 = vmax.f32 %v5985_v11, %v2383_v27  ;;  %v2687_v15 = vmul.f32 0.2, %v2655_v38  ;;  %vm2352_vm13 = vcmp.ge.f32.partialorder %v2336_v8, 0.0  ;;  %v2368_v41 = vmul.f32 0.2, %v2336_v8 }
 0x229   :  { %v2381_v43 = vsel %vm2349_vm11, %v2333_v54, %v2365_v16  ;;  %v2658_v59 = vadd.f32 %v5211_v28, %v2642_v44  ;;  %v2318_v6 = vmul.f32 %v5217_v20, %v5463_v55  ;;  %v5987_v42 = vmax.f32 %v5420_v53, %v5986_v45 }
 0x22a   :  { %v2721_v31 = vmax.f32 %v2399_v60, %v2705_v49  ;;  %v2703_v33 = vsel %vm2671_vm12, %v2655_v38, %v2687_v15  ;;  %v2384_v19 = vsel %vm2352_vm13, %v2336_v8, %v2368_v41  ;;  %v2640_v21 = vmul.f32 %v5217_v20, %v5988_v36 }
 0x22b   :  { %v2397_v62 = vmax.f32 %v5987_v42, %v2381_v43  ;;  %v5991_v30 = vmax.f32 %v5989_v56, %v5990_v18  ;;  %vm2674_vm14 = vcmp.ge.f32.partialorder %v2658_v59, 0.0  ;;  %v2690_v55 = vmul.f32 0.2, %v2658_v59 }
 0x22c   :  { %2737 = vst.msk [vmem:[%s5674_s5 + $0x70] sm:$0xff] %vm253_vm0, %v2721_v31  ;;  %v2334_v5 = vadd.f32 %v5211_v28, %v2318_v6  ;;  %v2656_v26 = vadd.f32 %v5211_v28, %v2640_v21  ;;  %v5993_v28 = vmax.f32 %v5447_v24, %v5992_v48 }
 0x22d   :  { %v2400_v63 = vmax.f32 %v5991_v30, %v2384_v19  ;;  %v2719_v53 = vmax.f32 %v2397_v62, %v2703_v33  ;;  %v2706_v35 = vsel %vm2674_vm14, %v2658_v59, %v2690_v55 }
 0x22e   :  { %vm2350_vm15 = vcmp.ge.f32.partialorder %v2334_v5, 0.0  ;;  %v2366_v7 = vmul.f32 0.2, %v2334_v5  ;;  %vm2672_vm1 = vcmp.ge.f32.partialorder %v2656_v26, 0.0  ;;  %v2688_v17 = vmul.f32 0.2, %v2656_v26 }
 0x22f   :  { %2735 = vst.msk [vmem:[%s5674_s5 + $0x60] sm:$0xff] %vm253_vm0, %v2719_v53  ;;  %v2722_v20 = vmax.f32 %v2400_v63, %v2706_v35 }
 0x230   :  { %v2382_v47 = vsel %vm2350_vm15, %v2334_v5, %v2366_v7  ;;  %v2704_v39 = vsel %vm2672_vm1, %v2656_v26, %v2688_v17 }
 0x231   :  { %2738 = vst.msk [vmem:[%s5674_s5 + $0x78] sm:$0xff] %vm253_vm0, %v2722_v20  ;;  %v2398_v40 = vmax.f32 %v5993_v28, %v2382_v47 }
 0x233   :  { %v2720_v2 = vmax.f32 %v2398_v40, %v2704_v39 }
 0x235   :  { %2736 = vst.msk [vmem:[%s5674_s5 + $0x68] sm:$0xff] %vm253_vm0, %v2720_v2 }

// kernel: _lambda_.21
= control target key start
LH: loop header
LB: loop body
LE: loop exit
PB: predicated region body
PF: predicated region fallthrough
CT: control target
= control target key end

     0   :  { %s1526_s21 = smov 64   ;;  %vm994_vm10 = vcmask 523264   ;;  %s2414_s1 = inlined_call_operand.vmem [shape: bf16[128,128], index: 1, kind: input, shape index: {}]   ;;  %s2415_s0 = inlined_call_operand.vmem [shape: bf16[8,128,64], index: 0, kind: input, shape index: {}]   ;;  %s2416_s2 = inlined_call_operand.vmem [shape: f32[128,64], index: 2, kind: output, shape index: {}]  }
   0x1   :  { %v1416_v0 = vld [vmem:[%s2414_s1 + $0x10] sm:$0xff]   ;;  %v1128_v1 = vld [vmem:[%s2414_s1] sm:$0xff]   ;;  %v1417_v2 = vld [vmem:[%s2414_s1 + $0x18] sm:$0xff]  }
   0x2   :  { %v1137_v3 = vunpack.c.l.bf16 %v1416_v0  ;;  %v1138_v4 = vunpack.c.h.bf16 %v1416_v0  ;;  %v1129_v5 = vunpack.c.l.bf16 %v1128_v1  ;;  %v1130_v6 = vunpack.c.h.bf16 %v1128_v1  ;;  %v1415_v7 = vld [vmem:[%s2414_s1 + $0x8] sm:$0xff]   ;;  %v1418_v13 = vld [vmem:[%s2414_s1 + $0x20] sm:$0xff]   ;;  %v1421_v22 = vld [vmem:[%s2414_s1 + $0x38] sm:$0xff]  }
   0x3   :  { %v1419_v8 = vld [vmem:[%s2414_s1 + $0x28] sm:$0xff]   ;;  %v1141_v9 = vunpack.c.l.bf16 %v1417_v2  ;;  %v1142_v10 = vunpack.c.h.bf16 %v1417_v2  ;;  %v1133_v11 = vunpack.c.l.bf16 %v1415_v7  ;;  %v1134_v12 = vunpack.c.h.bf16 %v1415_v7  ;;  %v1420_v23 = vld [vmem:[%s2414_s1 + $0x30] sm:$0xff]   ;;  %v1617_v48 = vld [vmem:[%s2415_s0] sm:$0xff]  }
   0x4   :  { %v1496_v14 = vpack.i.bf16 %v1138_v4, %v1137_v3  ;;  %v1486_v15 = vpack.i.bf16 %v1130_v6, %v1129_v5  ;;  %v1149_v16 = vunpack.c.l.bf16 %v1419_v8  ;;  %v1150_v17 = vunpack.c.h.bf16 %v1419_v8  ;;  %v1569_v32 = vld [vmem:[%s2415_s0 + $0x10] sm:$0xff]   ;;  %v1622_v49 = vld [vmem:[%s2415_s0 + $0x40] sm:$0xff]   ;;  %v1673_v8 = vld [vmem:[%s2415_s0 + $0x18] sm:$0xff]  }
   0x5   :  { %v1501_v18 = vpack.i.bf16 %v1142_v10, %v1141_v9  ;;  %v1491_v19 = vpack.i.bf16 %v1134_v12, %v1133_v11  ;;  %v1145_v20 = vunpack.c.l.bf16 %v1418_v13  ;;  %v1146_v21 = vunpack.c.h.bf16 %v1418_v13  ;;  %v1574_v33 = vld [vmem:[%s2415_s0 + $0x50] sm:$0xff]   ;;  %v1631_v54 = vld [vmem:[%s2415_s0 + $0x80] sm:$0xff]   ;;  %v1678_v9 = vld [vmem:[%s2415_s0 + $0x58] sm:$0xff]  }
   0x6   :  { %1497 = vrot.lane.b32.xlu1 %v1496_v14, %s1526_s21  ;;  %1487 = vrot.lane.b32.xlu0 %v1486_v15, %s1526_s21  ;;  %v1511_v24 = vpack.i.bf16 %v1150_v17, %v1149_v16  ;;  %v1157_v25 = vunpack.c.l.bf16 %v1421_v22  ;;  %v1158_v27 = vunpack.c.h.bf16 %v1421_v22  ;;  %v1153_v28 = vunpack.c.l.bf16 %v1420_v23  ;;  %v1579_v34 = vld [vmem:[%s2415_s0 + $0x90] sm:$0xff]   ;;  %v1636_v55 = vld [vmem:[%s2415_s0 + $0xc0] sm:$0xff]  }
   0x7   :  { %v1506_v26 = vpack.i.bf16 %v1146_v21, %v1145_v20  ;;  %v1154_v29 = vunpack.c.h.bf16 %v1420_v23  ;;  %v1584_v35 = vld [vmem:[%s2415_s0 + $0xd0] sm:$0xff]   ;;  %v1645_v60 = vld [vmem:[%s2415_s0 + $0x100] sm:$0xff]   ;;  %v1687_v14 = vld [vmem:[%s2415_s0 + $0x98] sm:$0xff]   ;;  %v2468_v39 = vunpack.c.l.bf16 %v1569_v32  ;;  %v2470_v41 = vunpack.c.l.bf16 %v1574_v33 }
   0x8   :  { %v1521_v30 = vpack.i.bf16 %v1158_v27, %v1157_v25  ;;  %v1589_v36 = vld [vmem:[%s2415_s0 + $0x110] sm:$0xff]   ;;  %v1650_v61 = vld [vmem:[%s2415_s0 + $0x140] sm:$0xff]   ;;  %v1692_v15 = vld [vmem:[%s2415_s0 + $0xd8] sm:$0xff]   ;;  %v2472_v47 = vunpack.c.l.bf16 %v1579_v34 }
   0x9   :  { %v1516_v31 = vpack.i.bf16 %v1154_v29, %v1153_v28  ;;  %v1594_v37 = vld [vmem:[%s2415_s0 + $0x150] sm:$0xff]   ;;  %v1659_v2 = vld [vmem:[%s2415_s0 + $0x180] sm:$0xff]   ;;  %v1701_v20 = vld [vmem:[%s2415_s0 + $0x118] sm:$0xff]  }
   0xa   :  { %1502 = vrot.lane.b32.xlu1 %v1501_v18, %s1526_s21  ;;  %1492 = vrot.lane.b32.xlu0 %v1491_v19, %s1526_s21  ;;  %v1603_v42 = vld [vmem:[%s2415_s0 + $0x190] sm:$0xff]   ;;  %v1664_v3 = vld [vmem:[%s2415_s0 + $0x1c0] sm:$0xff]  }
   0xb   :  { %v1608_v43 = vld [vmem:[%s2415_s0 + $0x1d0] sm:$0xff]   ;;  %v1706_v21 = vld [vmem:[%s2415_s0 + $0x158] sm:$0xff]   ;;  %v1729_v25 = vld [vmem:[%s2415_s0 + $0x8] sm:$0xff]  }
   0xc   :  { %v1720_v27 = vld [vmem:[%s2415_s0 + $0x1d8] sm:$0xff]   ;;  %v1748_v22 = vld [vmem:[%s2415_s0 + $0xc8] sm:$0xff]   ;;  %v1841_v13 = vld [vmem:[%s2415_s0 + $0x20] sm:$0xff]  }
   0xd   :  { %v1762_v18 = vld [vmem:[%s2415_s0 + $0x148] sm:$0xff]   ;;  %2454 = vst [vmem:[#allocation5_spill] sm:$0xff] %v1841_v13  ;;  %v1846_v0 = vld [vmem:[%s2415_s0 + $0x60] sm:$0xff]   ;;  %v1897_v1 = vld [vmem:[%s2415_s0 + $0x38] sm:$0xff]  }
   0xe   :  { %1512 = vrot.lane.b32.xlu1 %v1511_v24, %s1526_s21  ;;  %1507 = vrot.lane.b32.xlu0 %v1506_v26, %s1526_s21  ;;  %v1715_v26 = vld [vmem:[%s2415_s0 + $0x198] sm:$0xff]   ;;  %v1734_v24 = vld [vmem:[%s2415_s0 + $0x48] sm:$0xff]   ;;  %2455 = vst [vmem:[#allocation6_spill] sm:$0xff] %v1846_v0  ;;  %2462 = vst [vmem:[#allocation13_spill] sm:$0xff] %v1897_v1 }
   0xf   :  { %v1771_v29 = vld [vmem:[%s2415_s0 + $0x188] sm:$0xff]   ;;  %v1855_v11 = vld [vmem:[%s2415_s0 + $0xa0] sm:$0xff]   ;;  %v1902_v52 = vld [vmem:[%s2415_s0 + $0x78] sm:$0xff]  }
  0x10   :  { %v1776_v16 = vld [vmem:[%s2415_s0 + $0x1c8] sm:$0xff]   ;;  %2456 = vst [vmem:[#allocation7_spill] sm:$0xff] %v1855_v11  ;;  %v1860_v62 = vld [vmem:[%s2415_s0 + $0xe0] sm:$0xff]   ;;  %2463 = vst [vmem:[#allocation14_spill] sm:$0xff] %v1902_v52 }
  0x11   :  { %v1785_v28 = vld [vmem:[%s2415_s0 + $0x28] sm:$0xff]   ;;  %2457 = vst [vmem:[#allocation8_spill] sm:$0xff] %v1860_v62  ;;  %v1869_v7 = vld [vmem:[%s2415_s0 + $0x120] sm:$0xff]   ;;  %v1911_v63 = vld [vmem:[%s2415_s0 + $0xb8] sm:$0xff]  }
  0x12   :  { %1522 = vrot.lane.b32.xlu1 %v1521_v30, %s1526_s21  ;;  %1517 = vrot.lane.b32.xlu0 %v1516_v31, %s1526_s21  ;;  %v1743_v31 = vld [vmem:[%s2415_s0 + $0x88] sm:$0xff]   ;;  %2458 = vst [vmem:[#allocation9_spill] sm:$0xff] %v1869_v7  ;;  %v1874_v58 = vld [vmem:[%s2415_s0 + $0x160] sm:$0xff]   ;;  %2464 = vst [vmem:[#allocation15_spill] sm:$0xff] %v1911_v63  ;;  %v2475_v63 = vunpack.c.h.bf16 %v1584_v35 }
  0x13   :  { %v1757_v30 = vld [vmem:[%s2415_s0 + $0x108] sm:$0xff]   ;;  %2459 = vst [vmem:[#allocation10_spill] sm:$0xff] %v1874_v58  ;;  %v1883_v5 = vld [vmem:[%s2415_s0 + $0x1a0] sm:$0xff]   ;;  %v1916_v50 = vld [vmem:[%s2415_s0 + $0xf8] sm:$0xff]  }
  0x14   :  { %v1790_v12 = vld [vmem:[%s2415_s0 + $0x68] sm:$0xff]   ;;  %2460 = vst [vmem:[#allocation11_spill] sm:$0xff] %v1883_v5  ;;  %v1888_v56 = vld [vmem:[%s2415_s0 + $0x1e0] sm:$0xff]   ;;  %2465 = vst [vmem:[#allocation16_spill] sm:$0xff] %v1916_v50  ;;  %v2469_v50 = vunpack.c.h.bf16 %v1569_v32  ;;  %v2474_v32 = vunpack.c.l.bf16 %v1584_v35 }
  0x15   :  { %v1799_v23 = vld [vmem:[%s2415_s0 + $0xa8] sm:$0xff]   ;;  %2461 = vst [vmem:[#allocation12_spill] sm:$0xff] %v1888_v56  ;;  %v1925_v59 = vld [vmem:[%s2415_s0 + $0x138] sm:$0xff]  }
  0x16   :  { %v1804_v10 = vld [vmem:[%s2415_s0 + $0xe8] sm:$0xff]   ;;  %2466 = vst [vmem:[#allocation17_spill] sm:$0xff] %v1925_v59  ;;  %v1934_v51 = vld [vmem:[%s2415_s0 + $0x178] sm:$0xff]   ;;  %v2471_v59 = vunpack.c.h.bf16 %v1574_v33 }
  0x17   :  { %v1813_v19 = vld [vmem:[%s2415_s0 + $0x128] sm:$0xff]   ;;  %2467 = vst [vmem:[#allocation18_spill] sm:$0xff] %v1934_v51  ;;  %v2473_v51 = vunpack.c.h.bf16 %v1579_v34 }
  0x18   :  { %v1818_v6 = vld [vmem:[%s2415_s0 + $0x168] sm:$0xff]  }
  0x19   :  { %2451 = vst [vmem:[#allocation2_spill] sm:$0xff] %v1818_v6  ;;  %v1827_v17 = vld [vmem:[%s2415_s0 + $0x1a8] sm:$0xff]   ;;  %v2476_v6 = vunpack.c.l.bf16 %v1589_v36 }
  0x1a   :  { %2452 = vst [vmem:[#allocation3_spill] sm:$0xff] %v1827_v17  ;;  %v1832_v4 = vld [vmem:[%s2415_s0 + $0x1e8] sm:$0xff]  }
  0x1b   :  { %2453 = vst [vmem:[#allocation4_spill] sm:$0xff] %v1832_v4 }
  0x78   :  { %v1498_v53 = vpop.permute.xlu1 %1497  ;;  %v1488_v57 = vpop.permute.xlu0 %1487 }
  0x79   :  { %v1940_v45 = vunpack.i.h.bf16 %v1498_v53  ;;  %v1942_v44 = vunpack.i.l.bf16 %v1498_v53  ;;  %v1946_v52 = vunpack.i.h.bf16 %v1488_v57  ;;  %v1948_v1 = vunpack.i.l.bf16 %v1488_v57 }
  0x7b   :  { %v143_v46 = vadd.f32 %v1942_v44, %v2468_v39  ;;  %v144_v53 = vadd.f32 %v1940_v45, %v2469_v50  ;;  %v240_v38 = vadd.f32 %v1942_v44, %v2470_v41  ;;  %v241_v57 = vadd.f32 %v1940_v45, %v2471_v59 }
  0x7c   :  { %v353_v40 = vadd.f32 %v1942_v44, %v2472_v47  ;;  %v354_v39 = vadd.f32 %v1940_v45, %v2473_v51  ;;  %v466_v50 = vadd.f32 %v1942_v44, %v2474_v32  ;;  %v467_v41 = vadd.f32 %v1940_v45, %v2475_v63 }
  0x7d   :  { %vm159_vm0 = vcmp.ge.f32.partialorder %v143_v46, 0.0  ;;  %vm160_vm1 = vcmp.ge.f32.partialorder %v144_v53, 0.0  ;;  %v175_v33 = vmul.f32 0.2, %v143_v46  ;;  %v176_v59 = vmul.f32 0.2, %v144_v53 }
  0x7e   :  { %vm256_vm2 = vcmp.ge.f32.partialorder %v240_v38, 0.0  ;;  %vm257_vm3 = vcmp.ge.f32.partialorder %v241_v57, 0.0  ;;  %v272_v56 = vmul.f32 0.2, %v240_v38  ;;  %v273_v47 = vmul.f32 0.2, %v241_v57 }
  0x7f   :  { %v191_v5 = vsel %vm159_vm0, %v143_v46, %v175_v33  ;;  %v192_v34 = vsel %vm160_vm1, %v144_v53, %v176_v59  ;;  %vm369_vm4 = vcmp.ge.f32.partialorder %v353_v40, 0.0  ;;  %vm370_vm5 = vcmp.ge.f32.partialorder %v354_v39, 0.0 }
  0x80   :  { %v288_v51 = vsel %vm256_vm2, %v240_v38, %v272_v56  ;;  %v289_v58 = vsel %vm257_vm3, %v241_v57, %v273_v47  ;;  %v385_v7 = vmul.f32 0.2, %v353_v40  ;;  %v386_v32 = vmul.f32 0.2, %v354_v39 }
  0x81   :  { %v304_v62 = vmax.f32 %v191_v5, %v288_v51  ;;  %v305_v35 = vmax.f32 %v192_v34, %v289_v58  ;;  %vm482_vm6 = vcmp.ge.f32.partialorder %v466_v50, 0.0  ;;  %vm483_vm7 = vcmp.ge.f32.partialorder %v467_v41, 0.0 }
  0x82   :  { %v401_v63 = vsel %vm369_vm4, %v353_v40, %v385_v7  ;;  %v402_v11 = vsel %vm370_vm5, %v354_v39, %v386_v32  ;;  %v498_v0 = vmul.f32 0.2, %v466_v50  ;;  %v499_v13 = vmul.f32 0.2, %v467_v41 }
  0x83   :  { %v417_v4 = vmax.f32 %v304_v62, %v401_v63  ;;  %v418_v17 = vmax.f32 %v305_v35, %v402_v11  ;;  %v579_v46 = vadd.f32 %v1942_v44, %v2476_v6  ;;  %v2477_v53 = vunpack.c.h.bf16 %v1589_v36 }
  0x84   :  { %v514_v56 = vsel %vm482_vm6, %v466_v50, %v498_v0  ;;  %v515_v57 = vsel %vm483_vm7, %v467_v41, %v499_v13  ;;  %v2478_v58 = vunpack.c.l.bf16 %v1594_v37  ;;  %v2479_v40 = vunpack.c.h.bf16 %v1594_v37 }
  0x85   :  { %v580_v38 = vadd.f32 %v1940_v45, %v2477_v53  ;;  %v530_v62 = vmax.f32 %v417_v4, %v514_v56  ;;  %v531_v11 = vmax.f32 %v418_v17, %v515_v57  ;;  %vm595_vm8 = vcmp.ge.f32.partialorder %v579_v46, 0.0 }
  0x86   :  { %v692_v5 = vadd.f32 %v1942_v44, %v2478_v58  ;;  %v693_v7 = vadd.f32 %v1940_v45, %v2479_v40  ;;  %v611_v6 = vmul.f32 0.2, %v579_v46  ;;  %v2480_v13 = vunpack.c.l.bf16 %v1603_v42 }
  0x87   :  { %vm596_vm9 = vcmp.ge.f32.partialorder %v580_v38, 0.0  ;;  %v612_v39 = vmul.f32 0.2, %v580_v38  ;;  %v2481_v41 = vunpack.c.h.bf16 %v1603_v42  ;;  %v2482_v17 = vunpack.c.l.bf16 %v1608_v43 }
  0x88   :  { %vm708_vm11 = vcmp.ge.f32.partialorder %v692_v5, 0.0  ;;  %vm709_vm12 = vcmp.ge.f32.partialorder %v693_v7, 0.0  ;;  %v724_v36 = vmul.f32 0.2, %v692_v5  ;;  %v725_v0 = vmul.f32 0.2, %v693_v7 }
  0x89   :  { %v805_v50 = vadd.f32 %v1942_v44, %v2480_v13  ;;  %v806_v37 = vadd.f32 %v1940_v45, %v2481_v41  ;;  %v627_v33 = vsel %vm595_vm8, %v579_v46, %v611_v6  ;;  %v628_v4 = vsel %vm596_vm9, %v580_v38, %v612_v39 }
  0x8a   :  { %v918_v59 = vadd.f32 %v1942_v44, %v2482_v17  ;;  %v2483_v47 = vunpack.c.h.bf16 %v1608_v43  ;;  %v643_v51 = vmax.f32 %v530_v62, %v627_v33  ;;  %v644_v32 = vmax.f32 %v531_v11, %v628_v4 }
  0x8b   :  { %v740_v35 = vsel %vm708_vm11, %v692_v5, %v724_v36  ;;  %v741_v63 = vsel %vm709_vm12, %v693_v7, %v725_v0  ;;  %vm821_vm13 = vcmp.ge.f32.partialorder %v805_v50, 0.0  ;;  %vm822_vm14 = vcmp.ge.f32.partialorder %v806_v37, 0.0 }
  0x8c   :  { %v919_v34 = vadd.f32 %v1940_v45, %v2483_v47  ;;  %v837_v53 = vmul.f32 0.2, %v805_v50  ;;  %v838_v42 = vmul.f32 0.2, %v806_v37  ;;  %v756_v56 = vmax.f32 %v643_v51, %v740_v35 }
  0x8d   :  { %v757_v57 = vmax.f32 %v644_v32, %v741_v63  ;;  %vm934_vm15 = vcmp.ge.f32.partialorder %v918_v59, 0.0  ;;  %v950_v58 = vmul.f32 0.2, %v918_v59  ;;  %v2484_v45 = vunpack.c.l.bf16 %v1617_v48 }
  0x8e   :  { %vm935_vm0 = vcmp.ge.f32.partialorder %v919_v34, 0.0  ;;  %v853_v46 = vsel %vm821_vm13, %v805_v50, %v837_v53  ;;  %v854_v38 = vsel %vm822_vm14, %v806_v37, %v838_v42  ;;  %v951_v44 = vmul.f32 0.2, %v919_v34 }
  0x8f   :  { %v869_v40 = vmax.f32 %v756_v56, %v853_v46  ;;  %v870_v43 = vmax.f32 %v757_v57, %v854_v38  ;;  %v139_v62 = vadd.f32 %v1948_v1, %v2484_v45  ;;  %v2485_v5 = vunpack.c.h.bf16 %v1617_v48 }
  0x90   :  { %v966_v11 = vsel %vm934_vm15, %v918_v59, %v950_v58  ;;  %v967_v6 = vsel %vm935_vm0, %v919_v34, %v951_v44  ;;  %v2486_v39 = vunpack.c.l.bf16 %v1622_v49  ;;  %v2487_v0 = vunpack.c.h.bf16 %v1622_v49 }
  0x91   :  { %v140_v7 = vadd.f32 %v1946_v52, %v2485_v5  ;;  %v982_v50 = vmax.f32 %v869_v40, %v966_v11  ;;  %v983_v41 = vmax.f32 %v870_v43, %v967_v6  ;;  %vm155_vm1 = vcmp.ge.f32.partialorder %v139_v62, 0.0 }
  0x92   :  { %v236_v36 = vadd.f32 %v1948_v1, %v2486_v39  ;;  %v237_v13 = vadd.f32 %v1946_v52, %v2487_v0  ;;  %v171_v37 = vmul.f32 0.2, %v139_v62  ;;  %v2488_v4 = vunpack.c.l.bf16 %v1631_v54 }
  0x93   :  { %vm156_vm2 = vcmp.ge.f32.partialorder %v140_v7, 0.0  ;;  %v172_v33 = vmul.f32 0.2, %v140_v7  ;;  %999 = vst.msk [vmem:[%s2416_s2 + $0x20] sm:$0xff] %vm994_vm10, %v982_v50  ;;  %1000 = vst.msk [vmem:[%s2416_s2 + $0x28] sm:$0xff] %vm994_vm10, %v983_v41  ;;  %v2489_v59 = vunpack.c.h.bf16 %v1631_v54  ;;  %v2490_v32 = vunpack.c.l.bf16 %v1636_v55 }
  0x94   :  { %vm252_vm3 = vcmp.ge.f32.partialorder %v236_v36, 0.0  ;;  %vm253_vm4 = vcmp.ge.f32.partialorder %v237_v13, 0.0  ;;  %v268_v48 = vmul.f32 0.2, %v236_v36  ;;  %v269_v49 = vmul.f32 0.2, %v237_v13 }
  0x95   :  { %v349_v17 = vadd.f32 %v1948_v1, %v2488_v4  ;;  %v350_v47 = vadd.f32 %v1946_v52, %v2489_v59  ;;  %v187_v34 = vsel %vm155_vm1, %v139_v62, %v171_v37  ;;  %v188_v51 = vsel %vm156_vm2, %v140_v7, %v172_v33 }
  0x96   :  { %v462_v35 = vadd.f32 %v1948_v1, %v2490_v32  ;;  %v2491_v63 = vunpack.c.h.bf16 %v1636_v55  ;;  %v284_v42 = vsel %vm252_vm3, %v236_v36, %v268_v48  ;;  %v285_v56 = vsel %vm253_vm4, %v237_v13, %v269_v49  ;;  %v1503_v32 = vpop.permute.xlu1 %1502 }
  0x97   :  { %vm365_vm5 = vcmp.ge.f32.partialorder %v349_v17, 0.0  ;;  %vm366_vm6 = vcmp.ge.f32.partialorder %v350_v47, 0.0  ;;  %v300_v57 = vmax.f32 %v187_v34, %v284_v42  ;;  %v301_v46 = vmax.f32 %v188_v51, %v285_v56 }
  0x98   :  { %v463_v53 = vadd.f32 %v1946_v52, %v2491_v63  ;;  %v381_v38 = vmul.f32 0.2, %v349_v17  ;;  %v382_v54 = vmul.f32 0.2, %v350_v47  ;;  %vm478_vm7 = vcmp.ge.f32.partialorder %v462_v35, 0.0 }
  0x99   :  { %v494_v58 = vmul.f32 0.2, %v462_v35  ;;  %v2492_v45 = vunpack.c.l.bf16 %v1645_v60  ;;  %v2493_v62 = vunpack.c.h.bf16 %v1645_v60  ;;  %v2494_v41 = vunpack.c.l.bf16 %v1650_v61 }
  0x9a   :  { %vm479_vm8 = vcmp.ge.f32.partialorder %v463_v53, 0.0  ;;  %v495_v44 = vmul.f32 0.2, %v463_v53  ;;  %v397_v40 = vsel %vm365_vm5, %v349_v17, %v381_v38  ;;  %v398_v43 = vsel %vm366_vm6, %v350_v47, %v382_v54 }
  0x9b   :  { %v575_v55 = vadd.f32 %v1948_v1, %v2492_v45  ;;  %v576_v5 = vadd.f32 %v1946_v52, %v2493_v62  ;;  %v413_v7 = vmax.f32 %v300_v57, %v397_v40  ;;  %v414_v11 = vmax.f32 %v301_v46, %v398_v43 }
  0x9c   :  { %v510_v6 = vsel %vm478_vm7, %v462_v35, %v494_v58  ;;  %v511_v39 = vsel %vm479_vm8, %v463_v53, %v495_v44  ;;  %v688_v37 = vadd.f32 %v1948_v1, %v2494_v41  ;;  %v2495_v33 = vunpack.c.h.bf16 %v1650_v61 }
  0x9d   :  { %vm591_vm9 = vcmp.ge.f32.partialorder %v575_v55, 0.0  ;;  %vm592_vm11 = vcmp.ge.f32.partialorder %v576_v5, 0.0  ;;  %v607_v36 = vmul.f32 0.2, %v575_v55  ;;  %v608_v0 = vmul.f32 0.2, %v576_v5 }
  0x9e   :  { %v526_v13 = vmax.f32 %v413_v7, %v510_v6  ;;  %v527_v50 = vmax.f32 %v414_v11, %v511_v39  ;;  %v689_v60 = vadd.f32 %v1946_v52, %v2495_v33  ;;  %v2496_v4 = vunpack.c.l.bf16 %v1659_v2 }
  0x9f   :  { %v623_v48 = vsel %vm591_vm9, %v575_v55, %v607_v36  ;;  %v624_v49 = vsel %vm592_vm11, %v576_v5, %v608_v0  ;;  %v2497_v59 = vunpack.c.h.bf16 %v1659_v2  ;;  %vm704_vm12 = vcmp.ge.f32.partialorder %v688_v37, 0.0 }
  0xa0   :  { %v801_v17 = vadd.f32 %v1948_v1, %v2496_v4  ;;  %v639_v34 = vmax.f32 %v526_v13, %v623_v48  ;;  %v640_v51 = vmax.f32 %v527_v50, %v624_v49  ;;  %vm705_vm13 = vcmp.ge.f32.partialorder %v689_v60, 0.0 }
  0xa1   :  { %v802_v47 = vadd.f32 %v1946_v52, %v2497_v59  ;;  %v720_v35 = vmul.f32 0.2, %v688_v37  ;;  %v721_v63 = vmul.f32 0.2, %v689_v60  ;;  %v2498_v42 = vunpack.c.l.bf16 %v1664_v3 }
  0xa2   :  { %vm817_vm14 = vcmp.ge.f32.partialorder %v801_v17, 0.0  ;;  %v833_v61 = vmul.f32 0.2, %v801_v17  ;;  %v2499_v57 = vunpack.c.h.bf16 %v1664_v3  ;;  %v2056_v54 = vunpack.i.h.bf16 %v1503_v32 }
  0xa3   :  { %vm818_vm15 = vcmp.ge.f32.partialorder %v802_v47, 0.0  ;;  %v834_v53 = vmul.f32 0.2, %v802_v47  ;;  %v914_v56 = vadd.f32 %v1948_v1, %v2498_v42  ;;  %v736_v46 = vsel %vm704_vm12, %v688_v37, %v720_v35 }
  0xa4   :  { %v915_v2 = vadd.f32 %v1946_v52, %v2499_v57  ;;  %v737_v38 = vsel %vm705_vm13, %v689_v60, %v721_v63  ;;  %v2058_v58 = vunpack.i.l.bf16 %v1503_v32  ;;  %v752_v44 = vmax.f32 %v639_v34, %v736_v46 }
  0xa5   :  { %v753_v40 = vmax.f32 %v640_v51, %v737_v38  ;;  %v849_v43 = vsel %vm817_vm14, %v801_v17, %v833_v61  ;;  %v850_v45 = vsel %vm818_vm15, %v802_v47, %v834_v53  ;;  %vm930_vm0 = vcmp.ge.f32.partialorder %v914_v56, 0.0 }
  0xa6   :  { %vm931_vm1 = vcmp.ge.f32.partialorder %v915_v2, 0.0  ;;  %v946_v55 = vmul.f32 0.2, %v914_v56  ;;  %v947_v62 = vmul.f32 0.2, %v915_v2  ;;  %v865_v5 = vmax.f32 %v752_v44, %v849_v43 }
  0xa7   :  { %v866_v1 = vmax.f32 %v753_v40, %v850_v45  ;;  %v2500_v3 = vunpack.c.l.bf16 %v1673_v8  ;;  %v2501_v7 = vunpack.c.h.bf16 %v1673_v8  ;;  %v2502_v36 = vunpack.c.l.bf16 %v1678_v9 }
  0xa8   :  { %v962_v6 = vsel %vm930_vm0, %v914_v56, %v946_v55  ;;  %v963_v39 = vsel %vm931_vm1, %v915_v2, %v947_v62  ;;  %v2503_v13 = vunpack.c.h.bf16 %v1678_v9  ;;  %v2504_v48 = vunpack.c.l.bf16 %v1687_v14 }
  0xa9   :  { %v145_v52 = vadd.f32 %v2058_v58, %v2500_v3  ;;  %v146_v11 = vadd.f32 %v2056_v54, %v2501_v7  ;;  %v242_v0 = vadd.f32 %v2058_v58, %v2502_v36  ;;  %v978_v41 = vmax.f32 %v865_v5, %v962_v6 }
  0xaa   :  { %v243_v50 = vadd.f32 %v2056_v54, %v2503_v13  ;;  %v979_v37 = vmax.f32 %v866_v1, %v963_v39  ;;  %v355_v49 = vadd.f32 %v2058_v58, %v2504_v48  ;;  %v2505_v4 = vunpack.c.h.bf16 %v1687_v14 }
  0xab   :  { %vm161_vm2 = vcmp.ge.f32.partialorder %v145_v52, 0.0  ;;  %vm162_vm3 = vcmp.ge.f32.partialorder %v146_v11, 0.0  ;;  %v177_v33 = vmul.f32 0.2, %v145_v52  ;;  %v178_v60 = vmul.f32 0.2, %v146_v11 }
  0xac   :  { %vm258_vm4 = vcmp.ge.f32.partialorder %v242_v0, 0.0  ;;  %vm259_vm5 = vcmp.ge.f32.partialorder %v243_v50, 0.0  ;;  %995 = vst.msk [vmem:[%s2416_s2] sm:$0xff] %vm994_vm10, %v978_v41  ;;  %996 = vst.msk [vmem:[%s2416_s2 + $0x8] sm:$0xff] %vm994_vm10, %v979_v37  ;;  %v274_v8 = vmul.f32 0.2, %v242_v0  ;;  %v356_v17 = vadd.f32 %v2056_v54, %v2505_v4 }
  0xad   :  { %v275_v9 = vmul.f32 0.2, %v243_v50  ;;  %v193_v59 = vsel %vm161_vm2, %v145_v52, %v177_v33  ;;  %v194_v47 = vsel %vm162_vm3, %v146_v11, %v178_v60  ;;  %v2506_v34 = vunpack.c.l.bf16 %v1692_v15 }
  0xae   :  { %v2507_v32 = vunpack.c.h.bf16 %v1692_v15  ;;  %v290_v63 = vsel %vm258_vm4, %v242_v0, %v274_v8  ;;  %vm371_vm6 = vcmp.ge.f32.partialorder %v355_v49, 0.0  ;;  %vm372_vm7 = vcmp.ge.f32.partialorder %v356_v17, 0.0  ;;  %v1493_v8 = vpop.permute.xlu0 %1492 }
  0xaf   :  { %v468_v51 = vadd.f32 %v2058_v58, %v2506_v34  ;;  %v291_v61 = vsel %vm259_vm5, %v243_v50, %v275_v9  ;;  %v306_v53 = vmax.f32 %v193_v59, %v290_v63  ;;  %v387_v56 = vmul.f32 0.2, %v355_v49 }
  0xb0   :  { %v469_v35 = vadd.f32 %v2056_v54, %v2507_v32  ;;  %v307_v42 = vmax.f32 %v194_v47, %v291_v61  ;;  %v388_v14 = vmul.f32 0.2, %v356_v17  ;;  %v2508_v44 = vunpack.c.l.bf16 %v1701_v20 }
  0xb1   :  { %vm484_vm8 = vcmp.ge.f32.partialorder %v468_v51, 0.0  ;;  %v500_v57 = vmul.f32 0.2, %v468_v51  ;;  %v403_v46 = vsel %vm371_vm6, %v355_v49, %v387_v56  ;;  %v2509_v40 = vunpack.c.h.bf16 %v1701_v20 }
  0xb2   :  { %vm485_vm9 = vcmp.ge.f32.partialorder %v469_v35, 0.0  ;;  %v501_v2 = vmul.f32 0.2, %v469_v35  ;;  %v404_v38 = vsel %vm372_vm7, %v356_v17, %v388_v14  ;;  %v581_v15 = vadd.f32 %v2058_v58, %v2508_v44 }
  0xb3   :  { %v582_v43 = vadd.f32 %v2056_v54, %v2509_v40  ;;  %v419_v45 = vmax.f32 %v306_v53, %v403_v46  ;;  %v420_v55 = vmax.f32 %v307_v42, %v404_v38  ;;  %v516_v62 = vsel %vm484_vm8, %v468_v51, %v500_v57 }
  0xb4   :  { %v517_v5 = vsel %vm485_vm9, %v469_v35, %v501_v2  ;;  %vm597_vm11 = vcmp.ge.f32.partialorder %v581_v15, 0.0  ;;  %v613_v1 = vmul.f32 0.2, %v581_v15  ;;  %v2510_v11 = vunpack.c.l.bf16 %v1706_v21 }
  0xb5   :  { %vm598_vm12 = vcmp.ge.f32.partialorder %v582_v43, 0.0  ;;  %v614_v3 = vmul.f32 0.2, %v582_v43  ;;  %v532_v52 = vmax.f32 %v419_v45, %v516_v62  ;;  %v533_v7 = vmax.f32 %v420_v55, %v517_v5 }
  0xb6   :  { %v694_v6 = vadd.f32 %v2058_v58, %v2510_v11  ;;  %v2511_v39 = vunpack.c.h.bf16 %v1706_v21  ;;  %v629_v36 = vsel %vm597_vm11, %v581_v15, %v613_v1  ;;  %v2512_v13 = vunpack.c.l.bf16 %v1715_v26 }
  0xb7   :  { %v630_v0 = vsel %vm598_vm12, %v582_v43, %v614_v3  ;;  %v2513_v41 = vunpack.c.h.bf16 %v1715_v26  ;;  %v645_v33 = vmax.f32 %v532_v52, %v629_v36  ;;  %v2514_v4 = vunpack.c.l.bf16 %v1720_v27 }
  0xb8   :  { %v695_v20 = vadd.f32 %v2056_v54, %v2511_v39  ;;  %v807_v50 = vadd.f32 %v2058_v58, %v2512_v13  ;;  %v646_v60 = vmax.f32 %v533_v7, %v630_v0  ;;  %vm710_vm13 = vcmp.ge.f32.partialorder %v694_v6, 0.0 }
  0xb9   :  { %v808_v37 = vadd.f32 %v2056_v54, %v2513_v41  ;;  %v726_v9 = vmul.f32 0.2, %v694_v6  ;;  %v920_v17 = vadd.f32 %v2058_v58, %v2514_v4  ;;  %v2515_v59 = vunpack.c.h.bf16 %v1720_v27 }
  0xba   :  { %vm711_vm14 = vcmp.ge.f32.partialorder %v695_v20, 0.0  ;;  %v727_v48 = vmul.f32 0.2, %v695_v20  ;;  %vm823_vm15 = vcmp.ge.f32.partialorder %v807_v50, 0.0  ;;  %v839_v21 = vmul.f32 0.2, %v807_v50 }
  0xbb   :  { %vm824_vm0 = vcmp.ge.f32.partialorder %v808_v37, 0.0  ;;  %v840_v49 = vmul.f32 0.2, %v808_v37  ;;  %v921_v26 = vadd.f32 %v2056_v54, %v2515_v59  ;;  %v742_v47 = vsel %vm710_vm13, %v694_v6, %v726_v9 }
  0xbc   :  { %v743_v34 = vsel %vm711_vm14, %v695_v20, %v727_v48  ;;  %v2116_v51 = vunpack.i.h.bf16 %v1493_v8  ;;  %v2118_v32 = vunpack.i.l.bf16 %v1493_v8  ;;  %v758_v35 = vmax.f32 %v645_v33, %v742_v47 }
  0xbd   :  { %v759_v63 = vmax.f32 %v646_v60, %v743_v34  ;;  %v855_v61 = vsel %vm823_vm15, %v807_v50, %v839_v21  ;;  %v856_v53 = vsel %vm824_vm0, %v808_v37, %v840_v49  ;;  %vm936_vm1 = vcmp.ge.f32.partialorder %v920_v17, 0.0 }
  0xbe   :  { %vm937_vm2 = vcmp.ge.f32.partialorder %v921_v26, 0.0  ;;  %v952_v42 = vmul.f32 0.2, %v920_v17  ;;  %v953_v56 = vmul.f32 0.2, %v921_v26  ;;  %v871_v14 = vmax.f32 %v758_v35, %v855_v61 }
  0xbf   :  { %v872_v58 = vmax.f32 %v759_v63, %v856_v53  ;;  %v2516_v27 = vunpack.c.l.bf16 %v1729_v25  ;;  %v2517_v57 = vunpack.c.h.bf16 %v1729_v25  ;;  %v2518_v44 = vunpack.c.l.bf16 %v1734_v24 }
  0xc0   :  { %v968_v46 = vsel %vm936_vm1, %v920_v17, %v952_v42  ;;  %v969_v38 = vsel %vm937_vm2, %v921_v26, %v953_v56  ;;  %v2519_v40 = vunpack.c.h.bf16 %v1734_v24  ;;  %v2520_v1 = vunpack.c.l.bf16 %v1743_v31 }
  0xc1   :  { %v141_v54 = vadd.f32 %v2118_v32, %v2516_v27  ;;  %v142_v2 = vadd.f32 %v2116_v51, %v2517_v57  ;;  %v238_v15 = vadd.f32 %v2118_v32, %v2518_v44  ;;  %v984_v45 = vmax.f32 %v871_v14, %v968_v46  ;;  %v1513_v44 = vpop.permute.xlu1 %1512 }
  0xc2   :  { %v239_v43 = vadd.f32 %v2116_v51, %v2519_v40  ;;  %v985_v55 = vmax.f32 %v872_v58, %v969_v38  ;;  %v351_v3 = vadd.f32 %v2118_v32, %v2520_v1  ;;  %v2521_v52 = vunpack.c.h.bf16 %v1743_v31 }
  0xc3   :  { %vm157_vm3 = vcmp.ge.f32.partialorder %v141_v54, 0.0  ;;  %vm158_vm4 = vcmp.ge.f32.partialorder %v142_v2, 0.0  ;;  %v173_v62 = vmul.f32 0.2, %v141_v54  ;;  %v174_v5 = vmul.f32 0.2, %v142_v2 }
  0xc4   :  { %vm254_vm5 = vcmp.ge.f32.partialorder %v238_v15, 0.0  ;;  %vm255_vm6 = vcmp.ge.f32.partialorder %v239_v43, 0.0  ;;  %1001 = vst.msk [vmem:[%s2416_s2 + $0x30] sm:$0xff] %vm994_vm10, %v984_v45  ;;  %1002 = vst.msk [vmem:[%s2416_s2 + $0x38] sm:$0xff] %vm994_vm10, %v985_v55  ;;  %v270_v24 = vmul.f32 0.2, %v238_v15  ;;  %v352_v7 = vadd.f32 %v2116_v51, %v2521_v52 }
  0xc5   :  { %v271_v25 = vmul.f32 0.2, %v239_v43  ;;  %v189_v11 = vsel %vm157_vm3, %v141_v54, %v173_v62  ;;  %v190_v6 = vsel %vm158_vm4, %v142_v2, %v174_v5  ;;  %v2522_v39 = vunpack.c.l.bf16 %v1748_v22 }
  0xc6   :  { %v2523_v36 = vunpack.c.h.bf16 %v1748_v22  ;;  %v286_v13 = vsel %vm254_vm5, %v238_v15, %v270_v24  ;;  %vm367_vm7 = vcmp.ge.f32.partialorder %v351_v3, 0.0  ;;  %vm368_vm8 = vcmp.ge.f32.partialorder %v352_v7, 0.0 }
  0xc7   :  { %v464_v20 = vadd.f32 %v2118_v32, %v2522_v39  ;;  %v287_v50 = vsel %vm255_vm6, %v239_v43, %v271_v25  ;;  %v302_v41 = vmax.f32 %v189_v11, %v286_v13  ;;  %v383_v33 = vmul.f32 0.2, %v351_v3 }
  0xc8   :  { %v465_v0 = vadd.f32 %v2116_v51, %v2523_v36  ;;  %v303_v37 = vmax.f32 %v190_v6, %v287_v50  ;;  %v384_v31 = vmul.f32 0.2, %v352_v7  ;;  %v2524_v21 = vunpack.c.l.bf16 %v1757_v30 }
  0xc9   :  { %vm480_vm9 = vcmp.ge.f32.partialorder %v464_v20, 0.0  ;;  %v496_v60 = vmul.f32 0.2, %v464_v20  ;;  %v399_v9 = vsel %vm367_vm7, %v351_v3, %v383_v33  ;;  %v2525_v49 = vunpack.c.h.bf16 %v1757_v30 }
  0xca   :  { %vm481_vm11 = vcmp.ge.f32.partialorder %v465_v0, 0.0  ;;  %v497_v8 = vmul.f32 0.2, %v465_v0  ;;  %v400_v48 = vsel %vm368_vm8, %v352_v7, %v384_v31  ;;  %v577_v22 = vadd.f32 %v2118_v32, %v2524_v21 }
  0xcb   :  { %v578_v4 = vadd.f32 %v2116_v51, %v2525_v49  ;;  %v415_v17 = vmax.f32 %v302_v41, %v399_v9  ;;  %v416_v59 = vmax.f32 %v303_v37, %v400_v48  ;;  %v512_v26 = vsel %vm480_vm9, %v464_v20, %v496_v60 }
  0xcc   :  { %v513_v47 = vsel %vm481_vm11, %v465_v0, %v497_v8  ;;  %vm593_vm12 = vcmp.ge.f32.partialorder %v577_v22, 0.0  ;;  %v609_v34 = vmul.f32 0.2, %v577_v22  ;;  %v2526_v53 = vunpack.c.l.bf16 %v1762_v18 }
  0xcd   :  { %vm594_vm13 = vcmp.ge.f32.partialorder %v578_v4, 0.0  ;;  %v610_v35 = vmul.f32 0.2, %v578_v4  ;;  %v528_v63 = vmax.f32 %v415_v17, %v512_v26  ;;  %v529_v61 = vmax.f32 %v416_v59, %v513_v47 }
  0xce   :  { %v690_v42 = vadd.f32 %v2118_v32, %v2526_v53  ;;  %v2527_v56 = vunpack.c.h.bf16 %v1762_v18  ;;  %v625_v14 = vsel %vm593_vm12, %v577_v22, %v609_v34  ;;  %v2528_v27 = vunpack.c.l.bf16 %v1771_v29 }
  0xcf   :  { %v626_v58 = vsel %vm594_vm13, %v578_v4, %v610_v35  ;;  %v2529_v57 = vunpack.c.h.bf16 %v1771_v29  ;;  %v641_v46 = vmax.f32 %v528_v63, %v625_v14  ;;  %v2530_v45 = vunpack.c.l.bf16 %v1776_v16 }
  0xd0   :  { %v691_v30 = vadd.f32 %v2116_v51, %v2527_v56  ;;  %v803_v54 = vadd.f32 %v2118_v32, %v2528_v27  ;;  %v642_v38 = vmax.f32 %v529_v61, %v626_v58  ;;  %vm706_vm14 = vcmp.ge.f32.partialorder %v690_v42, 0.0 }
  0xd1   :  { %v804_v2 = vadd.f32 %v2116_v51, %v2529_v57  ;;  %v722_v15 = vmul.f32 0.2, %v690_v42  ;;  %v916_v55 = vadd.f32 %v2118_v32, %v2530_v45  ;;  %v2531_v62 = vunpack.c.h.bf16 %v1776_v16 }
  0xd2   :  { %vm707_vm15 = vcmp.ge.f32.partialorder %v691_v30, 0.0  ;;  %v723_v40 = vmul.f32 0.2, %v691_v30  ;;  %vm819_vm0 = vcmp.ge.f32.partialorder %v803_v54, 0.0  ;;  %v835_v18 = vmul.f32 0.2, %v803_v54 }
  0xd3   :  { %vm820_vm1 = vcmp.ge.f32.partialorder %v804_v2, 0.0  ;;  %v836_v43 = vmul.f32 0.2, %v804_v2  ;;  %v917_v29 = vadd.f32 %v2116_v51, %v2531_v62  ;;  %v738_v5 = vsel %vm706_vm14, %v690_v42, %v722_v15 }
  0xd4   :  { %v739_v24 = vsel %vm707_vm15, %v691_v30, %v723_v40  ;;  %v2176_v25 = vunpack.i.h.bf16 %v1513_v44  ;;  %v2178_v1 = vunpack.i.l.bf16 %v1513_v44  ;;  %v754_v3 = vmax.f32 %v641_v46, %v738_v5 }
  0xd5   :  { %v755_v52 = vmax.f32 %v642_v38, %v739_v24  ;;  %v851_v7 = vsel %vm819_vm0, %v803_v54, %v835_v18  ;;  %v852_v11 = vsel %vm820_vm1, %v804_v2, %v836_v43  ;;  %vm932_vm2 = vcmp.ge.f32.partialorder %v916_v55, 0.0 }
  0xd6   :  { %vm933_vm3 = vcmp.ge.f32.partialorder %v917_v29, 0.0  ;;  %v948_v6 = vmul.f32 0.2, %v916_v55  ;;  %v949_v39 = vmul.f32 0.2, %v917_v29  ;;  %v867_v20 = vmax.f32 %v754_v3, %v851_v7 }
  0xd7   :  { %v868_v32 = vmax.f32 %v755_v52, %v852_v11  ;;  %v2532_v16 = vunpack.c.l.bf16 %v1785_v28  ;;  %v2533_v36 = vunpack.c.h.bf16 %v1785_v28  ;;  %v2534_v41 = vunpack.c.l.bf16 %v1790_v12  ;;  %v2545_v52 = vld [vmem:[#allocation3_spill] sm:$0xff] }
  0xd8   :  { %v964_v13 = vsel %vm932_vm2, %v916_v55, %v948_v6  ;;  %v965_v50 = vsel %vm933_vm3, %v917_v29, %v949_v39  ;;  %v2535_v33 = vunpack.c.h.bf16 %v1790_v12  ;;  %v2536_v21 = vunpack.c.l.bf16 %v1799_v23  ;;  %v2542_v55 = vld [vmem:[#allocation2_spill] sm:$0xff] }
  0xd9   :  { %v149_v51 = vadd.f32 %v2178_v1, %v2532_v16  ;;  %v150_v0 = vadd.f32 %v2176_v25, %v2533_v36  ;;  %v246_v37 = vadd.f32 %v2178_v1, %v2534_v41  ;;  %v980_v60 = vmax.f32 %v867_v20, %v964_v13  ;;  %v1508_v16 = vpop.permute.xlu0 %1507 }
  0xda   :  { %v247_v31 = vadd.f32 %v2176_v25, %v2535_v33  ;;  %v981_v8 = vmax.f32 %v868_v32, %v965_v50  ;;  %v359_v22 = vadd.f32 %v2178_v1, %v2536_v21  ;;  %v2537_v49 = vunpack.c.h.bf16 %v1799_v23  ;;  %v2548_v50 = vld [vmem:[#allocation4_spill] sm:$0xff] }
  0xdb   :  { %vm165_vm4 = vcmp.ge.f32.partialorder %v149_v51, 0.0  ;;  %vm166_vm5 = vcmp.ge.f32.partialorder %v150_v0, 0.0  ;;  %v181_v9 = vmul.f32 0.2, %v149_v51  ;;  %v182_v48 = vmul.f32 0.2, %v150_v0 }
  0xdc   :  { %vm262_vm6 = vcmp.ge.f32.partialorder %v246_v37, 0.0  ;;  %vm263_vm7 = vcmp.ge.f32.partialorder %v247_v31, 0.0  ;;  %997 = vst.msk [vmem:[%s2416_s2 + $0x10] sm:$0xff] %vm994_vm10, %v980_v60  ;;  %998 = vst.msk [vmem:[%s2416_s2 + $0x18] sm:$0xff] %vm994_vm10, %v981_v8  ;;  %v278_v12 = vmul.f32 0.2, %v246_v37  ;;  %v360_v4 = vadd.f32 %v2176_v25, %v2537_v49 }
  0xdd   :  { %v279_v28 = vmul.f32 0.2, %v247_v31  ;;  %v197_v17 = vsel %vm165_vm4, %v149_v51, %v181_v9  ;;  %v198_v59 = vsel %vm166_vm5, %v150_v0, %v182_v48  ;;  %v2538_v26 = vunpack.c.l.bf16 %v1804_v10 }
  0xde   :  { %v2539_v34 = vunpack.c.h.bf16 %v1804_v10  ;;  %v294_v63 = vsel %vm262_vm6, %v246_v37, %v278_v12  ;;  %vm375_vm8 = vcmp.ge.f32.partialorder %v359_v22, 0.0  ;;  %vm376_vm9 = vcmp.ge.f32.partialorder %v360_v4, 0.0 }
  0xdf   :  { %v472_v47 = vadd.f32 %v2178_v1, %v2538_v26  ;;  %v295_v61 = vsel %vm263_vm7, %v247_v31, %v279_v28  ;;  %v310_v53 = vmax.f32 %v197_v17, %v294_v63  ;;  %v391_v56 = vmul.f32 0.2, %v359_v22 }
  0xe0   :  { %v473_v35 = vadd.f32 %v2176_v25, %v2539_v34  ;;  %v311_v42 = vmax.f32 %v198_v59, %v295_v61  ;;  %v392_v23 = vmul.f32 0.2, %v360_v4  ;;  %v2540_v54 = vunpack.c.l.bf16 %v1813_v19  ;;  %v2551_v59 = vld [vmem:[#allocation5_spill] sm:$0xff]  ;;  %v2554_v61 = vld [vmem:[#allocation6_spill] sm:$0xff] }
  0xe1   :  { %vm488_vm11 = vcmp.ge.f32.partialorder %v472_v47, 0.0  ;;  %v504_v30 = vmul.f32 0.2, %v472_v47  ;;  %v407_v58 = vsel %vm375_vm8, %v359_v22, %v391_v56  ;;  %v2541_v57 = vunpack.c.h.bf16 %v1813_v19 }
  0xe2   :  { %vm489_vm12 = vcmp.ge.f32.partialorder %v473_v35, 0.0  ;;  %v505_v14 = vmul.f32 0.2, %v473_v35  ;;  %v408_v27 = vsel %vm376_vm9, %v360_v4, %v392_v23  ;;  %v585_v10 = vadd.f32 %v2178_v1, %v2540_v54 }
  0xe3   :  { %v586_v2 = vadd.f32 %v2176_v25, %v2541_v57  ;;  %v423_v46 = vmax.f32 %v310_v53, %v407_v58  ;;  %v424_v38 = vmax.f32 %v311_v42, %v408_v27  ;;  %v520_v44 = vsel %vm488_vm11, %v472_v47, %v504_v30  ;;  %v2557_v57 = vld [vmem:[#allocation7_spill] sm:$0xff] }
  0xe4   :  { %v521_v15 = vsel %vm489_vm12, %v473_v35, %v505_v14  ;;  %vm601_vm13 = vcmp.ge.f32.partialorder %v585_v10, 0.0  ;;  %v617_v40 = vmul.f32 0.2, %v585_v10  ;;  %v2543_v62 = vunpack.c.l.bf16 %v2542_v55 }
  0xe5   :  { %vm602_vm14 = vcmp.ge.f32.partialorder %v586_v2, 0.0  ;;  %v618_v18 = vmul.f32 0.2, %v586_v2  ;;  %v536_v43 = vmax.f32 %v423_v46, %v520_v44  ;;  %v537_v45 = vmax.f32 %v424_v38, %v521_v15 }
  0xe6   :  { %v698_v29 = vadd.f32 %v2178_v1, %v2543_v62  ;;  %v2544_v5 = vunpack.c.h.bf16 %v2542_v55  ;;  %v633_v24 = vsel %vm601_vm13, %v585_v10, %v617_v40  ;;  %v2546_v7 = vunpack.c.l.bf16 %v2545_v52 }
  0xe7   :  { %v634_v3 = vsel %vm602_vm14, %v586_v2, %v618_v18  ;;  %v2547_v6 = vunpack.c.h.bf16 %v2545_v52  ;;  %v649_v20 = vmax.f32 %v536_v43, %v633_v24  ;;  %v2549_v41 = vunpack.c.l.bf16 %v2548_v50  ;;  %v2560_v18 = vld [vmem:[#allocation8_spill] sm:$0xff] }
  0xe8   :  { %v699_v19 = vadd.f32 %v2176_v25, %v2544_v5  ;;  %v811_v11 = vadd.f32 %v2178_v1, %v2546_v7  ;;  %v650_v32 = vmax.f32 %v537_v45, %v634_v3  ;;  %vm714_vm15 = vcmp.ge.f32.partialorder %v698_v29, 0.0 }
  0xe9   :  { %v812_v39 = vadd.f32 %v2176_v25, %v2547_v6  ;;  %v730_v51 = vmul.f32 0.2, %v698_v29  ;;  %v924_v37 = vadd.f32 %v2178_v1, %v2549_v41  ;;  %v2550_v33 = vunpack.c.h.bf16 %v2548_v50 }
  0xea   :  { %vm715_vm0 = vcmp.ge.f32.partialorder %v699_v19, 0.0  ;;  %v731_v36 = vmul.f32 0.2, %v699_v19  ;;  %vm827_vm1 = vcmp.ge.f32.partialorder %v811_v11, 0.0  ;;  %v843_v0 = vmul.f32 0.2, %v811_v11 }
  0xeb   :  { %vm828_vm2 = vcmp.ge.f32.partialorder %v812_v39, 0.0  ;;  %v844_v13 = vmul.f32 0.2, %v812_v39  ;;  %v925_v31 = vadd.f32 %v2176_v25, %v2550_v33  ;;  %v746_v60 = vsel %vm714_vm15, %v698_v29, %v730_v51 }
  0xec   :  { %v747_v8 = vsel %vm715_vm0, %v699_v19, %v731_v36  ;;  %v2236_v9 = vunpack.i.h.bf16 %v1508_v16  ;;  %v2238_v48 = vunpack.i.l.bf16 %v1508_v16  ;;  %v762_v12 = vmax.f32 %v649_v20, %v746_v60  ;;  %v2563_v20 = vld [vmem:[#allocation9_spill] sm:$0xff] }
  0xed   :  { %v763_v28 = vmax.f32 %v650_v32, %v747_v8  ;;  %v859_v21 = vsel %vm827_vm1, %v811_v11, %v843_v0  ;;  %v860_v22 = vsel %vm828_vm2, %v812_v39, %v844_v13  ;;  %vm940_vm3 = vcmp.ge.f32.partialorder %v924_v37, 0.0  ;;  %v2566_v8 = vld [vmem:[#allocation10_spill] sm:$0xff] }
  0xee   :  { %vm941_vm4 = vcmp.ge.f32.partialorder %v925_v31, 0.0  ;;  %v956_v49 = vmul.f32 0.2, %v924_v37  ;;  %v957_v4 = vmul.f32 0.2, %v925_v31  ;;  %v875_v17 = vmax.f32 %v762_v12, %v859_v21 }
  0xef   :  { %v876_v1 = vmax.f32 %v763_v28, %v860_v22  ;;  %v2552_v26 = vunpack.c.l.bf16 %v2551_v59  ;;  %v2553_v47 = vunpack.c.h.bf16 %v2551_v59  ;;  %v2555_v53 = vunpack.c.l.bf16 %v2554_v61 }
  0xf0   :  { %v972_v35 = vsel %vm940_vm3, %v924_v37, %v956_v49  ;;  %v973_v63 = vsel %vm941_vm4, %v925_v31, %v957_v4  ;;  %v2556_v56 = vunpack.c.h.bf16 %v2554_v61  ;;  %v2558_v2 = vunpack.c.l.bf16 %v2557_v57 }
  0xf1   :  { %v147_v25 = vadd.f32 %v2238_v48, %v2552_v26  ;;  %v148_v34 = vadd.f32 %v2236_v9, %v2553_v47  ;;  %v244_v42 = vadd.f32 %v2238_v48, %v2555_v53  ;;  %v988_v30 = vmax.f32 %v875_v17, %v972_v35  ;;  %v2569_v17 = vld [vmem:[#allocation11_spill] sm:$0xff]  ;;  %v1523_v35 = vpop.permute.xlu1 %1522 }
  0xf2   :  { %v245_v23 = vadd.f32 %v2236_v9, %v2556_v56  ;;  %v989_v14 = vmax.f32 %v876_v1, %v973_v63  ;;  %v357_v46 = vadd.f32 %v2238_v48, %v2558_v2  ;;  %v2559_v38 = vunpack.c.h.bf16 %v2557_v57  ;;  %v2572_v56 = vld [vmem:[#allocation12_spill] sm:$0xff] }
  0xf3   :  { %vm163_vm5 = vcmp.ge.f32.partialorder %v147_v25, 0.0  ;;  %vm164_vm6 = vcmp.ge.f32.partialorder %v148_v34, 0.0  ;;  %v179_v58 = vmul.f32 0.2, %v147_v25  ;;  %v180_v27 = vmul.f32 0.2, %v148_v34 }
  0xf4   :  { %vm260_vm7 = vcmp.ge.f32.partialorder %v244_v42, 0.0  ;;  %vm261_vm8 = vcmp.ge.f32.partialorder %v245_v23, 0.0  ;;  %1005 = vst.msk [vmem:[%s2416_s2 + $0x50] sm:$0xff] %vm994_vm10, %v988_v30  ;;  %1006 = vst.msk [vmem:[%s2416_s2 + $0x58] sm:$0xff] %vm994_vm10, %v989_v14  ;;  %v276_v54 = vmul.f32 0.2, %v244_v42  ;;  %v358_v44 = vadd.f32 %v2236_v9, %v2559_v38 }
  0xf5   :  { %v277_v10 = vmul.f32 0.2, %v245_v23  ;;  %v195_v15 = vsel %vm163_vm5, %v147_v25, %v179_v58  ;;  %v196_v40 = vsel %vm164_vm6, %v148_v34, %v180_v27  ;;  %v2561_v43 = vunpack.c.l.bf16 %v2560_v18 }
  0xf6   :  { %v2562_v55 = vunpack.c.h.bf16 %v2560_v18  ;;  %v292_v29 = vsel %vm260_vm7, %v244_v42, %v276_v54  ;;  %vm373_vm9 = vcmp.ge.f32.partialorder %v357_v46, 0.0  ;;  %vm374_vm11 = vcmp.ge.f32.partialorder %v358_v44, 0.0 }
  0xf7   :  { %v470_v45 = vadd.f32 %v2238_v48, %v2561_v43  ;;  %v293_v5 = vsel %vm261_vm8, %v245_v23, %v277_v10  ;;  %v308_v19 = vmax.f32 %v195_v15, %v292_v29  ;;  %v389_v3 = vmul.f32 0.2, %v357_v46  ;;  %v2575_v43 = vld [vmem:[#allocation13_spill] sm:$0xff] }
  0xf8   :  { %v471_v62 = vadd.f32 %v2236_v9, %v2562_v55  ;;  %v309_v24 = vmax.f32 %v196_v40, %v293_v5  ;;  %v390_v52 = vmul.f32 0.2, %v358_v44  ;;  %v2564_v32 = vunpack.c.l.bf16 %v2563_v20 }
  0xf9   :  { %vm486_vm12 = vcmp.ge.f32.partialorder %v470_v45, 0.0  ;;  %v502_v7 = vmul.f32 0.2, %v470_v45  ;;  %v405_v6 = vsel %vm373_vm9, %v357_v46, %v389_v3  ;;  %v2565_v51 = vunpack.c.h.bf16 %v2563_v20 }
  0xfa   :  { %vm487_vm13 = vcmp.ge.f32.partialorder %v471_v62, 0.0  ;;  %v503_v11 = vmul.f32 0.2, %v471_v62  ;;  %v406_v39 = vsel %vm374_vm11, %v358_v44, %v390_v52  ;;  %v583_v16 = vadd.f32 %v2238_v48, %v2564_v32 }
  0xfb   :  { %v584_v36 = vadd.f32 %v2236_v9, %v2565_v51  ;;  %v421_v0 = vmax.f32 %v308_v19, %v405_v6  ;;  %v422_v13 = vmax.f32 %v309_v24, %v406_v39  ;;  %v518_v50 = vsel %vm486_vm12, %v470_v45, %v502_v7  ;;  %v2578_v19 = vld [vmem:[#allocation14_spill] sm:$0xff]  ;;  %v2581_v51 = vld [vmem:[#allocation15_spill] sm:$0xff] }
  0xfc   :  { %v519_v41 = vsel %vm487_vm13, %v471_v62, %v503_v11  ;;  %vm599_vm14 = vcmp.ge.f32.partialorder %v583_v16, 0.0  ;;  %v615_v37 = vmul.f32 0.2, %v583_v16  ;;  %v2567_v12 = vunpack.c.l.bf16 %v2566_v8 }
  0xfd   :  { %vm600_vm15 = vcmp.ge.f32.partialorder %v584_v36, 0.0  ;;  %v616_v33 = vmul.f32 0.2, %v584_v36  ;;  %v534_v31 = vmax.f32 %v421_v0, %v518_v50  ;;  %v535_v60 = vmax.f32 %v422_v13, %v519_v41 }
  0xfe   :  { %v696_v28 = vadd.f32 %v2238_v48, %v2567_v12  ;;  %v2568_v21 = vunpack.c.h.bf16 %v2566_v8  ;;  %v631_v49 = vsel %vm599_vm14, %v583_v16, %v615_v37  ;;  %v2570_v1 = vunpack.c.l.bf16 %v2569_v17 }
  0xff   :  { %v632_v4 = vsel %vm600_vm15, %v584_v36, %v616_v33  ;;  %v2571_v26 = vunpack.c.h.bf16 %v2569_v17  ;;  %v647_v47 = vmax.f32 %v534_v31, %v631_v49  ;;  %v2573_v23 = vunpack.c.l.bf16 %v2572_v56  ;;  %v2584_v33 = vld [vmem:[#allocation16_spill] sm:$0xff] }
 0x100   :  { %v697_v22 = vadd.f32 %v2236_v9, %v2568_v21  ;;  %v809_v59 = vadd.f32 %v2238_v48, %v2570_v1  ;;  %v648_v34 = vmax.f32 %v535_v60, %v632_v4  ;;  %vm712_vm0 = vcmp.ge.f32.partialorder %v696_v28, 0.0 }
 0x101   :  { %v810_v25 = vadd.f32 %v2236_v9, %v2571_v26  ;;  %v728_v63 = vmul.f32 0.2, %v696_v28  ;;  %v922_v30 = vadd.f32 %v2238_v48, %v2573_v23  ;;  %v2574_v14 = vunpack.c.h.bf16 %v2572_v56 }
 0x102   :  { %vm713_vm1 = vcmp.ge.f32.partialorder %v697_v22, 0.0  ;;  %v729_v61 = vmul.f32 0.2, %v697_v22  ;;  %vm825_vm2 = vcmp.ge.f32.partialorder %v809_v59, 0.0  ;;  %v841_v53 = vmul.f32 0.2, %v809_v59 }
 0x103   :  { %vm826_vm3 = vcmp.ge.f32.partialorder %v810_v25, 0.0  ;;  %v842_v42 = vmul.f32 0.2, %v810_v25  ;;  %v923_v58 = vadd.f32 %v2236_v9, %v2574_v14  ;;  %v744_v27 = vsel %vm712_vm0, %v696_v28, %v728_v63 }
 0x104   :  { %v745_v54 = vsel %vm713_vm1, %v697_v22, %v729_v61  ;;  %v2296_v10 = vunpack.i.h.bf16 %v1523_v35  ;;  %v2298_v57 = vunpack.i.l.bf16 %v1523_v35  ;;  %v760_v2 = vmax.f32 %v647_v47, %v744_v27  ;;  %v2587_v47 = vld [vmem:[#allocation17_spill] sm:$0xff] }
 0x105   :  { %v761_v46 = vmax.f32 %v648_v34, %v745_v54  ;;  %v857_v38 = vsel %vm825_vm2, %v809_v59, %v841_v53  ;;  %v858_v44 = vsel %vm826_vm3, %v810_v25, %v842_v42  ;;  %vm938_vm4 = vcmp.ge.f32.partialorder %v922_v30, 0.0 }
 0x106   :  { %vm939_vm5 = vcmp.ge.f32.partialorder %v923_v58, 0.0  ;;  %v954_v15 = vmul.f32 0.2, %v922_v30  ;;  %v955_v40 = vmul.f32 0.2, %v923_v58  ;;  %v873_v18 = vmax.f32 %v760_v2, %v857_v38  ;;  %v2590_v2 = vld [vmem:[#allocation18_spill] sm:$0xff] }
 0x107   :  { %v874_v48 = vmax.f32 %v761_v46, %v858_v44  ;;  %v2576_v45 = vunpack.c.l.bf16 %v2575_v43  ;;  %v2577_v55 = vunpack.c.h.bf16 %v2575_v43  ;;  %v2579_v24 = vunpack.c.l.bf16 %v2578_v19 }
 0x108   :  { %v970_v29 = vsel %vm938_vm4, %v922_v30, %v954_v15  ;;  %v971_v5 = vsel %vm939_vm5, %v923_v58, %v955_v40  ;;  %v2580_v52 = vunpack.c.h.bf16 %v2578_v19  ;;  %v2582_v36 = vunpack.c.l.bf16 %v2581_v51  ;;  %v1476_v30 = vld [vmem:[%s2415_s0 + $0x1b8] sm:$0xff]  }
 0x109   :  { %v153_v9 = vadd.f32 %v2298_v57, %v2576_v45  ;;  %v154_v62 = vadd.f32 %v2296_v10, %v2577_v55  ;;  %v250_v3 = vadd.f32 %v2298_v57, %v2579_v24  ;;  %v986_v11 = vmax.f32 %v873_v18, %v970_v29  ;;  %v1484_v45 = vld [vmem:[%s2415_s0 + $0x1f8] sm:$0xff]  }
 0x10a   :  { %v251_v7 = vadd.f32 %v2296_v10, %v2580_v52  ;;  %v987_v6 = vmax.f32 %v874_v48, %v971_v5  ;;  %v363_v0 = vadd.f32 %v2298_v57, %v2582_v36  ;;  %v2583_v13 = vunpack.c.h.bf16 %v2581_v51 }
 0x10b   :  { %vm169_vm6 = vcmp.ge.f32.partialorder %v153_v9, 0.0  ;;  %vm170_vm7 = vcmp.ge.f32.partialorder %v154_v62, 0.0  ;;  %v185_v39 = vmul.f32 0.2, %v153_v9  ;;  %v186_v20 = vmul.f32 0.2, %v154_v62 }
 0x10c   :  { %vm266_vm8 = vcmp.ge.f32.partialorder %v250_v3, 0.0  ;;  %vm267_vm9 = vcmp.ge.f32.partialorder %v251_v7, 0.0  ;;  %1003 = vst.msk [vmem:[%s2416_s2 + $0x40] sm:$0xff] %vm994_vm10, %v986_v11  ;;  %1004 = vst.msk [vmem:[%s2416_s2 + $0x48] sm:$0xff] %vm994_vm10, %v987_v6  ;;  %v282_v32 = vmul.f32 0.2, %v250_v3  ;;  %v364_v50 = vadd.f32 %v2296_v10, %v2583_v13 }
 0x10d   :  { %v283_v16 = vmul.f32 0.2, %v251_v7  ;;  %v201_v41 = vsel %vm169_vm6, %v153_v9, %v185_v39  ;;  %v202_v37 = vsel %vm170_vm7, %v154_v62, %v186_v20  ;;  %v2585_v31 = vunpack.c.l.bf16 %v2584_v33  ;;  %v1518_v9 = vpop.permute.xlu0 %1517  ;;  %v1427_v6 = vld [vmem:[%s2415_s0 + $0x30] sm:$0xff]  }
 0x10e   :  { %v2586_v8 = vunpack.c.h.bf16 %v2584_v33  ;;  %v298_v28 = vsel %vm266_vm8, %v250_v3, %v282_v32  ;;  %vm379_vm11 = vcmp.ge.f32.partialorder %v363_v0, 0.0  ;;  %vm380_vm12 = vcmp.ge.f32.partialorder %v364_v50, 0.0  ;;  %v1435_v32 = vld [vmem:[%s2415_s0 + $0x70] sm:$0xff]  }
 0x10f   :  { %v476_v60 = vadd.f32 %v2298_v57, %v2585_v31  ;;  %v299_v21 = vsel %vm267_vm9, %v251_v7, %v283_v16  ;;  %v314_v22 = vmax.f32 %v201_v41, %v298_v28  ;;  %v395_v4 = vmul.f32 0.2, %v363_v0 }
 0x110   :  { %v477_v12 = vadd.f32 %v2296_v10, %v2586_v8  ;;  %v315_v49 = vmax.f32 %v202_v37, %v299_v21  ;;  %v396_v17 = vmul.f32 0.2, %v364_v50  ;;  %v2588_v34 = vunpack.c.l.bf16 %v2587_v47 }
 0x111   :  { %vm492_vm13 = vcmp.ge.f32.partialorder %v476_v60, 0.0  ;;  %v508_v1 = vmul.f32 0.2, %v476_v60  ;;  %v411_v26 = vsel %vm379_vm11, %v363_v0, %v395_v4  ;;  %v2589_v63 = vunpack.c.h.bf16 %v2587_v47 }
 0x112   :  { %vm493_vm14 = vcmp.ge.f32.partialorder %v477_v12, 0.0  ;;  %v509_v59 = vmul.f32 0.2, %v477_v12  ;;  %v412_v25 = vsel %vm380_vm12, %v364_v50, %v396_v17  ;;  %v589_v35 = vadd.f32 %v2298_v57, %v2588_v34 }
 0x113   :  { %v590_v61 = vadd.f32 %v2296_v10, %v2589_v63  ;;  %v427_v53 = vmax.f32 %v314_v22, %v411_v26  ;;  %v428_v42 = vmax.f32 %v315_v49, %v412_v25  ;;  %v524_v56 = vsel %vm492_vm13, %v476_v60, %v508_v1 }
 0x114   :  { %v525_v23 = vsel %vm493_vm14, %v477_v12, %v509_v59  ;;  %vm605_vm15 = vcmp.ge.f32.partialorder %v589_v35, 0.0  ;;  %v621_v14 = vmul.f32 0.2, %v589_v35  ;;  %v2591_v46 = vunpack.c.l.bf16 %v2590_v2  ;;  %v1443_v12 = vld [vmem:[%s2415_s0 + $0xb0] sm:$0xff]  }
 0x115   :  { %vm606_vm0 = vcmp.ge.f32.partialorder %v590_v61, 0.0  ;;  %v622_v58 = vmul.f32 0.2, %v590_v61  ;;  %v540_v27 = vmax.f32 %v427_v53, %v524_v56  ;;  %v541_v54 = vmax.f32 %v428_v42, %v525_v23 }
 0x116   :  { %v702_v38 = vadd.f32 %v2298_v57, %v2591_v46  ;;  %v2592_v44 = vunpack.c.h.bf16 %v2590_v2  ;;  %v637_v40 = vsel %vm605_vm15, %v589_v35, %v621_v14  ;;  %v1381_v48 = vunpack.c.l.bf16 %v1476_v30  ;;  %v1459_v46 = vld [vmem:[%s2415_s0 + $0x130] sm:$0xff]  }
 0x117   :  { %v638_v18 = vsel %vm606_vm0, %v590_v61, %v622_v58  ;;  %v1382_v43 = vunpack.c.h.bf16 %v1476_v30  ;;  %v653_v55 = vmax.f32 %v540_v27, %v637_v40  ;;  %v1413_v3 = vunpack.c.l.bf16 %v1484_v45  ;;  %v1451_v61 = vld [vmem:[%s2415_s0 + $0xf0] sm:$0xff]  }
 0x118   :  { %v703_v15 = vadd.f32 %v2296_v10, %v2592_v44  ;;  %v654_v62 = vmax.f32 %v541_v54, %v638_v18  ;;  %vm718_vm1 = vcmp.ge.f32.partialorder %v702_v38, 0.0  ;;  %v734_v29 = vmul.f32 0.2, %v702_v38 }
 0x119   :  { %v815_v19 = vadd.f32 %v2298_v57, %v1381_v48  ;;  %v816_v24 = vadd.f32 %v2296_v10, %v1382_v43  ;;  %v1414_v52 = vunpack.c.h.bf16 %v1484_v45  ;;  %v2352_v7 = vunpack.i.h.bf16 %v1518_v9 }
 0x11a   :  { %vm719_vm2 = vcmp.ge.f32.partialorder %v703_v15, 0.0  ;;  %v735_v5 = vmul.f32 0.2, %v703_v15  ;;  %v2354_v11 = vunpack.i.l.bf16 %v1518_v9  ;;  %v750_v39 = vsel %vm718_vm1, %v702_v38, %v734_v29  ;;  %v1467_v38 = vld [vmem:[%s2415_s0 + $0x170] sm:$0xff]  }
 0x11b   :  { %vm831_vm3 = vcmp.ge.f32.partialorder %v815_v19, 0.0  ;;  %vm832_vm4 = vcmp.ge.f32.partialorder %v816_v24, 0.0  ;;  %v766_v16 = vmax.f32 %v653_v55, %v750_v39  ;;  %v847_v36 = vmul.f32 0.2, %v815_v19 }
 0x11c   :  { %v751_v20 = vsel %vm719_vm2, %v703_v15, %v735_v5  ;;  %v848_v0 = vmul.f32 0.2, %v816_v24  ;;  %v928_v13 = vadd.f32 %v2298_v57, %v1413_v3  ;;  %v929_v50 = vadd.f32 %v2296_v10, %v1414_v52 }
 0x11d   :  { %v767_v51 = vmax.f32 %v654_v62, %v751_v20  ;;  %v1185_v41 = vunpack.c.l.bf16 %v1427_v6  ;;  %v1186_v37 = vunpack.c.h.bf16 %v1427_v6  ;;  %v863_v33 = vsel %vm831_vm3, %v815_v19, %v847_v36  ;;  %v1475_v19 = vld [vmem:[%s2415_s0 + $0x1b0] sm:$0xff]  }
 0x11e   :  { %v864_v31 = vsel %vm832_vm4, %v816_v24, %v848_v0  ;;  %v1217_v60 = vunpack.c.l.bf16 %v1435_v32  ;;  %v1218_v8 = vunpack.c.h.bf16 %v1435_v32  ;;  %v879_v28 = vmax.f32 %v766_v16, %v863_v33 }
 0x11f   :  { %v880_v21 = vmax.f32 %v767_v51, %v864_v31  ;;  %vm944_vm5 = vcmp.ge.f32.partialorder %v928_v13, 0.0  ;;  %vm945_vm6 = vcmp.ge.f32.partialorder %v929_v50, 0.0  ;;  %v960_v22 = vmul.f32 0.2, %v928_v13 }
 0x120   :  { %v961_v49 = vmul.f32 0.2, %v929_v50  ;;  %v151_v57 = vadd.f32 %v2354_v11, %v1185_v41  ;;  %v152_v10 = vadd.f32 %v2352_v7, %v1186_v37  ;;  %v248_v4 = vadd.f32 %v2354_v11, %v1217_v60  ;;  %v1483_v37 = vld [vmem:[%s2415_s0 + $0x1f0] sm:$0xff]  }
 0x121   :  { %v249_v17 = vadd.f32 %v2352_v7, %v1218_v8  ;;  %v1249_v1 = vunpack.c.l.bf16 %v1443_v12  ;;  %v1250_v59 = vunpack.c.h.bf16 %v1443_v12  ;;  %v976_v26 = vsel %vm944_vm5, %v928_v13, %v960_v22 }
 0x122   :  { %v977_v25 = vsel %vm945_vm6, %v929_v50, %v961_v49  ;;  %vm167_vm7 = vcmp.ge.f32.partialorder %v151_v57, 0.0  ;;  %vm168_vm8 = vcmp.ge.f32.partialorder %v152_v10, 0.0  ;;  %v992_v47 = vmax.f32 %v879_v28, %v976_v26 }
 0x123   :  { %v993_v34 = vmax.f32 %v880_v21, %v977_v25  ;;  %v183_v35 = vmul.f32 0.2, %v151_v57  ;;  %v184_v63 = vmul.f32 0.2, %v152_v10  ;;  %vm264_vm9 = vcmp.ge.f32.partialorder %v248_v4, 0.0 }
 0x124   :  { %vm265_vm11 = vcmp.ge.f32.partialorder %v249_v17, 0.0  ;;  %v280_v53 = vmul.f32 0.2, %v248_v4  ;;  %v281_v42 = vmul.f32 0.2, %v249_v17  ;;  %1009 = vst.msk [vmem:[%s2416_s2 + $0x70] sm:$0xff] %vm994_vm10, %v992_v47  ;;  %v361_v30 = vadd.f32 %v2354_v11, %v1249_v1 }
 0x125   :  { %1010 = vst.msk [vmem:[%s2416_s2 + $0x78] sm:$0xff] %vm994_vm10, %v993_v34  ;;  %v199_v56 = vsel %vm167_vm7, %v151_v57, %v183_v35  ;;  %v200_v23 = vsel %vm168_vm8, %v152_v10, %v184_v63  ;;  %v362_v14 = vadd.f32 %v2352_v7, %v1250_v59  ;;  %v1281_v54 = vunpack.c.l.bf16 %v1451_v61 }
 0x126   :  { %v296_v58 = vsel %vm264_vm9, %v248_v4, %v280_v53  ;;  %v297_v27 = vsel %vm265_vm11, %v249_v17, %v281_v42  ;;  %v1282_v2 = vunpack.c.h.bf16 %v1451_v61  ;;  %vm377_vm12 = vcmp.ge.f32.partialorder %v361_v30, 0.0 }
 0x127   :  { %v312_v44 = vmax.f32 %v199_v56, %v296_v58  ;;  %v313_v15 = vmax.f32 %v200_v23, %v297_v27  ;;  %vm378_vm13 = vcmp.ge.f32.partialorder %v362_v14, 0.0  ;;  %v393_v40 = vmul.f32 0.2, %v361_v30 }
 0x128   :  { %v394_v18 = vmul.f32 0.2, %v362_v14  ;;  %v474_v48 = vadd.f32 %v2354_v11, %v1281_v54  ;;  %v475_v43 = vadd.f32 %v2352_v7, %v1282_v2  ;;  %v1313_v45 = vunpack.c.l.bf16 %v1459_v46 }
 0x129   :  { %v1314_v9 = vunpack.c.h.bf16 %v1459_v46  ;;  %v1345_v55 = vunpack.c.l.bf16 %v1467_v38  ;;  %v1346_v62 = vunpack.c.h.bf16 %v1467_v38  ;;  %v409_v29 = vsel %vm377_vm12, %v361_v30, %v393_v40 }
 0x12a   :  { %v410_v5 = vsel %vm378_vm13, %v362_v14, %v394_v18  ;;  %vm490_vm14 = vcmp.ge.f32.partialorder %v474_v48, 0.0  ;;  %vm491_vm15 = vcmp.ge.f32.partialorder %v475_v43, 0.0  ;;  %v425_v24 = vmax.f32 %v312_v44, %v409_v29 }
 0x12b   :  { %v426_v3 = vmax.f32 %v313_v15, %v410_v5  ;;  %v506_v52 = vmul.f32 0.2, %v474_v48  ;;  %v507_v6 = vmul.f32 0.2, %v475_v43  ;;  %v587_v39 = vadd.f32 %v2354_v11, %v1313_v45 }
 0x12c   :  { %v588_v20 = vadd.f32 %v2352_v7, %v1314_v9  ;;  %v700_v32 = vadd.f32 %v2354_v11, %v1345_v55  ;;  %v701_v16 = vadd.f32 %v2352_v7, %v1346_v62  ;;  %v1377_v0 = vunpack.c.l.bf16 %v1475_v19 }
 0x12d   :  { %v522_v51 = vsel %vm490_vm14, %v474_v48, %v506_v52  ;;  %v523_v36 = vsel %vm491_vm15, %v475_v43, %v507_v6  ;;  %v1378_v13 = vunpack.c.h.bf16 %v1475_v19  ;;  %vm603_vm0 = vcmp.ge.f32.partialorder %v587_v39, 0.0 }
 0x12e   :  { %v538_v50 = vmax.f32 %v425_v24, %v522_v51  ;;  %v539_v41 = vmax.f32 %v426_v3, %v523_v36  ;;  %vm604_vm1 = vcmp.ge.f32.partialorder %v588_v20, 0.0  ;;  %v619_v33 = vmul.f32 0.2, %v587_v39 }
 0x12f   :  { %v620_v31 = vmul.f32 0.2, %v588_v20  ;;  %vm716_vm2 = vcmp.ge.f32.partialorder %v700_v32, 0.0  ;;  %vm717_vm3 = vcmp.ge.f32.partialorder %v701_v16, 0.0  ;;  %v732_v60 = vmul.f32 0.2, %v700_v32 }
 0x130   :  { %v733_v8 = vmul.f32 0.2, %v701_v16  ;;  %v813_v12 = vadd.f32 %v2354_v11, %v1377_v0  ;;  %v814_v28 = vadd.f32 %v2352_v7, %v1378_v13  ;;  %v635_v21 = vsel %vm603_vm0, %v587_v39, %v619_v33 }
 0x131   :  { %v636_v22 = vsel %vm604_vm1, %v588_v20, %v620_v31  ;;  %v1409_v49 = vunpack.c.l.bf16 %v1483_v37  ;;  %v1410_v57 = vunpack.c.h.bf16 %v1483_v37  ;;  %v651_v10 = vmax.f32 %v538_v50, %v635_v21 }
 0x132   :  { %v652_v4 = vmax.f32 %v539_v41, %v636_v22  ;;  %v748_v17 = vsel %vm716_vm2, %v700_v32, %v732_v60  ;;  %v749_v1 = vsel %vm717_vm3, %v701_v16, %v733_v8  ;;  %vm829_vm4 = vcmp.ge.f32.partialorder %v813_v12, 0.0 }
 0x133   :  { %vm830_vm5 = vcmp.ge.f32.partialorder %v814_v28, 0.0  ;;  %v845_v59 = vmul.f32 0.2, %v813_v12  ;;  %v846_v26 = vmul.f32 0.2, %v814_v28  ;;  %v764_v25 = vmax.f32 %v651_v10, %v748_v17 }
 0x134   :  { %v765_v47 = vmax.f32 %v652_v4, %v749_v1  ;;  %v926_v34 = vadd.f32 %v2354_v11, %v1409_v49  ;;  %v927_v35 = vadd.f32 %v2352_v7, %v1410_v57 }
 0x135   :  { %v861_v63 = vsel %vm829_vm4, %v813_v12, %v845_v59  ;;  %v862_v61 = vsel %vm830_vm5, %v814_v28, %v846_v26 }
 0x136   :  { %v877_v53 = vmax.f32 %v764_v25, %v861_v63  ;;  %v878_v42 = vmax.f32 %v765_v47, %v862_v61  ;;  %vm942_vm6 = vcmp.ge.f32.partialorder %v926_v34, 0.0  ;;  %vm943_vm7 = vcmp.ge.f32.partialorder %v927_v35, 0.0 }
 0x137   :  { %v958_v56 = vmul.f32 0.2, %v926_v34  ;;  %v959_v23 = vmul.f32 0.2, %v927_v35 }
 0x139   :  { %v974_v30 = vsel %vm942_vm6, %v926_v34, %v958_v56  ;;  %v975_v14 = vsel %vm943_vm7, %v927_v35, %v959_v23 }
 0x13a   :  { %v990_v58 = vmax.f32 %v877_v53, %v974_v30  ;;  %v991_v27 = vmax.f32 %v878_v42, %v975_v14 }
 0x13c   :  { %1007 = vst.msk [vmem:[%s2416_s2 + $0x60] sm:$0xff] %vm994_vm10, %v990_v58  ;;  %1008 = vst.msk [vmem:[%s2416_s2 + $0x68] sm:$0xff] %vm994_vm10, %v991_v27 }

</bundles_post_ra>
